<compile_context>
chip_gen: v7x
topology: tpu7x:2x2x1
jax: 0.10.0
libtpu: 0.0.40
codegen_flags: <defaults>
</compile_context>

<pallas_src>
import jax
import jax.numpy as jnp
from jax.experimental import pallas as pl
from jax.experimental.pallas import tpu as pltpu

BN_EPS = 1e-5
LANE = 128
PAD_C0 = 16                      # canvas interior column origin (bf16 sublane pack = 16)
VMEM_LIMIT = 48 * 1024 * 1024    # explicit scoped-VMEM budget (headroom below v7x 64 MiB)


# ------------------------------ small helpers --------------------------------

def _round_up(x, m):
    return (x + m - 1) // m * m


def _pad_to(a, shape):
    """Zero-pad `a` (trailing) up to `shape`."""
    return jnp.pad(a, [(0, t - s) for s, t in zip(a.shape, shape)])


def _pick_tile(m, c):
    """Row tile for the streaming BN reduction.

    Largest tile <= 2048 rows (and <= ~2 MiB f32 per block) that divides m.
    If m has no clean divisor, fall back to a fixed tile and zero-pad the rows
    (zero rows are inert for sum / sum-of-squares). Returns (tile, padded_m).
    """
    budget = max(8, (2 * 1024 * 1024) // (4 * max(c, 1)))
    for t in (2048, 1024, 512, 256, 128, 64, 32, 16, 8):
        if t <= budget and t <= m and m % t == 0:
            return t, m
    t = _round_up(max(8, min(512, budget)), 8)
    return t, _round_up(m, t)


def _bn_finalize(s, sq, gamma, beta, m):
    """(1,C) sums -> per-channel scale/shift; biased var like PyTorch fwd."""
    mean = s / m
    var = jnp.maximum(sq / m - mean * mean, 0.0)   # clamp: E[x^2]-E[x]^2 cancellation
    inv = jax.lax.rsqrt(var + BN_EPS)
    scale = gamma * inv
    return scale, beta - mean * scale


def _fold_weight(w_hwio, cin_p, cout_p):
    """(3,3,Cin,Cout) -> (3, 3*cin_p, cout_p) bf16; K rows ordered (kw, cin)."""
    w = _pad_to(w_hwio.astype(jnp.float32), (3, 3, cin_p, cout_p))
    return w.reshape(3, 3 * cin_p, cout_p).astype(jnp.bfloat16)


# ------------------------------ Pallas kernels --------------------------------

def _sum_sq_kernel(x_ref, sum_ref, sq_ref):
    """Streaming per-channel sum / sum-of-squares over (TM, C) row tiles."""
    @pl.when(pl.program_id(0) == 0)
    def _init():
        sum_ref[...] = jnp.zeros_like(sum_ref)
        sq_ref[...] = jnp.zeros_like(sq_ref)

    x = x_ref[...].astype(jnp.float32)
    sum_ref[...] += jnp.sum(x, axis=0, keepdims=True)
    sq_ref[...] += jnp.sum(x * x, axis=0, keepdims=True)


def _conv3x3_folded(canvas_ref, w_ref, H, W):
    """3x3 conv as 3 per-kh (H*W, 3C) @ (3C, Cout) bf16 MXU matmuls.

    kw is folded into the K dim via a lane-aligned concat of the 3 shifted taps
    read from the zero-haloed canvas.  Returns an (H*W, Cout) f32 accumulator.
    """
    cp = canvas_ref.shape[2]
    acc = None
    for kh in range(3):
        taps = [canvas_ref[kh:kh + H, PAD_C0 - 1 + kw:PAD_C0 - 1 + kw + W, :]
                for kw in range(3)]
        patch = jnp.concatenate(taps, axis=-1).reshape(H * W, 3 * cp)
        d = jnp.dot(patch, w_ref[kh], preferred_element_type=jnp.float32)
        acc = d if acc is None else acc + d
    return acc


def _bn_relu_conv1_kernel(x_ref, scale_ref, shift_ref, w_ref,
                          o_ref, sum_ref, sq_ref, canvas_ref):
    """h1 = conv3x3(relu(x*scale+shift)); BN2 sum/sum^2 fused into the epilogue.

    Batch grid axis is "arbitrary": the canvas (halo + channel padding) is
    zeroed once at step 0 and the BN2 statistics live in resident output blocks.
    """
    H, W, cin = x_ref.shape[1], x_ref.shape[2], x_ref.shape[3]
    cout = o_ref.shape[3]

    @pl.when(pl.program_id(0) == 0)
    def _init():
        canvas_ref[...] = jnp.zeros_like(canvas_ref)
        sum_ref[...] = jnp.zeros_like(sum_ref)
        sq_ref[...] = jnp.zeros_like(sq_ref)

    # BN1 + ReLU in f32 (VPU), single cast on the aligned canvas store.
    a = jnp.maximum(x_ref[0].astype(jnp.float32) * scale_ref[...] + shift_ref[...], 0.0)
    canvas_ref[1:H + 1, PAD_C0:PAD_C0 + W, :cin] = a.astype(canvas_ref.dtype)

    acc = _conv3x3_folded(canvas_ref, w_ref, H, W)            # (H*W, cout) f32

    # fused BN2 statistics (resident accumulator outputs)
    sum_ref[...] += jnp.sum(acc, axis=0, keepdims=True)
    sq_ref[...] += jnp.sum(acc * acc, axis=0, keepdims=True)

    o_ref[...] = acc.reshape(1, H, W, cout).astype(o_ref.dtype)


def _bn_relu_conv2_skip_kernel(h_ref, scale_ref, shift_ref, w_ref, bias_ref,
                               x_ref, wid_ref, o_ref, canvas_ref):
    """out = conv3x3(relu(h*scale+shift)) + (b2+b_id) + x @ w_id.

    Batch grid axis is "parallel" (megacore-shardable), so only the halo strips
    actually read by the taps are re-zeroed every step; the interior is fully
    overwritten by the aligned full-channel store of the normalized activation.
    """
    H, W = h_ref.shape[1], h_ref.shape[2]
    cin = x_ref.shape[3]
    cout = o_ref.shape[3]
    wc, cp = canvas_ref.shape[1], canvas_ref.shape[2]

    # halo-only zeroing (rows 0 / H+1, columns PAD_C0-1 / PAD_C0+W)
    zrow = jnp.zeros((1, wc, cp), canvas_ref.dtype)
    canvas_ref[0:1] = zrow
    canvas_ref[H + 1:H + 2] = zrow
    zcol = jnp.zeros((H, 1, cp), canvas_ref.dtype)
    canvas_ref[1:H + 1, PAD_C0 - 1:PAD_C0, :] = zcol
    canvas_ref[1:H + 1, PAD_C0 + W:PAD_C0 + W + 1, :] = zcol

    a = jnp.maximum(h_ref[0].astype(jnp.float32) * scale_ref[...] + shift_ref[...], 0.0)
    canvas_ref[1:H + 1, PAD_C0:PAD_C0 + W, :] = a.astype(canvas_ref.dtype)

    acc = _conv3x3_folded(canvas_ref, w_ref, H, W)            # (H*W, cout) f32

    # fused 1x1 identity_map skip + single pre-summed bias
    xs = x_ref[0].reshape(H * W, cin).astype(jnp.bfloat16)
    acc = acc + jnp.dot(xs, wid_ref[...], preferred_element_type=jnp.float32)
    acc = acc + bias_ref[...]
    o_ref[...] = acc.reshape(1, H, W, cout).astype(o_ref.dtype)


# ------------------------------ Pallas wrappers --------------------------------

def bn_sums(x2d):
    """Per-channel (sum, sum^2) over the rows of an (M, C) activation."""
    m, c = x2d.shape
    tm, m_pad = _pick_tile(m, c)
    if m_pad != m:
        x2d = jnp.pad(x2d, ((0, m_pad - m), (0, 0)))          # zero rows are inert
    return pl.pallas_call(
        _sum_sq_kernel,
        out_shape=(jax.ShapeDtypeStruct((1, c), jnp.float32),
                   jax.ShapeDtypeStruct((1, c), jnp.float32)),
        grid=(m_pad // tm,),
        in_specs=[pl.BlockSpec((tm, c), lambda i: (i, 0))],
        out_specs=(pl.BlockSpec((1, c), lambda i: (0, 0)),
                   pl.BlockSpec((1, c), lambda i: (0, 0))),
        compiler_params=pltpu.CompilerParams(
            dimension_semantics=("arbitrary",),
            vmem_limit_bytes=VMEM_LIMIT),
    )(x2d)


def bn_relu_conv1(x_nhwc, scale1, shift1, w1f, cout_p):
    """h1 (bf16, lane-padded channels) + fused BN2 sum / sum^2."""
    B, H, W, cin = x_nhwc.shape
    cin_p = w1f.shape[1] // 3
    return pl.pallas_call(
        _bn_relu_conv1_kernel,
        out_shape=(jax.ShapeDtypeStruct((B, H, W, cout_p), jnp.bfloat16),
                   jax.ShapeDtypeStruct((1, cout_p), jnp.float32),
                   jax.ShapeDtypeStruct((1, cout_p), jnp.float32)),
        grid=(B,),
        in_specs=[pl.BlockSpec((1, H, W, cin), lambda b: (b, 0, 0, 0)),
                  pl.BlockSpec((1, cin), lambda b: (0, 0)),
                  pl.BlockSpec((1, cin), lambda b: (0, 0)),
                  pl.BlockSpec((3, 3 * cin_p, cout_p), lambda b: (0, 0, 0))],
        out_specs=(pl.BlockSpec((1, H, W, cout_p), lambda b: (b, 0, 0, 0)),
                   pl.BlockSpec((1, cout_p), lambda b: (0, 0)),
                   pl.BlockSpec((1, cout_p), lambda b: (0, 0))),
        scratch_shapes=[pltpu.VMEM((H + 2, W + 2 * PAD_C0, cin_p), jnp.bfloat16)],
        compiler_params=pltpu.CompilerParams(
            dimension_semantics=("arbitrary",),      # needed for resident BN2 sums
            vmem_limit_bytes=VMEM_LIMIT),
    )(x_nhwc, scale1, shift1, w1f)


def bn_relu_conv2_skip(h1, scale2, shift2, w2f, b_total, x_nhwc, w_id):
    B, H, W, cmid = h1.shape
    cin = x_nhwc.shape[3]
    cout_p = w2f.shape[2]
    return pl.pallas_call(
        _bn_relu_conv2_skip_kernel,
        out_shape=jax.ShapeDtypeStruct((B, H, W, cout_p), jnp.float32),
        grid=(B,),
        in_specs=[pl.BlockSpec((1, H, W, cmid), lambda b: (b, 0, 0, 0)),
                  pl.BlockSpec((1, cmid), lambda b: (0, 0)),
                  pl.BlockSpec((1, cmid), lambda b: (0, 0)),
                  pl.BlockSpec((3, 3 * cmid, cout_p), lambda b: (0, 0, 0)),
                  pl.BlockSpec((1, cout_p), lambda b: (0, 0)),
                  pl.BlockSpec((1, H, W, cin), lambda b: (b, 0, 0, 0)),
                  pl.BlockSpec((cin, cout_p), lambda b: (0, 0))],
        out_specs=pl.BlockSpec((1, H, W, cout_p), lambda b: (b, 0, 0, 0)),
        scratch_shapes=[pltpu.VMEM((H + 2, W + 2 * PAD_C0, cmid), jnp.bfloat16)],
        compiler_params=pltpu.CompilerParams(
            dimension_semantics=("parallel",),
            vmem_limit_bytes=VMEM_LIMIT),
    )(h1, scale2, shift2, w2f, b_total, x_nhwc, w_id)


# --------------------------------- forward -------------------------------------

def residual_block_forward(x_nchw, params):
    B, Cin, H, W = x_nchw.shape
    Cout = params["w1"].shape[-1]
    Cin_p = _round_up(Cin, LANE)
    Cout_p = _round_up(Cout, LANE)
    M = B * H * W
    f32 = jnp.float32

    # x keeps its true channel count in HBM (read 3x); lane padding happens only
    # inside the kernels' VMEM canvases / matmul K dims.
    x_nhwc = jnp.transpose(x_nchw, (0, 2, 3, 1)).astype(f32)

    g1 = params["bn1_gamma"].astype(f32).reshape(1, Cin)
    be1 = params["bn1_beta"].astype(f32).reshape(1, Cin)
    g2 = _pad_to(params["bn2_gamma"].astype(f32), (Cout_p,)).reshape(1, Cout_p)
    be2 = _pad_to(params["bn2_beta"].astype(f32), (Cout_p,)).reshape(1, Cout_p)

    w1f = _fold_weight(params["w1"], Cin_p, Cout_p)           # (3, 3*Cin_p, Cout_p)
    w2f = _fold_weight(params["w2"], Cout_p, Cout_p)          # (3, 3*Cout_p, Cout_p)
    w_id = _pad_to(params["w_id"].astype(f32), (Cin, Cout_p)).astype(jnp.bfloat16)
    b_total = _pad_to((params["b2"] + params["b_id"]).astype(f32),
                      (Cout_p,)).reshape(1, Cout_p)           # conv2 bias + skip bias

    # batnorm_relu1 statistics (streaming reduction over unpadded x)
    s1, q1 = bn_sums(x_nhwc.reshape(M, Cin))
    scale1, shift1 = _bn_finalize(s1, q1, g1, be1, M)

    # conv_in1 fused with BN1+ReLU; BN2 sums fused into its epilogue; h1 is bf16
    h1, s2, q2 = bn_relu_conv1(x_nhwc, scale1, shift1, w1f, Cout_p)
    scale2, shift2 = _bn_finalize(s2, q2, g2, be2, M)

    # conv_in2 (+bias) fused with BN2+ReLU and the 1x1 identity_map skip
    out = bn_relu_conv2_skip(h1, scale2, shift2, w2f, b_total, x_nhwc, w_id)

    out = out[..., :Cout]                                     # drop channel padding
    return jnp.transpose(out, (0, 3, 1, 2))                   # back to NCHW


# ----------------------------- pure-JAX reference -------------------------------

def reference_forward(x_nchw, params):
    def bn_relu_ref(x, g, b):
        mean = x.mean(axis=(0, 1, 2), keepdims=True)
        var = ((x - mean) ** 2).mean(axis=(0, 1, 2), keepdims=True)
        return jax.nn.relu((x - mean) / jnp.sqrt(var + BN_EPS) * g + b)

    dn = ("NHWC", "HWIO", "NHWC")
    x = jnp.transpose(x_nchw, (0, 2, 3, 1)).astype(jnp.float32)
    Cin = x.shape[-1]
    Cout = params["w1"].shape[-1]

    h = bn_relu_ref(x, params["bn1_gamma"], params["bn1_beta"])
    h = jax.lax.conv_general_dilated(h, params["w1"], (1, 1), "SAME", dimension_numbers=dn)
    h = bn_relu_ref(h, params["bn2_gamma"], params["bn2_beta"])
    h = jax.lax.conv_general_dilated(h, params["w2"], (1, 1), "SAME", dimension_numbers=dn) + params["b2"]
    s = jax.lax.conv_general_dilated(
        x, params["w_id"].reshape(1, 1, Cin, Cout), (1, 1), "SAME", dimension_numbers=dn) + params["b_id"]
    return jnp.transpose(h + s, (0, 3, 1, 2))


# ----------------------------------- main ---------------------------------------

if __name__ == "__main__":
    B, Cin, Cout, H, W = 2, 4, 8, 16, 16

    key = jax.random.PRNGKey(0)
    ks = jax.random.split(key, 10)
    params = {
        "bn1_gamma": 1.0 + 0.1 * jax.random.normal(ks[0], (Cin,), jnp.float32),
        "bn1_beta": 0.1 * jax.random.normal(ks[1], (Cin,), jnp.float32),
        "w1": 0.1 * jax.random.normal(ks[2], (3, 3, Cin, Cout), jnp.float32),   # conv_in1 (no bias)
        "bn2_gamma": 1.0 + 0.1 * jax.random.normal(ks[3], (Cout,), jnp.float32),
        "bn2_beta": 0.1 * jax.random.normal(ks[4], (Cout,), jnp.float32),
        "w2": 0.1 * jax.random.normal(ks[5], (3, 3, Cout, Cout), jnp.float32),  # conv_in2
        "b2": 0.1 * jax.random.normal(ks[6], (Cout,), jnp.float32),
        "w_id": 0.1 * jax.random.normal(ks[7], (Cin, Cout), jnp.float32),       # identity_map 1x1
        "b_id": 0.1 * jax.random.normal(ks[8], (Cout,), jnp.float32),
    }

    x = jax.random.normal(ks[9], (B, Cin, H, W), jnp.float32)

    out = jax.jit(residual_block_forward)(x, params)
    out = jax.block_until_ready(out)
    assert out.shape == (B, Cout, H, W), out.shape

    ref = jax.block_until_ready(reference_forward(x, params))
    max_err = float(jnp.max(jnp.abs(out - ref)))
    # bf16 canvas / bf16 MXU matmul path -> tolerance accordingly
    if max_err > 5e-2:
        raise AssertionError(f"Pallas result deviates from reference, max abs err = {max_err}")

    print("KERNEL_OK")
</pallas_src>

<mosaic_0001>
module attributes {stable_mosaic.version = 11 : i64} {
  func.func @_sum_sq_kernel(%arg0: i32, %arg1: memref<512x4xf32, #tpu.memory_space<vmem>>, %arg2: memref<1x4xf32, #tpu.memory_space<vmem>>, %arg3: memref<1x4xf32, #tpu.memory_space<vmem>>) attributes {dimension_semantics = [#tpu.dimension_semantics<arbitrary>], iteration_bounds = array<i64: 1>, scalar_prefetch = 0 : i64, scratch_operands = 0 : i64, tpu.core_type = #tpu.core_type<tc>, window_params = [{transform_indices = @transform_0, window_bounds = array<i64: 512, 4>}, {pipeline_mode = #tpu.pipeline_mode<synchronous>, transform_indices = @transform_1, window_bounds = array<i64: 1, 4>}, {pipeline_mode = #tpu.pipeline_mode<synchronous>, transform_indices = @transform_2, window_bounds = array<i64: 1, 4>}]} {
    %c0_i32 = arith.constant 0 : i32
    %0 = arith.cmpi eq, %arg0, %c0_i32 : i32
    %1 = arith.extui %0 : i1 to i32
    %c0_i32_0 = arith.constant 0 : i32
    %2 = arith.cmpi ne, %1, %c0_i32_0 : i32
    scf.if %2 {
      %cst_11 = arith.constant 0.000000e+00 : f32
      %15 = vector.broadcast %cst_11 : f32 to vector<1x4xf32>
      %c0_12 = arith.constant 0 : index
      %c0_13 = arith.constant 0 : index
      %16 = vector.load %arg2[%c0_12, %c0_13] : memref<1x4xf32, #tpu.memory_space<vmem>>, vector<1x4xf32>
      tpu.vector_store %arg2[%c0_12, %c0_13], %15 {strides = array<i32>} : memref<1x4xf32, #tpu.memory_space<vmem>>, vector<1x4xf32>,
      %cst_14 = arith.constant 0.000000e+00 : f32
      %17 = vector.broadcast %cst_14 : f32 to vector<1x4xf32>
      %c0_15 = arith.constant 0 : index
      %c0_16 = arith.constant 0 : index
      %18 = vector.load %arg3[%c0_15, %c0_16] : memref<1x4xf32, #tpu.memory_space<vmem>>, vector<1x4xf32>
      tpu.vector_store %arg3[%c0_15, %c0_16], %17 {strides = array<i32>} : memref<1x4xf32, #tpu.memory_space<vmem>>, vector<1x4xf32>,
    } else {
    }
    %c0 = arith.constant 0 : index
    %c0_1 = arith.constant 0 : index
    %3 = vector.load %arg1[%c0, %c0_1] : memref<512x4xf32, #tpu.memory_space<vmem>>, vector<512x4xf32>
    %c0_2 = arith.constant 0 : index
    %c0_3 = arith.constant 0 : index
    %4 = vector.load %arg2[%c0_2, %c0_3] : memref<1x4xf32, #tpu.memory_space<vmem>>, vector<1x4xf32>
    %cst = arith.constant dense<0.000000e+00> : vector<4xf32>
    %5 = vector.multi_reduction <add>, %3, %cst [0] : vector<512x4xf32> to vector<4xf32>
    %6 = vector.shape_cast %5 : vector<4xf32> to vector<1x4xf32>
    %7 = arith.addf %4, %6 : vector<1x4xf32>
    %c0_4 = arith.constant 0 : index
    %c0_5 = arith.constant 0 : index
    %8 = vector.load %arg2[%c0_4, %c0_5] : memref<1x4xf32, #tpu.memory_space<vmem>>, vector<1x4xf32>
    tpu.vector_store %arg2[%c0_4, %c0_5], %7 {strides = array<i32>} : memref<1x4xf32, #tpu.memory_space<vmem>>, vector<1x4xf32>,
    %c0_6 = arith.constant 0 : index
    %c0_7 = arith.constant 0 : index
    %9 = vector.load %arg3[%c0_6, %c0_7] : memref<1x4xf32, #tpu.memory_space<vmem>>, vector<1x4xf32>
    %10 = arith.mulf %3, %3 : vector<512x4xf32>
    %cst_8 = arith.constant dense<0.000000e+00> : vector<4xf32>
    %11 = vector.multi_reduction <add>, %10, %cst_8 [0] : vector<512x4xf32> to vector<4xf32>
    %12 = vector.shape_cast %11 : vector<4xf32> to vector<1x4xf32>
    %13 = arith.addf %9, %12 : vector<1x4xf32>
    %c0_9 = arith.constant 0 : index
    %c0_10 = arith.constant 0 : index
    %14 = vector.load %arg3[%c0_9, %c0_10] : memref<1x4xf32, #tpu.memory_space<vmem>>, vector<1x4xf32>
    tpu.vector_store %arg3[%c0_9, %c0_10], %13 {strides = array<i32>} : memref<1x4xf32, #tpu.memory_space<vmem>>, vector<1x4xf32>,
    return
  }
  func.func @transform_0(%arg0: i32) -> (i32, i32) {
    %c0_i32 = arith.constant 0 : i32
    %c0_i32_0 = arith.constant 0 : i32
    return %arg0, %c0_i32 : i32, i32
  }
  func.func @transform_1(%arg0: i32) -> (i32, i32) {
    %c0_i32 = arith.constant 0 : i32
    %c0_i32_0 = arith.constant 0 : i32
    %c0_i32_1 = arith.constant 0 : i32
    return %c0_i32, %c0_i32_0 : i32, i32
  }
  func.func @transform_2(%arg0: i32) -> (i32, i32) {
    %c0_i32 = arith.constant 0 : i32
    %c0_i32_0 = arith.constant 0 : i32
    %c0_i32_1 = arith.constant 0 : i32
    return %c0_i32, %c0_i32_0 : i32, i32
  }
}

module attributes {stable_mosaic.version = 11 : i64} {
  func.func @_bn_relu_conv1_kernel(%arg0: i32, %arg1: memref<1x16x16x4xf32, #tpu.memory_space<vmem>>, %arg2: memref<1x4xf32, #tpu.memory_space<vmem>>, %arg3: memref<1x4xf32, #tpu.memory_space<vmem>>, %arg4: memref<3x384x128xbf16, #tpu.memory_space<vmem>>, %arg5: memref<1x16x16x128xbf16, #tpu.memory_space<vmem>>, %arg6: memref<1x128xf32, #tpu.memory_space<vmem>>, %arg7: memref<1x128xf32, #tpu.memory_space<vmem>>, %arg8: memref<18x48x128xbf16, #tpu.memory_space<vmem>>) attributes {dimension_semantics = [#tpu.dimension_semantics<arbitrary>], iteration_bounds = array<i64: 2>, scalar_prefetch = 0 : i64, scratch_operands = 1 : i64, tpu.core_type = #tpu.core_type<tc>, window_params = [{transform_indices = @transform_0, window_bounds = array<i64: 1, 16, 16, 4>}, {pipeline_mode = #tpu.pipeline_mode<synchronous>, transform_indices = @transform_1, window_bounds = array<i64: 1, 4>}, {pipeline_mode = #tpu.pipeline_mode<synchronous>, transform_indices = @transform_2, window_bounds = array<i64: 1, 4>}, {pipeline_mode = #tpu.pipeline_mode<synchronous>, transform_indices = @transform_3, window_bounds = array<i64: 3, 384, 128>}, {transform_indices = @transform_4, window_bounds = array<i64: 1, 16, 16, 128>}, {pipeline_mode = #tpu.pipeline_mode<synchronous>, transform_indices = @transform_5, window_bounds = array<i64: 1, 128>}, {pipeline_mode = #tpu.pipeline_mode<synchronous>, transform_indices = @transform_6, window_bounds = array<i64: 1, 128>}]} {
    %c0_i32 = arith.constant 0 : i32
    %0 = arith.cmpi eq, %arg0, %c0_i32 : i32
    %1 = arith.extui %0 : i1 to i32
    %c0_i32_0 = arith.constant 0 : i32
    %2 = arith.cmpi ne, %1, %c0_i32_0 : i32
    scf.if %2 {
      %cst_59 = arith.constant 0.000000e+00 : bf16
      %57 = vector.broadcast %cst_59 : bf16 to vector<18x48x128xbf16>
      %c0_60 = arith.constant 0 : index
      %c0_61 = arith.constant 0 : index
      %c0_62 = arith.constant 0 : index
      %58 = vector.load %arg8[%c0_60, %c0_61, %c0_62] : memref<18x48x128xbf16, #tpu.memory_space<vmem>>, vector<18x48x128xbf16>
      tpu.vector_store %arg8[%c0_60, %c0_61, %c0_62], %57 {strides = array<i32>} : memref<18x48x128xbf16, #tpu.memory_space<vmem>>, vector<18x48x128xbf16>,
      %cst_63 = arith.constant 0.000000e+00 : f32
      %59 = vector.broadcast %cst_63 : f32 to vector<1x128xf32>
      %c0_64 = arith.constant 0 : index
      %c0_65 = arith.constant 0 : index
      %60 = vector.load %arg6[%c0_64, %c0_65] : memref<1x128xf32, #tpu.memory_space<vmem>>, vector<1x128xf32>
      tpu.vector_store %arg6[%c0_64, %c0_65], %59 {strides = array<i32>} : memref<1x128xf32, #tpu.memory_space<vmem>>, vector<1x128xf32>,
      %cst_66 = arith.constant 0.000000e+00 : f32
      %61 = vector.broadcast %cst_66 : f32 to vector<1x128xf32>
      %c0_67 = arith.constant 0 : index
      %c0_68 = arith.constant 0 : index
      %62 = vector.load %arg7[%c0_67, %c0_68] : memref<1x128xf32, #tpu.memory_space<vmem>>, vector<1x128xf32>
      tpu.vector_store %arg7[%c0_67, %c0_68], %61 {strides = array<i32>} : memref<1x128xf32, #tpu.memory_space<vmem>>, vector<1x128xf32>,
    } else {
    }
    %c0 = arith.constant 0 : index
    %c0_1 = arith.constant 0 : index
    %c0_2 = arith.constant 0 : index
    %c0_3 = arith.constant 0 : index
    %3 = vector.load %arg1[%c0, %c0_1, %c0_2, %c0_3] : memref<1x16x16x4xf32, #tpu.memory_space<vmem>>, vector<1x16x16x4xf32>
    %4 = vector.shape_cast %3 : vector<1x16x16x4xf32> to vector<16x16x4xf32>
    %c0_4 = arith.constant 0 : index
    %c0_5 = arith.constant 0 : index
    %5 = vector.load %arg2[%c0_4, %c0_5] : memref<1x4xf32, #tpu.memory_space<vmem>>, vector<1x4xf32>
    %6 = vector.shape_cast %5 : vector<1x4xf32> to vector<1x1x4xf32>
    %7 = vector.broadcast %6 : vector<1x1x4xf32> to vector<16x16x4xf32>
    %8 = arith.mulf %4, %7 : vector<16x16x4xf32>
    %c0_6 = arith.constant 0 : index
    %c0_7 = arith.constant 0 : index
    %9 = vector.load %arg3[%c0_6, %c0_7] : memref<1x4xf32, #tpu.memory_space<vmem>>, vector<1x4xf32>
    %10 = vector.shape_cast %9 : vector<1x4xf32> to vector<1x1x4xf32>
    %11 = vector.broadcast %10 : vector<1x1x4xf32> to vector<16x16x4xf32>
    %12 = arith.addf %8, %11 : vector<16x16x4xf32>
    %cst = arith.constant 0.000000e+00 : f32
    %13 = vector.broadcast %cst : f32 to vector<16x16x4xf32>
    %14 = arith.maximumf %12, %13 : vector<16x16x4xf32>
    %15 = arith.truncf %14 : vector<16x16x4xf32> to vector<16x16x4xbf16>
    %c1 = arith.constant 1 : index
    %c16 = arith.constant 16 : index
    %c0_8 = arith.constant 0 : index
    %16 = vector.load %arg8[%c1, %c16, %c0_8] : memref<18x48x128xbf16, #tpu.memory_space<vmem>>, vector<16x16x4xbf16>
    tpu.vector_store %arg8[%c1, %c16, %c0_8], %15 {strides = array<i32>} : memref<18x48x128xbf16, #tpu.memory_space<vmem>>, vector<16x16x4xbf16>,
    %c0_9 = arith.constant 0 : index
    %c15 = arith.constant 15 : index
    %c0_10 = arith.constant 0 : index
    %17 = vector.load %arg8[%c0_9, %c15, %c0_10] : memref<18x48x128xbf16, #tpu.memory_space<vmem>>, vector<16x16x128xbf16>
    %c0_11 = arith.constant 0 : index
    %c16_12 = arith.constant 16 : index
    %c0_13 = arith.constant 0 : index
    %18 = vector.load %arg8[%c0_11, %c16_12, %c0_13] : memref<18x48x128xbf16, #tpu.memory_space<vmem>>, vector<16x16x128xbf16>
    %c0_14 = arith.constant 0 : index
    %c17 = arith.constant 17 : index
    %c0_15 = arith.constant 0 : index
    %19 = vector.load %arg8[%c0_14, %c17, %c0_15] : memref<18x48x128xbf16, #tpu.memory_space<vmem>>, vector<16x16x128xbf16>
    %20 = tpu.concatenate %17, %18, %19 in 2 : vector<16x16x128xbf16>, vector<16x16x128xbf16>, vector<16x16x128xbf16> -> vector<16x16x384xbf16>
    %21 = vector.shape_cast %20 : vector<16x16x384xbf16> to vector<256x384xbf16>
    %c0_16 = arith.constant 0 : index
    %c0_17 = arith.constant 0 : index
    %c0_18 = arith.constant 0 : index
    %22 = vector.load %arg4[%c0_16, %c0_17, %c0_18] : memref<3x384x128xbf16, #tpu.memory_space<vmem>>, vector<1x384x128xbf16>
    %23 = vector.shape_cast %22 : vector<1x384x128xbf16> to vector<384x128xbf16>
    %cst_19 = arith.constant dense<0.000000e+00> : vector<256x128xf32>
    %24 = tpu.matmul %21, %23, %cst_19 {dimension_numbers = #tpu.dot_dimension_numbers<[1], [0], [0], [1], [0, 0, 1, 1], [], []>} : vector<256x384xbf16>, vector<384x128xbf16>, vector<256x128xf32> -> vector<256x128xf32>
    %c1_20 = arith.constant 1 : index
    %c15_21 = arith.constant 15 : index
    %c0_22 = arith.constant 0 : index
    %25 = vector.load %arg8[%c1_20, %c15_21, %c0_22] : memref<18x48x128xbf16, #tpu.memory_space<vmem>>, vector<16x16x128xbf16>
    %c1_23 = arith.constant 1 : index
    %c16_24 = arith.constant 16 : index
    %c0_25 = arith.constant 0 : index
    %26 = vector.load %arg8[%c1_23, %c16_24, %c0_25] : memref<18x48x128xbf16, #tpu.memory_space<vmem>>, vector<16x16x128xbf16>
    %c1_26 = arith.constant 1 : index
    %c17_27 = arith.constant 17 : index
    %c0_28 = arith.constant 0 : index
    %27 = vector.load %arg8[%c1_26, %c17_27, %c0_28] : memref<18x48x128xbf16, #tpu.memory_space<vmem>>, vector<16x16x128xbf16>
    %28 = tpu.concatenate %25, %26, %27 in 2 : vector<16x16x128xbf16>, vector<16x16x128xbf16>, vector<16x16x128xbf16> -> vector<16x16x384xbf16>
    %29 = vector.shape_cast %28 : vector<16x16x384xbf16> to vector<256x384xbf16>
    %c1_29 = arith.constant 1 : index
    %c0_30 = arith.constant 0 : index
    %c0_31 = arith.constant 0 : index
    %30 = vector.load %arg4[%c1_29, %c0_30, %c0_31] : memref<3x384x128xbf16, #tpu.memory_space<vmem>>, vector<1x384x128xbf16>
    %31 = vector.shape_cast %30 : vector<1x384x128xbf16> to vector<384x128xbf16>
    %cst_32 = arith.constant dense<0.000000e+00> : vector<256x128xf32>
    %32 = tpu.matmul %29, %31, %cst_32 {dimension_numbers = #tpu.dot_dimension_numbers<[1], [0], [0], [1], [0, 0, 1, 1], [], []>} : vector<256x384xbf16>, vector<384x128xbf16>, vector<256x128xf32> -> vector<256x128xf32>
    %33 = arith.addf %24, %32 : vector<256x128xf32>
    %c2 = arith.constant 2 : index
    %c15_33 = arith.constant 15 : index
    %c0_34 = arith.constant 0 : index
    %34 = vector.load %arg8[%c2, %c15_33, %c0_34] : memref<18x48x128xbf16, #tpu.memory_space<vmem>>, vector<16x16x128xbf16>
    %c2_35 = arith.constant 2 : index
    %c16_36 = arith.constant 16 : index
    %c0_37 = arith.constant 0 : index
    %35 = vector.load %arg8[%c2_35, %c16_36, %c0_37] : memref<18x48x128xbf16, #tpu.memory_space<vmem>>, vector<16x16x128xbf16>
    %c2_38 = arith.constant 2 : index
    %c17_39 = arith.constant 17 : index
    %c0_40 = arith.constant 0 : index
    %36 = vector.load %arg8[%c2_38, %c17_39, %c0_40] : memref<18x48x128xbf16, #tpu.memory_space<vmem>>, vector<16x16x128xbf16>
    %37 = tpu.concatenate %34, %35, %36 in 2 : vector<16x16x128xbf16>, vector<16x16x128xbf16>, vector<16x16x128xbf16> -> vector<16x16x384xbf16>
    %38 = vector.shape_cast %37 : vector<16x16x384xbf16> to vector<256x384xbf16>
    %c2_41 = arith.constant 2 : index
    %c0_42 = arith.constant 0 : index
    %c0_43 = arith.constant 0 : index
    %39 = vector.load %arg4[%c2_41, %c0_42, %c0_43] : memref<3x384x128xbf16, #tpu.memory_space<vmem>>, vector<1x384x128xbf16>
    %40 = vector.shape_cast %39 : vector<1x384x128xbf16> to vector<384x128xbf16>
    %cst_44 = arith.constant dense<0.000000e+00> : vector<256x128xf32>
    %41 = tpu.matmul %38, %40, %cst_44 {dimension_numbers = #tpu.dot_dimension_numbers<[1], [0], [0], [1], [0, 0, 1, 1], [], []>} : vector<256x384xbf16>, vector<384x128xbf16>, vector<256x128xf32> -> vector<256x128xf32>
    %42 = arith.addf %33, %41 : vector<256x128xf32>
    %c0_45 = arith.constant 0 : index
    %c0_46 = arith.constant 0 : index
    %43 = vector.load %arg6[%c0_45, %c0_46] : memref<1x128xf32, #tpu.memory_space<vmem>>, vector<1x128xf32>
    %cst_47 = arith.constant dense<0.000000e+00> : vector<128xf32>
    %44 = vector.multi_reduction <add>, %42, %cst_47 [0] : vector<256x128xf32> to vector<128xf32>
    %45 = vector.shape_cast %44 : vector<128xf32> to vector<1x128xf32>
    %46 = arith.addf %43, %45 : vector<1x128xf32>
    %c0_48 = arith.constant 0 : index
    %c0_49 = arith.constant 0 : index
    %47 = vector.load %arg6[%c0_48, %c0_49] : memref<1x128xf32, #tpu.memory_space<vmem>>, vector<1x128xf32>
    tpu.vector_store %arg6[%c0_48, %c0_49], %46 {strides = array<i32>} : memref<1x128xf32, #tpu.memory_space<vmem>>, vector<1x128xf32>,
    %c0_50 = arith.constant 0 : index
    %c0_51 = arith.constant 0 : index
    %48 = vector.load %arg7[%c0_50, %c0_51] : memref<1x128xf32, #tpu.memory_space<vmem>>, vector<1x128xf32>
    %49 = arith.mulf %42, %42 : vector<256x128xf32>
    %cst_52 = arith.constant dense<0.000000e+00> : vector<128xf32>
    %50 = vector.multi_reduction <add>, %49, %cst_52 [0] : vector<256x128xf32> to vector<128xf32>
    %51 = vector.shape_cast %50 : vector<128xf32> to vector<1x128xf32>
    %52 = arith.addf %48, %51 : vector<1x128xf32>
    %c0_53 = arith.constant 0 : index
    %c0_54 = arith.constant 0 : index
    %53 = vector.load %arg7[%c0_53, %c0_54] : memref<1x128xf32, #tpu.memory_space<vmem>>, vector<1x128xf32>
    tpu.vector_store %arg7[%c0_53, %c0_54], %52 {strides = array<i32>} : memref<1x128xf32, #tpu.memory_space<vmem>>, vector<1x128xf32>,
    %54 = vector.shape_cast %42 : vector<256x128xf32> to vector<1x16x16x128xf32>
    %55 = arith.truncf %54 : vector<1x16x16x128xf32> to vector<1x16x16x128xbf16>
    %c0_55 = arith.constant 0 : index
    %c0_56 = arith.constant 0 : index
    %c0_57 = arith.constant 0 : index
    %c0_58 = arith.constant 0 : index
    %56 = vector.load %arg5[%c0_55, %c0_56, %c0_57, %c0_58] : memref<1x16x16x128xbf16, #tpu.memory_space<vmem>>, vector<1x16x16x128xbf16>
    tpu.vector_store %arg5[%c0_55, %c0_56, %c0_57, %c0_58], %55 {strides = array<i32>} : memref<1x16x16x128xbf16, #tpu.memory_space<vmem>>, vector<1x16x16x128xbf16>,
    return
  }
  func.func @transform_0(%arg0: i32) -> (i32, i32, i32, i32) {
    %c0_i32 = arith.constant 0 : i32
    %c0_i32_0 = arith.constant 0 : i32
    %c0_i32_1 = arith.constant 0 : i32
    %c0_i32_2 = arith.constant 0 : i32
    return %arg0, %c0_i32, %c0_i32_0, %c0_i32_1 : i32, i32, i32, i32
  }
  func.func @transform_1(%arg0: i32) -> (i32, i32) {
    %c0_i32 = arith.constant 0 : i32
    %c0_i32_0 = arith.constant 0 : i32
    %c0_i32_1 = arith.constant 0 : i32
    return %c0_i32, %c0_i32_0 : i32, i32
  }
  func.func @transform_2(%arg0: i32) -> (i32, i32) {
    %c0_i32 = arith.constant 0 : i32
    %c0_i32_0 = arith.constant 0 : i32
    %c0_i32_1 = arith.constant 0 : i32
    return %c0_i32, %c0_i32_0 : i32, i32
  }
  func.func @transform_3(%arg0: i32) -> (i32, i32, i32) {
    %c0_i32 = arith.constant 0 : i32
    %c0_i32_0 = arith.constant 0 : i32
    %c0_i32_1 = arith.constant 0 : i32
    %c0_i32_2 = arith.constant 0 : i32
    return %c0_i32, %c0_i32_0, %c0_i32_1 : i32, i32, i32
  }
  func.func @transform_4(%arg0: i32) -> (i32, i32, i32, i32) {
    %c0_i32 = arith.constant 0 : i32
    %c0_i32_0 = arith.constant 0 : i32
    %c0_i32_1 = arith.constant 0 : i32
    %c0_i32_2 = arith.constant 0 : i32
    return %arg0, %c0_i32, %c0_i32_0, %c0_i32_1 : i32, i32, i32, i32
  }
  func.func @transform_5(%arg0: i32) -> (i32, i32) {
    %c0_i32 = arith.constant 0 : i32
    %c0_i32_0 = arith.constant 0 : i32
    %c0_i32_1 = arith.constant 0 : i32
    return %c0_i32, %c0_i32_0 : i32, i32
  }
  func.func @transform_6(%arg0: i32) -> (i32, i32) {
    %c0_i32 = arith.constant 0 : i32
    %c0_i32_0 = arith.constant 0 : i32
    %c0_i32_1 = arith.constant 0 : i32
    return %c0_i32, %c0_i32_0 : i32, i32
  }
}

module attributes {stable_mosaic.version = 11 : i64} {
  func.func @_bn_relu_conv2_skip_kernel(%arg0: i32, %arg1: memref<1x16x16x128xbf16, #tpu.memory_space<vmem>>, %arg2: memref<1x128xf32, #tpu.memory_space<vmem>>, %arg3: memref<1x128xf32, #tpu.memory_space<vmem>>, %arg4: memref<3x384x128xbf16, #tpu.memory_space<vmem>>, %arg5: memref<1x128xf32, #tpu.memory_space<vmem>>, %arg6: memref<1x16x16x4xf32, #tpu.memory_space<vmem>>, %arg7: memref<4x128xbf16, #tpu.memory_space<vmem>>, %arg8: memref<1x16x16x128xf32, #tpu.memory_space<vmem>>, %arg9: memref<18x48x128xbf16, #tpu.memory_space<vmem>>) attributes {dimension_semantics = [#tpu.dimension_semantics<parallel>], iteration_bounds = array<i64: 2>, scalar_prefetch = 0 : i64, scratch_operands = 1 : i64, tpu.core_type = #tpu.core_type<tc>, window_params = [{transform_indices = @transform_0, window_bounds = array<i64: 1, 16, 16, 128>}, {pipeline_mode = #tpu.pipeline_mode<synchronous>, transform_indices = @transform_1, window_bounds = array<i64: 1, 128>}, {pipeline_mode = #tpu.pipeline_mode<synchronous>, transform_indices = @transform_2, window_bounds = array<i64: 1, 128>}, {pipeline_mode = #tpu.pipeline_mode<synchronous>, transform_indices = @transform_3, window_bounds = array<i64: 3, 384, 128>}, {pipeline_mode = #tpu.pipeline_mode<synchronous>, transform_indices = @transform_4, window_bounds = array<i64: 1, 128>}, {transform_indices = @transform_5, window_bounds = array<i64: 1, 16, 16, 4>}, {pipeline_mode = #tpu.pipeline_mode<synchronous>, transform_indices = @transform_6, window_bounds = array<i64: 4, 128>}, {transform_indices = @transform_7, window_bounds = array<i64: 1, 16, 16, 128>}]} {
    %cst = arith.constant 0.000000e+00 : bf16
    %0 = vector.broadcast %cst : bf16 to vector<1x48x128xbf16>
    %c0 = arith.constant 0 : index
    %c0_0 = arith.constant 0 : index
    %c0_1 = arith.constant 0 : index
    %1 = vector.load %arg9[%c0, %c0_0, %c0_1] : memref<18x48x128xbf16, #tpu.memory_space<vmem>>, vector<1x48x128xbf16>
    tpu.vector_store %arg9[%c0, %c0_0, %c0_1], %0 {strides = array<i32>} : memref<18x48x128xbf16, #tpu.memory_space<vmem>>, vector<1x48x128xbf16>,
    %c17 = arith.constant 17 : index
    %c0_2 = arith.constant 0 : index
    %c0_3 = arith.constant 0 : index
    %2 = vector.load %arg9[%c17, %c0_2, %c0_3] : memref<18x48x128xbf16, #tpu.memory_space<vmem>>, vector<1x48x128xbf16>
    tpu.vector_store %arg9[%c17, %c0_2, %c0_3], %0 {strides = array<i32>} : memref<18x48x128xbf16, #tpu.memory_space<vmem>>, vector<1x48x128xbf16>,
    %cst_4 = arith.constant 0.000000e+00 : bf16
    %3 = vector.broadcast %cst_4 : bf16 to vector<16x1x128xbf16>
    %c1 = arith.constant 1 : index
    %c15 = arith.constant 15 : index
    %c0_5 = arith.constant 0 : index
    %4 = vector.load %arg9[%c1, %c15, %c0_5] : memref<18x48x128xbf16, #tpu.memory_space<vmem>>, vector<16x1x128xbf16>
    tpu.vector_store %arg9[%c1, %c15, %c0_5], %3 {strides = array<i32>} : memref<18x48x128xbf16, #tpu.memory_space<vmem>>, vector<16x1x128xbf16>,
    %c1_6 = arith.constant 1 : index
    %c32 = arith.constant 32 : index
    %c0_7 = arith.constant 0 : index
    %5 = vector.load %arg9[%c1_6, %c32, %c0_7] : memref<18x48x128xbf16, #tpu.memory_space<vmem>>, vector<16x1x128xbf16>
    tpu.vector_store %arg9[%c1_6, %c32, %c0_7], %3 {strides = array<i32>} : memref<18x48x128xbf16, #tpu.memory_space<vmem>>, vector<16x1x128xbf16>,
    %c0_8 = arith.constant 0 : index
    %c0_9 = arith.constant 0 : index
    %c0_10 = arith.constant 0 : index
    %c0_11 = arith.constant 0 : index
    %6 = vector.load %arg1[%c0_8, %c0_9, %c0_10, %c0_11] : memref<1x16x16x128xbf16, #tpu.memory_space<vmem>>, vector<1x16x16x128xbf16>
    %7 = vector.shape_cast %6 : vector<1x16x16x128xbf16> to vector<16x16x128xbf16>
    %8 = arith.extf %7 : vector<16x16x128xbf16> to vector<16x16x128xf32>
    %c0_12 = arith.constant 0 : index
    %c0_13 = arith.constant 0 : index
    %9 = vector.load %arg2[%c0_12, %c0_13] : memref<1x128xf32, #tpu.memory_space<vmem>>, vector<1x128xf32>
    %10 = vector.shape_cast %9 : vector<1x128xf32> to vector<1x1x128xf32>
    %11 = vector.broadcast %10 : vector<1x1x128xf32> to vector<16x16x128xf32>
    %12 = arith.mulf %8, %11 : vector<16x16x128xf32>
    %c0_14 = arith.constant 0 : index
    %c0_15 = arith.constant 0 : index
    %13 = vector.load %arg3[%c0_14, %c0_15] : memref<1x128xf32, #tpu.memory_space<vmem>>, vector<1x128xf32>
    %14 = vector.shape_cast %13 : vector<1x128xf32> to vector<1x1x128xf32>
    %15 = vector.broadcast %14 : vector<1x1x128xf32> to vector<16x16x128xf32>
    %16 = arith.addf %12, %15 : vector<16x16x128xf32>
    %cst_16 = arith.constant 0.000000e+00 : f32
    %17 = vector.broadcast %cst_16 : f32 to vector<16x16x128xf32>
    %18 = arith.maximumf %16, %17 : vector<16x16x128xf32>
    %19 = arith.truncf %18 : vector<16x16x128xf32> to vector<16x16x128xbf16>
    %c1_17 = arith.constant 1 : index
    %c16 = arith.constant 16 : index
    %c0_18 = arith.constant 0 : index
    %20 = vector.load %arg9[%c1_17, %c16, %c0_18] : memref<18x48x128xbf16, #tpu.memory_space<vmem>>, vector<16x16x128xbf16>
    tpu.vector_store %arg9[%c1_17, %c16, %c0_18], %19 {strides = array<i32>} : memref<18x48x128xbf16, #tpu.memory_space<vmem>>, vector<16x16x128xbf16>,
    %c0_19 = arith.constant 0 : index
    %c15_20 = arith.constant 15 : index
    %c0_21 = arith.constant 0 : index
    %21 = vector.load %arg9[%c0_19, %c15_20, %c0_21] : memref<18x48x128xbf16, #tpu.memory_space<vmem>>, vector<16x16x128xbf16>
    %c0_22 = arith.constant 0 : index
    %c16_23 = arith.constant 16 : index
    %c0_24 = arith.constant 0 : index
    %22 = vector.load %arg9[%c0_22, %c16_23, %c0_24] : memref<18x48x128xbf16, #tpu.memory_space<vmem>>, vector<16x16x128xbf16>
    %c0_25 = arith.constant 0 : index
    %c17_26 = arith.constant 17 : index
    %c0_27 = arith.constant 0 : index
    %23 = vector.load %arg9[%c0_25, %c17_26, %c0_27] : memref<18x48x128xbf16, #tpu.memory_space<vmem>>, vector<16x16x128xbf16>
    %24 = tpu.concatenate %21, %22, %23 in 2 : vector<16x16x128xbf16>, vector<16x16x128xbf16>, vector<16x16x128xbf16> -> vector<16x16x384xbf16>
    %25 = vector.shape_cast %24 : vector<16x16x384xbf16> to vector<256x384xbf16>
    %c0_28 = arith.constant 0 : index
    %c0_29 = arith.constant 0 : index
    %c0_30 = arith.constant 0 : index
    %26 = vector.load %arg4[%c0_28, %c0_29, %c0_30] : memref<3x384x128xbf16, #tpu.memory_space<vmem>>, vector<1x384x128xbf16>
    %27 = vector.shape_cast %26 : vector<1x384x128xbf16> to vector<384x128xbf16>
    %cst_31 = arith.constant dense<0.000000e+00> : vector<256x128xf32>
    %28 = tpu.matmul %25, %27, %cst_31 {dimension_numbers = #tpu.dot_dimension_numbers<[1], [0], [0], [1], [0, 0, 1, 1], [], []>} : vector<256x384xbf16>, vector<384x128xbf16>, vector<256x128xf32> -> vector<256x128xf32>
    %c1_32 = arith.constant 1 : index
    %c15_33 = arith.constant 15 : index
    %c0_34 = arith.constant 0 : index
    %29 = vector.load %arg9[%c1_32, %c15_33, %c0_34] : memref<18x48x128xbf16, #tpu.memory_space<vmem>>, vector<16x16x128xbf16>
    %c1_35 = arith.constant 1 : index
    %c16_36 = arith.constant 16 : index
    %c0_37 = arith.constant 0 : index
    %30 = vector.load %arg9[%c1_35, %c16_36, %c0_37] : memref<18x48x128xbf16, #tpu.memory_space<vmem>>, vector<16x16x128xbf16>
    %c1_38 = arith.constant 1 : index
    %c17_39 = arith.constant 17 : index
    %c0_40 = arith.constant 0 : index
    %31 = vector.load %arg9[%c1_38, %c17_39, %c0_40] : memref<18x48x128xbf16, #tpu.memory_space<vmem>>, vector<16x16x128xbf16>
    %32 = tpu.concatenate %29, %30, %31 in 2 : vector<16x16x128xbf16>, vector<16x16x128xbf16>, vector<16x16x128xbf16> -> vector<16x16x384xbf16>
    %33 = vector.shape_cast %32 : vector<16x16x384xbf16> to vector<256x384xbf16>
    %c1_41 = arith.constant 1 : index
    %c0_42 = arith.constant 0 : index
    %c0_43 = arith.constant 0 : index
    %34 = vector.load %arg4[%c1_41, %c0_42, %c0_43] : memref<3x384x128xbf16, #tpu.memory_space<vmem>>, vector<1x384x128xbf16>
    %35 = vector.shape_cast %34 : vector<1x384x128xbf16> to vector<384x128xbf16>
    %cst_44 = arith.constant dense<0.000000e+00> : vector<256x128xf32>
    %36 = tpu.matmul %33, %35, %cst_44 {dimension_numbers = #tpu.dot_dimension_numbers<[1], [0], [0], [1], [0, 0, 1, 1], [], []>} : vector<256x384xbf16>, vector<384x128xbf16>, vector<256x128xf32> -> vector<256x128xf32>
    %37 = arith.addf %28, %36 : vector<256x128xf32>
    %c2 = arith.constant 2 : index
    %c15_45 = arith.constant 15 : index
    %c0_46 = arith.constant 0 : index
    %38 = vector.load %arg9[%c2, %c15_45, %c0_46] : memref<18x48x128xbf16, #tpu.memory_space<vmem>>, vector<16x16x128xbf16>
    %c2_47 = arith.constant 2 : index
    %c16_48 = arith.constant 16 : index
    %c0_49 = arith.constant 0 : index
    %39 = vector.load %arg9[%c2_47, %c16_48, %c0_49] : memref<18x48x128xbf16, #tpu.memory_space<vmem>>, vector<16x16x128xbf16>
    %c2_50 = arith.constant 2 : index
    %c17_51 = arith.constant 17 : index
    %c0_52 = arith.constant 0 : index
    %40 = vector.load %arg9[%c2_50, %c17_51, %c0_52] : memref<18x48x128xbf16, #tpu.memory_space<vmem>>, vector<16x16x128xbf16>
    %41 = tpu.concatenate %38, %39, %40 in 2 : vector<16x16x128xbf16>, vector<16x16x128xbf16>, vector<16x16x128xbf16> -> vector<16x16x384xbf16>
    %42 = vector.shape_cast %41 : vector<16x16x384xbf16> to vector<256x384xbf16>
    %c2_53 = arith.constant 2 : index
    %c0_54 = arith.constant 0 : index
    %c0_55 = arith.constant 0 : index
    %43 = vector.load %arg4[%c2_53, %c0_54, %c0_55] : memref<3x384x128xbf16, #tpu.memory_space<vmem>>, vector<1x384x128xbf16>
    %44 = vector.shape_cast %43 : vector<1x384x128xbf16> to vector<384x128xbf16>
    %cst_56 = arith.constant dense<0.000000e+00> : vector<256x128xf32>
    %45 = tpu.matmul %42, %44, %cst_56 {dimension_numbers = #tpu.dot_dimension_numbers<[1], [0], [0], [1], [0, 0, 1, 1], [], []>} : vector<256x384xbf16>, vector<384x128xbf16>, vector<256x128xf32> -> vector<256x128xf32>
    %46 = arith.addf %37, %45 : vector<256x128xf32>
    %c0_57 = arith.constant 0 : index
    %c0_58 = arith.constant 0 : index
    %c0_59 = arith.constant 0 : index
    %c0_60 = arith.constant 0 : index
    %47 = vector.load %arg6[%c0_57, %c0_58, %c0_59, %c0_60] : memref<1x16x16x4xf32, #tpu.memory_space<vmem>>, vector<1x16x16x4xf32>
    %48 = vector.shape_cast %47 : vector<1x16x16x4xf32> to vector<16x16x4xf32>
    %49 = vector.shape_cast %48 : vector<16x16x4xf32> to vector<256x4xf32>
    %50 = arith.truncf %49 : vector<256x4xf32> to vector<256x4xbf16>
    %c0_61 = arith.constant 0 : index
    %c0_62 = arith.constant 0 : index
    %51 = vector.load %arg7[%c0_61, %c0_62] : memref<4x128xbf16, #tpu.memory_space<vmem>>, vector<4x128xbf16>
    %cst_63 = arith.constant dense<0.000000e+00> : vector<256x128xf32>
    %52 = tpu.matmul %50, %51, %cst_63 {dimension_numbers = #tpu.dot_dimension_numbers<[1], [0], [0], [1], [0, 0, 1, 1], [], []>} : vector<256x4xbf16>, vector<4x128xbf16>, vector<256x128xf32> -> vector<256x128xf32>
    %53 = arith.addf %46, %52 : vector<256x128xf32>
    %c0_64 = arith.constant 0 : index
    %c0_65 = arith.constant 0 : index
    %54 = vector.load %arg5[%c0_64, %c0_65] : memref<1x128xf32, #tpu.memory_space<vmem>>, vector<1x128xf32>
    %55 = vector.broadcast %54 : vector<1x128xf32> to vector<256x128xf32>
    %56 = arith.addf %53, %55 : vector<256x128xf32>
    %57 = vector.shape_cast %56 : vector<256x128xf32> to vector<1x16x16x128xf32>
    %c0_66 = arith.constant 0 : index
    %c0_67 = arith.constant 0 : index
    %c0_68 = arith.constant 0 : index
    %c0_69 = arith.constant 0 : index
    %58 = vector.load %arg8[%c0_66, %c0_67, %c0_68, %c0_69] : memref<1x16x16x128xf32, #tpu.memory_space<vmem>>, vector<1x16x16x128xf32>
    tpu.vector_store %arg8[%c0_66, %c0_67, %c0_68, %c0_69], %57 {strides = array<i32>} : memref<1x16x16x128xf32, #tpu.memory_space<vmem>>, vector<1x16x16x128xf32>,
    return
  }
  func.func @transform_0(%arg0: i32) -> (i32, i32, i32, i32) {
    %c0_i32 = arith.constant 0 : i32
    %c0_i32_0 = arith.constant 0 : i32
    %c0_i32_1 = arith.constant 0 : i32
    %c0_i32_2 = arith.constant 0 : i32
    return %arg0, %c0_i32, %c0_i32_0, %c0_i32_1 : i32, i32, i32, i32
  }
  func.func @transform_1(%arg0: i32) -> (i32, i32) {
    %c0_i32 = arith.constant 0 : i32
    %c0_i32_0 = arith.constant 0 : i32
    %c0_i32_1 = arith.constant 0 : i32
    return %c0_i32, %c0_i32_0 : i32, i32
  }
  func.func @transform_2(%arg0: i32) -> (i32, i32) {
    %c0_i32 = arith.constant 0 : i32
    %c0_i32_0 = arith.constant 0 : i32
    %c0_i32_1 = arith.constant 0 : i32
    return %c0_i32, %c0_i32_0 : i32, i32
  }
  func.func @transform_3(%arg0: i32) -> (i32, i32, i32) {
    %c0_i32 = arith.constant 0 : i32
    %c0_i32_0 = arith.constant 0 : i32
    %c0_i32_1 = arith.constant 0 : i32
    %c0_i32_2 = arith.constant 0 : i32
    return %c0_i32, %c0_i32_0, %c0_i32_1 : i32, i32, i32
  }
  func.func @transform_4(%arg0: i32) -> (i32, i32) {
    %c0_i32 = arith.constant 0 : i32
    %c0_i32_0 = arith.constant 0 : i32
    %c0_i32_1 = arith.constant 0 : i32
    return %c0_i32, %c0_i32_0 : i32, i32
  }
  func.func @transform_5(%arg0: i32) -> (i32, i32, i32, i32) {
    %c0_i32 = arith.constant 0 : i32
    %c0_i32_0 = arith.constant 0 : i32
    %c0_i32_1 = arith.constant 0 : i32
    %c0_i32_2 = arith.constant 0 : i32
    return %arg0, %c0_i32, %c0_i32_0, %c0_i32_1 : i32, i32, i32, i32
  }
  func.func @transform_6(%arg0: i32) -> (i32, i32) {
    %c0_i32 = arith.constant 0 : i32
    %c0_i32_0 = arith.constant 0 : i32
    %c0_i32_1 = arith.constant 0 : i32
    return %c0_i32, %c0_i32_0 : i32, i32
  }
  func.func @transform_7(%arg0: i32) -> (i32, i32, i32, i32) {
    %c0_i32 = arith.constant 0 : i32
    %c0_i32_0 = arith.constant 0 : i32
    %c0_i32_1 = arith.constant 0 : i32
    %c0_i32_2 = arith.constant 0 : i32
    return %arg0, %c0_i32, %c0_i32_0, %c0_i32_1 : i32, i32, i32, i32
  }
}

</mosaic_0001>

<bundles_post_ra>
// kernel: residual_block_forward.3
= control target key start
LH: loop header
LB: loop body
LE: loop exit
PB: predicated region body
PF: predicated region fallthrough
CT: control target
= control target key end

     0   :  { %vm14_vm0 = vcmask 24576   ;;  %vm82_vm1 = vcmask 31744   ;;  %v428_v0 = vmov 0.0   ;;  %s1318_s0 = inlined_call_operand.vmem [shape: f32[512,4], index: 0, kind: input, shape index: {}]   ;;  %s1319_s1 = inlined_call_operand.vmem [shape: f32[1,4], index: 1, kind: output, shape index: {0}]   ;;  %s1320_s2 = inlined_call_operand.vmem [shape: f32[1,4], index: 2, kind: output, shape index: {1}]  }
   0x1   :  { %15 = vst.msk [vmem:[%s1319_s1] sm:$0x1] %vm14_vm0, %v428_v0  ;;  %16 = vst.msk [vmem:[%s1320_s2] sm:$0x1] %vm14_vm0, %v428_v0  ;;  %v455_v1 = vld [vmem:[%s1318_s0] sm:$0xff]  ;;  %v460_v2 = vld [vmem:[%s1318_s0 + $0x8] sm:$0xff] }
   0x2   :  { %v465_v3 = vld [vmem:[%s1318_s0 + $0x10] sm:$0xff]  ;;  %v83_v4 = vsel %vm82_vm1, %v455_v1, 0.0  ;;  %v84_v5 = vsel %vm82_vm1, %v460_v2, 0.0  ;;  %v476_v7 = vld [vmem:[%s1318_s0 + $0x18] sm:$0xff]  ;;  %v483_v10 = vld [vmem:[%s1318_s0 + $0x20] sm:$0xff] }
   0x3   :  { %v86_v6 = vsel %vm82_vm1, %v465_v3, 0.0  ;;  %v85_v8 = vadd.f32 %v84_v5, %v83_v4  ;;  %v88_v9 = vsel %vm82_vm1, %v476_v7, 0.0  ;;  %v90_v12 = vsel %vm82_vm1, %v483_v10, 0.0  ;;  %v490_v13 = vld [vmem:[%s1318_s0 + $0x28] sm:$0xff]  ;;  %v497_v16 = vld [vmem:[%s1318_s0 + $0x30] sm:$0xff]  ;;  %v502_v18 = vld [vmem:[%s1318_s0 + $0x38] sm:$0xff] }
   0x4   :  { %v92_v15 = vsel %vm82_vm1, %v490_v13, 0.0  ;;  %v507_v19 = vld [vmem:[%s1318_s0 + $0x40] sm:$0xff]  ;;  %v94_v20 = vsel %vm82_vm1, %v497_v16, 0.0  ;;  %v514_v21 = vld [vmem:[%s1318_s0 + $0x48] sm:$0xff]  ;;  %v519_v22 = vld [vmem:[%s1318_s0 + $0x50] sm:$0xff]  ;;  %v96_v25 = vsel %vm82_vm1, %v502_v18, 0.0 }
   0x5   :  { %v87_v11 = vadd.f32 %v86_v6, %v85_v8  ;;  %v524_v23 = vld [vmem:[%s1318_s0 + $0x58] sm:$0xff]  ;;  %v98_v26 = vsel %vm82_vm1, %v507_v19, 0.0  ;;  %v533_v27 = vld [vmem:[%s1318_s0 + $0x108] sm:$0xff]  ;;  %v538_v28 = vld [vmem:[%s1318_s0 + $0x110] sm:$0xff]  ;;  %v100_v30 = vsel %vm82_vm1, %v514_v21, 0.0  ;;  %v102_v31 = vsel %vm82_vm1, %v519_v22, 0.0 }
   0x6   :  { %v543_v29 = vld [vmem:[%s1318_s0 + $0x118] sm:$0xff]  ;;  %v551_v32 = vsel %vm82_vm1, %v524_v23, 0.0  ;;  %v556_v33 = vld [vmem:[%s1318_s0 + $0x120] sm:$0xff]  ;;  %v561_v34 = vld [vmem:[%s1318_s0 + $0x128] sm:$0xff]  ;;  %v570_v37 = vsel %vm82_vm1, %v533_v27, 0.0  ;;  %v574_v38 = vsel %vm82_vm1, %v538_v28, 0.0 }
   0x7   :  { %v89_v14 = vadd.f32 %v88_v9, %v87_v11  ;;  %v566_v35 = vld [vmem:[%s1318_s0 + $0x130] sm:$0xff]  ;;  %1339 = vst [vmem:[#allocation2_spill] sm:$0xff] %v570_v37  ;;  %1340 = vst [vmem:[#allocation3_spill] sm:$0xff] %v574_v38  ;;  %v578_v39 = vsel %vm82_vm1, %v543_v29, 0.0  ;;  %v583_v40 = vld [vmem:[%s1318_s0 + $0x138] sm:$0xff]  ;;  %v597_v43 = vsel %vm82_vm1, %v556_v33, 0.0  ;;  %v222_v37 = vmul.f32 %v465_v3, %v465_v3 }
   0x8   :  { %1341 = vst [vmem:[#allocation4_spill] sm:$0xff] %v578_v39  ;;  %v588_v41 = vld [vmem:[%s1318_s0 + $0x140] sm:$0xff]  ;;  %v593_v42 = vld [vmem:[%s1318_s0 + $0x148] sm:$0xff]  ;;  %1342 = vst [vmem:[#allocation5_spill] sm:$0xff] %v597_v43  ;;  %v601_v44 = vsel %vm82_vm1, %v561_v34, 0.0  ;;  %v605_v45 = vsel %vm82_vm1, %v566_v35, 0.0 }
   0x9   :  { %v91_v17 = vadd.f32 %v90_v12, %v89_v14  ;;  %1343 = vst [vmem:[#allocation6_spill] sm:$0xff] %v601_v44  ;;  %1344 = vst [vmem:[#allocation7_spill] sm:$0xff] %v605_v45  ;;  %v610_v46 = vld [vmem:[%s1318_s0 + $0x150] sm:$0xff]  ;;  %v615_v47 = vld [vmem:[%s1318_s0 + $0x158] sm:$0xff]  ;;  %v624_v50 = vsel %vm82_vm1, %v583_v40, 0.0  ;;  %v628_v51 = vsel %vm82_vm1, %v588_v41, 0.0 }
   0xa   :  { %v620_v48 = vld [vmem:[%s1318_s0 + $0x160] sm:$0xff]  ;;  %1345 = vst [vmem:[#allocation8_spill] sm:$0xff] %v624_v50  ;;  %1346 = vst [vmem:[#allocation9_spill] sm:$0xff] %v628_v51  ;;  %v632_v52 = vsel %vm82_vm1, %v593_v42, 0.0  ;;  %v637_v53 = vld [vmem:[%s1318_s0 + $0x168] sm:$0xff]  ;;  %v651_v56 = vsel %vm82_vm1, %v610_v46, 0.0 }
   0xb   :  { %v93_v24 = vadd.f32 %v92_v15, %v91_v17  ;;  %1347 = vst [vmem:[#allocation10_spill] sm:$0xff] %v632_v52  ;;  %v642_v54 = vld [vmem:[%s1318_s0 + $0x170] sm:$0xff]  ;;  %v647_v55 = vld [vmem:[%s1318_s0 + $0x178] sm:$0xff]  ;;  %1348 = vst [vmem:[#allocation11_spill] sm:$0xff] %v651_v56  ;;  %v655_v57 = vsel %vm82_vm1, %v615_v47, 0.0  ;;  %v659_v58 = vsel %vm82_vm1, %v620_v48, 0.0 }
   0xc   :  { %1349 = vst [vmem:[#allocation12_spill] sm:$0xff] %v655_v57  ;;  %1350 = vst [vmem:[#allocation13_spill] sm:$0xff] %v659_v58  ;;  %v664_v59 = vld [vmem:[%s1318_s0 + $0x180] sm:$0xff]  ;;  %v669_v60 = vld [vmem:[%s1318_s0 + $0x188] sm:$0xff]  ;;  %v678_v63 = vsel %vm82_vm1, %v637_v53, 0.0  ;;  %v682_v0 = vsel %vm82_vm1, %v642_v54, 0.0 }
   0xd   :  { %v95_v36 = vadd.f32 %v94_v20, %v93_v24  ;;  %v674_v61 = vld [vmem:[%s1318_s0 + $0x190] sm:$0xff]  ;;  %1351 = vst [vmem:[#allocation14_spill] sm:$0xff] %v678_v63  ;;  %1352 = vst [vmem:[#allocation15_spill] sm:$0xff] %v682_v0  ;;  %v686_v4 = vsel %vm82_vm1, %v647_v55, 0.0  ;;  %v691_v5 = vld [vmem:[%s1318_s0 + $0x198] sm:$0xff]  ;;  %v705_v9 = vsel %vm82_vm1, %v664_v59, 0.0 }
   0xe   :  { %1353 = vst [vmem:[#allocation16_spill] sm:$0xff] %v686_v4  ;;  %v696_v6 = vld [vmem:[%s1318_s0 + $0x1a0] sm:$0xff]  ;;  %v701_v8 = vld [vmem:[%s1318_s0 + $0x1a8] sm:$0xff]  ;;  %1354 = vst [vmem:[#allocation17_spill] sm:$0xff] %v705_v9  ;;  %v709_v11 = vsel %vm82_vm1, %v669_v60, 0.0  ;;  %v713_v12 = vsel %vm82_vm1, %v674_v61, 0.0 }
   0xf   :  { %v97_v49 = vadd.f32 %v96_v25, %v95_v36  ;;  %1355 = vst [vmem:[#allocation18_spill] sm:$0xff] %v709_v11  ;;  %1356 = vst [vmem:[#allocation19_spill] sm:$0xff] %v713_v12  ;;  %v718_v14 = vld [vmem:[%s1318_s0 + $0x60] sm:$0xff]  ;;  %v723_v15 = vld [vmem:[%s1318_s0 + $0x1b0] sm:$0xff]  ;;  %v737_v25 = vsel %vm82_vm1, %v691_v5, 0.0  ;;  %v745_v36 = vsel %vm82_vm1, %v701_v8, 0.0 }
  0x10   :  { %v728_v17 = vld [vmem:[%s1318_s0 + $0x1b8] sm:$0xff]  ;;  %v733_v20 = vld [vmem:[%s1318_s0 + $0x1c0] sm:$0xff]  ;;  %1357 = vst [vmem:[#allocation20_spill] sm:$0xff] %v737_v25  ;;  %1359 = vst [vmem:[#allocation22_spill] sm:$0xff] %v745_v36 }
  0x11   :  { %v99_v62 = vadd.f32 %v98_v26, %v97_v49  ;;  %v741_v26 = vsel %vm82_vm1, %v696_v6, 0.0  ;;  %v750_v49 = vld [vmem:[%s1318_s0 + $0x1c8] sm:$0xff]  ;;  %v768_v36 = vsel %vm82_vm1, %v728_v17, 0.0  ;;  %v772_v25 = vsel %vm82_vm1, %v733_v20, 0.0  ;;  %v777_v12 = vld [vmem:[%s1318_s0 + $0x1e0] sm:$0xff]  ;;  %v804_v0 = vld [vmem:[%s1318_s0 + $0x1f8] sm:$0xff] }
  0x12   :  { %1358 = vst [vmem:[#allocation21_spill] sm:$0xff] %v741_v26  ;;  %v764_v26 = vsel %vm82_vm1, %v723_v15, 0.0  ;;  %1361 = vst [vmem:[#allocation24_spill] sm:$0xff] %v768_v36  ;;  %v782_v11 = vld [vmem:[%s1318_s0 + $0x1e8] sm:$0xff]  ;;  %v791_v9 = vsel %vm82_vm1, %v750_v49, 0.0  ;;  %v826_v58 = vsel %vm82_vm1, %v804_v0, 0.0 }
  0x13   :  { %v101_v24 = vadd.f32 %v100_v30, %v99_v62  ;;  %v755_v30 = vld [vmem:[%s1318_s0 + $0x1d0] sm:$0xff]  ;;  %v760_v62 = vld [vmem:[%s1318_s0 + $0x1d8] sm:$0xff]  ;;  %1360 = vst [vmem:[#allocation23_spill] sm:$0xff] %v764_v26  ;;  %1362 = vst [vmem:[#allocation25_spill] sm:$0xff] %v772_v25 }
  0x14   :  { %v787_v26 = vld [vmem:[%s1318_s0 + $0x1f0] sm:$0xff]  ;;  %1364 = vst [vmem:[#allocation27_spill] sm:$0xff] %v791_v9  ;;  %v795_v25 = vsel %vm82_vm1, %v755_v30, 0.0  ;;  %v799_v4 = vsel %vm82_vm1, %v760_v62, 0.0  ;;  %1367 = vst [vmem:[#allocation30_spill] sm:$0xff] %v804_v0  ;;  %v814_v9 = vsel %vm82_vm1, %v782_v11, 0.0 }
  0x15   :  { %1363 = vst [vmem:[#allocation26_spill] sm:$0xff] %v787_v26  ;;  %v103_v36 = vadd.f32 %v102_v31, %v101_v24  ;;  %1365 = vst [vmem:[#allocation28_spill] sm:$0xff] %v795_v25  ;;  %v106_v31 = vsel %vm82_vm1, %v718_v14, 0.0  ;;  %v810_v24 = vsel %vm82_vm1, %v777_v12, 0.0  ;;  %v818_v25 = vsel %vm82_vm1, %v787_v26, 0.0  ;;  %v855_v56 = vld [vmem:[%s1318_s0 + $0x90] sm:$0xff] }
  0x16   :  { %1366 = vst [vmem:[#allocation29_spill] sm:$0xff] %v799_v4  ;;  %1368 = vst [vmem:[#allocation31_spill] sm:$0xff] %v810_v24  ;;  %v30_v4 = vld [vmem:[%s1318_s0 + $0x68] sm:$0xff]  ;;  %v860_v52 = vld [vmem:[%s1318_s0 + $0x98] sm:$0xff] }
  0x17   :  { %1369 = vst [vmem:[#allocation32_spill] sm:$0xff] %v814_v9  ;;  %1370 = vst [vmem:[#allocation33_spill] sm:$0xff] %v818_v25  ;;  %v105_v63 = vadd.f32 %v551_v32, %v103_v36  ;;  %v108_v24 = vsel %vm82_vm1, %v30_v4, 0.0  ;;  %v31_v9 = vld [vmem:[%s1318_s0 + $0x70] sm:$0xff]  ;;  %v835_v25 = vld [vmem:[%s1318_s0 + $0x78] sm:$0xff]  ;;  %v120_v39 = vsel %vm82_vm1, %v860_v52, 0.0 }
  0x18   :  { %1371 = vst [vmem:[#allocation34_spill] sm:$0xff] %v826_v58  ;;  %1372 = vst [vmem:[#allocation35_spill] sm:$0xff] %v835_v25  ;;  %v840_v32 = vld [vmem:[%s1318_s0 + $0x80] sm:$0xff]  ;;  %v845_v36 = vld [vmem:[%s1318_s0 + $0x88] sm:$0xff]  ;;  %v110_v58 = vsel %vm82_vm1, %v31_v9, 0.0 }
  0x19   :  { %v107_v57 = vadd.f32 %v106_v31, %v105_v63  ;;  %1373 = vst [vmem:[#allocation36_spill] sm:$0xff] %v840_v32  ;;  %1374 = vst [vmem:[#allocation37_spill] sm:$0xff] %v845_v36  ;;  %v220_v63 = vmul.f32 %v455_v1, %v455_v1  ;;  %v221_v31 = vmul.f32 %v460_v2, %v460_v2  ;;  %v865_v51 = vld [vmem:[%s1318_s0 + $0xa0] sm:$0xff]  ;;  %v112_v1 = vsel %vm82_vm1, %v835_v25, 0.0  ;;  %v876_v44 = vld [vmem:[%s1318_s0 + $0xa8] sm:$0xff] }
  0x1a   :  { %1375 = vst [vmem:[#allocation38_spill] sm:$0xff] %v855_v56  ;;  %1376 = vst [vmem:[#allocation39_spill] sm:$0xff] %v860_v52  ;;  %v114_v2 = vsel %vm82_vm1, %v840_v32, 0.0  ;;  %v116_v45 = vsel %vm82_vm1, %v845_v36, 0.0  ;;  %v881_v43 = vld [vmem:[%s1318_s0 + $0xb0] sm:$0xff]  ;;  %v122_v38 = vsel %vm82_vm1, %v865_v51, 0.0  ;;  %v223_v25 = vmul.f32 %v476_v7, %v476_v7 }
  0x1b   :  { %1377 = vst [vmem:[#allocation40_spill] sm:$0xff] %v865_v51  ;;  %v109_v50 = vadd.f32 %v108_v24, %v107_v57  ;;  %1378 = vst [vmem:[#allocation41_spill] sm:$0xff] %v876_v44  ;;  %v886_v57 = vld [vmem:[%s1318_s0 + $0xb8] sm:$0xff]  ;;  %v118_v24 = vsel %vm82_vm1, %v855_v56, 0.0  ;;  %v899_v36 = vld [vmem:[%s1318_s0 + $0xc0] sm:$0xff]  ;;  %v124_v51 = vsel %vm82_vm1, %v876_v44, 0.0 }
  0x1c   :  { %1379 = vst [vmem:[#allocation42_spill] sm:$0xff] %v881_v43  ;;  %1380 = vst [vmem:[#allocation43_spill] sm:$0xff] %v886_v57  ;;  %v904_v32 = vld [vmem:[%s1318_s0 + $0xc8] sm:$0xff]  ;;  %v909_v52 = vld [vmem:[%s1318_s0 + $0xd0] sm:$0xff]  ;;  %v915_v3 = vsel %vm82_vm1, %v881_v43, 0.0 }
  0x1d   :  { %1381 = vst [vmem:[#allocation44_spill] sm:$0xff] %v899_v36  ;;  %1382 = vst [vmem:[#allocation45_spill] sm:$0xff] %v904_v32  ;;  %v111_v56 = vadd.f32 %v110_v58, %v109_v50  ;;  %v922_v0 = vld [vmem:[%s1318_s0 + $0xd8] sm:$0xff]  ;;  %v927_v26 = vld [vmem:[%s1318_s0 + $0xe0] sm:$0xff]  ;;  %v931_v50 = vsel %vm82_vm1, %v886_v57, 0.0  ;;  %v935_v58 = vsel %vm82_vm1, %v899_v36, 0.0 }
  0x1e   :  { %1383 = vst [vmem:[#allocation46_spill] sm:$0xff] %v909_v52  ;;  %1384 = vst [vmem:[#allocation47_spill] sm:$0xff] %v922_v0  ;;  %v939_v7 = vsel %vm82_vm1, %v904_v32, 0.0  ;;  %v943_v43 = vsel %vm82_vm1, %v909_v52, 0.0  ;;  %v948_v44 = vld [vmem:[%s1318_s0 + $0xe8] sm:$0xff]  ;;  %v953_v57 = vld [vmem:[%s1318_s0 + $0xf0] sm:$0xff]  ;;  %v224_v52 = vmul.f32 %v483_v10, %v483_v10  ;;  %v228_v10 = vmul.f32 %v507_v19, %v507_v19 }
  0x1f   :  { %1385 = vst [vmem:[#allocation48_spill] sm:$0xff] %v927_v26  ;;  %1386 = vst [vmem:[#allocation49_spill] sm:$0xff] %v935_v58  ;;  %v113_v36 = vadd.f32 %v112_v1, %v111_v56  ;;  %v957_v58 = vsel %vm82_vm1, %v922_v0, 0.0  ;;  %v961_v32 = vsel %vm82_vm1, %v927_v26, 0.0  ;;  %v225_v56 = vmul.f32 %v490_v13, %v490_v13 }
  0x20   :  { %1387 = vst [vmem:[#allocation50_spill] sm:$0xff] %v939_v7  ;;  %1388 = vst [vmem:[#allocation51_spill] sm:$0xff] %v943_v43  ;;  %v967_v43 = vsel %vm82_vm1, %v948_v44, 0.0  ;;  %v971_v7 = vsel %vm82_vm1, %v953_v57, 0.0  ;;  %v226_v1 = vmul.f32 %v497_v16, %v497_v16  ;;  %v227_v26 = vmul.f32 %v502_v18, %v502_v18 }
  0x21   :  { %1389 = vst [vmem:[#allocation52_spill] sm:$0xff] %v948_v44  ;;  %1390 = vst [vmem:[#allocation53_spill] sm:$0xff] %v953_v57  ;;  %v115_v0 = vadd.f32 %v114_v2, %v113_v36  ;;  %v229_v44 = vmul.f32 %v514_v21, %v514_v21  ;;  %v230_v57 = vmul.f32 %v519_v22, %v519_v22 }
  0x22   :  { %1391 = vst [vmem:[#allocation54_spill] sm:$0xff] %v971_v7  ;;  %v231_v7 = vmul.f32 %v524_v23, %v524_v23  ;;  %v232_v13 = vmul.f32 %v718_v14, %v718_v14  ;;  %v989_v16 = vmul.f32 %v30_v4, %v30_v4  ;;  %v991_v2 = vmul.f32 %v31_v9, %v31_v9 }
  0x23   :  { %v117_v36 = vadd.f32 %v116_v45, %v115_v0  ;;  %v253_v18 = vmul.f32 %v533_v27, %v533_v27  ;;  %v254_v19 = vmul.f32 %v538_v28, %v538_v28  ;;  %v255_v21 = vmul.f32 %v543_v29, %v543_v29 }
  0x24   :  { %v256_v22 = vmul.f32 %v556_v33, %v556_v33  ;;  %v257_v23 = vmul.f32 %v561_v34, %v561_v34  ;;  %v258_v45 = vmul.f32 %v566_v35, %v566_v35  ;;  %v259_v4 = vmul.f32 %v583_v40, %v583_v40 }
  0x25   :  { %v119_v0 = vadd.f32 %v118_v24, %v117_v36  ;;  %v260_v27 = vmul.f32 %v588_v41, %v588_v41  ;;  %v261_v28 = vmul.f32 %v593_v42, %v593_v42  ;;  %v262_v29 = vmul.f32 %v610_v46, %v610_v46 }
  0x26   :  { %v263_v33 = vmul.f32 %v615_v47, %v615_v47  ;;  %v284_v34 = vsel %vm82_vm1, %v220_v63, 0.0  ;;  %v285_v35 = vsel %vm82_vm1, %v221_v31, 0.0  ;;  %v264_v40 = vmul.f32 %v620_v48, %v620_v48 }
  0x27   :  { %v121_v9 = vadd.f32 %v120_v39, %v119_v0  ;;  %v286_v14 = vadd.f32 %v285_v35, %v284_v34  ;;  %v287_v41 = vsel %vm82_vm1, %v222_v37, 0.0  ;;  %v265_v42 = vmul.f32 %v637_v53, %v637_v53  ;;  %v1392_v0 = vld [vmem:[#allocation26_spill] sm:$0xff] }
  0x28   :  { %v266_v46 = vmul.f32 %v642_v54, %v642_v54  ;;  %v267_v47 = vmul.f32 %v647_v55, %v647_v55  ;;  %v289_v63 = vsel %vm82_vm1, %v223_v25, 0.0  ;;  %v268_v39 = vmul.f32 %v664_v59, %v664_v59  ;;  %v1393_v34 = vld [vmem:[#allocation30_spill] sm:$0xff] }
  0x29   :  { %v123_v24 = vadd.f32 %v122_v38, %v121_v9  ;;  %v269_v48 = vmul.f32 %v669_v60, %v669_v60  ;;  %v288_v31 = vadd.f32 %v287_v41, %v286_v14  ;;  %v270_v37 = vmul.f32 %v674_v61, %v674_v61  ;;  %v1394_v41 = vld [vmem:[#allocation49_spill] sm:$0xff] }
  0x2a   :  { %v271_v53 = vmul.f32 %v691_v5, %v691_v5  ;;  %v272_v54 = vmul.f32 %v696_v6, %v696_v6  ;;  %v291_v55 = vsel %vm82_vm1, %v224_v52, 0.0  ;;  %v273_v38 = vmul.f32 %v701_v8, %v701_v8 }
  0x2b   :  { %v125_v25 = vadd.f32 %v124_v51, %v123_v24  ;;  %v274_v59 = vmul.f32 %v723_v15, %v723_v15  ;;  %v290_v60 = vadd.f32 %v289_v63, %v288_v31  ;;  %v275_v36 = vmul.f32 %v728_v17, %v728_v17 }
  0x2c   :  { %v276_v61 = vmul.f32 %v733_v20, %v733_v20  ;;  %v277_v5 = vmul.f32 %v750_v49, %v750_v49  ;;  %v293_v6 = vsel %vm82_vm1, %v225_v56, 0.0  ;;  %v278_v52 = vmul.f32 %v755_v30, %v755_v30 }
  0x2d   :  { %v127_v51 = vadd.f32 %v915_v3, %v125_v25  ;;  %v279_v8 = vmul.f32 %v760_v62, %v760_v62  ;;  %v292_v15 = vadd.f32 %v291_v55, %v290_v60  ;;  %v280_v17 = vmul.f32 %v777_v12, %v777_v12  ;;  %v1396_v25 = vld [vmem:[#allocation51_spill] sm:$0xff] }
  0x2e   :  { %v281_v20 = vmul.f32 %v782_v11, %v782_v11  ;;  %v282_v49 = vmul.f32 %v1392_v0, %v1392_v0  ;;  %v295_v56 = vsel %vm82_vm1, %v226_v1, 0.0  ;;  %v283_v30 = vmul.f32 %v1393_v34, %v1393_v34  ;;  %v1398_v34 = vld [vmem:[#allocation54_spill] sm:$0xff] }
  0x2f   :  { %v129_v3 = vadd.f32 %v931_v50, %v127_v51  ;;  %v294_v35 = vadd.f32 %v293_v6, %v292_v15  ;;  %v297_v62 = vsel %vm82_vm1, %v227_v26, 0.0  ;;  %v299_v9 = vsel %vm82_vm1, %v228_v10, 0.0 }
  0x30   :  { %v301_v12 = vsel %vm82_vm1, %v229_v44, 0.0  ;;  %v303_v14 = vsel %vm82_vm1, %v230_v57, 0.0  ;;  %v305_v11 = vsel %vm82_vm1, %v231_v7, 0.0  ;;  %v307_v1 = vsel %vm82_vm1, %v232_v13, 0.0  ;;  %v1395_v7 = vld [vmem:[#allocation50_spill] sm:$0xff] }
  0x31   :  { %v131_v63 = vadd.f32 %v1394_v41, %v129_v3  ;;  %v296_v24 = vadd.f32 %v295_v56, %v294_v35  ;;  %v1072_v50 = vsel %vm82_vm1, %v253_v18, 0.0  ;;  %v1075_v31 = vsel %vm82_vm1, %v254_v19, 0.0  ;;  %v1397_v56 = vld [vmem:[#allocation35_spill] sm:$0xff] }
  0x32   :  { %v1078_v26 = vsel %vm82_vm1, %v255_v21, 0.0  ;;  %v1081_v44 = vsel %vm82_vm1, %v256_v22, 0.0  ;;  %v1084_v57 = vsel %vm82_vm1, %v257_v23, 0.0  ;;  %v1088_v13 = vsel %vm82_vm1, %v258_v45, 0.0 }
  0x33   :  { %v133_v10 = vadd.f32 %v1395_v7, %v131_v63  ;;  %v298_v55 = vadd.f32 %v297_v62, %v296_v24  ;;  %v1091_v18 = vsel %vm82_vm1, %v259_v4, 0.0  ;;  %v1094_v19 = vsel %vm82_vm1, %v260_v27, 0.0  ;;  %v1399_v62 = vld [vmem:[#allocation36_spill] sm:$0xff] }
  0x34   :  { %v1097_v21 = vsel %vm82_vm1, %v261_v28, 0.0  ;;  %v1100_v22 = vsel %vm82_vm1, %v262_v29, 0.0  ;;  %v1103_v23 = vsel %vm82_vm1, %v263_v33, 0.0  ;;  %v1107_v45 = vsel %vm82_vm1, %v264_v40, 0.0 }
  0x35   :  { %v135_v60 = vadd.f32 %v1396_v25, %v133_v10  ;;  %v300_v6 = vadd.f32 %v299_v9, %v298_v55  ;;  %v1110_v4 = vsel %vm82_vm1, %v265_v42, 0.0  ;;  %v1113_v27 = vsel %vm82_vm1, %v266_v46, 0.0  ;;  %v1401_v10 = vld [vmem:[#allocation38_spill] sm:$0xff] }
  0x36   :  { %v1116_v28 = vsel %vm82_vm1, %v267_v47, 0.0  ;;  %v1119_v29 = vsel %vm82_vm1, %v268_v39, 0.0  ;;  %v1122_v33 = vsel %vm82_vm1, %v269_v48, 0.0  ;;  %v1126_v40 = vsel %vm82_vm1, %v270_v37, 0.0  ;;  %v1402_v25 = vld [vmem:[#allocation2_spill] sm:$0xff] }
  0x37   :  { %v137_v51 = vadd.f32 %v957_v58, %v135_v60  ;;  %v302_v15 = vadd.f32 %v301_v12, %v300_v6  ;;  %v1129_v42 = vsel %vm82_vm1, %v271_v53, 0.0  ;;  %v1132_v46 = vsel %vm82_vm1, %v272_v54, 0.0 }
  0x38   :  { %v1135_v47 = vsel %vm82_vm1, %v273_v38, 0.0  ;;  %v1138_v39 = vsel %vm82_vm1, %v274_v59, 0.0  ;;  %v1141_v48 = vsel %vm82_vm1, %v275_v36, 0.0  ;;  %v1145_v37 = vsel %vm82_vm1, %v276_v61, 0.0 }
  0x39   :  { %v139_v58 = vadd.f32 %v961_v32, %v137_v51  ;;  %v304_v0 = vadd.f32 %v303_v14, %v302_v15  ;;  %v1148_v53 = vsel %vm82_vm1, %v277_v5, 0.0  ;;  %v1151_v54 = vsel %vm82_vm1, %v278_v52, 0.0  ;;  %v1165_v32 = vld [vmem:[%s1318_s0 + $0xf8] sm:$0xff]  ;;  %v1403_v51 = vld [vmem:[#allocation39_spill] sm:$0xff] }
  0x3a   :  { %v1154_v38 = vsel %vm82_vm1, %v279_v8, 0.0  ;;  %v1157_v59 = vsel %vm82_vm1, %v280_v17, 0.0  ;;  %v1160_v36 = vsel %vm82_vm1, %v281_v20, 0.0  ;;  %v1169_v52 = vsel %vm82_vm1, %v282_v49, 0.0 }
  0x3b   :  { %v141_v61 = vadd.f32 %v967_v43, %v139_v58  ;;  %v306_v5 = vadd.f32 %v305_v11, %v304_v0  ;;  %v1172_v8 = vsel %vm82_vm1, %v283_v30, 0.0  ;;  %v144_v17 = vsel %vm82_vm1, %v1165_v32, 0.0  ;;  %v1183_v43 = vld [vmem:[%s1318_s0 + $0x100] sm:$0xff]  ;;  %v1404_v58 = vld [vmem:[#allocation3_spill] sm:$0xff] }
  0x3c   :  { %v235_v20 = vmul.f32 %v1397_v56, %v1397_v56  ;;  %v309_v3 = vsel %vm82_vm1, %v989_v16, 0.0  ;;  %v146_v30 = vsel %vm82_vm1, %v1183_v43, 0.0  ;;  %v236_v9 = vmul.f32 %v1399_v62, %v1399_v62  ;;  %v1400_v16 = vld [vmem:[#allocation37_spill] sm:$0xff] }
  0x3d   :  { %v143_v49 = vadd.f32 %v1398_v34, %v141_v61  ;;  %v308_v35 = vadd.f32 %v307_v1, %v306_v5  ;;  %v311_v12 = vsel %vm82_vm1, %v991_v2, 0.0  ;;  %v237_v41 = vmul.f32 %v1400_v16, %v1400_v16  ;;  %v1405_v5 = vld [vmem:[#allocation40_spill] sm:$0xff]  ;;  %v1408_v62 = vld [vmem:[#allocation5_spill] sm:$0xff] }
  0x3e   :  { %v313_v63 = vsel %vm82_vm1, %v235_v20, 0.0  ;;  %v238_v1 = vmul.f32 %v1401_v10, %v1401_v10  ;;  %v315_v55 = vsel %vm82_vm1, %v236_v9, 0.0  ;;  %v239_v2 = vmul.f32 %v1403_v51, %v1403_v51  ;;  %v1406_v20 = vld [vmem:[#allocation4_spill] sm:$0xff] }
  0x3f   :  { %v145_v14 = vadd.f32 %v144_v17, %v143_v49  ;;  %v310_v11 = vadd.f32 %v309_v3, %v308_v35  ;;  %v317_v15 = vsel %vm82_vm1, %v237_v41, 0.0  ;;  %v240_v17 = vmul.f32 %v1405_v5, %v1405_v5  ;;  %v1407_v49 = vld [vmem:[#allocation41_spill] sm:$0xff]  ;;  %v1410_v41 = vld [vmem:[#allocation6_spill] sm:$0xff] }
  0x40   :  { %v319_v56 = vsel %vm82_vm1, %v238_v1, 0.0  ;;  %v241_v35 = vmul.f32 %v1407_v49, %v1407_v49 }
  0x41   :  { %v147_v24 = vadd.f32 %v146_v30, %v145_v14  ;;  %v312_v7 = vadd.f32 %v311_v12, %v310_v11  ;;  %v321_v30 = vsel %vm82_vm1, %v239_v2, 0.0  ;;  %v1409_v14 = vld [vmem:[#allocation42_spill] sm:$0xff]  ;;  %v323_v16 = vsel %vm82_vm1, %v240_v17, 0.0 }
  0x42   :  { %v242_v11 = vmul.f32 %v1409_v14, %v1409_v14  ;;  %v325_v1 = vsel %vm82_vm1, %v241_v35, 0.0 }
  0x43   :  { %v149_v60 = vadd.f32 %v1402_v25, %v147_v24  ;;  %v314_v6 = vadd.f32 %v313_v63, %v312_v7  ;;  %v1411_v7 = vld [vmem:[#allocation43_spill] sm:$0xff] }
  0x44   :  { %v243_v10 = vmul.f32 %v1411_v7, %v1411_v7  ;;  %v327_v2 = vsel %vm82_vm1, %v242_v11, 0.0 }
  0x45   :  { %v151_v0 = vadd.f32 %v1404_v58, %v149_v60  ;;  %v316_v61 = vadd.f32 %v315_v55, %v314_v6  ;;  %v1412_v55 = vld [vmem:[#allocation7_spill] sm:$0xff]  ;;  %v1413_v6 = vld [vmem:[#allocation44_spill] sm:$0xff] }
  0x46   :  { %v244_v51 = vmul.f32 %v1413_v6, %v1413_v6  ;;  %v329_v17 = vsel %vm82_vm1, %v243_v10, 0.0 }
  0x47   :  { %v153_v3 = vadd.f32 %v1406_v20, %v151_v0  ;;  %v318_v34 = vadd.f32 %v317_v15, %v316_v61  ;;  %v1414_v15 = vld [vmem:[#allocation8_spill] sm:$0xff]  ;;  %v1415_v61 = vld [vmem:[#allocation45_spill] sm:$0xff] }
  0x48   :  { %v245_v5 = vmul.f32 %v1415_v61, %v1415_v61  ;;  %v331_v35 = vsel %vm82_vm1, %v244_v51, 0.0 }
  0x49   :  { %v155_v9 = vadd.f32 %v1408_v62, %v153_v3  ;;  %v320_v12 = vadd.f32 %v319_v56, %v318_v34  ;;  %v1416_v56 = vld [vmem:[#allocation9_spill] sm:$0xff]  ;;  %v1417_v34 = vld [vmem:[#allocation46_spill] sm:$0xff] }
  0x4a   :  { %v246_v49 = vmul.f32 %v1417_v34, %v1417_v34  ;;  %v333_v11 = vsel %vm82_vm1, %v245_v5, 0.0 }
  0x4b   :  { %v157_v63 = vadd.f32 %v1410_v41, %v155_v9  ;;  %v322_v24 = vadd.f32 %v321_v30, %v320_v12  ;;  %v1418_v30 = vld [vmem:[#allocation10_spill] sm:$0xff]  ;;  %v1419_v12 = vld [vmem:[#allocation47_spill] sm:$0xff] }
  0x4c   :  { %v247_v14 = vmul.f32 %v1419_v12, %v1419_v12  ;;  %v335_v10 = vsel %vm82_vm1, %v246_v49, 0.0  ;;  %v1427_v49 = vld [vmem:[#allocation15_spill] sm:$0xff]  ;;  %v1428_v12 = vld [vmem:[#allocation16_spill] sm:$0xff] }
  0x4d   :  { %v159_v25 = vadd.f32 %v1412_v55, %v157_v63  ;;  %v324_v60 = vadd.f32 %v323_v16, %v322_v24  ;;  %v1420_v16 = vld [vmem:[#allocation11_spill] sm:$0xff]  ;;  %v1421_v24 = vld [vmem:[#allocation48_spill] sm:$0xff] }
  0x4e   :  { %v248_v7 = vmul.f32 %v1421_v24, %v1421_v24  ;;  %v337_v51 = vsel %vm82_vm1, %v247_v14, 0.0 }
  0x4f   :  { %v161_v58 = vadd.f32 %v1414_v15, %v159_v25  ;;  %v326_v0 = vadd.f32 %v325_v1, %v324_v60  ;;  %v1422_v1 = vld [vmem:[#allocation12_spill] sm:$0xff] }
  0x50   :  { %v1423_v60 = vld [vmem:[#allocation52_spill] sm:$0xff]  ;;  %v339_v5 = vsel %vm82_vm1, %v248_v7, 0.0  ;;  %v1430_v7 = vld [vmem:[#allocation18_spill] sm:$0xff] }
  0x51   :  { %v163_v20 = vadd.f32 %v1416_v56, %v161_v58  ;;  %v328_v3 = vadd.f32 %v327_v2, %v326_v0  ;;  %v249_v6 = vmul.f32 %v1423_v60, %v1423_v60  ;;  %v1424_v2 = vld [vmem:[#allocation13_spill] sm:$0xff] }
  0x52   :  { %v1425_v0 = vld [vmem:[#allocation53_spill] sm:$0xff] }
  0x53   :  { %v165_v62 = vadd.f32 %v1418_v30, %v163_v20  ;;  %v330_v9 = vadd.f32 %v329_v17, %v328_v3  ;;  %v250_v61 = vmul.f32 %v1425_v0, %v1425_v0  ;;  %v1426_v17 = vld [vmem:[#allocation14_spill] sm:$0xff]  ;;  %v251_v3 = vmul.f32 %v1165_v32, %v1165_v32 }
  0x54   :  { %v341_v34 = vsel %vm82_vm1, %v249_v6, 0.0  ;;  %v1432_v6 = vld [vmem:[#allocation20_spill] sm:$0xff]  ;;  %v1434_v0 = vld [vmem:[#allocation22_spill] sm:$0xff] }
  0x55   :  { %v167_v41 = vadd.f32 %v1420_v16, %v165_v62  ;;  %v332_v63 = vadd.f32 %v331_v35, %v330_v9  ;;  %v252_v62 = vmul.f32 %v1183_v43, %v1183_v43  ;;  %v343_v9 = vsel %vm82_vm1, %v250_v61, 0.0 }
  0x56   :  { %v345_v16 = vsel %vm82_vm1, %v251_v3, 0.0  ;;  %v1436_v3 = vld [vmem:[#allocation24_spill] sm:$0xff] }
  0x57   :  { %v169_v55 = vadd.f32 %v1422_v1, %v167_v41  ;;  %v334_v25 = vadd.f32 %v333_v11, %v332_v63  ;;  %v1429_v41 = vld [vmem:[#allocation17_spill] sm:$0xff]  ;;  %v347_v32 = vsel %vm82_vm1, %v252_v62, 0.0  ;;  %v1438_v62 = vld [vmem:[#allocation27_spill] sm:$0xff] }
  0x59   :  { %v171_v15 = vadd.f32 %v1424_v2, %v169_v55  ;;  %v336_v58 = vadd.f32 %v335_v10, %v334_v25  ;;  %v1431_v55 = vld [vmem:[#allocation19_spill] sm:$0xff]  ;;  %v1433_v2 = vld [vmem:[#allocation21_spill] sm:$0xff] }
  0x5b   :  { %v173_v56 = vadd.f32 %v1426_v17, %v171_v15  ;;  %v338_v20 = vadd.f32 %v337_v51, %v336_v58  ;;  %v1435_v17 = vld [vmem:[#allocation23_spill] sm:$0xff] }
  0x5d   :  { %v175_v35 = vadd.f32 %v1427_v49, %v173_v56  ;;  %v340_v30 = vadd.f32 %v339_v5, %v338_v20 }
  0x5f   :  { %v177_v14 = vadd.f32 %v1428_v12, %v175_v35  ;;  %v342_v11 = vadd.f32 %v341_v34, %v340_v30  ;;  %v1437_v35 = vld [vmem:[#allocation25_spill] sm:$0xff]  ;;  %v1439_v12 = vld [vmem:[#allocation28_spill] sm:$0xff] }
  0x61   :  { %v179_v63 = vadd.f32 %v1429_v41, %v177_v14  ;;  %v344_v24 = vadd.f32 %v343_v9, %v342_v11  ;;  %v1440_v11 = vld [vmem:[#allocation29_spill] sm:$0xff]  ;;  %v1441_v41 = vld [vmem:[#allocation31_spill] sm:$0xff] }
  0x63   :  { %v181_v10 = vadd.f32 %v1430_v7, %v179_v63  ;;  %v346_v1 = vadd.f32 %v345_v16, %v344_v24  ;;  %v1442_v24 = vld [vmem:[#allocation32_spill] sm:$0xff]  ;;  %v1443_v7 = vld [vmem:[#allocation33_spill] sm:$0xff] }
  0x65   :  { %v183_v25 = vadd.f32 %v1431_v55, %v181_v10  ;;  %v348_v60 = vadd.f32 %v347_v32, %v346_v1  ;;  %v1444_v1 = vld [vmem:[#allocation34_spill] sm:$0xff] }
  0x67   :  { %v185_v43 = vadd.f32 %v1432_v6, %v183_v25  ;;  %v350_v51 = vadd.f32 %v1072_v50, %v348_v60 }
  0x69   :  { %v187_v15 = vadd.f32 %v1433_v2, %v185_v43  ;;  %v352_v58 = vadd.f32 %v1075_v31, %v350_v51 }
  0x6b   :  { %v189_v61 = vadd.f32 %v1434_v0, %v187_v15  ;;  %v354_v5 = vadd.f32 %v1078_v26, %v352_v58 }
  0x6d   :  { %v191_v56 = vadd.f32 %v1435_v17, %v189_v61  ;;  %v356_v20 = vadd.f32 %v1081_v44, %v354_v5 }
  0x6f   :  { %v193_v34 = vadd.f32 %v1436_v3, %v191_v56  ;;  %v358_v49 = vadd.f32 %v1084_v57, %v356_v20 }
  0x71   :  { %v195_v30 = vadd.f32 %v1437_v35, %v193_v34  ;;  %v360_v50 = vadd.f32 %v1088_v13, %v358_v49 }
  0x73   :  { %v197_v9 = vadd.f32 %v1438_v62, %v195_v30  ;;  %v362_v31 = vadd.f32 %v1091_v18, %v360_v50 }
  0x75   :  { %v199_v14 = vadd.f32 %v1439_v12, %v197_v9  ;;  %v364_v26 = vadd.f32 %v1094_v19, %v362_v31 }
  0x77   :  { %v201_v16 = vadd.f32 %v1440_v11, %v199_v14  ;;  %v366_v44 = vadd.f32 %v1097_v21, %v364_v26 }
  0x79   :  { %v203_v63 = vadd.f32 %v1441_v41, %v201_v16  ;;  %v368_v57 = vadd.f32 %v1100_v22, %v366_v44 }
  0x7b   :  { %v205_v32 = vadd.f32 %v1442_v24, %v203_v63  ;;  %v370_v13 = vadd.f32 %v1103_v23, %v368_v57 }
  0x7d   :  { %v207_v10 = vadd.f32 %v1443_v7, %v205_v32  ;;  %v372_v18 = vadd.f32 %v1107_v45, %v370_v13  ;;  %v81_v45 = vld [vmem:[%s1319_s1] sm:$0x1] }
  0x7f   :  { %v209_v55 = vadd.f32 %v1444_v1, %v207_v10  ;;  %v374_v19 = vadd.f32 %v1110_v4, %v372_v18 }
  0x81   :  { %v210_v25 = vrot.slane %v209_v55, 4  ;;  %v376_v60 = vadd.f32 %v1113_v27, %v374_v19 }
  0x83   :  { %v211_v21 = vadd.f32 %v210_v25, %v209_v55  ;;  %v378_v6 = vadd.f32 %v1116_v28, %v376_v60 }
  0x85   :  { %v212_v43 = vrot.slane %v211_v21, 2  ;;  %v380_v22 = vadd.f32 %v1119_v29, %v378_v6 }
  0x87   :  { %v213_v51 = vadd.f32 %v212_v43, %v211_v21  ;;  %v382_v23 = vadd.f32 %v1122_v33, %v380_v22 }
  0x89   :  { %v214_v2 = vrot.slane %v213_v51, 1  ;;  %v384_v15 = vadd.f32 %v1126_v40, %v382_v23 }
  0x8b   :  { %v215_v4 = vadd.f32 %v214_v2, %v213_v51  ;;  %v386_v58 = vadd.f32 %v1129_v42, %v384_v15 }
  0x8d   :  { %v216_v27 = vadd.f32 %v215_v4, %v81_v45  ;;  %v388_v0 = vadd.f32 %v1132_v46, %v386_v58 }
  0x8f   :  { %218 = vst.msk [vmem:[%s1319_s1] sm:$0x1] %vm14_vm0, %v216_v27  ;;  %v390_v28 = vadd.f32 %v1135_v47, %v388_v0 }
  0x91   :  { %v392_v29 = vadd.f32 %v1138_v39, %v390_v28 }
  0x93   :  { %v394_v33 = vadd.f32 %v1141_v48, %v392_v29 }
  0x95   :  { %v396_v40 = vadd.f32 %v1145_v37, %v394_v33  ;;  %v219_v37 = vld [vmem:[%s1320_s2] sm:$0x1] }
  0x97   :  { %v398_v61 = vadd.f32 %v1148_v53, %v396_v40 }
  0x99   :  { %v400_v42 = vadd.f32 %v1151_v54, %v398_v61 }
  0x9b   :  { %v402_v5 = vadd.f32 %v1154_v38, %v400_v42 }
  0x9d   :  { %v404_v46 = vadd.f32 %v1157_v59, %v402_v5 }
  0x9f   :  { %v406_v17 = vadd.f32 %v1160_v36, %v404_v46 }
  0xa1   :  { %v408_v56 = vadd.f32 %v1169_v52, %v406_v17 }
  0xa3   :  { %v410_v47 = vadd.f32 %v1172_v8, %v408_v56 }
  0xa5   :  { %v411_v20 = vrot.slane %v410_v47, 4 }
  0xa7   :  { %v412_v39 = vadd.f32 %v411_v20, %v410_v47 }
  0xa9   :  { %v413_v3 = vrot.slane %v412_v39, 2 }
  0xab   :  { %v414_v48 = vadd.f32 %v413_v3, %v412_v39 }
  0xad   :  { %v415_v34 = vrot.slane %v414_v48, 1 }
  0xaf   :  { %v416_v53 = vadd.f32 %v415_v34, %v414_v48 }
  0xb1   :  { %v417_v54 = vadd.f32 %v416_v53, %v219_v37 }
  0xb3   :  { %418 = vst.msk [vmem:[%s1320_s2] sm:$0x1] %vm14_vm0, %v417_v54 }

// kernel: residual_block_forward.4
= control target key start
LH: loop header
LB: loop body
LE: loop exit
PB: predicated region body
PF: predicated region fallthrough
CT: control target
= control target key end

     0   :  { %s5959_s21 = smov 0   ;;  %s7738_s0 = inlined_call_operand.vmem [shape: f32[2,16,16,4], index: 0, kind: input, shape index: {}]   ;;  %s7739_s1 = inlined_call_operand.vmem [shape: f32[1,4], index: 1, kind: input, shape index: {}]   ;;  %s7740_s2 = inlined_call_operand.vmem [shape: f32[1,4], index: 2, kind: input, shape index: {}]   ;;  %s7741_s3 = inlined_call_operand.vmem [shape: bf16[3,384,128], index: 3, kind: input, shape index: {}]   ;;  %s7742_s4 = inlined_call_operand.vmem [shape: bf16[2,16,16,128], index: 4, kind: output, shape index: {0}]   ;;  %s7743_s5 = inlined_call_operand.vmem [shape: f32[1,128], index: 5, kind: output, shape index: {1}]   ;;  %s7744_s6 = inlined_call_operand.vmem [shape: f32[1,128], index: 6, kind: output, shape index: {2}]  }
   0x1 LB: > { %s4754_s22 = sadd.s32 4294967295, %s5920_s21   ;;  %p4758_p0 = scmp.ge.s32.totalorder %s5920_s21, 1  ;;  %s5920_s21 = sphi %s5959_s21, %s17_s21  }
   0x2   : > { %p207_p1 = scmp.lt.s32.totalorder %s5920_s21, 3 }
   0x4   : > { %p208_p2 = pnand %p4758_p0, %p207_p1 }
   0x6   : > { %211 = sbr.rel (%p208_p2) target bundleno = 630 (0x276), region = 36 }
   0xd   : > { %p237_p3 = scmp.lt.s32.totalorder %s4754_s22, 1  ;;  %p4763_p4 = scmp.ne.s32.totalorder %s4754_s22, 0 }
   0xe   : > { %v5922_v0 = vmov (!%p4763_p4), 0   ;;  %v5923_v1 = vmov (!%p4763_p4), 0.0  }
   0xf   : > { %s238_s23 = scalar_select %p237_p3, %s4754_s22, 1 }
  0x10   : > { %251 = sbr.rel (%p4763_p4) target bundleno = 44 (0x2c), region = 40  ;;  %252 = vst [vmem:[#allocation2] sm:$0xff] (!%p4763_p4), %v5922_v0  ;;  %253 = vst [vmem:[#allocation2 + $0x8] sm:$0xff] (!%p4763_p4), %v5922_v0 }
  0x11   : > { %s4968_s24 = sshll.u32 %s238_s23, 8  ;;  %s4969_s25 = sshll.u32 %s238_s23, 7  ;;  %254 = vst [vmem:[#allocation2 + $0x10] sm:$0xff] (!%p4763_p4), %v5922_v0  ;;  %255 = vst [vmem:[#allocation2 + $0x18] sm:$0xff] (!%p4763_p4), %v5922_v0 }
  0x12   : > { %s5970_s28 = scalar_lea.vmem %s7738_s0, %s4968_s24  ;;  %s5975_s7 = scalar_lea.vmem %s7742_s4, %s4969_s25  ;;  %256 = vst [vmem:[#allocation2 + $0x20] sm:$0xff] (!%p4763_p4), %v5922_v0  ;;  %257 = vst [vmem:[#allocation2 + $0x28] sm:$0xff] (!%p4763_p4), %v5922_v0 }
  0x13   : > { %258 = vst [vmem:[#allocation2 + $0x30] sm:$0xff] (!%p4763_p4), %v5922_v0  ;;  %259 = vst [vmem:[#allocation2 + $0x38] sm:$0xff] (!%p4763_p4), %v5922_v0 }
  0x14   : > { %260 = vst [vmem:[#allocation2 + $0x40] sm:$0xff] (!%p4763_p4), %v5922_v0  ;;  %261 = vst [vmem:[#allocation2 + $0x48] sm:$0xff] (!%p4763_p4), %v5922_v0 }
  0x15   : > { %262 = vst [vmem:[#allocation2 + $0x50] sm:$0xff] (!%p4763_p4), %v5922_v0  ;;  %263 = vst [vmem:[#allocation2 + $0x58] sm:$0xff] (!%p4763_p4), %v5922_v0 }
  0x16   : > { %264 = vst [vmem:[#allocation2 + $0x60] sm:$0xff] (!%p4763_p4), %v5922_v0  ;;  %265 = vst [vmem:[#allocation2 + $0x68] sm:$0xff] (!%p4763_p4), %v5922_v0 }
  0x17   : > { %266 = vst [vmem:[#allocation2 + $0x70] sm:$0xff] %v5922_v0  ;;  %267 = vst [vmem:[#allocation2 + $0x78] sm:$0xff] %v5922_v0 }
  0x18   : > { %268 = vst [vmem:[#allocation2 + $0x80] sm:$0xff] %v5922_v0  ;;  %269 = vst [vmem:[#allocation2 + $0x88] sm:$0xff] %v5922_v0 }
  0x19   : > { %270 = vst [vmem:[#allocation2 + $0x90] sm:$0xff] %v5922_v0  ;;  %271 = vst [vmem:[#allocation2 + $0x98] sm:$0xff] %v5922_v0 }
  0x1a   : > { %272 = vst [vmem:[#allocation2 + $0xa0] sm:$0xff] %v5922_v0  ;;  %273 = vst [vmem:[#allocation2 + $0xa8] sm:$0xff] %v5922_v0 }
  0x1b   : > { %274 = vst [vmem:[#allocation2 + $0xb0] sm:$0xff] %v5922_v0  ;;  %275 = vst [vmem:[#allocation2 + $0xb8] sm:$0xff] %v5922_v0 }
  0x1c   : > { %276 = vst [vmem:[#allocation2 + $0xc0] sm:$0xff] %v5922_v0  ;;  %277 = vst [vmem:[#allocation2 + $0xc8] sm:$0xff] %v5922_v0 }
  0x1d   : > { %278 = vst [vmem:[#allocation2 + $0xd0] sm:$0xff] %v5922_v0  ;;  %279 = vst [vmem:[#allocation2 + $0xd8] sm:$0xff] %v5922_v0 }
  0x1e   : > { %280 = vst [vmem:[#allocation2 + $0xe0] sm:$0xff] %v5922_v0  ;;  %281 = vst [vmem:[#allocation2 + $0xe8] sm:$0xff] %v5922_v0 }
  0x1f   : > { %282 = vst [vmem:[#allocation2 + $0xf0] sm:$0xff] %v5922_v0  ;;  %283 = vst [vmem:[#allocation2 + $0xf8] sm:$0xff] %v5922_v0 }
  0x20   : > { %284 = vst [vmem:[#allocation2 + $0x100] sm:$0xff] %v5922_v0  ;;  %285 = vst [vmem:[#allocation2 + $0x108] sm:$0xff] %v5922_v0 }
  0x21   : > { %286 = vst [vmem:[#allocation2 + $0x110] sm:$0xff] %v5922_v0  ;;  %287 = vst [vmem:[#allocation2 + $0x118] sm:$0xff] %v5922_v0 }
  0x22   : > { %288 = vst [vmem:[#allocation2 + $0x120] sm:$0xff] %v5922_v0  ;;  %289 = vst [vmem:[#allocation2 + $0x128] sm:$0xff] %v5922_v0 }
  0x23   : > { %290 = vst [vmem:[#allocation2 + $0x130] sm:$0xff] %v5922_v0  ;;  %291 = vst [vmem:[#allocation2 + $0x138] sm:$0xff] %v5922_v0 }
  0x24   : > { %292 = vst [vmem:[#allocation2 + $0x140] sm:$0xff] %v5922_v0  ;;  %293 = vst [vmem:[#allocation2 + $0x148] sm:$0xff] %v5922_v0 }
  0x25   : > { %294 = vst [vmem:[#allocation2 + $0x150] sm:$0xff] %v5922_v0  ;;  %295 = vst [vmem:[#allocation2 + $0x158] sm:$0xff] %v5922_v0 }
  0x26   : > { %296 = vst [vmem:[#allocation2 + $0x160] sm:$0xff] %v5922_v0  ;;  %297 = vst [vmem:[#allocation2 + $0x168] sm:$0xff] %v5922_v0 }
  0x27   : > { %298 = vst [vmem:[#allocation2 + $0x170] sm:$0xff] %v5922_v0  ;;  %299 = vst [vmem:[#allocation2 + $0x178] sm:$0xff] %v5922_v0 }
  0x28   : > { %300 = vst [vmem:[#allocation2 + $0x180] sm:$0xff] %v5922_v0  ;;  %301 = vst [vmem:[#allocation2 + $0x188] sm:$0xff] %v5922_v0 }
  0x29   : > { %302 = vst [vmem:[#allocation2 + $0x190] sm:$0xff] %v5922_v0  ;;  %303 = vst [vmem:[#allocation2 + $0x198] sm:$0xff] %v5922_v0 }
  0x2a   : > { %304 = vst [vmem:[#allocation2 + $0x1a0] sm:$0xff] %v5922_v0  ;;  %305 = vst [vmem:[#allocation2 + $0x1a8] sm:$0xff] %v5922_v0 }
  0x2b   : > { %306 = vst [vmem:[%s7743_s5] sm:$0x1] %v5923_v1  ;;  %307 = vst [vmem:[%s7744_s6] sm:$0x1] %v5923_v1 }
  0x2c PF: > { %v5835_v2 = vld [vmem:[%s7741_s3 + $0x100] sm:$0xff]   ;;  %v5838_v5 = vld [vmem:[%s7741_s3 + $0x108] sm:$0xff]   ;;  %v5841_v8 = vld [vmem:[%s7741_s3 + $0x110] sm:$0xff]   ;;  %vm467_vm0 = vcmask 31744   ;;  %vm676_vm1 = vcmask 1046528  }
  0x2d   : > { %v5989_v3 = vld [vmem:[%s7741_s3 + $0x140] sm:$0xff]   ;;  %5097 = vmatprep.subr.bf16.mxu0 %v5835_v2  ;;  %v6002_v6 = vld [vmem:[%s7741_s3 + $0x148] sm:$0xff]   ;;  %v6014_v9 = vld [vmem:[%s7741_s3 + $0x150] sm:$0xff]   ;;  %vm725_vm2 = vsmask.f32 256 }
  0x2e   : > { %v5837_v4 = vld [vmem:[%s7741_s3 + $0xc0] sm:$0xff]   ;;  %5649 = vmatprep.subr.bf16.mxu1 %v5989_v3  ;;  %v5840_v7 = vld [vmem:[%s7741_s3 + $0xc8] sm:$0xff]   ;;  %v5843_v10 = vld [vmem:[%s7741_s3 + $0xd0] sm:$0xff]  }
  0x2f   : > { %5098 = vmatpush3.bf16.msra.mxu0 %v5837_v4  ;;  %5657 = vmatpush3.bf16.msra.mxu1 %v5989_v3  ;;  %v5844_v11 = vld [vmem:[%s7741_s3 + $0x118] sm:$0xff]   ;;  %v5847_v14 = vld [vmem:[%s7741_s3 + $0x120] sm:$0xff]   ;;  %v5850_v17 = vld [vmem:[%s7741_s3 + $0x128] sm:$0xff]  }
  0x30   : > { %5099 = vmatprep.subr.bf16.mxu0 %v5838_v5  ;;  %5650 = vmatprep.subr.bf16.mxu1 %v6002_v6  ;;  %v6027_v12 = vld [vmem:[%s7741_s3 + $0x158] sm:$0xff]   ;;  %v6040_v15 = vld [vmem:[%s7741_s3 + $0x160] sm:$0xff]   ;;  %v6053_v18 = vld [vmem:[%s7741_s3 + $0x168] sm:$0xff]  }
  0x31   : > { %v5846_v13 = vld [vmem:[%s7741_s3 + $0xd8] sm:$0xff]   ;;  %v5849_v16 = vld [vmem:[%s7741_s3 + $0xe0] sm:$0xff]   ;;  %v5852_v19 = vld [vmem:[%s7741_s3 + $0xe8] sm:$0xff]  }
  0x32   : > { %v5853_v20 = vld [vmem:[%s7741_s3 + $0x130] sm:$0xff]   ;;  %v5856_v23 = vld [vmem:[%s7741_s3 + $0x138] sm:$0xff]   ;;  %v308_v25 = vld [vmem:[%s5970_s28] sm:$0xff] }
  0x33   : > { %5100 = vmatpush3.bf16.msra.mxu0 %v5840_v7  ;;  %5658 = vmatpush3.bf16.msra.mxu1 %v6002_v6  ;;  %v6066_v21 = vld [vmem:[%s7741_s3 + $0x170] sm:$0xff]   ;;  %v6077_v24 = vld [vmem:[%s7741_s3 + $0x178] sm:$0xff]   ;;  %v309_v26 = vld [vmem:[%s5970_s28 + $0x8] sm:$0xff] }
  0x34   : > { %5101 = vmatprep.subr.bf16.mxu0 %v5841_v8  ;;  %5651 = vmatprep.subr.bf16.mxu1 %v6014_v9  ;;  %v5855_v22 = vld [vmem:[%s7741_s3 + $0xf0] sm:$0xff]   ;;  %v6085_v27 = vld [vmem:[%s7739_s1] ss:$0 sm:$0xff]  ;;  %v325_v32 = vld [vmem:[%s5970_s28 + $0x88] sm:$0xff] }
  0x35   : > { %v347_v28 = vmul.f32 %v6085_v27, %v308_v25  ;;  %v348_v29 = vmul.f32 %v6085_v27, %v309_v26  ;;  %v6093_v30 = vld [vmem:[%s7740_s2] ss:$0 sm:$0xff]  ;;  %v364_v34 = vmul.f32 %v6085_v27, %v325_v32  ;;  %v326_v35 = vld [vmem:[%s5970_s28 + $0x90] sm:$0xff]  ;;  %v5858_v36 = vld [vmem:[%s7741_s3 + $0xf8] sm:$0xff]  }
  0x36   : > { %v324_v31 = vld [vmem:[%s5970_s28 + $0x80] sm:$0xff]  ;;  %v327_v39 = vld [vmem:[%s5970_s28 + $0x98] sm:$0xff]  ;;  %v365_v43 = vmul.f32 %v6085_v27, %v326_v35  ;;  %v6111_v46 = vld [vmem:[#allocation2 + $0xe8] sm:$0x1] }
  0x37   : > { %5102 = vmatpush3.bf16.msra.mxu0 %v5843_v10  ;;  %5659 = vmatpush3.bf16.msra.mxu1 %v6014_v9  ;;  %v363_v33 = vmul.f32 %v6085_v27, %v324_v31  ;;  %v386_v37 = vadd.f32 %v6093_v30, %v347_v28  ;;  %v387_v38 = vadd.f32 %v6093_v30, %v348_v29  ;;  %v1318_v42 = vld [vmem:[#allocation2 + $0x18] sm:$0x80]  ;;  %v5859_v48 = vld [vmem:[%s7741_s3 + $0x40] sm:$0xff]   ;;  %v310_v57 = vld [vmem:[%s5970_s28 + $0x10] sm:$0xff]  ;;  %v1535_v1 = vrot.slane %v6111_v46, 1 }
  0x38   : > { %5103 = vmatprep.subr.bf16.mxu0 %v5844_v11  ;;  %5652 = vmatprep.subr.bf16.mxu1 %v6027_v12  ;;  %v403_v41 = vadd.f32 %v6093_v30, %v364_v34  ;;  %v366_v47 = vmul.f32 %v6085_v27, %v327_v39  ;;  %v404_v51 = vadd.f32 %v6093_v30, %v365_v43  ;;  %v6120_v56 = vld [vmem:[#allocation2 + $0x100] sm:$0x1]  ;;  %v311_v58 = vld [vmem:[%s5970_s28 + $0x18] sm:$0xff]  ;;  %v1559_v59 = vshrl.u32 %v1318_v42, 16  ;;  %v329_v0 = vld [vmem:[%s5970_s28 + $0xa8] sm:$0xff] }
  0x39   : > { %v402_v40 = vadd.f32 %v6093_v30, %v363_v33  ;;  %v418_v44 = vmax.f32 %v386_v37, 0.0  ;;  %v419_v45 = vmax.f32 %v387_v38, 0.0  ;;  %v349_v61 = vmul.f32 %v6085_v27, %v310_v57  ;;  %v328_v63 = vld [vmem:[%s5970_s28 + $0xa0] sm:$0xff]  ;;  %v6134_v5 = vld [vmem:[#allocation2 + $0x118] sm:$0x1]  ;;  %v330_v7 = vld [vmem:[%s5970_s28 + $0xb0] sm:$0xff] }
  0x3a   : > { %v435_v50 = vmax.f32 %v403_v41, 0.0  ;;  %v405_v53 = vadd.f32 %v6093_v30, %v366_v47  ;;  %v436_v55 = vmax.f32 %v404_v51, 0.0  ;;  %v350_v62 = vmul.f32 %v6085_v27, %v311_v58  ;;  %v331_v8 = vld [vmem:[%s5970_s28 + $0xb8] sm:$0xff]  ;;  %v6147_v28 = vld [vmem:[#allocation2 + $0x30] sm:$0x80]  ;;  %v312_v41 = vld [vmem:[%s5970_s28 + $0x20] sm:$0xff] }
  0x3b   : > { %5104 = vmatpush3.bf16.msra.mxu0 %v5846_v13  ;;  %5660 = vmatpush3.bf16.msra.mxu1 %v6027_v12  ;;  %v434_v49 = vmax.f32 %v402_v40, 0.0  ;;  %v450_v52 = vpack.c.bf16 %v419_v45, %v418_v44  ;;  %v367_v2 = vmul.f32 %v6085_v27, %v328_v63  ;;  %v368_v4 = vmul.f32 %v6085_v27, %v329_v0  ;;  %v6151_v35 = vld [vmem:[#allocation2 + $0x130] sm:$0x1]  ;;  %v313_v42 = vld [vmem:[%s5970_s28 + $0x28] sm:$0xff] }
  0x3c   : > { %5105 = vmatprep.subr.bf16.mxu0 %v5847_v14  ;;  %5653 = vmatprep.subr.bf16.mxu1 %v6040_v15  ;;  %v437_v60 = vmax.f32 %v405_v53, 0.0  ;;  %v1538_v11 = vrot.slane %v6120_v56, 1  ;;  %v388_v13 = vadd.f32 %v6093_v30, %v349_v61  ;;  %v389_v14 = vadd.f32 %v6093_v30, %v350_v62 }
  0x3d   : > { %v458_v54 = vpack.c.bf16 %v435_v50, %v434_v49  ;;  %468 = vst.msk [vmem:[#allocation2 + $0x20] sm:$0xff] %vm467_vm0, %v450_v52  ;;  %v1541_v26 = vrot.slane %v6134_v5, 1  ;;  %v1590_v38 = vshrl.u32 %v6147_v28, 16  ;;  %v351_v46 = vmul.f32 %v6085_v27, %v312_v41  ;;  %v333_v49 = vld [vmem:[%s5970_s28 + $0xc8] sm:$0xff] }
  0x3e   : > { %v459_v10 = vpack.c.bf16 %v437_v60, %v436_v55  ;;  %v421_v25 = vmax.f32 %v389_v14, 0.0  ;;  %v352_v47 = vmul.f32 %v6085_v27, %v313_v42  ;;  %v1544_v52 = vrot.slane %v6151_v35, 1  ;;  %v5861_v5 = vld [vmem:[%s7741_s3 + $0x48] sm:$0xff]   ;;  %v314_v35 = vld [vmem:[%s5970_s28 + $0x30] sm:$0xff] }
  0x3f   : > { %5106 = vmatpush3.bf16.msra.mxu0 %v5849_v16  ;;  %5661 = vmatpush3.bf16.msra.mxu1 %v6040_v15  ;;  %476 = vst.msk [vmem:[#allocation2 + $0xe0] sm:$0xff] %vm467_vm0, %v458_v54  ;;  %v406_v16 = vadd.f32 %v6093_v30, %v367_v2  ;;  %v390_v57 = vadd.f32 %v6093_v30, %v351_v46 }
  0x40   : > { %5107 = vmatprep.subr.bf16.mxu0 %v5850_v17  ;;  %5654 = vmatprep.subr.bf16.mxu1 %v6053_v18  ;;  %v407_v17 = vadd.f32 %v6093_v30, %v368_v4  ;;  %477 = vst.msk [vmem:[#allocation2 + $0xf8] sm:$0xff] %vm467_vm0, %v459_v10  ;;  %v391_v58 = vadd.f32 %v6093_v30, %v352_v47 }
  0x41   : > { %v438_v29 = vmax.f32 %v406_v16, 0.0  ;;  %v372_v62 = vmul.f32 %v6085_v27, %v333_v49 }
  0x42   : > { %v439_v31 = vmax.f32 %v407_v17, 0.0 }
  0x43   : > { %5108 = vmatpush3.bf16.msra.mxu0 %v5852_v19  ;;  %5662 = vmatpush3.bf16.msra.mxu1 %v6053_v18  ;;  %v369_v19 = vmul.f32 %v6085_v27, %v330_v7 }
  0x44   : > { %5109 = vmatprep.subr.bf16.mxu0 %v5853_v20  ;;  %5655 = vmatprep.subr.bf16.mxu1 %v6066_v21  ;;  %v370_v20 = vmul.f32 %v6085_v27, %v331_v8  ;;  %v460_v37 = vpack.c.bf16 %v439_v31, %v438_v29  ;;  %v423_v31 = vmax.f32 %v391_v58, 0.0 }
  0x45   : > { %v408_v32 = vadd.f32 %v6093_v30, %v369_v19 }
  0x46   : > { %v409_v33 = vadd.f32 %v6093_v30, %v370_v20  ;;  %v6156_v45 = vld [vmem:[#allocation2 + $0xe0] sm:$0xff]  ;;  %478 = vst.msk [vmem:[#allocation2 + $0x110] sm:$0xff] %vm467_vm0, %v460_v37 }
  0x47   : > { %5110 = vmatpush3.bf16.msra.mxu0 %v5855_v22  ;;  %5663 = vmatpush3.bf16.msra.mxu1 %v6066_v21  ;;  %v1561_v22 = vrot.slane %v1559_v59, 7  ;;  %v440_v39 = vmax.f32 %v408_v32, 0.0  ;;  %v1534_v50 = vrot.slane %v6156_v45, 1  ;;  %v6170_v61 = vld [vmem:[#allocation2 + $0xf8] sm:$0xff] }
  0x48   : > { %5111 = vmatprep.subr.bf16.mxu0 %v5856_v23  ;;  %5656 = vmatprep.subr.bf16.mxu1 %v6077_v24  ;;  %v420_v23 = vmax.f32 %v388_v13, 0.0  ;;  %v441_v40 = vmax.f32 %v409_v33, 0.0  ;;  %v1537_v13 = vrot.slane %v6170_v61, 1 }
  0x49   : > { %v1536_v59 = vsel %vm676_vm1, %v1534_v50, %v1535_v1  ;;  %v1826_v60 = vshrl.u32 %v1534_v50, 16  ;;  %v422_v1 = vmax.f32 %v390_v57, 0.0 }
  0x4a   : > { %v451_v34 = vpack.c.bf16 %v421_v25, %v420_v23  ;;  %v461_v51 = vpack.c.bf16 %v441_v40, %v440_v39  ;;  %v1830_v4 = vshrl.u32 %v1536_v59, 16  ;;  %v1833_v7 = vshll.u32 %v1536_v59, 16 }
  0x4b   : > { %5112 = vmatpush3.bf16.msra.mxu0 %v5858_v36  ;;  %5664 = vmatpush3.bf16.msra.mxu1 %v6077_v24  ;;  %v1319_v36 = vld [vmem:[#allocation2 + $0x20] sm:$0xff]  ;;  %v1828_v8 = vrot.slane %v1826_v60, 7  ;;  %v1539_v23 = vsel %vm676_vm1, %v1537_v13, %v1538_v11  ;;  %v1857_v25 = vshrl.u32 %v1537_v13, 16  ;;  %v1592_v59 = vrot.slane %v1590_v38, 7 }
  0x4c   : > { %5505 = vmatprep.subr.bf16.mxu0 %v5989_v3  ;;  %5233 = vmatprep.subr.bf16.mxu1 %v5859_v48  ;;  %v1367_v43 = vshll.u32 %v1319_v36, 16  ;;  %v1370_v44 = vshrl.u32 %v1319_v36, 16  ;;  %469 = vst.msk [vmem:[#allocation2 + $0x38] sm:$0xff] %vm467_vm0, %v451_v34  ;;  %v332_v48 = vld [vmem:[%s5970_s28 + $0xc0] sm:$0xff]  ;;  %479 = vst.msk [vmem:[#allocation2 + $0x128] sm:$0xff] %vm467_vm0, %v461_v51  ;;  %v1832_v19 = vrot.slane %v1830_v4, 7 }
  0x4d   : > { %v371_v53 = vmul.f32 %v6085_v27, %v332_v48  ;;  %v1861_v34 = vshrl.u32 %v1539_v23, 16  ;;  %v1864_v36 = vshll.u32 %v1539_v23, 16  ;;  %v6185_v37 = vld [vmem:[#allocation2 + $0x110] sm:$0xff]  ;;  %v1859_v39 = vrot.slane %v1857_v25, 7 }
  0x4e   : > { %v1369_v54 = vrot.slane %v1367_v43, 1  ;;  %v1562_v55 = vrot.slane %v1370_v44, 7  ;;  %v1835_v33 = vor.u32 %v1833_v7, %v1832_v19  ;;  %v1540_v42 = vrot.slane %v6185_v37, 1  ;;  %v335_v19 = vld [vmem:[%s5970_s28 + $0xd8] sm:$0xff] }
  0x4f   : > { %v6175_v63 = vadd.f32 %v6093_v30, %v371_v53  ;;  %v1863_v56 = vrot.slane %v1861_v34, 7  ;;  %v5860_v53 = vld [vmem:[%s7741_s3] sm:$0xff]   ;;  %v411_v7 = vadd.f32 %v6093_v30, %v372_v62 }
  0x50   : > { %v1372_v0 = vor.u32 %v1370_v44, %v1369_v54  ;;  %v1566_v2 = vshrl.u32 %v1369_v54, 16  ;;  %v6177_v10 = vor.u32 %v1562_v55, %v1367_v43  ;;  %v452_v44 = vpack.c.bf16 %v423_v31, %v422_v1  ;;  %v5863_v1 = vld [vmem:[%s7741_s3 + $0x50] sm:$0xff]  }
  0x51   : > { %v1542_v46 = vsel %vm676_vm1, %v1540_v42, %v1541_v26  ;;  %v1888_v47 = vshrl.u32 %v1540_v42, 16  ;;  %v1866_v51 = vor.u32 %v1864_v36, %v1863_v56  ;;  %v315_v56 = vld [vmem:[%s5970_s28 + $0x38] sm:$0xff] }
  0x52   : > { %v1568_v14 = vrot.slane %v1566_v2, 7  ;;  %v1570_v16 = vshrl.u32 %v1372_v0, 16  ;;  %v1573_v17 = vshll.u32 %v1372_v0, 16  ;;  %v1564_v20 = vsel %vm725_vm2, %v1561_v22, %v6177_v10  ;;  %470 = vst.msk [vmem:[#allocation2 + $0x50] sm:$0xff] %vm467_vm0, %v452_v44  ;;  %v5862_v0 = vld [vmem:[%s7741_s3 + $0x8] sm:$0xff]   ;;  %v336_v44 = vld [vmem:[%s5970_s28 + $0xe0] sm:$0xff] }
  0x53   : > { %v1321_v29 = vld [vmem:[#allocation2 + $0x38] sm:$0xff]  ;;  %v1836_v22 = vsel %vm725_vm2, %v1828_v8, %v1835_v33  ;;  %v6192_v49 = vld [vmem:[#allocation2 + $0x128] sm:$0xff]  ;;  %v1892_v54 = vshrl.u32 %v1542_v46, 16  ;;  %v1895_v55 = vshll.u32 %v1542_v46, 16  ;;  %v1890_v58 = vrot.slane %v1888_v47, 7 }
  0x54   : > { %v1572_v32 = vrot.slane %v1570_v16, 7  ;;  %v1374_v40 = vshll.u32 %v1321_v29, 16  ;;  %v1377_v41 = vshrl.u32 %v1321_v29, 16  ;;  %5537 = vmatprep.mubr.bf16.mxu1 %v1836_v22  ;;  %v1867_v60 = vsel %vm725_vm2, %v1859_v39, %v1866_v51  ;;  %v1322_v33 = vld [vmem:[#allocation2 + $0x48] sm:$0x80]  ;;  %v5865_v46 = vld [vmem:[%s7741_s3 + $0x58] sm:$0xff]  }
  0x55   : > { %v1894_v2 = vrot.slane %v1892_v54, 7  ;;  %v1543_v4 = vrot.slane %v6192_v49, 1  ;;  %5538 = vmatmul.mubr.bf16.vlgmr.msra.gmra.mrb[0].mxu1 %v1867_v60  ;;  %v443_v29 = vmax.f32 %v411_v7, 0.0  ;;  %v374_v22 = vmul.f32 %v6085_v27, %v335_v19  ;;  %v6246_v47 = vld [vmem:[#allocation2 + $0x148] sm:$0x1]  ;;  %v338_v19 = vld [vmem:[%s5970_s28 + $0xf0] sm:$0xff] }
  0x56   : > { %v1575_v43 = vor.u32 %v1573_v17, %v1572_v32  ;;  %v1376_v11 = vrot.slane %v1374_v40, 1  ;;  %v1593_v48 = vrot.slane %v1377_v41, 7  ;;  %5234 = vmatpush3.bf16.msra.mxu1 %v5860_v53  ;;  %v442_v17 = vmax.f32 %v6175_v63, 0.0  ;;  %v337_v53 = vld [vmem:[%s5970_s28 + $0xe8] sm:$0xff] }
  0x57   : > { %v1545_v16 = vsel %vm676_vm1, %v1543_v4, %v1544_v52  ;;  %v1919_v62 = vshrl.u32 %v1543_v4, 16  ;;  %5235 = vmatprep.subr.bf16.mxu1 %v5861_v5  ;;  %v413_v5 = vadd.f32 %v6093_v30, %v374_v22  ;;  %v375_v60 = vmul.f32 %v6085_v27, %v336_v44  ;;  %v316_v44 = vld [vmem:[%s5970_s28 + $0x40] sm:$0xff] }
  0x58   : > { %v6195_v50 = vsel %vm725_vm2, %v1568_v14, %v1575_v43  ;;  %v1379_v26 = vor.u32 %v1377_v41, %v1376_v11  ;;  %v1597_v57 = vshrl.u32 %v1376_v11, 16  ;;  %v6214_v13 = vor.u32 %v1593_v48, %v1374_v40  ;;  %v5864_v41 = vld [vmem:[%s7741_s3 + $0x10] sm:$0xff]  }
  0x59   : > { %2327 = vmatprep.mubr.bf16.mxu0 %v6195_v50  ;;  %v1897_v14 = vor.u32 %v1895_v55, %v1894_v2  ;;  %v1923_v23 = vshrl.u32 %v1545_v16, 16  ;;  %v1926_v25 = vshll.u32 %v1545_v16, 16  ;;  %v1921_v32 = vrot.slane %v1919_v62, 7  ;;  %v1323_v63 = vld [vmem:[#allocation2 + $0x50] sm:$0xff] }
  0x5a   : > { %2328 = vmatmul.mubr.bf16.vlgmr.msra.gmra.mrb[0].mxu0 %v1564_v20  ;;  %v1599_v8 = vrot.slane %v1597_v57, 7  ;;  %v1601_v28 = vshrl.u32 %v1379_v26, 16  ;;  %v1604_v38 = vshll.u32 %v1379_v26, 16  ;;  %v462_v36 = vpack.c.bf16 %v443_v29, %v442_v17  ;;  %5236 = vmatpush3.bf16.msra.mxu1 %v5862_v0 }
  0x5b   : > { %5506 = vmatpush3.bf16.msra.mxu0 %v5989_v3  ;;  %v334_v3 = vld [vmem:[%s5970_s28 + $0xd0] sm:$0xff]  ;;  %v1898_v31 = vsel %vm725_vm2, %v1890_v58, %v1897_v14  ;;  %v1925_v34 = vrot.slane %v1923_v23, 7  ;;  %v1595_v40 = vsel %vm725_vm2, %v1592_v59, %v6214_v13  ;;  %v1381_v42 = vshll.u32 %v1323_v63, 16  ;;  %5237 = vmatprep.subr.bf16.mxu1 %v5863_v1 }
  0x5c   : > { %5507 = vmatprep.subr.bf16.mxu0 %v6002_v6  ;;  %v1603_v20 = vrot.slane %v1601_v28, 7  ;;  %5541 = vmatprep.mubr.bf16.mxu1 %v1898_v31  ;;  %v373_v39 = vmul.f32 %v6085_v27, %v334_v3  ;;  %v1384_v43 = vshrl.u32 %v1323_v63, 16  ;;  %480 = vst.msk [vmem:[#allocation2 + $0x140] sm:$0xff] %vm467_vm0, %v462_v36  ;;  %v1621_v48 = vshrl.u32 %v1322_v33, 16  ;;  %v5867_v28 = vld [vmem:[%s7741_s3 + $0x60] sm:$0xff]  }
  0x5d   : > { %v1383_v54 = vrot.slane %v1381_v42, 1  ;;  %v353_v26 = vmul.f32 %v6085_v27, %v314_v35  ;;  %v354_v59 = vmul.f32 %v6085_v27, %v315_v56  ;;  %v1547_v4 = vrot.slane %v6246_v47, 1  ;;  %v6273_v31 = vld [vmem:[#allocation2 + $0x60] sm:$0x80] }
  0x5e   : > { %v1606_v52 = vor.u32 %v1604_v38, %v1603_v20  ;;  %v412_v51 = vadd.f32 %v6093_v30, %v373_v39  ;;  %v1624_v55 = vrot.slane %v1384_v43, 7  ;;  %v445_v7 = vmax.f32 %v413_v5, 0.0  ;;  %5238 = vmatpush3.bf16.msra.mxu1 %v5864_v41  ;;  %v5868_v36 = vld [vmem:[%s7741_s3 + $0x20] sm:$0xff]   ;;  %v5869_v39 = vld [vmem:[%s7741_s3 + $0x68] sm:$0xff]  }
  0x5f   : > { %5508 = vmatpush3.bf16.msra.mxu0 %v6002_v6  ;;  %v1928_v6 = vor.u32 %v1926_v25, %v1925_v34  ;;  %v1386_v0 = vor.u32 %v1384_v43, %v1383_v54  ;;  %v1628_v2 = vshrl.u32 %v1383_v54, 16  ;;  %v392_v38 = vadd.f32 %v6093_v30, %v353_v26  ;;  %5239 = vmatprep.subr.bf16.mxu1 %v5865_v46  ;;  %v1363_v26 = vld [vmem:[#allocation2 + $0x160] sm:$0x1] }
  0x60   : > { %5509 = vmatprep.subr.bf16.mxu0 %v6014_v9  ;;  %v6240_v11 = vsel %vm725_vm2, %v1599_v8, %v1606_v52  ;;  %v444_v58 = vmax.f32 %v412_v51, 0.0  ;;  %v5866_v8 = vld [vmem:[%s7741_s3 + $0x18] sm:$0xff]   ;;  %v393_v1 = vadd.f32 %v6093_v30, %v354_v59  ;;  %v376_v14 = vmul.f32 %v6085_v27, %v337_v53  ;;  %v6298_v53 = vld [vmem:[#allocation2 + $0x8] sm:$0xff] }
  0x61   : > { %2335 = vmatprep.mubr.bf16.mxu0 %v6240_v11  ;;  %v1929_v57 = vsel %vm725_vm2, %v1921_v32, %v1928_v6  ;;  %v414_v16 = vadd.f32 %v6093_v30, %v375_v60  ;;  %v1635_v62 = vshll.u32 %v1386_v0, 16  ;;  %v1623_v17 = vrot.slane %v1621_v48, 7  ;;  %v339_v32 = vld [vmem:[%s5970_s28 + $0xf8] sm:$0xff]  ;;  %v317_v6 = vld [vmem:[%s5970_s28 + $0x48] sm:$0xff] }
  0x62   : > { %2336 = vmatmul.mubr.bf16.gmra.mrb[4].mxu0 %v1595_v40  ;;  %5542 = vmatmul.mubr.bf16.gmra.mrb[4].mxu1 %v1929_v57  ;;  %v6268_v3 = vor.u32 %v1624_v55, %v1381_v42  ;;  %v463_v20 = vpack.c.bf16 %v445_v7, %v444_v58  ;;  %v424_v23 = vmax.f32 %v392_v38, 0.0  ;;  %v425_v25 = vmax.f32 %v393_v1, 0.0  ;;  %v5870_v59 = vld [vmem:[%s7741_s3 + $0x28] sm:$0xff]   ;;  %v1364_v1 = vld [vmem:[#allocation2 + $0x178] sm:$0x1] }
  0x63   : > { %5510 = vmatpush3.bf16.msra.mxu0 %v6014_v9  ;;  %v1632_v9 = vshrl.u32 %v1386_v0, 16  ;;  %v415_v29 = vadd.f32 %v6093_v30, %v376_v14  ;;  %v1630_v33 = vrot.slane %v1628_v2, 7  ;;  %v6276_v52 = vld [vmem:[#allocation2 + $0x140] sm:$0xff]  ;;  %v446_v34 = vmax.f32 %v414_v16, 0.0  ;;  %5240 = vmatpush3.bf16.msra.mxu1 %v5866_v8  ;;  %v5871_v0 = vld [vmem:[%s7741_s3 + $0x70] sm:$0xff]  }
  0x64   : > { %5511 = vmatprep.subr.bf16.mxu0 %v6027_v12  ;;  %v1546_v63 = vrot.slane %v6276_v52, 1  ;;  %481 = vst.msk [vmem:[#allocation2 + $0x158] sm:$0xff] %vm467_vm0, %v463_v20  ;;  %v453_v40 = vpack.c.bf16 %v425_v25, %v424_v23  ;;  %v377_v42 = vmul.f32 %v6085_v27, %v338_v19  ;;  %v1626_v43 = vsel %vm725_vm2, %v1623_v17, %v6268_v3  ;;  %v6322_v19 = vld [vmem:[#allocation2 + $0x190] sm:$0x1] }
  0x65   : > { %v1634_v35 = vrot.slane %v1632_v9, 7  ;;  %v447_v41 = vmax.f32 %v415_v29, 0.0  ;;  %5241 = vmatprep.subr.bf16.mxu1 %v5867_v28  ;;  %v1652_v22 = vshrl.u32 %v6273_v31, 16  ;;  %v378_v56 = vmul.f32 %v6085_v27, %v339_v32  ;;  %v5872_v25 = vld [vmem:[%s7741_s3 + $0x30] sm:$0xff]   ;;  %v6331_v32 = vld [vmem:[#allocation2 + $0x78] sm:$0x80] }
  0x66   : > { %v1548_v46 = vsel %vm676_vm1, %v1546_v63, %v1547_v4  ;;  %v1950_v47 = vshrl.u32 %v1546_v63, 16  ;;  %471 = vst.msk [vmem:[#allocation2 + $0x68] sm:$0xff] %vm467_vm0, %v453_v40  ;;  %v416_v51 = vadd.f32 %v6093_v30, %v377_v42  ;;  %v355_v2 = vmul.f32 %v6085_v27, %v316_v44 }
  0x67   : > { %5512 = vmatpush3.bf16.msra.mxu0 %v6027_v12  ;;  %v1637_v12 = vor.u32 %v1635_v62, %v1634_v35  ;;  %v464_v48 = vpack.c.bf16 %v447_v41, %v446_v34  ;;  %v1954_v55 = vshrl.u32 %v1548_v46, 16  ;;  %v1957_v5 = vshll.u32 %v1548_v46, 16  ;;  %5242 = vmatpush3.bf16.msra.mxu1 %v5868_v36 }
  0x68   : > { %5513 = vmatprep.subr.bf16.mxu0 %v6040_v15  ;;  %v417_v57 = vadd.f32 %v6093_v30, %v378_v56  ;;  %v1952_v58 = vrot.slane %v1950_v47, 7  ;;  %v448_v60 = vmax.f32 %v416_v51, 0.0  ;;  %v356_v4 = vmul.f32 %v6085_v27, %v317_v6  ;;  %5243 = vmatprep.subr.bf16.mxu1 %v5869_v39  ;;  %v5874_v51 = vld [vmem:[%s7741_s3 + $0x38] sm:$0xff]  }
  0x69   : > { %v6301_v54 = vsel %vm725_vm2, %v1630_v33, %v1637_v12  ;;  %482 = vst.msk [vmem:[#allocation2 + $0x170] sm:$0xff] %vm467_vm0, %v464_v48  ;;  %v533_v8 = vshll.u32 %v6298_v53, 16  ;;  %v536_v28 = vshrl.u32 %v6298_v53, 16  ;;  %v1550_v38 = vrot.slane %v1363_v26, 1 }
  0x6a   : > { %2343 = vmatprep.mubr.bf16.mxu0 %v6301_v54  ;;  %v449_v7 = vmax.f32 %v417_v57, 0.0  ;;  %v394_v14 = vadd.f32 %v6093_v30, %v355_v2  ;;  %v395_v16 = vadd.f32 %v6093_v30, %v356_v4  ;;  %v1553_v34 = vrot.slane %v1364_v1, 1  ;;  %v6361_v57 = vld [vmem:[%s7741_s3 + $0x80] sm:$0xff]  }
  0x6b   : > { %5514 = vmatpush3.bf16.msra.mxu0 %v6040_v15  ;;  %v1956_v15 = vrot.slane %v1954_v55, 7  ;;  %v6320_v62 = vld [vmem:[#allocation2 + $0x158] sm:$0xff]  ;;  %v535_v20 = vrot.slane %v533_v8, 1  ;;  %5244 = vmatpush3.bf16.msra.mxu1 %v5870_v59  ;;  %v6335_v63 = vrot.slane %v1652_v22, 7  ;;  %v1556_v48 = vrot.slane %v6322_v19, 1 }
  0x6c   : > { %2344 = vmatmul.mubr.bf16.gmra.mrb[8].mxu0 %v1626_v43  ;;  %5515 = vmatprep.subr.bf16.mxu0 %v6053_v18  ;;  %v465_v17 = vpack.c.bf16 %v449_v7, %v448_v60  ;;  %v1549_v23 = vrot.slane %v6320_v62, 1  ;;  %v426_v29 = vmax.f32 %v394_v14, 0.0  ;;  %v427_v31 = vmax.f32 %v395_v16, 0.0  ;;  %v319_v19 = vld [vmem:[%s5970_s28 + $0x58] sm:$0xff] }
  0x6d   : > { %v1959_v9 = vor.u32 %v1957_v5, %v1956_v15  ;;  %v1325_v35 = vld [vmem:[#allocation2 + $0x68] sm:$0xff]  ;;  %5245 = vmatprep.subr.bf16.mxu1 %v5871_v0  ;;  %v6343_v36 = vor.u32 %v536_v28, %v535_v20  ;;  %v734_v44 = vshrl.u32 %v535_v20, 16  ;;  %v1683_v26 = vshrl.u32 %v6331_v32, 16 }
  0x6e   : > { %483 = vst.msk [vmem:[#allocation2 + $0x188] sm:$0xff] %vm467_vm0, %v465_v17  ;;  %v1551_v39 = vsel %vm676_vm1, %v1549_v23, %v1550_v38  ;;  %v1981_v40 = vshrl.u32 %v1549_v23, 16  ;;  %v1388_v41 = vshll.u32 %v1325_v35, 16  ;;  %v1391_v42 = vshrl.u32 %v1325_v35, 16  ;;  %v318_v38 = vld [vmem:[%s5970_s28 + $0x50] sm:$0xff] }
  0x6f   : > { %5516 = vmatpush3.bf16.msra.mxu0 %v6053_v18  ;;  %v1960_v33 = vsel %vm725_vm2, %v1952_v58, %v1959_v9  ;;  %v5873_v18 = vld [vmem:[%s7741_s3 + $0x78] sm:$0xff]   ;;  %v1985_v12 = vshrl.u32 %v1551_v39, 16  ;;  %v1988_v43 = vshll.u32 %v1551_v39, 16  ;;  %v454_v56 = vpack.c.bf16 %v427_v31, %v426_v29  ;;  %5246 = vmatpush3.bf16.msra.mxu1 %v5872_v25  ;;  %v484_v39 = vld [vmem:[#allocation2] sm:$0x80] }
  0x70   : > { %5517 = vmatprep.subr.bf16.mxu0 %v6066_v21  ;;  %5545 = vmatprep.mubr.bf16.mxu1 %v1960_v33  ;;  %v6346_v22 = vld [vmem:[#allocation2 + $0x170] sm:$0xff]  ;;  %v1390_v6 = vrot.slane %v1388_v41, 1  ;;  %v1655_v47 = vrot.slane %v1391_v42, 7  ;;  %v1983_v55 = vrot.slane %v1981_v40, 7  ;;  %v736_v7 = vrot.slane %v734_v44, 7 }
  0x71   : > { %v1552_v46 = vrot.slane %v6346_v22, 1  ;;  %v1987_v5 = vrot.slane %v1985_v12, 7  ;;  %5247 = vmatprep.subr.bf16.mxu1 %v5873_v18  ;;  %472 = vst.msk [vmem:[#allocation2 + $0x80] sm:$0xff] %vm467_vm0, %v454_v56  ;;  %v741_v17 = vshll.u32 %v6343_v36, 16  ;;  %v357_v35 = vmul.f32 %v6085_v27, %v318_v38 }
  0x72   : > { %v1393_v58 = vor.u32 %v1391_v42, %v1390_v6  ;;  %v1659_v59 = vshrl.u32 %v1390_v6, 16  ;;  %v6366_v16 = vor.u32 %v1655_v47, %v1388_v41  ;;  %v358_v40 = vmul.f32 %v6085_v27, %v319_v19  ;;  %v5882_v41 = vld [vmem:[%s7741_s3 + $0x1c0] sm:$0xff]  }
  0x73   : > { %5518 = vmatpush3.bf16.msra.mxu0 %v6066_v21  ;;  %v738_v21 = vshrl.u32 %v6343_v36, 16  ;;  %v1554_v60 = vsel %vm676_vm1, %v1552_v46, %v1553_v34  ;;  %v2012_v0 = vshrl.u32 %v1552_v46, 16  ;;  %v1990_v2 = vor.u32 %v1988_v43, %v1987_v5  ;;  %5248 = vmatpush3.bf16.msra.mxu1 %v5874_v51  ;;  %v320_v51 = vld [vmem:[%s5970_s28 + $0x60] sm:$0xff] }
  0x74   : > { %5519 = vmatprep.subr.bf16.mxu0 %v6077_v24  ;;  %v2016_v4 = vshrl.u32 %v1554_v60, 16  ;;  %v2019_v15 = vshll.u32 %v1554_v60, 16  ;;  %v1663_v1 = vshrl.u32 %v1393_v58, 16  ;;  %v1666_v14 = vshll.u32 %v1393_v58, 16  ;;  %5553 = vmatprep.subr.bf16.mxu1 %v6361_v57 }
  0x75   : > { %v6368_v9 = vld [vmem:[#allocation2 + $0x188] sm:$0xff]  ;;  %v1991_v20 = vsel %vm725_vm2, %v1983_v55, %v1990_v2  ;;  %v2014_v23 = vrot.slane %v2012_v0, 7  ;;  %v740_v33 = vrot.slane %v738_v21, 7  ;;  %v1657_v12 = vsel %vm725_vm2, %v6335_v63, %v6366_v16 }
  0x76   : > { %v2018_v25 = vrot.slane %v2016_v4, 7  ;;  %v1555_v29 = vrot.slane %v6368_v9, 1  ;;  %5546 = vmatmul.mubr.bf16.gmra.mrb[8].mxu1 %v1991_v20  ;;  %v1665_v31 = vrot.slane %v1663_v1, 7  ;;  %v396_v21 = vadd.f32 %v6093_v30, %v357_v35  ;;  %v321_v2 = vld [vmem:[%s5970_s28 + $0x68] sm:$0xff] }
  0x77   : > { %5520 = vmatpush3.bf16.msra.mxu0 %v6077_v24  ;;  %v1661_v24 = vrot.slane %v1659_v59, 7  ;;  %v727_v59 = vshrl.u32 %v484_v39, 16  ;;  %v730_v60 = vrot.slane %v536_v28, 7  ;;  %v397_v0 = vadd.f32 %v6093_v30, %v358_v40 }
  0x78   : > { %v2021_v34 = vor.u32 %v2019_v15, %v2018_v25  ;;  %v1557_v18 = vsel %vm676_vm1, %v1555_v29, %v1556_v48  ;;  %v2043_v36 = vshrl.u32 %v1555_v29, 16  ;;  %v1668_v42 = vor.u32 %v1666_v14, %v1665_v31  ;;  %v6384_v44 = vld [vmem:[#allocation2 + $0x80] sm:$0xff]  ;;  %5369 = vmatprep.subr.bf16.mxu0 %v5882_v41  ;;  %v322_v29 = vld [vmem:[%s5970_s28 + $0x70] sm:$0xff] }
  0x79   : > { %v2047_v43 = vshrl.u32 %v1557_v18, 16  ;;  %v2050_v56 = vshll.u32 %v1557_v18, 16  ;;  %v1395_v46 = vshll.u32 %v6384_v44, 16  ;;  %v1398_v47 = vshrl.u32 %v6384_v44, 16  ;;  %v323_v18 = vld [vmem:[%s5970_s28 + $0x78] sm:$0xff] }
  0x7a   : > { %v2022_v6 = vsel %vm725_vm2, %v2014_v23, %v2021_v34  ;;  %v743_v48 = vor.u32 %v741_v17, %v740_v33  ;;  %v6391_v55 = vsel %vm725_vm2, %v1661_v24, %v1668_v42  ;;  %v2045_v5 = vrot.slane %v2043_v36, 7  ;;  %v486_v34 = vld [vmem:[#allocation2 + $0x18] sm:$0x80]  ;;  %v1328_v41 = vld [vmem:[#allocation2 + $0x90] sm:$0x80] }
  0x7b   : > { %5549 = vmatprep.mubr.bf16.mxu1 %v2022_v6  ;;  %v2049_v63 = vrot.slane %v2047_v43, 7  ;;  %2351 = vmatprep.mubr.bf16.mxu0 %v6391_v55  ;;  %v1397_v58 = vrot.slane %v1395_v46, 1  ;;  %v1686_v15 = vrot.slane %v1398_v47, 7  ;;  %v428_v38 = vmax.f32 %v396_v21, 0.0  ;;  %v488_v6 = vld [vmem:[#allocation2 + $0x30] sm:$0x80] }
  0x7c   : > { %2352 = vmatmul.mubr.bf16.gmra.mrb[12].mxu0 %v1657_v12  ;;  %v359_v1 = vmul.f32 %v6085_v27, %v320_v51  ;;  %v744_v19 = vsel %vm725_vm2, %v736_v7, %v743_v48  ;;  %v429_v20 = vmax.f32 %v397_v0, 0.0  ;;  %v1685_v28 = vrot.slane %v1683_v26, 7 }
  0x7d   : > { %v2052_v4 = vor.u32 %v2050_v56, %v2049_v63  ;;  %v1400_v14 = vor.u32 %v1398_v47, %v1397_v58  ;;  %v1690_v17 = vshrl.u32 %v1397_v58, 16  ;;  %v360_v25 = vmul.f32 %v6085_v27, %v321_v2 }
  0x7e   : > { %v729_v33 = vrot.slane %v727_v59, 7  ;;  %v731_v35 = vor.u32 %v730_v60, %v533_v8  ;;  %v6409_v7 = vor.u32 %v1686_v15, %v1395_v46  ;;  %v455_v36 = vpack.c.bf16 %v429_v20, %v428_v38  ;;  %v490_v60 = vld [vmem:[#allocation2 + $0x48] sm:$0x80]  ;;  %v1334_v38 = vld [vmem:[#allocation2 + $0xd8] sm:$0x80]  ;;  %v5877_v20 = vld [vmem:[%s7741_s3 + $0x90] sm:$0xff]  }
  0x7f   : > { %v2053_v23 = vsel %vm725_vm2, %v2045_v5, %v2052_v4  ;;  %v1694_v24 = vshrl.u32 %v1400_v14, 16  ;;  %v1697_v31 = vshll.u32 %v1400_v14, 16  ;;  %v398_v39 = vadd.f32 %v6093_v30, %v359_v1  ;;  %v1330_v5 = vld [vmem:[#allocation2 + $0xa8] sm:$0x80] }
  0x80   : > { %5550 = vmatmul.mubr.bf16.gmra.mrb[12].mxu1 %v2053_v23  ;;  %v399_v32 = vadd.f32 %v6093_v30, %v360_v25  ;;  %v1692_v26 = vrot.slane %v1690_v17, 7  ;;  %v361_v42 = vmul.f32 %v6085_v27, %v322_v29  ;;  %473 = vst.msk [vmem:[#allocation2 + $0x98] sm:$0xff] %vm467_vm0, %v455_v36  ;;  %v758_v12 = vshrl.u32 %v486_v34, 16  ;;  %v492_v17 = vld [vmem:[#allocation2 + $0x60] sm:$0x80] }
  0x81   : > { %2793 = vmatprep.mubr.bf16.mxu1 %v744_v19  ;;  %v1696_v40 = vrot.slane %v1694_v24, 7  ;;  %v430_v53 = vmax.f32 %v398_v39, 0.0  ;;  %v362_v43 = vmul.f32 %v6085_v27, %v323_v18  ;;  %v1688_v47 = vsel %vm725_vm2, %v1685_v28, %v6409_v7  ;;  %v5876_v27 = vld [vmem:[%s7741_s3 + $0x88] sm:$0xff]  }
  0x82   : > { %v431_v8 = vmax.f32 %v399_v32, 0.0  ;;  %v400_v46 = vadd.f32 %v6093_v30, %v361_v42  ;;  %v732_v48 = vsel %vm725_vm2, %v729_v33, %v731_v35  ;;  %v1714_v58 = vshrl.u32 %v1328_v41, 16  ;;  %v6448_v35 = vld [vmem:[#allocation2 + $0xf0] sm:$0x80] }
  0x83   : > { %v1699_v56 = vor.u32 %v1697_v31, %v1696_v40  ;;  %v401_v63 = vadd.f32 %v6093_v30, %v362_v43  ;;  %v1423_v0 = vshll.u32 %v6156_v45, 16  ;;  %v760_v2 = vrot.slane %v758_v12, 7  ;;  %v6430_v30 = vld [vmem:[#allocation2 + $0xc0] sm:$0x80]  ;;  %v5878_v43 = vld [vmem:[%s7741_s3 + $0x98] sm:$0xff]  }
  0x84   : > { %v456_v51 = vpack.c.bf16 %v431_v8, %v430_v53  ;;  %v432_v59 = vmax.f32 %v400_v46, 0.0  ;;  %v789_v4 = vshrl.u32 %v488_v6, 16  ;;  %v1426_v1 = vshrl.u32 %v6156_v45, 16 }
  0x85   : > { %v6422_v21 = vsel %vm725_vm2, %v1692_v26, %v1699_v56  ;;  %v433_v15 = vmax.f32 %v401_v63, 0.0  ;;  %v1745_v14 = vshrl.u32 %v1330_v5, 16  ;;  %v1430_v23 = vshll.u32 %v6170_v61, 16 }
  0x86   : > { %2359 = vmatprep.mubr.bf16.mxu0 %v6422_v21  ;;  %474 = vst.msk [vmem:[#allocation2 + $0xb0] sm:$0xff] %vm467_vm0, %v456_v51  ;;  %v1716_v25 = vrot.slane %v1714_v58, 7  ;;  %v820_v29 = vshrl.u32 %v490_v60, 16  ;;  %v1425_v24 = vrot.slane %v1423_v0, 1  ;;  %v791_v33 = vrot.slane %v789_v4, 7 }
  0x87   : > { %2360 = vmatmul.mubr.bf16.gmra.mrb[16].mxu0 %v1688_v47  ;;  %v457_v19 = vpack.c.bf16 %v433_v15, %v432_v59  ;;  %v6439_v28 = vld [vmem:[#allocation2 + $0x98] sm:$0xff]  ;;  %v6450_v34 = vrot.slane %v1745_v14, 7  ;;  %v1776_v18 = vshrl.u32 %v6430_v30, 16  ;;  %v1807_v36 = vshrl.u32 %v1334_v38, 16 }
  0x88   : > { %2794 = vmatmul.mubr.bf16.vlgmr.msra.gmra.mrb[16].mxu1 %v732_v48  ;;  %v1402_v31 = vshll.u32 %v6439_v28, 16  ;;  %v851_v39 = vshrl.u32 %v492_v17, 16  ;;  %v1814_v26 = vshrl.u32 %v1425_v24, 16  ;;  %v6455_v40 = vrot.slane %v1430_v23, 1 }
  0x89   : > { %5554 = vmatpush3.bf16.msra.mxu1 %v6361_v57  ;;  %2801 = vmatprep.mubr.bf16.mxu1 %v6195_v50  ;;  %v1405_v57 = vshrl.u32 %v6439_v28, 16  ;;  %v763_v50 = vsel %vm725_vm2, %v760_v2, %v6177_v10  ;;  %475 = vst.msk [vmem:[#allocation2 + $0xc8] sm:$0xff] %vm467_vm0, %v457_v19  ;;  %v1433_v10 = vshrl.u32 %v6170_v61, 16  ;;  %v822_v12 = vrot.slane %v820_v29, 7 }
  0x8a   : > { %5555 = vmatprep.subr.bf16.mxu1 %v5876_v27  ;;  %v1404_v32 = vrot.slane %v1402_v31, 1  ;;  %v6460_v53 = vor.u32 %v1426_v1, %v1425_v24  ;;  %v1810_v8 = vrot.slane %v1426_v1, 7  ;;  %v794_v47 = vsel %vm725_vm2, %v791_v33, %v6214_v13 }
  0x8b   : > { %v1717_v41 = vrot.slane %v1405_v57, 7  ;;  %v6469_v51 = vrot.slane %v1807_v36, 7  ;;  %v6471_v5 = vrot.slane %v851_v39, 7  ;;  %v1838_v63 = vshrl.u32 %v6448_v35, 16 }
  0x8c   : > { %v1407_v56 = vor.u32 %v1405_v57, %v1404_v32  ;;  %v1721_v6 = vshrl.u32 %v1404_v32, 16  ;;  %v6475_v59 = vrot.slane %v1814_v26, 7  ;;  %v6478_v60 = vor.u32 %v1433_v10, %v6455_v40 }
  0x8d   : > { %5556 = vmatpush3.bf16.msra.mxu1 %v5876_v27  ;;  %v6458_v42 = vld [vmem:[#allocation2 + $0xb0] sm:$0xff]  ;;  %v6480_v13 = vor.u32 %v1717_v41, %v1402_v31  ;;  %v1818_v15 = vshrl.u32 %v6460_v53, 16  ;;  %v1821_v38 = vshll.u32 %v6460_v53, 16  ;;  %v6493_v24 = vsel %vm725_vm2, %v822_v12, %v6268_v3  ;;  %v494_v3 = vld [vmem:[#allocation2 + $0x78] sm:$0x80] }
  0x8e   : > { %5557 = vmatprep.subr.bf16.mxu1 %v5877_v20  ;;  %v1409_v46 = vshll.u32 %v6458_v42, 16  ;;  %v1412_v48 = vshrl.u32 %v6458_v42, 16  ;;  %v1725_v58 = vshrl.u32 %v1407_v56, 16  ;;  %v1728_v27 = vshll.u32 %v1407_v56, 16 }
  0x8f   : > { %v1723_v1 = vrot.slane %v1721_v6, 7  ;;  %v1845_v31 = vshrl.u32 %v6455_v40, 16  ;;  %v1811_v33 = vor.u32 %v1810_v8, %v1423_v0  ;;  %v1849_v35 = vshrl.u32 %v6478_v60, 16  ;;  %v5880_v40 = vld [vmem:[%s7741_s3 + $0xa8] sm:$0xff]  }
  0x90   : > { %2802 = vmatmul.mubr.bf16.gmra.mrb[20].mxu1 %v763_v50  ;;  %v1411_v2 = vrot.slane %v1409_v46, 1  ;;  %v6482_v4 = vld [vmem:[#allocation2 + $0xc8] sm:$0xff]  ;;  %v1727_v14 = vrot.slane %v1725_v58, 7  ;;  %v1719_v36 = vsel %vm725_vm2, %v1716_v25, %v6480_v13  ;;  %v1748_v26 = vrot.slane %v1412_v48, 7 }
  0x91   : > { %2809 = vmatprep.mubr.bf16.mxu1 %v6240_v11  ;;  %5558 = vmatpush3.bf16.msra.mxu1 %v5877_v20  ;;  %v5879_v11 = vld [vmem:[%s7741_s3 + $0xa0] sm:$0xff]   ;;  %v1416_v17 = vshll.u32 %v6482_v4, 16  ;;  %v1419_v19 = vshrl.u32 %v6482_v4, 16  ;;  %v1820_v12 = vrot.slane %v1818_v15, 7  ;;  %v1840_v25 = vrot.slane %v1838_v63, 7 }
  0x92   : > { %5559 = vmatprep.subr.bf16.mxu1 %v5878_v43  ;;  %v1414_v20 = vor.u32 %v1412_v48, %v1411_v2  ;;  %v1752_v29 = vshrl.u32 %v1411_v2, 16  ;;  %v1730_v57 = vor.u32 %v1728_v27, %v1727_v14  ;;  %v1851_v48 = vrot.slane %v1849_v35, 7 }
  0x93   : > { %v1418_v50 = vrot.slane %v1416_v17, 1  ;;  %v1852_v58 = vshll.u32 %v6478_v60, 16  ;;  %v6512_v2 = vor.u32 %v1748_v26, %v1409_v46  ;;  %v1437_v15 = vshll.u32 %v6185_v37, 16  ;;  %v1338_v26 = vld [vmem:[#allocation2 + $0x108] sm:$0x80] }
  0x94   : > { %v1756_v39 = vshrl.u32 %v1414_v20, 16  ;;  %v1759_v32 = vshll.u32 %v1414_v20, 16  ;;  %v6507_v41 = vsel %vm725_vm2, %v1723_v1, %v1730_v57  ;;  %v1754_v53 = vrot.slane %v1752_v29, 7 }
  0x95   : > { %5560 = vmatpush3.bf16.msra.mxu1 %v5878_v43  ;;  %v1421_v45 = vor.u32 %v1419_v19, %v1418_v50  ;;  %v1783_v0 = vshrl.u32 %v1418_v50, 16  ;;  %2367 = vmatprep.mubr.bf16.mxu0 %v6507_v41  ;;  %v1841_v43 = vrot.slane %v1433_v10, 7  ;;  %v1440_v1 = vshrl.u32 %v6185_v37, 16  ;;  %v5881_v10 = vld [vmem:[%s7741_s3 + $0xb0] sm:$0xff]  }
  0x96   : > { %5561 = vmatprep.subr.bf16.mxu1 %v5879_v11  ;;  %v1758_v8 = vrot.slane %v1756_v39, 7  ;;  %2368 = vmatmul.mubr.bf16.gmra.mrb[20].mxu0 %v1719_v36  ;;  %v882_v14 = vshrl.u32 %v494_v3, 16  ;;  %v1779_v46 = vrot.slane %v1419_v19, 7  ;;  %v1439_v20 = vrot.slane %v1437_v15, 1  ;;  %v496_v3 = vld [vmem:[#allocation2 + $0x90] sm:$0x80] }
  0x97   : > { %v1787_v56 = vshrl.u32 %v1421_v45, 16  ;;  %v1790_v6 = vshll.u32 %v1421_v45, 16  ;;  %v1447_v29 = vshrl.u32 %v6192_v49, 16  ;;  %v1823_v57 = vor.u32 %v1821_v38, %v1820_v12 }
  0x98   : > { %2810 = vmatmul.mubr.bf16.gmra.mrb[24].mxu1 %v794_v47  ;;  %v1761_v27 = vor.u32 %v1759_v32, %v1758_v8  ;;  %v1785_v47 = vrot.slane %v1783_v0, 7  ;;  %v1847_v50 = vrot.slane %v1845_v31, 7  ;;  %v1750_v36 = vsel %vm725_vm2, %v6450_v34, %v6512_v2  ;;  %v5890_v34 = vld [vmem:[%s7741_s3 + $0xb8] sm:$0xff]  }
  0x99   : > { %2817 = vmatprep.mubr.bf16.mxu1 %v6301_v54  ;;  %5562 = vmatpush3.bf16.msra.mxu1 %v5879_v11  ;;  %v1789_v63 = vrot.slane %v1787_v56, 7  ;;  %v1444_v54 = vshll.u32 %v6192_v49, 16  ;;  %v1854_v39 = vor.u32 %v1852_v58, %v1851_v48  ;;  %v1842_v19 = vor.u32 %v1841_v43, %v1430_v23 }
  0x9a   : > { %5563 = vmatprep.subr.bf16.mxu1 %v5880_v40  ;;  %v6521_v60 = vsel %vm725_vm2, %v1754_v53, %v1761_v27  ;;  %v6534_v32 = vor.u32 %v1440_v1, %v1439_v20  ;;  %v1778_v38 = vrot.slane %v1776_v18, 7  ;;  %v6548_v61 = vor.u32 %v1779_v46, %v1416_v17  ;;  %v498_v53 = vld [vmem:[#allocation2 + $0xa8] sm:$0x80]  ;;  %v1342_v27 = vld [vmem:[#allocation2 + $0x138] sm:$0x80]  ;;  %v6582_v46 = vld [vmem:[#allocation2 + $0xe0] sm:$0xff] }
  0x9b   : > { %2375 = vmatprep.mubr.bf16.mxu0 %v6521_v60  ;;  %v1792_v11 = vor.u32 %v1790_v6, %v1789_v63  ;;  %v1446_v35 = vrot.slane %v1444_v54, 1  ;;  %v6553_v23 = vsel %vm725_vm2, %v6469_v51, %v1811_v33  ;;  %v856_v30 = vsel %vm725_vm2, %v6471_v5, %v6366_v16 }
  0x9c   : > { %v884_v18 = vrot.slane %v882_v14, 7  ;;  %v1824_v0 = vsel %vm725_vm2, %v6475_v59, %v1823_v57  ;;  %v1880_v17 = vshrl.u32 %v6534_v32, 16  ;;  %v1869_v12 = vshrl.u32 %v1338_v26, 16 }
  0x9d   : > { %5564 = vmatpush3.bf16.msra.mxu1 %v5880_v40  ;;  %v6537_v45 = vsel %vm725_vm2, %v1785_v47, %v1792_v11  ;;  %v6541_v31 = vor.u32 %v1447_v29, %v1446_v35  ;;  %v1340_v40 = vld [vmem:[#allocation2 + $0x120] sm:$0x80]  ;;  %v6564_v51 = vsel %vm725_vm2, %v1847_v50, %v1854_v39  ;;  %v6567_v16 = vsel %vm725_vm2, %v1840_v25, %v1842_v19 }
  0x9e   : > { %5565 = vmatprep.subr.bf16.mxu1 %v5881_v10  ;;  %2376 = vmatmul.mubr.bf16.gmra.mrb[24].mxu0 %v1750_v36  ;;  %v1872_v5 = vrot.slane %v1440_v1, 7  ;;  %v1451_v33 = vshll.u32 %v6276_v52, 16  ;;  %v1876_v59 = vshrl.u32 %v1439_v20, 16  ;;  %v1907_v8 = vshrl.u32 %v1446_v35, 16  ;;  %v500_v1 = vld [vmem:[#allocation2 + $0xc0] sm:$0x80] }
  0x9f   : > { %2383 = vmatprep.mubr.bf16.mxu0 %v6537_v45  ;;  %v1911_v43 = vshrl.u32 %v6541_v31, 16  ;;  %v1454_v56 = vshrl.u32 %v6276_v52, 16  ;;  %v1781_v6 = vsel %vm725_vm2, %v1778_v38, %v6548_v61  ;;  %v887_v25 = vsel %vm725_vm2, %v884_v18, %v6409_v7 }
  0xa0   : > { %2818 = vmatmul.mubr.bf16.gmra.mrb[28].mxu1 %v6493_v24  ;;  %v913_v24 = vshrl.u32 %v496_v3, 16  ;;  %v1900_v48 = vshrl.u32 %v1340_v40, 16  ;;  %v1453_v58 = vrot.slane %v1451_v33, 1  ;;  %v1883_v47 = vshll.u32 %v6534_v32, 16  ;;  %v1344_v40 = vld [vmem:[#allocation2 + $0x150] sm:$0x80] }
  0xa1   : > { %2825 = vmatprep.mubr.bf16.mxu1 %v6391_v55  ;;  %5566 = vmatpush3.bf16.msra.mxu1 %v5881_v10  ;;  %v5899_v55 = vld [vmem:[%s7741_s3 + $0x200] sm:$0xff]   ;;  %v1882_v10 = vrot.slane %v1880_v17, 7  ;;  %v1871_v63 = vrot.slane %v1869_v12, 7  ;;  %v1873_v20 = vor.u32 %v1872_v5, %v1437_v15  ;;  %v1903_v11 = vrot.slane %v1447_v29, 7 }
  0xa2   : > { %5567 = vmatprep.subr.bf16.mxu1 %v5890_v34  ;;  %v915_v14 = vrot.slane %v913_v24, 7  ;;  %v944_v57 = vshrl.u32 %v498_v53, 16  ;;  %v1456_v50 = vor.u32 %v1454_v56, %v1453_v58  ;;  %v1878_v7 = vrot.slane %v1876_v59, 7  ;;  %v502_v53 = vld [vmem:[#allocation2 + $0xd8] sm:$0x80] }
  0xa3   : > { %v1909_v35 = vrot.slane %v1907_v8, 7  ;;  %v1913_v36 = vrot.slane %v1911_v43, 7  ;;  %v1914_v39 = vshll.u32 %v6541_v31, 16  ;;  %v1902_v19 = vrot.slane %v1900_v48, 7 }
  0xa4   : > { %v1931_v32 = vshrl.u32 %v1342_v27, 16  ;;  %v975_v26 = vshrl.u32 %v500_v1, 16  ;;  %v1458_v3 = vshll.u32 %v6320_v62, 16  ;;  %v1885_v37 = vor.u32 %v1883_v47, %v1882_v10 }
  0xa5   : > { %5568 = vmatpush3.bf16.msra.mxu1 %v5890_v34  ;;  %v1942_v15 = vshrl.u32 %v1456_v50, 16  ;;  %v1461_v29 = vshrl.u32 %v6320_v62, 16  ;;  %v596_v38 = vshll.u32 %v6582_v46, 16  ;;  %v1904_v31 = vor.u32 %v1903_v11, %v1444_v54 }
  0xa6   : > { %5601 = vmatprep.subr.bf16.mxu1 %v5899_v55  ;;  %2384 = vmatmul.mubr.bf16.gmra.mrb[28].mxu0 %v1781_v6  ;;  %v946_v34 = vrot.slane %v944_v57, 7  ;;  %v599_v18 = vshrl.u32 %v6582_v46, 16  ;;  %v1916_v17 = vor.u32 %v1914_v39, %v1913_v36  ;;  %v1938_v12 = vshrl.u32 %v1453_v58, 16  ;;  %v6610_v58 = vld [vmem:[#allocation2 + $0xf8] sm:$0xff] }
  0xa7   : > { %2391 = vmatprep.mubr.bf16.mxu0 %v1824_v0  ;;  %v1934_v24 = vrot.slane %v1454_v56, 7  ;;  %v6597_v62 = vsel %vm725_vm2, %v1871_v63, %v1873_v20  ;;  %v918_v0 = vsel %vm725_vm2, %v915_v14, %v6480_v13  ;;  %v1933_v49 = vrot.slane %v1931_v32, 7 }
  0xa8   : > { %2826 = vmatmul.mubr.bf16.gmra.mrb[32].mxu1 %v856_v30  ;;  %v1460_v30 = vrot.slane %v1458_v3, 1  ;;  %v1465_v54 = vshll.u32 %v6346_v22, 16  ;;  %v1944_v5 = vrot.slane %v1942_v15, 7  ;;  %v1945_v55 = vshll.u32 %v1456_v50, 16 }
  0xa9   : > { %2833 = vmatprep.mubr.bf16.mxu1 %v6422_v21  ;;  %v598_v21 = vrot.slane %v596_v38, 1  ;;  %v977_v59 = vrot.slane %v975_v26, 7  ;;  %v1886_v43 = vsel %vm725_vm2, %v1878_v7, %v1885_v37  ;;  %v6604_v56 = vsel %vm725_vm2, %v1902_v19, %v1904_v31  ;;  %v1346_v37 = vld [vmem:[#allocation2 + $0x168] sm:$0x80]  ;;  %v504_v31 = vld [vmem:[#allocation2 + $0xf0] sm:$0x80] }
  0xaa   : > { %v1463_v8 = vor.u32 %v1461_v29, %v1460_v30  ;;  %v6608_v6 = vsel %vm725_vm2, %v946_v34, %v6512_v2  ;;  %v6613_v13 = vsel %vm725_vm2, %v1909_v35, %v1916_v17  ;;  %v1940_v27 = vrot.slane %v1938_v12, 7  ;;  %v6636_v12 = vld [vmem:[#allocation2 + $0x110] sm:$0xff] }
  0xab   : > { %v601_v48 = vor.u32 %v599_v18, %v598_v21  ;;  %v1935_v1 = vor.u32 %v1934_v24, %v1451_v33  ;;  %v1962_v10 = vshrl.u32 %v1344_v40, 16  ;;  %v1965_v47 = vrot.slane %v1461_v29, 7 }
  0xac   : > { %v1006_v63 = vshrl.u32 %v502_v53, 16  ;;  %v1467_v14 = vrot.slane %v1465_v54, 1  ;;  %v1468_v2 = vshrl.u32 %v6346_v22, 16  ;;  %v1947_v20 = vor.u32 %v1945_v55, %v1944_v5 }
  0xad   : > { %v1973_v11 = vshrl.u32 %v1463_v8, 16  ;;  %v603_v57 = vshll.u32 %v6610_v58, 16  ;;  %v606_v52 = vshrl.u32 %v6610_v58, 16  ;;  %v6627_v33 = vsel %vm725_vm2, %v977_v59, %v6548_v61 }
  0xae   : > { %2392 = vmatmul.mubr.bf16.gmra.mrb[32].mxu0 %v6553_v23  ;;  %v1017_v50 = vshrl.u32 %v601_v48, 16  ;;  %v1470_v7 = vor.u32 %v1468_v2, %v1467_v14  ;;  %v6630_v35 = vsel %vm725_vm2, %v1933_v49, %v1935_v1  ;;  %v1013_v23 = vshrl.u32 %v598_v21, 16 }
  0xaf   : > { %2399 = vmatprep.mubr.bf16.mxu0 %v6564_v51  ;;  %v605_v36 = vrot.slane %v603_v57, 1  ;;  %v1964_v39 = vrot.slane %v1962_v10, 7  ;;  %v1966_v19 = vor.u32 %v1965_v47, %v1458_v3  ;;  %v1008_v32 = vrot.slane %v1006_v63, 7 }
  0xb0   : > { %2834 = vmatmul.mubr.bf16.gmra.mrb[36].mxu1 %v887_v25  ;;  %v1969_v25 = vshrl.u32 %v1460_v30, 16  ;;  %v2004_v26 = vshrl.u32 %v1470_v7, 16  ;;  %v6633_v51 = vsel %vm725_vm2, %v1940_v27, %v1947_v20  ;;  %v1975_v15 = vrot.slane %v1973_v11, 7  ;;  %v1348_v20 = vld [vmem:[#allocation2 + $0x180] sm:$0x80] }
  0xb1   : > { %2841 = vmatprep.mubr.bf16.mxu1 %v6507_v41  ;;  %v1009_v41 = vrot.slane %v599_v18, 7  ;;  %v1976_v61 = vshll.u32 %v1463_v8, 16  ;;  %v608_v29 = vor.u32 %v606_v52, %v605_v36  ;;  %v1019_v30 = vrot.slane %v1017_v50, 7 }
  0xb2   : > { %v1971_v34 = vrot.slane %v1969_v25, 7  ;;  %v1020_v40 = vshll.u32 %v601_v48, 16  ;;  %v1472_v17 = vshll.u32 %v6368_v9, 16  ;;  %v1015_v18 = vrot.slane %v1013_v23, 7 }
  0xb3   : > { %v2000_v24 = vshrl.u32 %v1467_v14, 16  ;;  %v1993_v3 = vshrl.u32 %v1346_v37, 16  ;;  %v1996_v21 = vrot.slane %v1468_v2, 7  ;;  %v2006_v53 = vrot.slane %v2004_v26, 7 }
  0xb4   : > { %v2007_v49 = vshll.u32 %v1470_v7, 16  ;;  %v1037_v5 = vshrl.u32 %v504_v31, 16  ;;  %v1040_v55 = vrot.slane %v606_v52, 7  ;;  %v1978_v59 = vor.u32 %v1976_v61, %v1975_v15  ;;  %v1350_v7 = vld [vmem:[#allocation2 + $0x28] sm:$0x1] }
  0xb5   : > { %v1010_v8 = vor.u32 %v1009_v41, %v596_v38  ;;  %v1048_v48 = vshrl.u32 %v608_v29, 16  ;;  %v610_v27 = vshll.u32 %v6636_v12, 16  ;;  %v1022_v1 = vor.u32 %v1020_v40, %v1019_v30  ;;  %v1351_v15 = vld [vmem:[#allocation2 + $0x40] sm:$0x1] }
  0xb6   : > { %2400 = vmatmul.mubr.bf16.gmra.mrb[36].mxu0 %v6567_v16  ;;  %v1044_v10 = vshrl.u32 %v605_v36, 16  ;;  %v1475_v47 = vshrl.u32 %v6368_v9, 16  ;;  %v2002_v63 = vrot.slane %v2000_v24, 7  ;;  %v1995_v14 = vrot.slane %v1993_v3, 7 }
  0xb7   : > { %2407 = vmatprep.mubr.bf16.mxu0 %v1886_v43  ;;  %v613_v16 = vshrl.u32 %v6636_v12, 16  ;;  %v2009_v46 = vor.u32 %v2007_v49, %v2006_v53  ;;  %v1997_v38 = vor.u32 %v1996_v21, %v1465_v54  ;;  %v1039_v43 = vrot.slane %v1037_v5, 7  ;;  %v506_v54 = vld [vmem:[#allocation2 + $0x108] sm:$0x80]  ;;  %v5908_v21 = vld [vmem:[#allocation2 + $0x38] sm:$0xff] }
  0xb8   : > { %2842 = vmatmul.mubr.bf16.gmra.mrb[40].mxu1 %v918_v0  ;;  %v1474_v0 = vrot.slane %v1472_v17, 1  ;;  %v1041_v2 = vor.u32 %v1040_v55, %v603_v57  ;;  %v6654_v11 = vsel %vm725_vm2, %v1964_v39, %v1966_v19  ;;  %v6657_v52 = vsel %vm725_vm2, %v1008_v32, %v1010_v8  ;;  %v6665_v57 = vld [vmem:[#allocation2 + $0x128] sm:$0xff]  ;;  %v5907_v32 = vld [vmem:[#allocation2 + $0x20] sm:$0xff] }
  0xb9   : > { %2849 = vmatprep.mubr.bf16.mxu1 %v6521_v60  ;;  %v6648_v60 = vrot.slane %v610_v27, 1  ;;  %v1050_v25 = vrot.slane %v1048_v48, 7  ;;  %v1051_v50 = vshll.u32 %v608_v29, 16  ;;  %v6660_v23 = vsel %vm725_vm2, %v1971_v34, %v1978_v59 }
  0xba   : > { %v1023_v41 = vsel %vm725_vm2, %v1015_v18, %v1022_v1  ;;  %v1046_v36 = vrot.slane %v1044_v10, 7  ;;  %v6663_v22 = vor.u32 %v1475_v47, %v1474_v0  ;;  %v2031_v26 = vshrl.u32 %v1474_v0, 16 }
  0xbb   : > { %v6668_v39 = vor.u32 %v613_v16, %v6648_v60  ;;  %v2024_v19 = vshrl.u32 %v1348_v20, 16  ;;  %v6670_v37 = vrot.slane %v5907_v32, 1  ;;  %v6674_v61 = vsel %vm725_vm2, %v2002_v63, %v2009_v46  ;;  %v1352_v46 = vld [vmem:[#allocation2 + $0x58] sm:$0x1]  ;;  %v508_v20 = vld [vmem:[#allocation2 + $0x120] sm:$0x80] }
  0xbc   : > { %v6677_v29 = vsel %vm725_vm2, %v1995_v14, %v1997_v38  ;;  %v6680_v31 = vsel %vm725_vm2, %v1039_v43, %v1041_v2  ;;  %v1511_v34 = vrot.slane %v1350_v7, 1  ;;  %v1053_v30 = vor.u32 %v1051_v50, %v1050_v25  ;;  %v5909_v25 = vld [vmem:[#allocation2 + $0x50] sm:$0xff]  ;;  %v6711_v7 = vld [vmem:[#allocation2 + $0x140] sm:$0xff] }
  0xbd   : > { %v2027_v40 = vrot.slane %v1475_v47, 7  ;;  %v1068_v18 = vshrl.u32 %v506_v54, 16  ;;  %v617_v24 = vshll.u32 %v6665_v57, 16  ;;  %v6689_v53 = vrot.slane %v5908_v21, 1 }
  0xbe   : > { %2408 = vmatmul.mubr.bf16.gmra.mrb[40].mxu0 %v6597_v62  ;;  %v1512_v3 = vsel %vm676_vm1, %v6670_v37, %v1511_v34  ;;  %v1514_v49 = vrot.slane %v1351_v15, 1  ;;  %v2033_v5 = vrot.slane %v2031_v26, 7  ;;  %v1079_v62 = vshrl.u32 %v6668_v39, 16 }
  0xbf   : > { %2415 = vmatprep.mubr.bf16.mxu0 %v6613_v13  ;;  %v620_v55 = vshrl.u32 %v6665_v57, 16  ;;  %v1075_v59 = vshrl.u32 %v6648_v60, 16  ;;  %v1071_v8 = vrot.slane %v613_v16, 7  ;;  %v6696_v13 = vrot.slane %v617_v24, 1 }
  0xc0   : > { %2850 = vmatmul.mubr.bf16.gmra.mrb[44].mxu1 %v6608_v6  ;;  %v2035_v6 = vshrl.u32 %v6663_v22, 16  ;;  %v1515_v48 = vsel %vm676_vm1, %v6689_v53, %v1514_v49  ;;  %v1054_v1 = vsel %vm725_vm2, %v1046_v36, %v1053_v30  ;;  %v2038_v10 = vshll.u32 %v6663_v22, 16  ;;  %v1353_v30 = vld [vmem:[#allocation2 + $0x70] sm:$0x1] }
  0xc1   : > { %2857 = vmatprep.mubr.bf16.mxu1 %v6537_v45  ;;  %v2026_v45 = vrot.slane %v2024_v19, 7  ;;  %v1582_v0 = vshrl.u32 %v1512_v3, 16  ;;  %v1613_v47 = vshrl.u32 %v1515_v48, 16  ;;  %v1082_v14 = vshll.u32 %v6668_v39, 16 }
  0xc2   : > { %v2037_v63 = vrot.slane %v2035_v6, 7  ;;  %v2028_v60 = vor.u32 %v2027_v40, %v1472_v17  ;;  %v1070_v16 = vrot.slane %v1068_v18, 7  ;;  %v1081_v38 = vrot.slane %v1079_v62, 7 }
  0xc3   : > { %v1578_v43 = vshrl.u32 %v6670_v37, 16  ;;  %v6707_v2 = vor.u32 %v620_v55, %v6696_v13  ;;  %v6709_v50 = vrot.slane %v5909_v25, 1  ;;  %v1077_v36 = vrot.slane %v1075_v59, 7 }
  0xc4   : > { %v1072_v9 = vor.u32 %v1071_v8, %v610_v27  ;;  %v1585_v17 = vshll.u32 %v1512_v3, 16  ;;  %v1609_v22 = vshrl.u32 %v6689_v53, 16  ;;  %v1584_v54 = vrot.slane %v1582_v0, 7  ;;  %v5910_v3 = vld [vmem:[#allocation2 + $0x68] sm:$0xff] }
  0xc5   : > { %v1615_v26 = vrot.slane %v1613_v47, 7  ;;  %v1616_v39 = vshll.u32 %v1515_v48, 16  ;;  %v1517_v19 = vrot.slane %v1352_v46, 1  ;;  %v2040_v32 = vor.u32 %v2038_v10, %v2037_v63  ;;  %v1354_v46 = vld [vmem:[#allocation2 + $0x88] sm:$0x1] }
  0xc6   : > { %2416 = vmatmul.mubr.bf16.gmra.mrb[44].mxu0 %v6604_v56  ;;  %v1099_v15 = vshrl.u32 %v508_v20, 16  ;;  %v1102_v34 = vrot.slane %v620_v55, 7  ;;  %v1084_v40 = vor.u32 %v1082_v14, %v1081_v38  ;;  %v6720_v27 = vrot.slane %v1578_v43, 7  ;;  %v510_v20 = vld [vmem:[#allocation2 + $0x138] sm:$0x80] }
  0xc7   : > { %2423 = vmatprep.mubr.bf16.mxu0 %v6633_v51  ;;  %v1110_v18 = vshrl.u32 %v6707_v2, 16  ;;  %v1518_v56 = vsel %vm676_vm1, %v6709_v50, %v1517_v19  ;;  %v6726_v6 = vrot.slane %v1609_v22, 7  ;;  %v627_v51 = vshrl.u32 %v6711_v7, 16 }
  0xc8   : > { %2858 = vmatmul.mubr.bf16.gmra.mrb[48].mxu1 %v6627_v33  ;;  %v624_v33 = vshll.u32 %v6711_v7, 16  ;;  %v6729_v21 = vrot.slane %v5910_v3, 1  ;;  %v1587_v49 = vor.u32 %v1585_v17, %v1584_v54  ;;  %v1618_v62 = vor.u32 %v1616_v39, %v1615_v26  ;;  %v1355_v54 = vld [vmem:[#allocation2 + $0xa0] sm:$0x1] }
  0xc9   : > { %2865 = vmatprep.mubr.bf16.mxu1 %v1023_v41  ;;  %v1106_v41 = vshrl.u32 %v6696_v13, 16  ;;  %v1520_v59 = vrot.slane %v1353_v30, 1  ;;  %v6734_v8 = vsel %vm725_vm2, %v2026_v45, %v2028_v60  ;;  %v1101_v48 = vrot.slane %v1099_v15, 7 }
  0xca   : > { %v626_v55 = vrot.slane %v624_v33, 1  ;;  %v1103_v13 = vor.u32 %v1102_v34, %v617_v24  ;;  %v1644_v10 = vshrl.u32 %v1518_v56, 16  ;;  %v6739_v0 = vsel %vm725_vm2, %v2033_v5, %v2040_v32  ;;  %v6752_v5 = vld [vmem:[#allocation2 + $0x158] sm:$0xff] }
  0xcb   : > { %v6742_v47 = vsel %vm725_vm2, %v1070_v16, %v1072_v9  ;;  %v1112_v63 = vrot.slane %v1110_v18, 7  ;;  %v1113_v14 = vshll.u32 %v6707_v2, 16  ;;  %v1085_v45 = vsel %vm725_vm2, %v1077_v36, %v1084_v40 }
  0xcc   : > { %v629_v60 = vor.u32 %v627_v51, %v626_v55  ;;  %v1521_v38 = vsel %vm676_vm1, %v6729_v21, %v1520_v59  ;;  %v6750_v24 = vrot.slane %v6384_v44, 1  ;;  %v6757_v16 = vsel %vm725_vm2, %v6720_v27, %v1587_v49 }
  0xcd   : > { %v1108_v43 = vrot.slane %v1106_v41, 7  ;;  %v1640_v2 = vshrl.u32 %v6709_v50, 16  ;;  %v6766_v44 = vsel %vm725_vm2, %v1101_v48, %v1103_v13  ;;  %v1646_v25 = vrot.slane %v1644_v10, 7  ;;  %v1356_v10 = vld [vmem:[#allocation2 + $0xb8] sm:$0x1] }
  0xce   : > { %2424 = vmatmul.mubr.bf16.gmra.mrb[48].mxu0 %v6630_v35  ;;  %v1647_v35 = vshll.u32 %v1518_v56, 16  ;;  %v1115_v36 = vor.u32 %v1113_v14, %v1112_v63  ;;  %v1675_v9 = vshrl.u32 %v1521_v38, 16  ;;  %v631_v17 = vshll.u32 %v6752_v5, 16 }
  0xcf   : > { %2431 = vmatprep.mubr.bf16.mxu0 %v6660_v23  ;;  %v634_v22 = vshrl.u32 %v6752_v5, 16  ;;  %v1141_v26 = vshrl.u32 %v629_v60, 16  ;;  %v1671_v39 = vshrl.u32 %v6729_v21, 16  ;;  %v1130_v19 = vshrl.u32 %v510_v20, 16 }
  0xd0   : > { %2866 = vmatmul.mubr.bf16.gmra.mrb[52].mxu1 %v6657_v52  ;;  %v6761_v52 = vsel %vm725_vm2, %v6726_v6, %v1618_v62  ;;  %v1137_v32 = vshrl.u32 %v626_v55, 16  ;;  %v1133_v15 = vrot.slane %v627_v51, 7  ;;  %v6775_v34 = vrot.slane %v631_v17, 1  ;;  %v6784_v55 = vld [vmem:[#allocation2 + $0x170] sm:$0xff] }
  0xd1   : > { %2873 = vmatprep.mubr.bf16.mxu1 %v1054_v1  ;;  %v1523_v1 = vrot.slane %v1354_v46, 1  ;;  %v6778_v30 = vrot.slane %v6439_v28, 1  ;;  %v6780_v40 = vrot.slane %v1640_v2, 7  ;;  %v1649_v18 = vor.u32 %v1647_v35, %v1646_v25  ;;  %v512_v2 = vld [vmem:[#allocation2 + $0x150] sm:$0x80] }
  0xd2   : > { %v1526_v41 = vrot.slane %v1355_v54, 1  ;;  %v1116_v3 = vsel %vm725_vm2, %v1108_v43, %v1115_v36  ;;  %v1677_v49 = vrot.slane %v1675_v9, 7  ;;  %v1678_v62 = vshll.u32 %v1521_v38, 16  ;;  %v1357_v9 = vld [vmem:[#allocation2 + $0xd0] sm:$0x1] }
  0xd3   : > { %v1524_v23 = vsel %vm676_vm1, %v6750_v24, %v1523_v1  ;;  %v636_v59 = vor.u32 %v634_v22, %v6775_v34  ;;  %v1143_v51 = vrot.slane %v1141_v26, 7  ;;  %v1144_v48 = vshll.u32 %v629_v60, 16 }
  0xd4   : > { %v1706_v56 = vshrl.u32 %v1524_v23, 16  ;;  %v6787_v13 = vrot.slane %v1671_v39, 7  ;;  %v1702_v28 = vshrl.u32 %v6750_v24, 16  ;;  %v1139_v63 = vrot.slane %v1137_v32, 7 }
  0xd5   : > { %v1132_v14 = vrot.slane %v1130_v19, 7  ;;  %v1134_v46 = vor.u32 %v1133_v15, %v624_v33  ;;  %v1527_v38 = vsel %vm676_vm1, %v6778_v30, %v1526_v41  ;;  %v1709_v43 = vshll.u32 %v1524_v23, 16 }
  0xd6   : > { %2432 = vmatmul.mubr.bf16.gmra.mrb[52].mxu0 %v6654_v11  ;;  %v1708_v60 = vrot.slane %v1706_v56, 7  ;;  %v6801_v11 = vrot.slane %v6458_v42, 1  ;;  %v1172_v20 = vshrl.u32 %v636_v59, 16  ;;  %v1529_v25 = vrot.slane %v1356_v10, 1  ;;  %v516_v10 = vld [vmem:[#allocation2 + $0x10] sm:$0x1] }
  0xd7   : > { %2439 = vmatprep.mubr.bf16.mxu0 %v6674_v61  ;;  %v638_v33 = vshll.u32 %v6784_v55, 16  ;;  %v1146_v35 = vor.u32 %v1144_v48, %v1143_v51  ;;  %v6804_v1 = vrot.slane %v1702_v28, 7  ;;  %v1737_v36 = vshrl.u32 %v1527_v38, 16 }
  0xd8   : > { %2874 = vmatmul.mubr.bf16.gmra.mrb[56].mxu1 %v6680_v31  ;;  %v6798_v31 = vsel %vm725_vm2, %v6780_v40, %v1649_v18  ;;  %v641_v61 = vshrl.u32 %v6784_v55, 16  ;;  %v1168_v54 = vshrl.u32 %v6775_v34, 16  ;;  %v1733_v26 = vshrl.u32 %v6778_v30, 16 }
  0xd9   : > { %2881 = vmatprep.mubr.bf16.mxu1 %v1085_v45  ;;  %v1680_v45 = vor.u32 %v1678_v62, %v1677_v49  ;;  %v1161_v39 = vshrl.u32 %v512_v2, 16  ;;  %v640_v42 = vrot.slane %v638_v33, 1  ;;  %v1711_v19 = vor.u32 %v1709_v43, %v1708_v60  ;;  %v514_v43 = vld [vmem:[#allocation2 + $0x168] sm:$0x80] }
  0xda   : > { %v1175_v23 = vshll.u32 %v636_v59, 16  ;;  %v1164_v32 = vrot.slane %v634_v22, 7  ;;  %v1530_v15 = vsel %vm676_vm1, %v6801_v11, %v1529_v25  ;;  %v1174_v18 = vrot.slane %v1172_v20, 7  ;;  %v5911_v2 = vld [vmem:[#allocation2 + $0x8] sm:$0xff] }
  0xdb   : > { %v6813_v56 = vor.u32 %v641_v61, %v640_v42  ;;  %v6816_v41 = vrot.slane %v6482_v4, 1  ;;  %v1532_v49 = vrot.slane %v1357_v9, 1  ;;  %v6821_v34 = vsel %vm725_vm2, %v6787_v13, %v1680_v45 }
  0xdc   : > { %v6824_v62 = vsel %vm725_vm2, %v1132_v14, %v1134_v46  ;;  %v1739_v22 = vrot.slane %v1737_v36, 7  ;;  %v1740_v59 = vshll.u32 %v1527_v38, 16  ;;  %v1147_v51 = vsel %vm725_vm2, %v1139_v63, %v1146_v35  ;;  %v517_v36 = vld [vmem:[#allocation2 + $0x28] sm:$0x1] }
  0xdd   : > { %v6828_v48 = vrot.slane %v1733_v26, 7  ;;  %v1163_v4 = vrot.slane %v1161_v39, 7  ;;  %v1768_v28 = vshrl.u32 %v1530_v15, 16  ;;  %v6835_v14 = vsel %vm725_vm2, %v6804_v1, %v1711_v19 }
  0xde   : > { %2440 = vmatmul.mubr.bf16.gmra.mrb[56].mxu0 %v6677_v29  ;;  %v1170_v46 = vrot.slane %v1168_v54, 7  ;;  %v1165_v29 = vor.u32 %v1164_v32, %v631_v17  ;;  %v1177_v63 = vor.u32 %v1175_v23, %v1174_v18  ;;  %v1203_v38 = vshrl.u32 %v6813_v56, 16 }
  0xdf   : > { %2447 = vmatprep.mubr.bf16.mxu0 %v6739_v0  ;;  %v6843_v60 = vsel %vm676_vm1, %v6816_v41, %v1532_v49  ;;  %v677_v0 = vrot.slane %v5911_v2, 1  ;;  %v1742_v45 = vor.u32 %v1740_v59, %v1739_v22  ;;  %v1771_v20 = vshll.u32 %v1530_v15, 16  ;;  %v6868_v2 = vld [vmem:[#allocation2 + $0x50] sm:$0xff] }
  0xe0   : > { %2882 = vmatmul.mubr.bf16.gmra.mrb[60].mxu1 %v6742_v47  ;;  %v6830_v47 = vld [vmem:[#allocation2 + $0x38] sm:$0xff]  ;;  %v678_v25 = vrot.slane %v516_v10, 1  ;;  %v1770_v9 = vrot.slane %v1768_v28, 7  ;;  %v1199_v17 = vshrl.u32 %v640_v42, 16  ;;  %v1795_v54 = vshrl.u32 %v6816_v41, 16 }
  0xe1   : > { %2889 = vmatprep.mubr.bf16.mxu1 %v1116_v3  ;;  %v1764_v3 = vshrl.u32 %v6801_v11, 16  ;;  %v3133_v35 = vshll.u32 %v6830_v47, 16  ;;  %v3136_v26 = vshrl.u32 %v6830_v47, 16  ;;  %v1799_v39 = vshrl.u32 %v6843_v60, 16 }
  0xe2   : > { %v1192_v19 = vshrl.u32 %v514_v43, 16  ;;  %v6850_v23 = vsel %vm676_vm1, %v677_v0, %v678_v25  ;;  %v1205_v15 = vrot.slane %v1203_v38, 7  ;;  %v1206_v18 = vshll.u32 %v6813_v56, 16  ;;  %v3084_v25 = vld [vmem:[#allocation2 + $0x30] sm:$0x80] }
  0xe3   : > { %v3135_v32 = vrot.slane %v3133_v35, 1  ;;  %v1195_v49 = vrot.slane %v641_v61, 7  ;;  %v681_v22 = vrot.slane %v517_v36, 1  ;;  %v1178_v42 = vsel %vm725_vm2, %v1170_v46, %v1177_v63 }
  0xe4   : > { %v6858_v59 = vsel %vm725_vm2, %v1163_v4, %v1165_v29  ;;  %v6860_v28 = vrot.slane %v1764_v3, 7  ;;  %v6865_v38 = vsel %vm725_vm2, %v6828_v48, %v1742_v45  ;;  %v1773_v56 = vor.u32 %v1771_v20, %v1770_v9 }
  0xe5   : > { %v3138_v10 = vor.u32 %v3136_v26, %v3135_v32  ;;  %v1201_v61 = vrot.slane %v1199_v17, 7  ;;  %v750_v43 = vshrl.u32 %v6850_v23, 16  ;;  %v6871_v4 = vrot.slane %v1795_v54, 7 }
  0xe6   : > { %2448 = vmatmul.mubr.bf16.gmra.mrb[60].mxu0 %v6734_v8  ;;  %v1801_v46 = vrot.slane %v1799_v39, 7  ;;  %v1802_v29 = vshll.u32 %v6843_v60, 16  ;;  %v1194_v8 = vrot.slane %v1192_v19, 7  ;;  %v1208_v3 = vor.u32 %v1206_v18, %v1205_v15 }
  0xe7   : > { %5521 = vmatprep.mubr.bf16.mxu0 %v6757_v16  ;;  %v1196_v63 = vor.u32 %v1195_v49, %v638_v33  ;;  %v3336_v45 = vshrl.u32 %v3138_v10, 16  ;;  %v682_v20 = vsel %vm676_vm1, %v6670_v37, %v681_v22  ;;  %v746_v36 = vshrl.u32 %v677_v0, 16  ;;  %v5883_v33 = vld [vmem:[%s7741_s3 + $0x180] sm:$0xff]  }
  0xe8   : > { %2890 = vmatmul.mubr.bf16.gmra.mrb[64].mxu1 %v6766_v44  ;;  %v518_v44 = vld [vmem:[#allocation2 + $0x40] sm:$0x1]  ;;  %v753_v9 = vshll.u32 %v6850_v23, 16  ;;  %v7745_v17 = vshll.u32 %v6868_v2, 16  ;;  %v752_v54 = vrot.slane %v750_v43, 7  ;;  %v3332_v39 = vshrl.u32 %v3135_v32, 16 }
  0xe9   : > { %2897 = vmatprep.mubr.bf16.mxu1 %v1147_v51  ;;  %v519_v51 = vld [vmem:[#allocation2 + $0x58] sm:$0x1]  ;;  %v684_v16 = vrot.slane %v518_v44, 1  ;;  %v3143_v60 = vshrl.u32 %v6868_v2, 16  ;;  %v781_v15 = vshrl.u32 %v682_v20, 16  ;;  %v3325_v18 = vshrl.u32 %v3084_v25, 16 }
  0xea   : > { %v687_v19 = vrot.slane %v519_v51, 1  ;;  %v6890_v0 = vrot.slane %v7745_v17, 1  ;;  %v5884_v23 = vld [vmem:[%s7741_s3 + $0x1c8] sm:$0xff]   ;;  %v6897_v32 = vsel %vm725_vm2, %v6860_v28, %v1773_v56  ;;  %v3338_v49 = vrot.slane %v3336_v45, 7 }
  0xeb   : > { %v6886_v37 = vsel %vm676_vm1, %v6689_v53, %v684_v16  ;;  %v3339_v22 = vshll.u32 %v3138_v10, 16  ;;  %v3328_v43 = vrot.slane %v3136_v26, 7  ;;  %v1209_v53 = vsel %vm725_vm2, %v1201_v61, %v1208_v3  ;;  %v520_v16 = vld [vmem:[#allocation2 + $0x70] sm:$0x1]  ;;  %v6905_v17 = vld [vmem:[#allocation2 + $0x68] sm:$0xff] }
  0xec   : > { %v1804_v44 = vor.u32 %v1802_v29, %v1801_v46  ;;  %v6902_v51 = vsel %vm725_vm2, %v1194_v8, %v1196_v63  ;;  %v812_v25 = vshrl.u32 %v6886_v37, 16  ;;  %v748_v56 = vrot.slane %v746_v36, 7  ;;  %v521_v10 = vld [vmem:[#allocation2 + $0x88] sm:$0x1]  ;;  %v5886_v8 = vld [vmem:[%s7741_s3 + $0x1d0] sm:$0xff]  }
  0xed   : > { %v3334_v45 = vrot.slane %v3332_v39, 7  ;;  %v6915_v26 = vsel %vm676_vm1, %v6709_v50, %v687_v19  ;;  %v5885_v61 = vld [vmem:[%s7741_s3 + $0x188] sm:$0xff]   ;;  %v784_v46 = vshll.u32 %v682_v20, 16  ;;  %v3327_v29 = vrot.slane %v3325_v18, 7  ;;  %v5887_v18 = vld [vmem:[%s7741_s3 + $0x190] sm:$0xff]  }
  0xee   : > { %5522 = vmatmul.mubr.bf16.vlgmr.msra.gmra.mrb[64].mxu0 %v6761_v52  ;;  %v755_v52 = vor.u32 %v753_v9, %v752_v54  ;;  %v3341_v3 = vor.u32 %v3339_v22, %v3338_v49  ;;  %v3329_v50 = vor.u32 %v3328_v43, %v3133_v35  ;;  %v690_v63 = vrot.slane %v520_v16, 1  ;;  %v3086_v9 = vld [vmem:[#allocation2 + $0x48] sm:$0x80]  ;;  %v5888_v22 = vld [vmem:[%s7741_s3 + $0x1d8] sm:$0xff]  }
  0xef   : > { %5370 = vmatpush3.bf16.msra.mxu0 %v5883_v33  ;;  %5525 = vmatprep.mubr.bf16.mxu0 %v6798_v31  ;;  %v3147_v36 = vshll.u32 %v6905_v17, 16  ;;  %v814_v39 = vrot.slane %v812_v25, 7  ;;  %v815_v19 = vshll.u32 %v6886_v37, 16  ;;  %v843_v31 = vshrl.u32 %v6915_v26, 16 }
  0xf0   : > { %2898 = vmatmul.mubr.bf16.gmra.mrb[68].mxu1 %v6824_v62  ;;  %v6911_v62 = vor.u32 %v3143_v60, %v6890_v0  ;;  %5371 = vmatprep.subr.bf16.mxu0 %v5884_v23  ;;  %v693_v20 = vrot.slane %v521_v10, 1  ;;  %v691_v33 = vsel %vm676_vm1, %v6729_v21, %v690_v63  ;;  %v3150_v35 = vshrl.u32 %v6905_v17, 16  ;;  %v522_v10 = vld [vmem:[#allocation2 + $0xa0] sm:$0x1] }
  0xf1   : > { %2905 = vmatprep.mubr.bf16.mxu1 %v1178_v42  ;;  %v783_v42 = vrot.slane %v781_v15, 7  ;;  %v6934_v15 = vrot.slane %v3147_v36, 1  ;;  %v6942_v37 = vsel %vm725_vm2, %v6871_v4, %v1804_v44  ;;  %v6945_v23 = vsel %vm725_vm2, %v748_v56, %v755_v52 }
  0xf2   : > { %v3367_v54 = vshrl.u32 %v6911_v62, 16  ;;  %v874_v21 = vshrl.u32 %v691_v33, 16  ;;  %v6951_v43 = vsel %vm725_vm2, %v3334_v45, %v3341_v3  ;;  %v6954_v25 = vsel %vm725_vm2, %v3327_v29, %v3329_v50  ;;  %v6965_v45 = vld [vmem:[#allocation2 + $0x80] sm:$0xff] }
  0xf3   : > { %5372 = vmatpush3.bf16.msra.mxu0 %v5885_v61  ;;  %v786_v49 = vor.u32 %v784_v46, %v783_v42  ;;  %v3363_v16 = vshrl.u32 %v6890_v0, 16  ;;  %v3356_v44 = vshrl.u32 %v3086_v9, 16  ;;  %v845_v56 = vrot.slane %v843_v31, 7  ;;  %v5889_v0 = vld [vmem:[%s7741_s3 + $0x198] sm:$0xff]  }
  0xf4   : > { %5373 = vmatprep.subr.bf16.mxu0 %v5886_v8  ;;  %v846_v61 = vshll.u32 %v6915_v26, 16  ;;  %v3359_v52 = vrot.slane %v3143_v60, 7  ;;  %v6963_v42 = vsel %vm676_vm1, %v6750_v24, %v693_v20  ;;  %v3369_v46 = vrot.slane %v3367_v54, 7  ;;  %v5891_v24 = vld [vmem:[%s7741_s3 + $0x1e0] sm:$0xff]  }
  0xf5   : > { %v3370_v26 = vshll.u32 %v6911_v62, 16  ;;  %v6973_v29 = vor.u32 %v3150_v35, %v6934_v15  ;;  %v876_v60 = vrot.slane %v874_v21, 7  ;;  %v3088_v8 = vld [vmem:[#allocation2 + $0x60] sm:$0x80]  ;;  %v696_v3 = vrot.slane %v522_v10, 1 }
  0xf6   : > { %5526 = vmatmul.mubr.bf16.gmra.mrb[68].mxu0 %v6821_v34  ;;  %v6981_v34 = vsel %vm725_vm2, %v6720_v27, %v786_v49  ;;  %v3365_v62 = vrot.slane %v3363_v16, 7  ;;  %v3358_v50 = vrot.slane %v3356_v44, 7  ;;  %v905_v63 = vshrl.u32 %v6963_v42, 16  ;;  %v524_v21 = vld [vmem:[#allocation2 + $0xd0] sm:$0x1] }
  0xf7   : > { %5374 = vmatpush3.bf16.msra.mxu0 %v5887_v18  ;;  %5529 = vmatprep.mubr.bf16.mxu0 %v6835_v14  ;;  %v523_v14 = vld [vmem:[#allocation2 + $0xb8] sm:$0x1]  ;;  %v7746_v31 = vshll.u32 %v6868_v2, 16  ;;  %v6989_v27 = vsel %vm676_vm1, %v6778_v30, %v696_v3  ;;  %v3157_v20 = vshrl.u32 %v6965_v45, 16  ;;  %v3398_v18 = vshrl.u32 %v6973_v29, 16  ;;  %v5892_v30 = vld [vmem:[%s7741_s3 + $0x1a0] sm:$0xff]  }
  0xf8   : > { %2906 = vmatmul.mubr.bf16.gmra.mrb[72].mxu1 %v6858_v59  ;;  %v817_v59 = vor.u32 %v815_v19, %v814_v39  ;;  %5375 = vmatprep.subr.bf16.mxu0 %v5888_v22  ;;  %v3154_v39 = vshll.u32 %v6965_v45, 16  ;;  %v848_v19 = vor.u32 %v846_v61, %v845_v56  ;;  %v3394_v16 = vshrl.u32 %v6934_v15, 16 }
  0xf9   : > { %2913 = vmatprep.mubr.bf16.mxu1 %v1209_v53  ;;  %v877_v53 = vshll.u32 %v691_v33, 16  ;;  %v3360_v9 = vor.u32 %v3359_v52, %v7746_v31  ;;  %v3372_v33 = vor.u32 %v3370_v26, %v3369_v46  ;;  %v3387_v44 = vshrl.u32 %v3088_v8, 16  ;;  %v5895_v8 = vld [vmem:[%s7741_s3 + $0x1f0] sm:$0xff]  }
  0xfa   : > { %v6994_v54 = vsel %vm725_vm2, %v6726_v6, %v817_v59  ;;  %v6999_v49 = vrot.slane %v3154_v39, 1  ;;  %v699_v10 = vrot.slane %v523_v14, 1  ;;  %v5893_v6 = vld [vmem:[%s7741_s3 + $0x1e8] sm:$0xff]   ;;  %v907_v56 = vrot.slane %v905_v63, 7 }
  0xfb   : > { %5376 = vmatpush3.bf16.msra.mxu0 %v5889_v0  ;;  %v879_v22 = vor.u32 %v877_v53, %v876_v60  ;;  %v908_v61 = vshll.u32 %v6963_v42, 16  ;;  %v3390_v52 = vrot.slane %v3150_v35, 7  ;;  %v936_v0 = vshrl.u32 %v6989_v27, 16  ;;  %v5894_v60 = vld [vmem:[%s7741_s3 + $0x1a8] sm:$0xff]  }
  0xfc   : > { %5377 = vmatprep.subr.bf16.mxu0 %v5891_v24  ;;  %v7013_v59 = vsel %vm725_vm2, %v6780_v40, %v848_v19  ;;  %v7016_v15 = vsel %vm725_vm2, %v3358_v50, %v3360_v9  ;;  %v7019_v46 = vor.u32 %v3157_v20, %v6999_v49  ;;  %v702_v26 = vrot.slane %v524_v21, 1  ;;  %v7031_v24 = vld [vmem:[#allocation2 + $0x98] sm:$0xff] }
  0xfd   : > { %v7024_v35 = vsel %vm725_vm2, %v3365_v62, %v3372_v33  ;;  %v3400_v42 = vrot.slane %v3398_v18, 7  ;;  %v7029_v40 = vsel %vm676_vm1, %v6801_v11, %v699_v10  ;;  %v3389_v53 = vrot.slane %v3387_v44, 7  ;;  %v5900_v44 = vld [vmem:[%s7741_s3 + $0x208] sm:$0xff]  }
  0xfe   : > { %5530 = vmatmul.mubr.bf16.gmra.mrb[72].mxu0 %v6865_v38  ;;  %v7039_v38 = vsel %vm725_vm2, %v6787_v13, %v879_v22  ;;  %v703_v11 = vsel %vm676_vm1, %v6816_v41, %v702_v26  ;;  %v910_v3 = vor.u32 %v908_v61, %v907_v56  ;;  %v3391_v62 = vor.u32 %v3390_v52, %v3147_v36  ;;  %v525_v13 = vld [vmem:[#allocation2 + $0xe8] sm:$0x1]  ;;  %v5896_v36 = vld [vmem:[%s7741_s3 + $0x1b0] sm:$0xff]  }
  0xff   : > { %5378 = vmatpush3.bf16.msra.mxu0 %v5892_v30  ;;  %5533 = vmatprep.mubr.bf16.mxu0 %v6897_v32  ;;  %v938_v32 = vrot.slane %v936_v0, 7  ;;  %v939_v50 = vshll.u32 %v6989_v27, 16  ;;  %v3429_v63 = vshrl.u32 %v7019_v46, 16  ;;  %v967_v14 = vshrl.u32 %v7029_v40, 16  ;;  %v5912_v30 = vld [vmem:[#allocation2 + $0xe0] sm:$0xff]  ;;  %v7073_v61 = vld [vmem:[#allocation2 + $0xb0] sm:$0xff] }
 0x100   : > { %2914 = vmatmul.mubr.bf16.gmra.mrb[76].mxu1 %v6902_v51  ;;  %v3401_v51 = vshll.u32 %v6973_v29, 16  ;;  %v3090_v29 = vld [vmem:[#allocation2 + $0x78] sm:$0x80]  ;;  %5379 = vmatprep.subr.bf16.mxu0 %v5893_v6  ;;  %v998_v19 = vshrl.u32 %v703_v11, 16  ;;  %v3161_v41 = vshll.u32 %v7031_v24, 16  ;;  %v3425_v9 = vshrl.u32 %v6999_v49, 16 }
 0x101   : > { %5569 = vmatprep.mubr.bf16.mxu1 %v6945_v23  ;;  %v3396_v23 = vrot.slane %v3394_v16, 7  ;;  %v3418_v33 = vshrl.u32 %v3090_v29, 16  ;;  %v3164_v18 = vshrl.u32 %v7031_v24, 16  ;;  %v3421_v27 = vrot.slane %v3157_v20, 7  ;;  %v5897_v49 = vld [vmem:[%s7741_s3 + $0x1f8] sm:$0xff]  }
 0x102   : > { %v3403_v31 = vor.u32 %v3401_v51, %v3400_v42  ;;  %v7059_v21 = vrot.slane %v3161_v41, 1  ;;  %v704_v22 = vrot.slane %v5912_v30, 1  ;;  %v705_v16 = vrot.slane %v525_v13, 1  ;;  %v526_v51 = vld [vmem:[#allocation2 + $0x100] sm:$0x1] }
 0x103   : > { %5380 = vmatpush3.bf16.msra.mxu0 %v5894_v60  ;;  %v7069_v10 = vsel %vm725_vm2, %v6804_v1, %v910_v3  ;;  %v941_v20 = vor.u32 %v939_v50, %v938_v32  ;;  %v3432_v6 = vshll.u32 %v7019_v46, 16  ;;  %v970_v56 = vshll.u32 %v7029_v40, 16  ;;  %v5913_v1 = vld [vmem:[%s7741_s3 + $0x200] sm:$0xff]   ;;  %v5898_v60 = vld [vmem:[%s7741_s3 + $0x1b8] sm:$0xff]   ;;  %v3092_v3 = vld [vmem:[#allocation2 + $0x90] sm:$0x80] }
 0x104   : > { %5381 = vmatprep.subr.bf16.mxu0 %v5895_v8  ;;  %v3431_v52 = vrot.slane %v3429_v63, 7  ;;  %v969_v0 = vrot.slane %v967_v14, 7  ;;  %v1000_v26 = vrot.slane %v998_v19, 7  ;;  %v1001_v42 = vshll.u32 %v703_v11, 16  ;;  %v527_v14 = vld [vmem:[#allocation2 + $0x118] sm:$0x1] }
 0x105   : > { %v7081_v46 = vsel %vm725_vm2, %v3396_v23, %v3403_v31  ;;  %v7084_v40 = vsel %vm725_vm2, %v3389_v53, %v3391_v62  ;;  %v3427_v29 = vrot.slane %v3425_v9, 7  ;;  %v3420_v23 = vrot.slane %v3418_v33, 7 }
 0x106   : > { %5534 = vmatmul.mubr.bf16.gmra.mrb[76].mxu0 %v6942_v37  ;;  %v5901_v37 = vld [vmem:[%s7741_s3 + $0x210] sm:$0xff]   ;;  %v3422_v53 = vor.u32 %v3421_v27, %v3154_v39  ;;  %v706_v11 = vsel %vm676_vm1, %v704_v22, %v705_v16  ;;  %v7102_v8 = vsel %vm725_vm2, %v6828_v48, %v941_v20  ;;  %v708_v62 = vrot.slane %v526_v51, 1  ;;  %v5902_v27 = vld [vmem:[%s7741_s3 + $0x218] sm:$0xff]  }
 0x107   : > { %5382 = vmatpush3.bf16.msra.mxu0 %v5896_v36  ;;  %4093 = vmatprep.mubr.bf16.mxu0 %v6951_v43  ;;  %v707_v43 = vrot.slane %v6610_v58, 1  ;;  %v3168_v32 = vshll.u32 %v7073_v61, 16  ;;  %v3434_v50 = vor.u32 %v3432_v6, %v3431_v52  ;;  %v972_v13 = vor.u32 %v970_v56, %v969_v0  ;;  %v528_v52 = vld [vmem:[#allocation2 + $0x130] sm:$0x1] }
 0x108   : > { %5570 = vmatmul.mubr.bf16.vlgmr.msra.gmra.mrb[80].mxu1 %v6981_v34  ;;  %v7087_v34 = vor.u32 %v3164_v18, %v7059_v21  ;;  %5383 = vmatprep.subr.bf16.mxu0 %v5897_v49  ;;  %v1003_v63 = vor.u32 %v1001_v42, %v1000_v26  ;;  %v3171_v39 = vshrl.u32 %v7073_v61, 16  ;;  %v1029_v19 = vshrl.u32 %v706_v11, 16 }
 0x109   : > { %5602 = vmatpush3.bf16.msra.mxu1 %v5913_v1  ;;  %5573 = vmatprep.mubr.bf16.mxu1 %v6994_v54  ;;  %v709_v48 = vsel %vm676_vm1, %v707_v43, %v708_v62  ;;  %v7111_v31 = vrot.slane %v3168_v32, 1  ;;  %v7114_v58 = vsel %vm725_vm2, %v3420_v23, %v3422_v53  ;;  %v7116_v9 = vshrl.u32 %v704_v22, 16 }
 0x10a   : > { %5603 = vmatprep.subr.bf16.mxu1 %v5900_v44  ;;  %v3460_v54 = vshrl.u32 %v7087_v34, 16  ;;  %v3449_v33 = vshrl.u32 %v3092_v3, 16  ;;  %v710_v36 = vrot.slane %v6636_v12, 1  ;;  %v3456_v30 = vshrl.u32 %v7059_v21, 16 }
 0x10b   : > { %5384 = vmatpush3.bf16.msra.mxu0 %v5898_v60  ;;  %v3452_v16 = vrot.slane %v3164_v18, 7  ;;  %v1060_v49 = vshrl.u32 %v709_v48, 16  ;;  %v7125_v20 = vsel %vm725_vm2, %v3427_v29, %v3434_v50  ;;  %v7129_v22 = vsel %vm725_vm2, %v6860_v28, %v972_v13  ;;  %v7140_v18 = vld [vmem:[#allocation2 + $0xc8] sm:$0xff] }
 0x10c   : > { %v7133_v12 = vsel %vm725_vm2, %v6871_v4, %v1003_v63  ;;  %v7138_v21 = vor.u32 %v3171_v39, %v7111_v31  ;;  %v3463_v6 = vshll.u32 %v7087_v34, 16  ;;  %v1031_v28 = vrot.slane %v1029_v19, 7 }
 0x10d   : > { %5604 = vmatpush3.bf16.msra.mxu1 %v5900_v44  ;;  %v711_v44 = vrot.slane %v527_v14, 1  ;;  %v1032_v56 = vshll.u32 %v706_v11, 16  ;;  %v1027_v4 = vrot.slane %v7116_v9, 7  ;;  %v3451_v0 = vrot.slane %v3449_v33, 7 }
 0x10e   : > { %5605 = vmatprep.subr.bf16.mxu1 %v5901_v37  ;;  %4094 = vmatmul.mubr.bf16.vlgmr.msra.gmra.mrb[80].mxu0 %v6954_v25  ;;  %v1056_v26 = vshrl.u32 %v707_v43, 16  ;;  %v3458_v51 = vrot.slane %v3456_v30, 7  ;;  %v5903_v25 = vld [vmem:[%s7741_s3 + $0x220] sm:$0xff]   ;;  %v1063_v1 = vshll.u32 %v709_v48, 16  ;;  %v713_v34 = vrot.slane %v6665_v57, 1 }
 0x10f   : > { %4101 = vmatprep.mubr.bf16.mxu0 %v7024_v35  ;;  %v712_v42 = vsel %vm676_vm1, %v710_v36, %v711_v44  ;;  %v3453_v35 = vor.u32 %v3452_v16, %v3161_v41  ;;  %v3491_v60 = vshrl.u32 %v7138_v21, 16  ;;  %v714_v29 = vrot.slane %v528_v52, 1  ;;  %v529_v41 = vld [vmem:[#allocation2 + $0x148] sm:$0x1] }
 0x110   : > { %5574 = vmatmul.mubr.bf16.gmra.mrb[84].mxu1 %v7013_v59  ;;  %v3462_v59 = vrot.slane %v3460_v54, 7  ;;  %v3175_v23 = vshll.u32 %v7140_v18, 16  ;;  %v1034_v11 = vor.u32 %v1032_v56, %v1031_v28  ;;  %v1091_v3 = vshrl.u32 %v712_v42, 16  ;;  %v5904_v54 = vld [vmem:[%s7741_s3 + $0x228] sm:$0xff]   ;;  %v5905_v28 = vld [vmem:[%s7741_s3 + $0x230] sm:$0xff]  }
 0x111   : > { %5577 = vmatprep.mubr.bf16.mxu1 %v7039_v38  ;;  %5606 = vmatpush3.bf16.msra.mxu1 %v5901_v37  ;;  %v1062_v38 = vrot.slane %v1060_v49, 7  ;;  %v3094_v37 = vld [vmem:[#allocation2 + $0xa8] sm:$0x80]  ;;  %v3178_v43 = vshrl.u32 %v7140_v18, 16  ;;  %v1058_v62 = vrot.slane %v1056_v26, 7  ;;  %v3487_v50 = vshrl.u32 %v7111_v31, 16 }
 0x112   : > { %5607 = vmatprep.subr.bf16.mxu1 %v5902_v27  ;;  %v3465_v53 = vor.u32 %v3463_v6, %v3462_v59  ;;  %v7158_v13 = vshrl.u32 %v710_v36, 16  ;;  %v7162_v57 = vrot.slane %v3175_v23, 1  ;;  %v3480_v14 = vshrl.u32 %v3094_v37, 16  ;;  %v3096_v26 = vld [vmem:[#allocation2 + $0xc0] sm:$0x80] }
 0x113   : > { %v1065_v63 = vor.u32 %v1063_v1, %v1062_v38  ;;  %v715_v19 = vsel %vm676_vm1, %v713_v34, %v714_v29  ;;  %v716_v48 = vrot.slane %v6711_v7, 1  ;;  %v3493_v31 = vrot.slane %v3491_v60, 7  ;;  %v531_v29 = vld [vmem:[#allocation2 + $0x178] sm:$0x1] }
 0x114   : > { %v3494_v9 = vshll.u32 %v7138_v21, 16  ;;  %v3483_v33 = vrot.slane %v3171_v39, 7  ;;  %v7174_v36 = vor.u32 %v3178_v43, %v7162_v57  ;;  %v1093_v30 = vrot.slane %v1091_v3, 7  ;;  %v7188_v21 = vld [vmem:[#allocation2 + $0xe0] sm:$0xff] }
 0x115   : > { %5608 = vmatpush3.bf16.msra.mxu1 %v5902_v27  ;;  %v7179_v27 = vsel %vm725_vm2, %v3451_v0, %v3453_v35  ;;  %v1094_v7 = vshll.u32 %v712_v42, 16  ;;  %v717_v16 = vrot.slane %v529_v41, 1  ;;  %v7186_v39 = vsel %vm725_vm2, %v1027_v4, %v1034_v11 }
 0x116   : > { %5609 = vmatprep.subr.bf16.mxu1 %v5903_v25  ;;  %4102 = vmatmul.mubr.bf16.gmra.mrb[84].mxu0 %v7016_v15  ;;  %v3489_v49 = vrot.slane %v3487_v50, 7  ;;  %v1122_v44 = vshrl.u32 %v715_v19, 16  ;;  %v530_v15 = vld [vmem:[#allocation2 + $0x160] sm:$0x1]  ;;  %v1089_v59 = vrot.slane %v7158_v13, 7  ;;  %v3482_v6 = vrot.slane %v3480_v14, 7 }
 0x117   : > { %4109 = vmatprep.mubr.bf16.mxu0 %v7081_v46  ;;  %v718_v46 = vsel %vm676_vm1, %v716_v48, %v717_v16  ;;  %v3496_v56 = vor.u32 %v3494_v9, %v3493_v31  ;;  %v3484_v52 = vor.u32 %v3483_v33, %v3168_v32  ;;  %v1118_v4 = vshrl.u32 %v713_v34, 16 }
 0x118   : > { %5578 = vmatmul.mubr.bf16.gmra.mrb[88].mxu1 %v7069_v10  ;;  %v7183_v10 = vsel %vm725_vm2, %v3458_v51, %v3465_v53  ;;  %v3522_v0 = vshrl.u32 %v7174_v36, 16  ;;  %v1096_v42 = vor.u32 %v1094_v7, %v1093_v30  ;;  %v719_v51 = vrot.slane %v6752_v5, 1  ;;  %v5906_v5 = vld [vmem:[%s7741_s3 + $0x238] sm:$0xff]  }
 0x119   : > { %5581 = vmatprep.mubr.bf16.mxu1 %v7102_v8  ;;  %5610 = vmatpush3.bf16.msra.mxu1 %v5903_v25  ;;  %v7191_v8 = vsel %vm725_vm2, %v1058_v62, %v1065_v63  ;;  %v720_v25 = vrot.slane %v530_v15, 1  ;;  %v3182_v38 = vshll.u32 %v7188_v21, 16  ;;  %v1124_v1 = vrot.slane %v1122_v44, 7  ;;  %v3116_v44 = vld [vmem:[#allocation2 + $0x40] sm:$0x1] }
 0x11a   : > { %5611 = vmatprep.subr.bf16.mxu1 %v5904_v54  ;;  %v1125_v35 = vshll.u32 %v715_v19, 16  ;;  %v1153_v60 = vshrl.u32 %v718_v46, 16  ;;  %v3185_v37 = vshrl.u32 %v7188_v21, 16  ;;  %v3518_v53 = vshrl.u32 %v7162_v57, 16 }
 0x11b   : > { %v1149_v32 = vshrl.u32 %v716_v48, 16  ;;  %v3511_v34 = vshrl.u32 %v3096_v26, 16  ;;  %v7207_v11 = vrot.slane %v3182_v38, 1  ;;  %v3524_v3 = vrot.slane %v3522_v0, 7 }
 0x11c   : > { %v3525_v62 = vshll.u32 %v7174_v36, 16  ;;  %v3514_v50 = vrot.slane %v3178_v43, 7  ;;  %v721_v13 = vsel %vm676_vm1, %v719_v51, %v720_v25  ;;  %v7218_v57 = vsel %vm725_vm2, %v3489_v49, %v3496_v56 }
 0x11d   : > { %5612 = vmatpush3.bf16.msra.mxu1 %v5904_v54  ;;  %v7223_v41 = vor.u32 %v3185_v37, %v7207_v11  ;;  %v723_v63 = vrot.slane %v531_v29, 1  ;;  %v1120_v43 = vrot.slane %v1118_v4, 7  ;;  %v1127_v14 = vor.u32 %v1125_v35, %v1124_v1 }
 0x11e   : > { %5613 = vmatprep.subr.bf16.mxu1 %v5905_v28  ;;  %4110 = vmatmul.mubr.bf16.gmra.mrb[88].mxu0 %v7084_v40  ;;  %v1155_v54 = vrot.slane %v1153_v60, 7  ;;  %v1156_v19 = vshll.u32 %v718_v46, 16  ;;  %v7227_v40 = vld [vmem:[#allocation2 + $0xf8] sm:$0xff]  ;;  %v7233_v48 = vsel %vm725_vm2, %v3482_v6, %v3484_v52  ;;  %v3520_v31 = vrot.slane %v3518_v53, 7 }
 0x11f   : > { %4117 = vmatprep.mubr.bf16.mxu0 %v7125_v20  ;;  %v1184_v9 = vshrl.u32 %v721_v13, 16  ;;  %v1151_v33 = vrot.slane %v1149_v32, 7  ;;  %v3513_v36 = vrot.slane %v3511_v34, 7  ;;  %v3515_v20 = vor.u32 %v3514_v50, %v3175_v23  ;;  %v3098_v23 = vld [vmem:[#allocation2 + $0xd8] sm:$0x80]  ;;  %v7269_v34 = vld [vmem:[#allocation2 + $0x110] sm:$0xff] }
 0x120   : > { %5582 = vmatmul.mubr.bf16.gmra.mrb[92].mxu1 %v7129_v22  ;;  %v722_v22 = vrot.slane %v6784_v55, 1  ;;  %v3527_v55 = vor.u32 %v3525_v62, %v3524_v3  ;;  %v1180_v30 = vshrl.u32 %v719_v51, 16  ;;  %v3553_v7 = vshrl.u32 %v7223_v41, 16  ;;  %v3117_v32 = vld [vmem:[#allocation2 + $0x58] sm:$0x1] }
 0x121   : > { %5585 = vmatprep.mubr.bf16.mxu1 %v7133_v12  ;;  %5614 = vmatpush3.bf16.msra.mxu1 %v5905_v28  ;;  %v7230_v12 = vsel %vm725_vm2, %v1089_v59, %v1096_v42  ;;  %v3189_v49 = vshll.u32 %v7227_v40, 16  ;;  %v1128_v15 = vsel %vm725_vm2, %v1120_v43, %v1127_v14  ;;  %v1158_v59 = vor.u32 %v1156_v19, %v1155_v54  ;;  %v3100_v14 = vld [vmem:[#allocation2 + $0xf0] sm:$0x80] }
 0x122   : > { %5615 = vmatprep.subr.bf16.mxu1 %v5906_v5  ;;  %v724_v16 = vsel %vm676_vm1, %v722_v22, %v723_v63  ;;  %v1187_v6 = vshll.u32 %v721_v13, 16  ;;  %v3192_v46 = vshrl.u32 %v7227_v40, 16  ;;  %v1186_v28 = vrot.slane %v1184_v9, 7 }
 0x123   : > { %v3549_v56 = vshrl.u32 %v7207_v11, 16  ;;  %v7243_v52 = vshrl.u32 %v722_v22, 16  ;;  %v7247_v4 = vrot.slane %v3189_v49, 1  ;;  %v7251_v0 = vsel %vm725_vm2, %v3513_v36, %v3515_v20  ;;  %v3118_v36 = vld [vmem:[#allocation2 + $0x70] sm:$0x1] }
 0x124   : > { %v1215_v26 = vshrl.u32 %v724_v16, 16  ;;  %v3276_v42 = vrot.slane %v6830_v47, 1  ;;  %v3277_v51 = vrot.slane %v3116_v44, 1  ;;  %v7257_v25 = vsel %vm725_vm2, %v3520_v31, %v3527_v55 }
 0x125   : > { %5616 = vmatpush3.bf16.msra.mxu1 %v5906_v5  ;;  %v1182_v35 = vrot.slane %v1180_v30, 7  ;;  %v3555_v60 = vrot.slane %v3553_v7, 7  ;;  %v3556_v29 = vshll.u32 %v7223_v41, 16  ;;  %v3542_v47 = vshrl.u32 %v3098_v23, 16 }
 0x126   : > { %4118 = vmatmul.mubr.bf16.gmra.mrb[92].mxu0 %v7114_v58  ;;  %v3545_v58 = vrot.slane %v3185_v37, 7  ;;  %v1189_v3 = vor.u32 %v1187_v6, %v1186_v28  ;;  %v3551_v62 = vrot.slane %v3549_v56, 7  ;;  %v1217_v13 = vrot.slane %v1215_v26, 7 }
 0x127   : > { %4125 = vmatprep.mubr.bf16.mxu0 %v7183_v10  ;;  %v1213_v10 = vrot.slane %v7243_v52, 7  ;;  %v1218_v41 = vshll.u32 %v724_v16, 16  ;;  %v3278_v22 = vsel %vm676_vm1, %v3276_v42, %v3277_v51  ;;  %v3279_v37 = vrot.slane %v6868_v2, 1 }
 0x128   : > { %5586 = vmatmul.mubr.bf16.gmra.mrb[0].mxu1 %v7186_v39  ;;  %v7262_v39 = vsel %vm725_vm2, %v1151_v33, %v1158_v59  ;;  %v3558_v43 = vor.u32 %v3556_v29, %v3555_v60  ;;  %v3280_v54 = vrot.slane %v3117_v32, 1  ;;  %v3196_v19 = vshll.u32 %v7269_v34, 16 }
 0x129   : > { %5589 = vmatprep.mubr.bf16.mxu1 %v7191_v8  ;;  %v7267_v8 = vor.u32 %v3192_v46, %v7247_v4  ;;  %v3544_v31 = vrot.slane %v3542_v47, 7  ;;  %v3546_v9 = vor.u32 %v3545_v58, %v3182_v38  ;;  %v3199_v33 = vshrl.u32 %v7269_v34, 16  ;;  %v7310_v58 = vld [vmem:[#allocation2 + $0x128] sm:$0xff] }
 0x12a   : > { %v3348_v20 = vshrl.u32 %v3278_v22, 16  ;;  %v3281_v30 = vsel %vm676_vm1, %v3279_v37, %v3280_v54  ;;  %v7286_v2 = vrot.slane %v3196_v19, 1  ;;  %v3282_v7 = vrot.slane %v6905_v17, 1  ;;  %v3102_v54 = vld [vmem:[#allocation2 + $0x108] sm:$0x80] }
 0x12b   : > { %v3584_v55 = vshrl.u32 %v7267_v8, 16  ;;  %v1190_v16 = vsel %vm725_vm2, %v1182_v35, %v1189_v3  ;;  %v1220_v44 = vor.u32 %v1218_v41, %v1217_v13  ;;  %v7291_v38 = vshrl.u32 %v3276_v42, 16 }
 0x12c   : > { %v3573_v59 = vshrl.u32 %v3100_v14, 16  ;;  %v7295_v6 = vsel %vm725_vm2, %v3551_v62, %v3558_v43  ;;  %v3580_v28 = vshrl.u32 %v7247_v4, 16  ;;  %v3576_v56 = vrot.slane %v3192_v46, 7  ;;  %v3119_v4 = vld [vmem:[#allocation2 + $0x88] sm:$0x1] }
 0x12d   : > { %v5113_v1 = vpop.f32.mrb[0].mxu0  ;;  %v3283_v23 = vrot.slane %v3118_v36, 1  ;;  %v7300_v17 = vsel %vm725_vm2, %v3544_v31, %v3546_v9  ;;  %v3587_v26 = vshll.u32 %v7267_v8, 16  ;;  %v3379_v42 = vshrl.u32 %v3281_v30, 16 }
 0x12e   : > { %v5114_v53 = vpop.f32.mrb[1].mxu0  ;;  %4126 = vmatmul.mubr.bf16.gmra.mrb[96].mxu0 %v7179_v27  ;;  %v3201_v27 = vor.u32 %v3199_v33, %v7286_v2  ;;  %v3586_v51 = vrot.slane %v3584_v55, 7  ;;  %v3351_v35 = vshll.u32 %v3278_v22, 16  ;;  %v3346_v29 = vrot.slane %v7291_v38, 7 }
 0x12f   : > { %v7271_v11 = vadd.f32 %v5114_v53, %v5113_v1  ;;  %v5116_v5 = vpop.f32.mrb[2].mxu0  ;;  %4133 = vmatprep.mubr.bf16.mxu0 %v7218_v57  ;;  %v3350_v1 = vrot.slane %v3348_v20, 7  ;;  %v3284_v46 = vsel %vm676_vm1, %v3282_v7, %v3283_v23  ;;  %v3375_v53 = vshrl.u32 %v3279_v37, 16 }
 0x130   : > { %v5117_v50 = vpop.f32.mrb[3].mxu0  ;;  %5590 = vmatmul.mubr.bf16.gmra.mrb[4].mxu1 %v7230_v12  ;;  %v3410_v47 = vshrl.u32 %v3284_v46, 16  ;;  %v3582_v32 = vrot.slane %v3580_v28, 7  ;;  %v3577_v3 = vor.u32 %v3576_v56, %v3189_v49  ;;  %v3382_v62 = vshll.u32 %v3281_v30, 16  ;;  %v3120_v49 = vld [vmem:[#allocation2 + $0xa0] sm:$0x1] }
 0x131   : > { %v7276_v63 = vadd.f32 %v5117_v50, %v5116_v5  ;;  %5593 = vmatprep.mubr.bf16.mxu1 %v1128_v15  ;;  %v3575_v5 = vrot.slane %v3573_v59, 7  ;;  %v3381_v13 = vrot.slane %v3379_v42, 7  ;;  %v3615_v41 = vshrl.u32 %v3201_v27, 16 }
 0x132   : > { %v3285_v22 = vrot.slane %v6965_v45, 1  ;;  %v3589_v43 = vor.u32 %v3587_v26, %v3586_v51  ;;  %v3353_v14 = vor.u32 %v3351_v35, %v3350_v1  ;;  %v3286_v37 = vrot.slane %v3119_v4, 1 }
 0x133   : > { %v3203_v31 = vshll.u32 %v7310_v58, 16  ;;  %v3377_v9 = vrot.slane %v3375_v53, 7  ;;  %v3406_v55 = vshrl.u32 %v3282_v7, 16  ;;  %v3412_v36 = vrot.slane %v3410_v47, 7 }
 0x134   : > { %v3413_v20 = vshll.u32 %v3284_v46, 16  ;;  %v3611_v30 = vshrl.u32 %v7286_v2, 16  ;;  %v3287_v45 = vsel %vm676_vm1, %v3285_v22, %v3286_v37  ;;  %v3206_v59 = vshrl.u32 %v7310_v58, 16  ;;  %v3104_v46 = vld [vmem:[#allocation2 + $0x120] sm:$0x80] }
 0x135   : > { %v5119_v12 = vpop.f32.mrb[4].mxu0  ;;  %v7324_v38 = vrot.slane %v3203_v31, 1  ;;  %v3617_v7 = vrot.slane %v3615_v41, 7  ;;  %v3618_v28 = vshll.u32 %v3201_v27, 16  ;;  %v3604_v56 = vshrl.u32 %v3102_v54, 16 }
 0x136   : > { %v5120_v15 = vpop.f32.mrb[5].mxu0  ;;  %4134 = vmatmul.mubr.bf16.gmra.mrb[100].mxu0 %v7233_v48  ;;  %v1221_v48 = vsel %vm725_vm2, %v1213_v10, %v1220_v44  ;;  %v3607_v2 = vrot.slane %v3199_v33, 7  ;;  %v3289_v23 = vrot.slane %v3120_v49, 1  ;;  %v3408_v26 = vrot.slane %v3406_v55, 7  ;;  %v3121_v44 = vld [vmem:[#allocation2 + $0xb8] sm:$0x1] }
 0x137   : > { %v7307_v60 = vadd.f32 %v5120_v15, %v5119_v12  ;;  %v5122_v57 = vpop.f32.mrb[6].mxu0  ;;  %4141 = vmatprep.mubr.bf16.mxu0 %v7257_v25  ;;  %v7335_v12 = vsel %vm725_vm2, %v3575_v5, %v3577_v3  ;;  %v3415_v42 = vor.u32 %v3413_v20, %v3412_v36  ;;  %v3441_v25 = vshrl.u32 %v3287_v45, 16 }
 0x138   : > { %v5123_v8 = vpop.f32.mrb[7].mxu0  ;;  %5594 = vmatmul.mubr.bf16.gmra.mrb[8].mxu1 %v7262_v39  ;;  %v3384_v39 = vor.u32 %v3382_v62, %v3381_v13  ;;  %v7338_v15 = vsel %vm725_vm2, %v3582_v32, %v3589_v43  ;;  %v3354_v27 = vsel %vm725_vm2, %v3346_v29, %v3353_v14  ;;  %v3613_v51 = vrot.slane %v3611_v30, 7 }
 0x139   : > { %v7314_v50 = vadd.f32 %v5123_v8, %v5122_v57  ;;  %5597 = vmatprep.mubr.bf16.mxu1 %v1190_v16  ;;  %v3288_v16 = vrot.slane %v7031_v24, 1  ;;  %v3208_v10 = vor.u32 %v3206_v59, %v7324_v38  ;;  %v3620_v1 = vor.u32 %v3618_v28, %v3617_v7  ;;  %v7344_v57 = vld [vmem:[#allocation2 + $0x140] sm:$0xff] }
 0x13a   : > { %v3385_v33 = vsel %vm725_vm2, %v3377_v9, %v3384_v39  ;;  %v3606_v35 = vrot.slane %v3604_v56, 7  ;;  %v3291_v4 = vrot.slane %v7073_v61, 1  ;;  %v3608_v29 = vor.u32 %v3607_v2, %v3196_v19  ;;  %v3122_v19 = vld [vmem:[#allocation2 + $0xd0] sm:$0x1] }
 0x13b   : > { %v3437_v8 = vshrl.u32 %v3285_v22, 16  ;;  %v3290_v32 = vsel %vm676_vm1, %v3288_v16, %v3289_v23  ;;  %v3416_v3 = vsel %vm725_vm2, %v3408_v26, %v3415_v42  ;;  %v3443_v62 = vrot.slane %v3441_v25, 7 }
 0x13c   : > { %v3444_v13 = vshll.u32 %v3287_v45, 16  ;;  %v3292_v41 = vrot.slane %v3121_v44, 1  ;;  %v3646_v43 = vshrl.u32 %v3208_v10, 16  ;;  %v3635_v14 = vshrl.u32 %v3104_v46, 16 }
 0x13d   : > { %v3210_v54 = vshll.u32 %v7344_v57, 16  ;;  %v3472_v22 = vshrl.u32 %v3290_v32, 16  ;;  %v3638_v37 = vrot.slane %v3206_v59, 7  ;;  %v3213_v55 = vshrl.u32 %v7344_v57, 16 }
 0x13e   : > { %4142 = vmatmul.mubr.bf16.gmra.mrb[104].mxu0 %v7251_v0  ;;  %v3293_v9 = vsel %vm676_vm1, %v3291_v4, %v3292_v41  ;;  %v3439_v36 = vrot.slane %v3437_v8, 7  ;;  %v3642_v20 = vshrl.u32 %v7324_v38, 16  ;;  %v3468_v0 = vshrl.u32 %v3288_v16, 16  ;;  %v3123_v16 = vld [vmem:[#allocation2 + $0xe8] sm:$0x1] }
 0x13f   : > { %v5125_v52 = vpop.f32.mrb[8].mxu0  ;;  %4149 = vmatprep.mubr.bf16.mxu0 %v7295_v6  ;;  %v3212_v49 = vrot.slane %v3210_v54, 1  ;;  %v3446_v30 = vor.u32 %v3444_v13, %v3443_v62  ;;  %v3649_v45 = vshll.u32 %v3208_v10, 16  ;;  %v3294_v39 = vrot.slane %v7140_v18, 1  ;;  %v3124_v8 = vld [vmem:[#allocation2 + $0x100] sm:$0x1] }
 0x140   : > { %v5126_v24 = vpop.f32.mrb[9].mxu0  ;;  %5598 = vmatmul.mubr.bf16.gmra.mrb[12].mxu1 %v1221_v48  ;;  %v3295_v7 = vrot.slane %v3122_v19, 1  ;;  %v3648_v28 = vrot.slane %v3646_v43, 7  ;;  %v3475_v6 = vshll.u32 %v3290_v32, 16  ;;  %v3637_v56 = vrot.slane %v3635_v14, 7 }
 0x141   : > { %v7346_v53 = vadd.f32 %v5126_v24, %v5125_v52  ;;  %v5128_v47 = vpop.f32.mrb[10].mxu0  ;;  %5617 = vmatprep.mubr.bf16.mxu1 %v3354_v27  ;;  %v3503_v59 = vshrl.u32 %v3293_v9, 16  ;;  %v3474_v48 = vrot.slane %v3472_v22, 7  ;;  %v3639_v2 = vor.u32 %v3638_v37, %v3203_v31  ;;  %v3106_v27 = vld [vmem:[#allocation2 + $0x138] sm:$0x80] }
 0x142   : > { %v5129_v5 = vpop.f32.mrb[11].mxu0  ;;  %v7365_v23 = vor.u32 %v3213_v55, %v3212_v49  ;;  %v3296_v38 = vsel %vm676_vm1, %v3294_v39, %v3295_v7  ;;  %v3621_v26 = vsel %vm725_vm2, %v3613_v51, %v3620_v1  ;;  %v7370_v42 = vsel %vm725_vm2, %v3606_v35, %v3608_v29  ;;  %v7375_v1 = vld [vmem:[#allocation2 + $0x158] sm:$0xff] }
 0x143   : > { %v7353_v61 = vadd.f32 %v5129_v5, %v5128_v47  ;;  %v3644_v18 = vrot.slane %v3642_v20, 7  ;;  %v3470_v25 = vrot.slane %v3468_v0, 7  ;;  %v3447_v52 = vsel %vm725_vm2, %v3439_v36, %v3446_v30 }
 0x144   : > { %v3499_v10 = vshrl.u32 %v3291_v4, 16  ;;  %v3534_v44 = vshrl.u32 %v3296_v38, 16  ;;  %v3297_v31 = vrot.slane %v7188_v21, 1  ;;  %v3651_v24 = vor.u32 %v3649_v45, %v3648_v28 }
 0x145   : > { %v3505_v46 = vrot.slane %v3503_v59, 7  ;;  %v3506_v47 = vshll.u32 %v3293_v9, 16  ;;  %v3298_v51 = vrot.slane %v3123_v16, 1  ;;  %v3477_v35 = vor.u32 %v3475_v6, %v3474_v48  ;;  %v3108_v6 = vld [vmem:[#allocation2 + $0x150] sm:$0x80] }
 0x146   : > { %4150 = vmatmul.mubr.bf16.gmra.mrb[108].mxu0 %v7300_v17  ;;  %v3677_v4 = vshrl.u32 %v7365_v23, 16  ;;  %v3666_v29 = vshrl.u32 %v3106_v27, 16  ;;  %v3673_v21 = vshrl.u32 %v3212_v49, 16  ;;  %v3530_v32 = vshrl.u32 %v3294_v39, 16  ;;  %v3125_v49 = vld [vmem:[#allocation2 + $0x118] sm:$0x1] }
 0x147   : > { %4157 = vmatprep.mubr.bf16.mxu0 %v7338_v15  ;;  %v3669_v17 = vrot.slane %v3213_v55, 7  ;;  %v3300_v5 = vrot.slane %v7227_v40, 1  ;;  %v3537_v62 = vshll.u32 %v3296_v38, 16  ;;  %v3299_v13 = vsel %vm676_vm1, %v3297_v31, %v3298_v51 }
 0x148   : > { %5618 = vmatmul.mubr.bf16.vlgmr.msra.gmra.mrb[80].mxu1 %v3385_v33  ;;  %v7379_v33 = vsel %vm725_vm2, %v3637_v56, %v3639_v2  ;;  %v3217_v41 = vshll.u32 %v7375_v1, 16  ;;  %v7386_v15 = vsel %vm725_vm2, %v3644_v18, %v3651_v24  ;;  %v3501_v43 = vrot.slane %v3499_v10, 7  ;;  %v7396_v56 = vld [vmem:[#allocation2 + $0x170] sm:$0xff] }
 0x149   : > { %5621 = vmatprep.mubr.bf16.mxu1 %v3416_v3  ;;  %v3536_v3 = vrot.slane %v3534_v44, 7  ;;  %v3508_v14 = vor.u32 %v3506_v47, %v3505_v46  ;;  %v3301_v19 = vrot.slane %v3124_v8, 1  ;;  %v3478_v22 = vsel %vm725_vm2, %v3470_v25, %v3477_v35 }
 0x14a   : > { %v3679_v37 = vrot.slane %v3677_v4, 7  ;;  %v3680_v9 = vshll.u32 %v7365_v23, 16  ;;  %v3668_v55 = vrot.slane %v3666_v29, 7  ;;  %v3675_v36 = vrot.slane %v3673_v21, 7 }
 0x14b   : > { %v3532_v40 = vrot.slane %v3530_v32, 7  ;;  %v3565_v20 = vshrl.u32 %v3299_v13, 16  ;;  %v3302_v0 = vsel %vm676_vm1, %v3300_v5, %v3301_v19  ;;  %v3539_v45 = vor.u32 %v3537_v62, %v3536_v3 }
 0x14c   : > { %v3670_v39 = vor.u32 %v3669_v17, %v3210_v54  ;;  %v3219_v7 = vrot.slane %v3217_v41, 1  ;;  %v3220_v28 = vshrl.u32 %v7375_v1, 16  ;;  %v3509_v48 = vsel %vm725_vm2, %v3501_v43, %v3508_v14 }
 0x14d   : > { %v3561_v2 = vshrl.u32 %v3297_v31, 16  ;;  %v3596_v23 = vshrl.u32 %v3302_v0, 16  ;;  %v3303_v38 = vrot.slane %v7269_v34, 1  ;;  %v3682_v18 = vor.u32 %v3680_v9, %v3679_v37 }
 0x14e   : > { %4158 = vmatmul.mubr.bf16.gmra.mrb[112].mxu0 %v7335_v12  ;;  %v3568_v25 = vshll.u32 %v3299_v13, 16  ;;  %v3304_v27 = vrot.slane %v3125_v49, 1  ;;  %v3567_v44 = vrot.slane %v3565_v20, 7  ;;  %v3592_v24 = vshrl.u32 %v3300_v5, 16 }
 0x14f   : > { %v5131_v30 = vpop.f32.mrb[12].mxu0  ;;  %4165 = vmatprep.mubr.bf16.mxu0 %v3621_v26  ;;  %v3697_v12 = vshrl.u32 %v3108_v6, 16  ;;  %v3224_v46 = vshll.u32 %v7396_v56, 16  ;;  %v3540_v31 = vsel %vm725_vm2, %v3532_v40, %v3539_v45  ;;  %v7407_v51 = vor.u32 %v3220_v28, %v3219_v7  ;;  %v3127_v40 = vld [vmem:[#allocation2 + $0x148] sm:$0x1] }
 0x150   : > { %5622 = vmatmul.mubr.bf16.gmra.mrb[84].mxu1 %v3447_v52  ;;  %v5132_v59 = vpop.f32.mrb[13].mxu0  ;;  %v3126_v52 = vld [vmem:[#allocation2 + $0x130] sm:$0x1]  ;;  %v3305_v34 = vsel %vm676_vm1, %v3303_v38, %v3304_v27  ;;  %v3704_v26 = vshrl.u32 %v3219_v7, 16  ;;  %v3598_v35 = vrot.slane %v3596_v23, 7  ;;  %v3599_v4 = vshll.u32 %v3302_v0, 16 }
 0x151   : > { %5625 = vmatprep.mubr.bf16.mxu1 %v3478_v22  ;;  %v7401_v54 = vadd.f32 %v5132_v59, %v5131_v30  ;;  %v5134_v16 = vpop.f32.mrb[14].mxu0  ;;  %v3227_v29 = vshrl.u32 %v7396_v56, 16  ;;  %v3700_v8 = vrot.slane %v3220_v28, 7  ;;  %v7413_v21 = vrot.slane %v3224_v46, 1 }
 0x152   : > { %v5135_v10 = vpop.f32.mrb[15].mxu0  ;;  %v3306_v32 = vrot.slane %v7310_v58, 1  ;;  %v3307_v17 = vrot.slane %v3126_v52, 1  ;;  %v7417_v5 = vsel %vm725_vm2, %v3668_v55, %v3670_v39  ;;  %v3563_v3 = vrot.slane %v3561_v2, 7 }
 0x153   : > { %v7404_v47 = vadd.f32 %v5135_v10, %v5134_v16  ;;  %v3570_v62 = vor.u32 %v3568_v25, %v3567_v44  ;;  %v3627_v13 = vshrl.u32 %v3305_v34, 16  ;;  %v3683_v43 = vsel %vm725_vm2, %v3675_v36, %v3682_v18  ;;  %v7432_v36 = vld [vmem:[#allocation2 + $0x188] sm:$0xff]  ;;  %v3128_v10 = vld [vmem:[#allocation2 + $0x160] sm:$0x1] }
 0x154   : > { %v3708_v14 = vshrl.u32 %v7407_v51, 16  ;;  %v7421_v19 = vshrl.u32 %v3303_v38, 16  ;;  %v3308_v22 = vsel %vm676_vm1, %v3306_v32, %v3307_v17  ;;  %v3594_v58 = vrot.slane %v3592_v24, 7 }
 0x155   : > { %v3601_v37 = vor.u32 %v3599_v4, %v3598_v35  ;;  %v7425_v9 = vrot.slane %v3697_v12, 7  ;;  %v7430_v55 = vor.u32 %v3227_v29, %v7413_v21  ;;  %v7435_v20 = vrot.slane %v3704_v26, 7 }
 0x156   : > { %4166 = vmatmul.mubr.bf16.gmra.mrb[116].mxu0 %v7370_v42  ;;  %v3711_v0 = vshll.u32 %v7407_v51, 16  ;;  %v7440_v42 = vor.u32 %v3700_v8, %v3217_v41  ;;  %v3658_v49 = vshrl.u32 %v3308_v22, 16  ;;  %v3571_v39 = vsel %vm725_vm2, %v3563_v3, %v3570_v62  ;;  %v3110_v8 = vld [vmem:[#allocation2 + $0x168] sm:$0x80] }
 0x157   : > { %4173 = vmatprep.mubr.bf16.mxu0 %v7386_v15  ;;  %v3629_v7 = vrot.slane %v3627_v13, 7  ;;  %v3630_v28 = vshll.u32 %v3305_v34, 16  ;;  %v3309_v6 = vrot.slane %v7344_v57, 1  ;;  %v3710_v15 = vrot.slane %v3708_v14, 7 }
 0x158   : > { %5626 = vmatmul.mubr.bf16.gmra.mrb[88].mxu1 %v3509_v48  ;;  %v3625_v2 = vrot.slane %v7421_v19, 7  ;;  %v3310_v23 = vrot.slane %v3127_v40, 1  ;;  %v3231_v38 = vshll.u32 %v7432_v36, 16  ;;  %v3602_v27 = vsel %vm725_vm2, %v3594_v58, %v3601_v37 }
 0x159   : > { %5629 = vmatprep.mubr.bf16.mxu1 %v3540_v31  ;;  %v3739_v52 = vshrl.u32 %v7430_v55, 16  ;;  %v3654_v24 = vshrl.u32 %v3306_v32, 16  ;;  %v3660_v12 = vrot.slane %v3658_v49, 7  ;;  %v3661_v31 = vshll.u32 %v3308_v22, 16 }
 0x15a   : > { %v5137_v30 = vpop.f32.mrb[16].mxu0  ;;  %v3311_v51 = vsel %vm676_vm1, %v3309_v6, %v3310_v23  ;;  %v3632_v35 = vor.u32 %v3630_v28, %v3629_v7  ;;  %v3735_v4 = vshrl.u32 %v7413_v21, 16  ;;  %v3713_v17 = vor.u32 %v3711_v0, %v3710_v15 }
 0x15b   : > { %v5249_v45 = vpop.f32.mrb[16].mxu1  ;;  %v5138_v59 = vpop.f32.mrb[17].mxu0  ;;  %v3689_v3 = vshrl.u32 %v3311_v51, 16  ;;  %v7460_v62 = vrot.slane %v3231_v38, 1  ;;  %v3234_v32 = vshrl.u32 %v7432_v36, 16  ;;  %v3741_v13 = vrot.slane %v3739_v52, 7 }
 0x15c   : > { %v5250_v48 = vpop.f32.mrb[17].mxu1  ;;  %v7446_v16 = vadd.f32 %v5138_v59, %v5137_v30  ;;  %v5140_v18 = vpop.f32.mrb[18].mxu0  ;;  %v3742_v14 = vshll.u32 %v7430_v55, 16  ;;  %v3312_v19 = vrot.slane %v7375_v1, 1  ;;  %v3313_v22 = vrot.slane %v3128_v10, 1  ;;  %v7475_v59 = vld [vmem:[#allocation2 + $0x1a0] sm:$0xff] }
 0x15d   : > { %v7448_v41 = vadd.f32 %v5250_v48, %v5249_v45  ;;  %v5252_v25 = vpop.f32.mrb[18].mxu1  ;;  %v5141_v57 = vpop.f32.mrb[19].mxu0  ;;  %v3656_v21 = vrot.slane %v3654_v24, 7  ;;  %v3663_v58 = vor.u32 %v3661_v31, %v3660_v12  ;;  %v3728_v37 = vshrl.u32 %v3110_v8, 16  ;;  %v3130_v12 = vld [vmem:[#allocation2 + $0x190] sm:$0x1] }
 0x15e   : > { %v5253_v44 = vpop.f32.mrb[19].mxu1  ;;  %v7453_v34 = vadd.f32 %v5141_v57, %v5140_v18  ;;  %4174 = vmatmul.mubr.bf16.gmra.mrb[120].mxu0 %v7379_v33  ;;  %v3731_v40 = vrot.slane %v3227_v29, 7  ;;  %v3633_v49 = vsel %vm725_vm2, %v3625_v2, %v3632_v35  ;;  %v3737_v30 = vrot.slane %v3735_v4, 7 }
 0x15f   : > { %v7455_v26 = vadd.f32 %v5253_v44, %v5252_v25  ;;  %4181 = vmatprep.mubr.bf16.mxu0 %v3683_v43  ;;  %v3685_v45 = vshrl.u32 %v3309_v6, 16  ;;  %v3314_v33 = vsel %vm676_vm1, %v3312_v19, %v3313_v22  ;;  %v3691_v55 = vrot.slane %v3689_v3, 7 }
 0x160   : > { %5630 = vmatmul.mubr.bf16.gmra.mrb[92].mxu1 %v3571_v39  ;;  %v3129_v39 = vld [vmem:[#allocation2 + $0x178] sm:$0x1]  ;;  %v3692_v28 = vshll.u32 %v3311_v51, 16  ;;  %v7473_v1 = vor.u32 %v3234_v32, %v7460_v62  ;;  %v3720_v43 = vshrl.u32 %v3314_v33, 16  ;;  %v3744_v15 = vor.u32 %v3742_v14, %v3741_v13 }
 0x161   : > { %5633 = vmatprep.mubr.bf16.mxu1 %v3602_v27  ;;  %v3716_v2 = vshrl.u32 %v3312_v19, 16  ;;  %v3723_v6 = vshll.u32 %v3314_v33, 16  ;;  %v3664_v18 = vsel %vm725_vm2, %v3656_v21, %v3663_v58  ;;  %v3315_v27 = vrot.slane %v7396_v56, 1 }
 0x162   : > { %v3722_v25 = vrot.slane %v3720_v43, 7  ;;  %v3316_v52 = vrot.slane %v3129_v39, 1  ;;  %v3714_v57 = vsel %vm725_vm2, %v7435_v20, %v3713_v17  ;;  %v3702_v44 = vsel %vm725_vm2, %v7425_v9, %v7440_v42 }
 0x163   : > { %v5255_v0 = vpop.f32.mrb[20].mxu1  ;;  %v3238_v24 = vshll.u32 %v7475_v59, 16  ;;  %v3687_v31 = vrot.slane %v3685_v45, 7  ;;  %v3694_v51 = vor.u32 %v3692_v28, %v3691_v55  ;;  %v3770_v35 = vshrl.u32 %v7473_v1, 16  ;;  %v3131_v55 = vld [vmem:[#allocation2 + $0x1a8] sm:$0x1] }
 0x164   : > { %v5256_v7 = vpop.f32.mrb[21].mxu1  ;;  %v3317_v4 = vsel %vm676_vm1, %v3315_v27, %v3316_v52  ;;  %v3718_v8 = vrot.slane %v3716_v2, 7  ;;  %v3725_v3 = vor.u32 %v3723_v6, %v3722_v25  ;;  %v3318_v17 = vrot.slane %v7432_v36, 1 }
 0x165   : > { %v7477_v29 = vadd.f32 %v5256_v7, %v5255_v0  ;;  %v5258_v48 = vpop.f32.mrb[22].mxu1  ;;  %v3751_v20 = vshrl.u32 %v3317_v4, 16  ;;  %v3745_v9 = vsel %vm725_vm2, %v3737_v30, %v3744_v15  ;;  %v3730_v42 = vrot.slane %v3728_v37, 7 }
 0x166   : > { %v5259_v23 = vpop.f32.mrb[23].mxu1  ;;  %4182 = vmatmul.mubr.bf16.gmra.mrb[124].mxu0 %v7417_v5  ;;  %v3732_v13 = vor.u32 %v3731_v40, %v3224_v46  ;;  %v3319_v14 = vrot.slane %v3130_v12, 1  ;;  %v3766_v22 = vshrl.u32 %v7460_v62, 16  ;;  %v3747_v21 = vshrl.u32 %v3315_v27, 16 }
 0x167   : > { %v7481_v10 = vadd.f32 %v5259_v23, %v5258_v48  ;;  %4189 = vmatprep.mubr.bf16.mxu0 %v3714_v57  ;;  %v7499_v5 = vrot.slane %v3238_v24, 1  ;;  %v3241_v58 = vshrl.u32 %v7475_v59, 16  ;;  %v3773_v45 = vshll.u32 %v7473_v1, 16 }
 0x168   : > { %5634 = vmatmul.mubr.bf16.gmra.mrb[0].mxu1 %v3633_v49  ;;  %v3753_v30 = vrot.slane %v3751_v20, 7  ;;  %v3754_v37 = vshll.u32 %v3317_v4, 16  ;;  %v3320_v56 = vsel %vm676_vm1, %v3318_v17, %v3319_v14  ;;  %v3695_v62 = vsel %vm725_vm2, %v3687_v31, %v3694_v51 }
 0x169   : > { %5637 = vmatprep.mubr.bf16.mxu1 %v3664_v18  ;;  %v5143_v0 = vpop.f32.mrb[20].mxu0  ;;  %v3772_v39 = vrot.slane %v3770_v35, 7  ;;  %v3726_v7 = vsel %vm725_vm2, %v3718_v8, %v3725_v3  ;;  %v3778_v15 = vshrl.u32 %v3318_v17, 16  ;;  %v3782_v1 = vshrl.u32 %v3320_v56, 16  ;;  %v3112_v35 = vld [vmem:[#allocation2 + $0x180] sm:$0x80] }
 0x16a   : > { %v5144_v46 = vpop.f32.mrb[21].mxu0  ;;  %v3321_v2 = vrot.slane %v7475_v59, 1  ;;  %v3749_v18 = vrot.slane %v3747_v21, 7  ;;  %v3243_v25 = vor.u32 %v3241_v58, %v7499_v5  ;;  %v3785_v27 = vshll.u32 %v3320_v56, 16 }
 0x16b   : > { %v5261_v19 = vpop.f32.mrb[24].mxu1  ;;  %v7508_v28 = vadd.f32 %v5144_v46, %v5143_v0  ;;  %v5146_v43 = vpop.f32.mrb[22].mxu0  ;;  %v3756_v57 = vor.u32 %v3754_v37, %v3753_v30  ;;  %v3784_v12 = vrot.slane %v3782_v1, 7  ;;  %v3322_v31 = vrot.slane %v3131_v55, 1 }
 0x16c   : > { %v5262_v49 = vpop.f32.mrb[25].mxu1  ;;  %v5147_v6 = vpop.f32.mrb[23].mxu0  ;;  %v3768_v51 = vrot.slane %v3766_v22, 7  ;;  %v3775_v4 = vor.u32 %v3773_v45, %v3772_v39  ;;  %v3780_v8 = vrot.slane %v3778_v15, 7  ;;  %v3801_v14 = vshrl.u32 %v3243_v25, 16 }
 0x16d   : > { %v7504_v40 = vadd.f32 %v5262_v49, %v5261_v19  ;;  %v5264_v33 = vpop.f32.mrb[26].mxu1  ;;  %v7516_v52 = vadd.f32 %v5147_v6, %v5146_v43  ;;  %v3787_v3 = vor.u32 %v3785_v27, %v3784_v12  ;;  %v3323_v20 = vsel %vm676_vm1, %v3321_v2, %v3322_v31 }
 0x16e   : > { %v5265_v48 = vpop.f32.mrb[27].mxu1  ;;  %4190 = vmatmul.mubr.bf16.gmra.mrb[128].mxu0 %v3702_v44  ;;  %v3813_v19 = vshrl.u32 %v3323_v20, 16  ;;  %v3733_v0 = vsel %vm725_vm2, %v3730_v42, %v3732_v13  ;;  %v3759_v30 = vshrl.u32 %v3112_v35, 16  ;;  %v3757_v37 = vsel %vm725_vm2, %v3749_v18, %v3756_v57 }
 0x16f   : > { %v7511_v23 = vadd.f32 %v5265_v48, %v5264_v33  ;;  %4197 = vmatprep.mubr.bf16.mxu0 %v3745_v9  ;;  %v3809_v9 = vshrl.u32 %v3321_v2, 16  ;;  %v3816_v46 = vshll.u32 %v3323_v20, 16  ;;  %v3762_v42 = vrot.slane %v3234_v32, 7 }
 0x170   : > { %5638 = vmatmul.mubr.bf16.gmra.mrb[4].mxu1 %v3695_v62  ;;  %v3815_v45 = vrot.slane %v3813_v19, 7  ;;  %v3788_v13 = vsel %vm725_vm2, %v3780_v8, %v3787_v3  ;;  %v3797_v48 = vshrl.u32 %v7499_v5, 16  ;;  %v3803_v15 = vrot.slane %v3801_v14, 7 }
 0x171   : > { %5641 = vmatprep.mubr.bf16.mxu1 %v3726_v7  ;;  %v5149_v21 = vpop.f32.mrb[24].mxu0  ;;  %v3776_v7 = vsel %vm725_vm2, %v3768_v51, %v3775_v4  ;;  %v3804_v1 = vshll.u32 %v3243_v25, 16  ;;  %v3811_v6 = vrot.slane %v3809_v9, 7  ;;  %v3761_v27 = vrot.slane %v3759_v30, 7  ;;  %v3114_v51 = vld [vmem:[#allocation2 + $0x198] sm:$0x80] }
 0x172   : > { %v5150_v44 = vpop.f32.mrb[25].mxu0  ;;  %v3818_v18 = vor.u32 %v3816_v46, %v3815_v45  ;;  %v3763_v32 = vor.u32 %v3762_v42, %v3231_v38  ;;  %v3799_v12 = vrot.slane %v3797_v48, 7  ;;  %v3790_v36 = vshrl.u32 %v3114_v51, 16 }
 0x173   : > { %v5267_v17 = vpop.f32.mrb[28].mxu1  ;;  %v7523_v33 = vadd.f32 %v5150_v44, %v5149_v21  ;;  %v5152_v62 = vpop.f32.mrb[26].mxu0  ;;  %v3806_v31 = vor.u32 %v3804_v1, %v3803_v15  ;;  %v3793_v38 = vrot.slane %v3241_v58, 7 }
 0x174   : > { %v5268_v49 = vpop.f32.mrb[29].mxu1  ;;  %v5153_v55 = vpop.f32.mrb[27].mxu0  ;;  %v3819_v3 = vsel %vm725_vm2, %v3811_v6, %v3818_v18  ;;  %v3764_v14 = vsel %vm725_vm2, %v3761_v27, %v3763_v32 }
 0x175   : > { %v7521_v22 = vadd.f32 %v5268_v49, %v5267_v17  ;;  %v5270_v56 = vpop.f32.mrb[30].mxu1  ;;  %v7532_v2 = vadd.f32 %v5153_v55, %v5152_v62  ;;  %v3807_v49 = vsel %vm725_vm2, %v3799_v12, %v3806_v31  ;;  %v3794_v44 = vor.u32 %v3793_v38, %v3238_v24 }
 0x176   : > { %v5271_v39 = vpop.f32.mrb[31].mxu1  ;;  %4198 = vmatmul.mubr.bf16.gmra.mrb[132].mxu0 %v3733_v0 }
 0x177   : > { %v7529_v43 = vadd.f32 %v5271_v39, %v5270_v56  ;;  %4205 = vmatprep.mubr.bf16.mxu0 %v3776_v7 }
 0x178   : > { %5642 = vmatmul.mubr.bf16.gmra.mrb[8].mxu1 %v3757_v37  ;;  %v3792_v37 = vrot.slane %v3790_v36, 7 }
 0x179   : > { %5645 = vmatprep.mubr.bf16.mxu1 %v3788_v13  ;;  %v5155_v35 = vpop.f32.mrb[28].mxu0 }
 0x17a   : > { %v5156_v4 = vpop.f32.mrb[29].mxu0  ;;  %v3795_v42 = vsel %vm725_vm2, %v3792_v37, %v3794_v44 }
 0x17b   : > { %v5273_v57 = vpop.f32.mrb[32].mxu1  ;;  %v7539_v20 = vadd.f32 %v5156_v4, %v5155_v35  ;;  %v5158_v17 = vpop.f32.mrb[30].mxu0 }
 0x17c   : > { %v5274_v5 = vpop.f32.mrb[33].mxu1  ;;  %v5159_v21 = vpop.f32.mrb[31].mxu0 }
 0x17d   : > { %v7536_v25 = vadd.f32 %v5274_v5, %v5273_v57  ;;  %v5276_v8 = vpop.f32.mrb[34].mxu1  ;;  %v7547_v30 = vadd.f32 %v5159_v21, %v5158_v17 }
 0x17e   : > { %v5277_v19 = vpop.f32.mrb[35].mxu1  ;;  %4206 = vmatmul.mubr.bf16.gmra.mrb[136].mxu0 %v3764_v14 }
 0x17f   : > { %v7544_v0 = vadd.f32 %v5277_v19, %v5276_v8  ;;  %4213 = vmatprep.mubr.bf16.mxu0 %v3807_v49 }
 0x180   : > { %5646 = vmatmul.mubr.bf16.gmra.mrb[12].mxu1 %v3819_v3 }
 0x181   : > { %v5161_v9 = vpop.f32.mrb[32].mxu0 }
 0x182   : > { %v5162_v46 = vpop.f32.mrb[33].mxu0 }
 0x183   : > { %v5279_v56 = vpop.f32.mrb[36].mxu1  ;;  %v5163_v39 = vadd.f32 %v5162_v46, %v5161_v9  ;;  %v5164_v7 = vpop.f32.mrb[34].mxu0 }
 0x184   : > { %v5280_v45 = vpop.f32.mrb[37].mxu1  ;;  %v5165_v55 = vpop.f32.mrb[35].mxu0 }
 0x185   : > { %v7551_v62 = vadd.f32 %v5280_v45, %v5279_v56  ;;  %v5282_v58 = vpop.f32.mrb[38].mxu1  ;;  %v5166_v15 = vadd.f32 %v5165_v55, %v5164_v7 }
 0x186   : > { %v5283_v13 = vpop.f32.mrb[39].mxu1  ;;  %4214 = vmatmul.mubr.bf16.gmra.mrb[140].mxu0 %v3795_v42 }
 0x187   : > { %v7554_v48 = vadd.f32 %v5283_v13, %v5282_v58 }
 0x189   : > { %v5167_v59 = vpop.f32.mrb[36].mxu0 }
 0x18a   : > { %v5168_v6 = vpop.f32.mrb[37].mxu0 }
 0x18b   : > { %v5285_v1 = vpop.f32.mrb[40].mxu1  ;;  %v5169_v32 = vadd.f32 %v5168_v6, %v5167_v59  ;;  %v5170_v57 = vpop.f32.mrb[38].mxu0 }
 0x18c   : > { %v5286_v24 = vpop.f32.mrb[41].mxu1  ;;  %v5171_v31 = vpop.f32.mrb[39].mxu0 }
 0x18d   : > { %v7556_v18 = vadd.f32 %v5286_v24, %v5285_v1  ;;  %v5288_v27 = vpop.f32.mrb[42].mxu1  ;;  %v5172_v35 = vadd.f32 %v5171_v31, %v5170_v57 }
 0x18e   : > { %v5289_v12 = vpop.f32.mrb[43].mxu1 }
 0x18f   : > { %v7558_v51 = vadd.f32 %v5289_v12, %v5288_v27 }
 0x191   : > { %v5173_v4 = vpop.f32.mrb[40].mxu0 }
 0x192   : > { %v5174_v3 = vpop.f32.mrb[41].mxu0 }
 0x193   : > { %v5291_v5 = vpop.f32.mrb[44].mxu1  ;;  %v5175_v19 = vadd.f32 %v5174_v3, %v5173_v4  ;;  %v5176_v36 = vpop.f32.mrb[42].mxu0 }
 0x194   : > { %v5292_v8 = vpop.f32.mrb[45].mxu1  ;;  %v5177_v21 = vpop.f32.mrb[43].mxu0 }
 0x195   : > { %v7560_v17 = vadd.f32 %v5292_v8, %v5291_v5  ;;  %v5294_v14 = vpop.f32.mrb[46].mxu1  ;;  %v5178_v37 = vadd.f32 %v5177_v21, %v5176_v36 }
 0x196   : > { %v5295_v38 = vpop.f32.mrb[47].mxu1 }
 0x197   : > { %v7562_v49 = vadd.f32 %v5295_v38, %v5294_v14 }
 0x199   : > { %v5179_v56 = vpop.f32.mrb[44].mxu0 }
 0x19a   : > { %v5180_v45 = vpop.f32.mrb[45].mxu0 }
 0x19b   : > { %v5297_v44 = vpop.f32.mrb[48].mxu1  ;;  %v5181_v7 = vadd.f32 %v5180_v45, %v5179_v56  ;;  %v5182_v42 = vpop.f32.mrb[46].mxu0 }
 0x19c   : > { %v5298_v9 = vpop.f32.mrb[49].mxu1  ;;  %v5183_v55 = vpop.f32.mrb[47].mxu0 }
 0x19d   : > { %v5299_v46 = vadd.f32 %v5298_v9, %v5297_v44  ;;  %v5300_v58 = vpop.f32.mrb[50].mxu1  ;;  %v5184_v24 = vadd.f32 %v5183_v55, %v5182_v42 }
 0x19e   : > { %v5301_v13 = vpop.f32.mrb[51].mxu1 }
 0x19f   : > { %v7564_v1 = vadd.f32 %v5299_v46, %v5163_v39  ;;  %v5302_v59 = vadd.f32 %v5301_v13, %v5300_v58 }
 0x1a1   : > { %v7566_v6 = vadd.f32 %v5302_v59, %v5166_v15  ;;  %v5185_v57 = vpop.f32.mrb[48].mxu0 }
 0x1a2   : > { %v5186_v31 = vpop.f32.mrb[49].mxu0 }
 0x1a3   : > { %v5303_v27 = vpop.f32.mrb[52].mxu1  ;;  %v5187_v8 = vadd.f32 %v5186_v31, %v5185_v57  ;;  %v5188_v3 = vpop.f32.mrb[50].mxu0 }
 0x1a4   : > { %v5304_v12 = vpop.f32.mrb[53].mxu1  ;;  %v5189_v36 = vpop.f32.mrb[51].mxu0 }
 0x1a5   : > { %v5305_v5 = vadd.f32 %v5304_v12, %v5303_v27  ;;  %v5306_v4 = vpop.f32.mrb[54].mxu1  ;;  %v5190_v44 = vadd.f32 %v5189_v36, %v5188_v3 }
 0x1a6   : > { %v5307_v14 = vpop.f32.mrb[55].mxu1 }
 0x1a7   : > { %v7568_v38 = vadd.f32 %v5305_v5, %v5169_v32  ;;  %v5308_v21 = vadd.f32 %v5307_v14, %v5306_v4 }
 0x1a9   : > { %v7570_v39 = vadd.f32 %v5308_v21, %v5172_v35  ;;  %v5191_v9 = vpop.f32.mrb[52].mxu0 }
 0x1aa   : > { %v5192_v45 = vpop.f32.mrb[53].mxu0 }
 0x1ab   : > { %7747 = vst [vmem:[#allocation3_spill] sm:$0xff] %v7570_v39  ;;  %v5309_v56 = vpop.f32.mrb[56].mxu1  ;;  %v5193_v42 = vadd.f32 %v5192_v45, %v5191_v9  ;;  %v5194_v13 = vpop.f32.mrb[54].mxu0 }
 0x1ac   : > { %v5310_v15 = vpop.f32.mrb[57].mxu1  ;;  %v5195_v59 = vpop.f32.mrb[55].mxu0 }
 0x1ad   : > { %v5311_v46 = vadd.f32 %v5310_v15, %v5309_v56  ;;  %v5312_v58 = vpop.f32.mrb[58].mxu1  ;;  %v5196_v12 = vadd.f32 %v5195_v59, %v5194_v13 }
 0x1ae   : > { %v5313_v55 = vpop.f32.mrb[59].mxu1 }
 0x1af   : > { %v7572_v27 = vadd.f32 %v5311_v46, %v5175_v19  ;;  %v5314_v57 = vadd.f32 %v5313_v55, %v5312_v58 }
 0x1b1   : > { %7748 = vst [vmem:[#allocation4_spill] sm:$0xff] %v7572_v27  ;;  %v7574_v32 = vadd.f32 %v5314_v57, %v5178_v37  ;;  %v5197_v5 = vpop.f32.mrb[56].mxu0 }
 0x1b2   : > { %v5198_v4 = vpop.f32.mrb[57].mxu0 }
 0x1b3   : > { %7749 = vst [vmem:[#allocation5_spill] sm:$0xff] %v7574_v32  ;;  %v5315_v31 = vpop.f32.mrb[60].mxu1  ;;  %v5199_v36 = vadd.f32 %v5198_v4, %v5197_v5  ;;  %v5200_v21 = vpop.f32.mrb[58].mxu0 }
 0x1b4   : > { %v5316_v35 = vpop.f32.mrb[61].mxu1  ;;  %v5201_v15 = vpop.f32.mrb[59].mxu0 }
 0x1b5   : > { %v5317_v3 = vadd.f32 %v5316_v35, %v5315_v31  ;;  %v5318_v14 = vpop.f32.mrb[62].mxu1  ;;  %v5202_v39 = vadd.f32 %v5201_v15, %v5200_v21 }
 0x1b6   : > { %v5319_v56 = vpop.f32.mrb[63].mxu1 }
 0x1b7   : > { %v7576_v9 = vadd.f32 %v5317_v3, %v5181_v7  ;;  %v5320_v45 = vadd.f32 %v5319_v56, %v5318_v14 }
 0x1b9   : > { %v7578_v19 = vadd.f32 %v5320_v45, %v5184_v24  ;;  %v5203_v58 = vpop.f32.mrb[60].mxu0 }
 0x1ba   : > { %v5204_v13 = vpop.f32.mrb[61].mxu0 }
 0x1bb   : > { %v5321_v46 = vpop.f32.mrb[64].mxu1  ;;  %v5205_v57 = vadd.f32 %v5204_v13, %v5203_v58  ;;  %v5206_v32 = vpop.f32.mrb[62].mxu0 }
 0x1bc   : > { %v5322_v37 = vpop.f32.mrb[65].mxu1  ;;  %v5207_v35 = vpop.f32.mrb[63].mxu0 }
 0x1bd   : > { %v5323_v55 = vadd.f32 %v5322_v37, %v5321_v46  ;;  %v5324_v59 = vpop.f32.mrb[66].mxu1  ;;  %v5208_v27 = vadd.f32 %v5207_v35, %v5206_v32 }
 0x1be   : > { %v5325_v31 = vpop.f32.mrb[67].mxu1 }
 0x1bf   : > { %v7580_v5 = vadd.f32 %v5323_v55, %v5187_v8  ;;  %v5326_v4 = vadd.f32 %v5325_v31, %v5324_v59 }
 0x1c1   : > { %v7582_v7 = vadd.f32 %v5326_v4, %v5190_v44  ;;  %v5523_v14 = vpop.f32.mrb[64].mxu0 }
 0x1c2   : > { %v2499_v21 = vadd.f32 %v5523_v14, %v7307_v60  ;;  %v2490_v56 = vpop.f32.mrb[65].mxu0 }
 0x1c3   : > { %v5327_v3 = vpop.f32.mrb[68].mxu1  ;;  %v2491_v46 = vadd.f32 %v7271_v11, %v2490_v56  ;;  %v5524_v58 = vpop.f32.mrb[66].mxu0 }
 0x1c4   : > { %v5328_v24 = vpop.f32.mrb[69].mxu1  ;;  %v7587_v13 = vadd.f32 %v7477_v29, %v2499_v21  ;;  %v2502_v8 = vadd.f32 %v5524_v58, %v7314_v50  ;;  %v2493_v32 = vpop.f32.mrb[67].mxu0 }
 0x1c5   : > { %v5329_v15 = vadd.f32 %v5328_v24, %v5327_v3  ;;  %v5330_v45 = vpop.f32.mrb[70].mxu1  ;;  %v7593_v59 = vadd.f32 %v7448_v41, %v2491_v46  ;;  %v2494_v60 = vadd.f32 %v7276_v63, %v2493_v32 }
 0x1c6   : > { %v5331_v37 = vpop.f32.mrb[71].mxu1  ;;  %v7597_v31 = vadd.f32 %v7481_v10, %v2502_v8 }
 0x1c7   : > { %v7590_v44 = vadd.f32 %v5329_v15, %v5193_v42  ;;  %v5332_v55 = vadd.f32 %v5331_v37, %v5330_v45  ;;  %v2799_v35 = vadd.f32 %v7455_v26, %v2494_v60 }
 0x1c9   : > { %v7599_v11 = vadd.f32 %v5332_v55, %v5196_v12  ;;  %v5527_v4 = vpop.f32.mrb[68].mxu0 }
 0x1ca   : > { %v2515_v50 = vadd.f32 %v5527_v4, %v7401_v54  ;;  %v2506_v42 = vpop.f32.mrb[69].mxu0 }
 0x1cb   : > { %v5333_v29 = vpop.f32.mrb[72].mxu1  ;;  %v2507_v41 = vadd.f32 %v7346_v53, %v2506_v42  ;;  %v5528_v21 = vpop.f32.mrb[70].mxu0 }
 0x1cc   : > { %v5334_v3 = vpop.f32.mrb[73].mxu1  ;;  %v7605_v63 = vadd.f32 %v7521_v22, %v2515_v50  ;;  %v2518_v10 = vadd.f32 %v5528_v21, %v7404_v47  ;;  %v2509_v12 = vpop.f32.mrb[71].mxu0 }
 0x1cd   : > { %v5335_v14 = vadd.f32 %v5334_v3, %v5333_v29  ;;  %v5336_v24 = vpop.f32.mrb[74].mxu1  ;;  %v2812_v45 = vadd.f32 %v7504_v40, %v2507_v41  ;;  %v2510_v54 = vadd.f32 %v7353_v61, %v2509_v12 }
 0x1ce   : > { %v5337_v56 = vpop.f32.mrb[75].mxu1  ;;  %v7613_v46 = vadd.f32 %v7529_v43, %v2518_v10 }
 0x1cf   : > { %v7608_v15 = vadd.f32 %v5335_v14, %v5199_v36  ;;  %v5338_v26 = vadd.f32 %v5337_v56, %v5336_v24  ;;  %v2815_v53 = vadd.f32 %v7511_v23, %v2510_v54 }
 0x1d1   : > { %v7615_v58 = vadd.f32 %v5338_v26, %v5202_v39  ;;  %v5531_v22 = vpop.f32.mrb[72].mxu0 }
 0x1d2   : > { %v2531_v47 = vadd.f32 %v5531_v22, %v7508_v28  ;;  %v2522_v32 = vpop.f32.mrb[73].mxu0 }
 0x1d3   : > { %v5339_v37 = vpop.f32.mrb[76].mxu1  ;;  %v2523_v60 = vadd.f32 %v7446_v16, %v2522_v32  ;;  %v5532_v40 = vpop.f32.mrb[74].mxu0 }
 0x1d4   : > { %v5340_v8 = vpop.f32.mrb[77].mxu1  ;;  %v7621_v61 = vadd.f32 %v7551_v62, %v2531_v47  ;;  %v2534_v43 = vadd.f32 %v5532_v40, %v7516_v52  ;;  %v2525_v39 = vpop.f32.mrb[75].mxu0 }
 0x1d5   : > { %v5341_v36 = vadd.f32 %v5340_v8, %v5339_v37  ;;  %v5342_v55 = vpop.f32.mrb[78].mxu1  ;;  %v2828_v3 = vadd.f32 %v7536_v25, %v2523_v60  ;;  %v2526_v28 = vadd.f32 %v7453_v34, %v2525_v39 }
 0x1d6   : > { %v5343_v29 = vpop.f32.mrb[79].mxu1  ;;  %v2839_v50 = vadd.f32 %v7554_v48, %v2534_v43 }
 0x1d7   : > { %v7624_v4 = vadd.f32 %v5341_v36, %v5205_v57  ;;  %v5344_v23 = vadd.f32 %v5343_v29, %v5342_v55  ;;  %v2831_v16 = vadd.f32 %v7544_v0, %v2526_v28 }
 0x1d9   : > { %v7629_v42 = vadd.f32 %v5344_v23, %v5208_v27  ;;  %v5535_v14 = vpop.f32.mrb[76].mxu0 }
 0x1da   : > { %v2547_v62 = vadd.f32 %v5535_v14, %v7539_v20  ;;  %v2538_v24 = vpop.f32.mrb[77].mxu0 }
 0x1db   : > { %v2539_v52 = vadd.f32 %v7523_v33, %v2538_v24  ;;  %v5536_v41 = vpop.f32.mrb[78].mxu0 }
 0x1dc   : > { %v7635_v57 = vadd.f32 %v7560_v17, %v2547_v62  ;;  %v2550_v25 = vadd.f32 %v5536_v41, %v7547_v30  ;;  %v2541_v21 = vpop.f32.mrb[79].mxu0 }
 0x1dd   : > { %v2844_v34 = vadd.f32 %v7556_v18, %v2539_v52  ;;  %v2542_v48 = vadd.f32 %v7532_v2, %v2541_v21 }
 0x1de   : > { %v7641_v27 = vadd.f32 %v7562_v49, %v2550_v25 }
 0x1df   : > { %v2847_v0 = vadd.f32 %v7558_v51, %v2542_v48 }
 0x1e1   : > { %v5385_v20 = vpop.f32.mrb[80].mxu0 }
 0x1e2   : > { %v5386_v56 = vpop.f32.mrb[81].mxu0 }
 0x1e3   : > { %v5387_v10 = vadd.f32 %v5386_v56, %v5385_v20  ;;  %v5388_v33 = vpop.f32.mrb[82].mxu0 }
 0x1e4   : > { %v5389_v12 = vpop.f32.mrb[83].mxu0 }
 0x1e5   : > { %v5390_v26 = vadd.f32 %v5389_v12, %v5388_v33  ;;  %v5671_v17 = vadd.f32 %v5387_v10, %v7593_v59 }
 0x1e7   : > { %v5679_v54 = vadd.f32 %v5390_v26, %v2799_v35 }
 0x1e9   : > { %v5391_v30 = vpop.f32.mrb[84].mxu0 }
 0x1ea   : > { %v5392_v37 = vpop.f32.mrb[85].mxu0 }
 0x1eb   : > { %v5393_v22 = vadd.f32 %v5392_v37, %v5391_v30  ;;  %v5394_v18 = vpop.f32.mrb[86].mxu0 }
 0x1ec   : > { %v5395_v8 = vpop.f32.mrb[87].mxu0 }
 0x1ed   : > { %v5396_v2 = vadd.f32 %v5395_v8, %v5394_v18  ;;  %v5667_v49 = vadd.f32 %v5393_v22, %v7587_v13 }
 0x1ef   : > { %v5675_v47 = vadd.f32 %v5396_v2, %v7597_v31 }
 0x1f1   : > { %v5397_v51 = vpop.f32.mrb[88].mxu0 }
 0x1f2   : > { %v5398_v32 = vpop.f32.mrb[89].mxu0 }
 0x1f3   : > { %v5399_v36 = vadd.f32 %v5398_v32, %v5397_v51  ;;  %v5400_v55 = vpop.f32.mrb[90].mxu0 }
 0x1f4   : > { %v5401_v60 = vpop.f32.mrb[91].mxu0 }
 0x1f5   : > { %v5402_v40 = vadd.f32 %v5401_v60, %v5400_v55  ;;  %v7647_v29 = vadd.f32 %v5399_v36, %v2812_v45 }
 0x1f7   : > { %v7649_v59 = vadd.f32 %v5402_v40, %v2815_v53 }
 0x1f9   : > { %v5403_v35 = vpop.f32.mrb[92].mxu0 }
 0x1fa   : > { %v5404_v43 = vpop.f32.mrb[93].mxu0 }
 0x1fb   : > { %v5405_v39 = vadd.f32 %v5404_v43, %v5403_v35  ;;  %v5406_v23 = vpop.f32.mrb[94].mxu0 }
 0x1fc   : > { %v5407_v28 = vpop.f32.mrb[95].mxu0 }
 0x1fd   : > { %v5408_v14 = vadd.f32 %v5407_v28, %v5406_v23  ;;  %v5683_v13 = vadd.f32 %v5405_v39, %v7605_v63 }
 0x1ff   : > { %v7653_v31 = vadd.f32 %v5408_v14, %v7613_v46 }
 0x201   : > { %v5409_v62 = vpop.f32.mrb[96].mxu0 }
 0x202   : > { %v5410_v24 = vpop.f32.mrb[97].mxu0 }
 0x203   : > { %v5411_v52 = vadd.f32 %v5410_v24, %v5409_v62  ;;  %v5412_v41 = vpop.f32.mrb[98].mxu0 }
 0x204   : > { %v5413_v25 = vpop.f32.mrb[99].mxu0 }
 0x205   : > { %v5414_v45 = vadd.f32 %v5413_v25, %v5412_v41  ;;  %v7655_v21 = vadd.f32 %v5411_v52, %v2828_v3 }
 0x207   : > { %v7657_v53 = vadd.f32 %v5414_v45, %v2831_v16 }
 0x209   : > { %v5415_v48 = vpop.f32.mrb[100].mxu0 }
 0x20a   : > { %v5416_v20 = vpop.f32.mrb[101].mxu0 }
 0x20b   : > { %v5417_v56 = vadd.f32 %v5416_v20, %v5415_v48  ;;  %v5418_v10 = vpop.f32.mrb[102].mxu0 }
 0x20c   : > { %v5419_v33 = vpop.f32.mrb[103].mxu0 }
 0x20d   : > { %v5420_v12 = vadd.f32 %v5419_v33, %v5418_v10  ;;  %v7660_v63 = vadd.f32 %v5417_v56, %v7621_v61 }
 0x20f   : > { %v7662_v46 = vadd.f32 %v5420_v12, %v2839_v50 }
 0x211   : > { %v5421_v26 = vpop.f32.mrb[104].mxu0 }
 0x212   : > { %v5422_v30 = vpop.f32.mrb[105].mxu0 }
 0x213   : > { %v5423_v37 = vadd.f32 %v5422_v30, %v5421_v26  ;;  %v5424_v22 = vpop.f32.mrb[106].mxu0 }
 0x214   : > { %v5425_v18 = vpop.f32.mrb[107].mxu0 }
 0x215   : > { %v5426_v3 = vadd.f32 %v5425_v18, %v5424_v22  ;;  %v7664_v8 = vadd.f32 %v5423_v37, %v2844_v34 }
 0x217   : > { %v7666_v16 = vadd.f32 %v5426_v3, %v2847_v0 }
 0x219   : > { %v5427_v51 = vpop.f32.mrb[108].mxu0 }
 0x21a   : > { %v5428_v55 = vpop.f32.mrb[109].mxu0 }
 0x21b   : > { %v5619_v2 = vpop.f32.mrb[80].mxu1  ;;  %v5429_v50 = vadd.f32 %v5428_v55, %v5427_v51  ;;  %v5430_v40 = vpop.f32.mrb[110].mxu0 }
 0x21c   : > { %v5668_v32 = vadd.f32 %v5667_v49, %v5619_v2  ;;  %v4256_v36 = vpop.f32.mrb[81].mxu1  ;;  %v5431_v39 = vpop.f32.mrb[111].mxu0 }
 0x21d   : > { %v5672_v61 = vadd.f32 %v5671_v17, %v4256_v36  ;;  %v5620_v60 = vpop.f32.mrb[82].mxu1  ;;  %v5432_v28 = vadd.f32 %v5431_v39, %v5430_v40  ;;  %v7669_v0 = vadd.f32 %v5429_v50, %v7635_v57 }
 0x21e   : > { %v5676_v35 = vadd.f32 %v5675_v47, %v5620_v60  ;;  %v4259_v43 = vpop.f32.mrb[83].mxu1  ;;  %v4458_v52 = vmul.f32 %v5668_v32, %v5668_v32 }
 0x21f   : > { %v5680_v23 = vadd.f32 %v5679_v54, %v4259_v43  ;;  %v4456_v14 = vmul.f32 %v5672_v61, %v5672_v61  ;;  %v7673_v17 = vadd.f32 %v5432_v28, %v7641_v27 }
 0x220   : > { %v5010_v34 = vpack.c.bf16 %v5676_v35, %v5668_v32  ;;  %v4459_v56 = vmul.f32 %v5676_v35, %v5676_v35 }
 0x221   : > { %v4416_v62 = vadd.f32 %v5680_v23, %v5672_v61  ;;  %v4457_v49 = vmul.f32 %v5680_v23, %v5680_v23  ;;  %v5005_v24 = vpack.c.bf16 %v5680_v23, %v5672_v61  ;;  %v5433_v45 = vpop.f32.mrb[112].mxu0 }
 0x222   : > { %5082 = vst [vmem:[%s5975_s7 + $0x8] sm:$0xff] %v5010_v34   ;;  %v5434_v20 = vpop.f32.mrb[113].mxu0 }
 0x223   : > { %v4417_v41 = vadd.f32 %v5668_v32, %v4416_v62  ;;  %v4488_v47 = vadd.f32 %v4457_v49, %v4456_v14  ;;  %5006 = vst [vmem:[%s5975_s7] sm:$0xff] %v5005_v24   ;;  %v5623_v25 = vpop.f32.mrb[84].mxu1  ;;  %v5435_v26 = vadd.f32 %v5434_v20, %v5433_v45  ;;  %v5436_v30 = vpop.f32.mrb[114].mxu0 }
 0x224   : > { %v5684_v54 = vadd.f32 %v5683_v13, %v5623_v25  ;;  %v4272_v48 = vpop.f32.mrb[85].mxu1  ;;  %v5437_v22 = vpop.f32.mrb[115].mxu0 }
 0x225   : > { %v4489_v57 = vadd.f32 %v4488_v47, %v4458_v52  ;;  %v5688_v10 = vadd.f32 %v7647_v29, %v4272_v48  ;;  %v4418_v33 = vadd.f32 %v5676_v35, %v4417_v41  ;;  %v5624_v12 = vpop.f32.mrb[86].mxu1  ;;  %v5438_v51 = vadd.f32 %v5437_v22, %v5436_v30 }
 0x226   : > { %v5692_v27 = vadd.f32 %v7653_v31, %v5624_v12  ;;  %v4275_v37 = vpop.f32.mrb[87].mxu1  ;;  %v7680_v36 = vadd.f32 %v7564_v1, %v5435_v26  ;;  %v4462_v50 = vmul.f32 %v5684_v54, %v5684_v54  ;;  %v7750_v12 = vld [vmem:[#allocation3_spill] sm:$0xff] }
 0x227   : > { %v4419_v18 = vadd.f32 %v5688_v10, %v4418_v33  ;;  %v4460_v3 = vmul.f32 %v5688_v10, %v5688_v10  ;;  %v4490_v2 = vadd.f32 %v4489_v57, %v4459_v56  ;;  %v5696_v13 = vadd.f32 %v7649_v59, %v4275_v37 }
 0x228   : > { %v5020_v32 = vpack.c.bf16 %v5692_v27, %v5684_v54  ;;  %v7684_v31 = vadd.f32 %v7566_v6, %v5438_v51  ;;  %v4463_v1 = vmul.f32 %v5692_v27, %v5692_v27 }
 0x229   : > { %v4491_v29 = vadd.f32 %v4490_v2, %v4460_v3  ;;  %v4420_v55 = vadd.f32 %v5696_v13, %v4419_v18  ;;  %v4461_v61 = vmul.f32 %v5696_v13, %v5696_v13  ;;  %v5015_v60 = vpack.c.bf16 %v5696_v13, %v5688_v10  ;;  %v5439_v39 = vpop.f32.mrb[116].mxu0 }
 0x22a   : > { %5084 = vst [vmem:[%s5975_s7 + $0x18] sm:$0xff] %v5020_v32   ;;  %v5440_v28 = vpop.f32.mrb[117].mxu0 }
 0x22b   : > { %v4421_v40 = vadd.f32 %v5684_v54, %v4420_v55  ;;  %v4492_v35 = vadd.f32 %v4491_v29, %v4461_v61  ;;  %5083 = vst [vmem:[%s5975_s7 + $0x10] sm:$0xff] %v5015_v60   ;;  %v5627_v43 = vpop.f32.mrb[88].mxu1  ;;  %v5441_v24 = vadd.f32 %v5440_v28, %v5439_v39  ;;  %v5442_v6 = vpop.f32.mrb[118].mxu0 }
 0x22c   : > { %v5700_v59 = vadd.f32 %v7660_v63, %v5627_v43  ;;  %v4288_v23 = vpop.f32.mrb[89].mxu1  ;;  %v5443_v47 = vpop.f32.mrb[119].mxu0 }
 0x22d   : > { %v4493_v34 = vadd.f32 %v4492_v35, %v4462_v50  ;;  %v5704_v14 = vadd.f32 %v7655_v21, %v4288_v23  ;;  %v4422_v62 = vadd.f32 %v5692_v27, %v4421_v40  ;;  %v5628_v49 = vpop.f32.mrb[90].mxu1  ;;  %v5444_v48 = vadd.f32 %v5443_v47, %v5442_v6  ;;  %v7751_v23 = vld [vmem:[#allocation4_spill] sm:$0xff] }
 0x22e   : > { %v5708_v52 = vadd.f32 %v7662_v46, %v5628_v49  ;;  %v4291_v41 = vpop.f32.mrb[91].mxu1  ;;  %v5730_v56 = vadd.f32 %v7568_v38, %v5441_v24  ;;  %v4466_v46 = vmul.f32 %v5700_v59, %v5700_v59 }
 0x22f   : > { %v4423_v25 = vadd.f32 %v5704_v14, %v4422_v62  ;;  %v4464_v45 = vmul.f32 %v5704_v14, %v5704_v14  ;;  %v4494_v54 = vadd.f32 %v4493_v34, %v4463_v1  ;;  %v5712_v63 = vadd.f32 %v7657_v53, %v4291_v41  ;;  %v7752_v62 = vld [vmem:[#allocation5_spill] sm:$0xff] }
 0x230   : > { %v5030_v20 = vpack.c.bf16 %v5708_v52, %v5700_v59  ;;  %v5736_v26 = vadd.f32 %v7750_v12, %v5444_v48  ;;  %v4467_v2 = vmul.f32 %v5708_v52, %v5708_v52 }
 0x231   : > { %v4495_v21 = vadd.f32 %v4494_v54, %v4464_v45  ;;  %v4424_v57 = vadd.f32 %v5712_v63, %v4423_v25  ;;  %v4465_v10 = vmul.f32 %v5712_v63, %v5712_v63  ;;  %v5025_v33 = vpack.c.bf16 %v5712_v63, %v5704_v14  ;;  %v5445_v22 = vpop.f32.mrb[120].mxu0 }
 0x232   : > { %5086 = vst [vmem:[%s5975_s7 + $0x28] sm:$0xff] %v5030_v20   ;;  %v5446_v3 = vpop.f32.mrb[121].mxu0 }
 0x233   : > { %v4425_v30 = vadd.f32 %v5700_v59, %v4424_v57  ;;  %v4496_v27 = vadd.f32 %v4495_v21, %v4465_v10  ;;  %5085 = vst [vmem:[%s5975_s7 + $0x20] sm:$0xff] %v5025_v33   ;;  %v5631_v37 = vpop.f32.mrb[92].mxu1  ;;  %v5447_v29 = vadd.f32 %v5446_v3, %v5445_v22  ;;  %v5448_v55 = vpop.f32.mrb[122].mxu0 }
 0x234   : > { %v5716_v18 = vadd.f32 %v7669_v0, %v5631_v37  ;;  %v4304_v53 = vpop.f32.mrb[93].mxu1  ;;  %v5449_v50 = vpop.f32.mrb[123].mxu0 }
 0x235   : > { %v4497_v13 = vadd.f32 %v4496_v27, %v4466_v46  ;;  %v5720_v38 = vadd.f32 %v7664_v8, %v4304_v53  ;;  %v4426_v51 = vadd.f32 %v5708_v52, %v4425_v30  ;;  %v5632_v32 = vpop.f32.mrb[94].mxu1  ;;  %v5450_v39 = vadd.f32 %v5449_v50, %v5448_v55 }
 0x236   : > { %v5724_v61 = vadd.f32 %v7673_v17, %v5632_v32  ;;  %v4307_v60 = vpop.f32.mrb[95].mxu1  ;;  %v5745_v28 = vadd.f32 %v7751_v23, %v5447_v29  ;;  %v4470_v17 = vmul.f32 %v5716_v18, %v5716_v18 }
 0x237   : > { %v4427_v40 = vadd.f32 %v5720_v38, %v4426_v51  ;;  %v4468_v35 = vmul.f32 %v5720_v38, %v5720_v38  ;;  %v4498_v43 = vadd.f32 %v4497_v13, %v4467_v2  ;;  %v5728_v0 = vadd.f32 %v7666_v16, %v4307_v60 }
 0x238   : > { %v5040_v59 = vpack.c.bf16 %v5724_v61, %v5716_v18  ;;  %v5751_v49 = vadd.f32 %v7752_v62, %v5450_v39  ;;  %v4471_v45 = vmul.f32 %v5724_v61, %v5724_v61 }
 0x239   : > { %v4499_v8 = vadd.f32 %v4498_v43, %v4468_v35  ;;  %v4428_v1 = vadd.f32 %v5728_v0, %v4427_v40  ;;  %v4469_v34 = vmul.f32 %v5728_v0, %v5728_v0  ;;  %v5035_v14 = vpack.c.bf16 %v5728_v0, %v5720_v38  ;;  %v5451_v41 = vpop.f32.mrb[124].mxu0 }
 0x23a   : > { %5088 = vst [vmem:[%s5975_s7 + $0x38] sm:$0xff] %v5040_v59   ;;  %v5452_v16 = vpop.f32.mrb[125].mxu0 }
 0x23b   : > { %v4429_v24 = vadd.f32 %v5716_v18, %v4428_v1  ;;  %v4500_v6 = vadd.f32 %v4499_v8, %v4469_v34  ;;  %5087 = vst [vmem:[%s5975_s7 + $0x30] sm:$0xff] %v5035_v14   ;;  %v5635_v52 = vpop.f32.mrb[0].mxu1  ;;  %v5453_v21 = vadd.f32 %v5452_v16, %v5451_v41  ;;  %v5454_v57 = vpop.f32.mrb[126].mxu0 }
 0x23c   : > { %v5731_v47 = vadd.f32 %v5730_v56, %v5635_v52  ;;  %v4320_v25 = vpop.f32.mrb[1].mxu1  ;;  %v5455_v12 = vpop.f32.mrb[127].mxu0 }
 0x23d   : > { %v4501_v54 = vadd.f32 %v4500_v6, %v4470_v17  ;;  %v5734_v63 = vadd.f32 %v7680_v36, %v4320_v25  ;;  %v4430_v48 = vadd.f32 %v5724_v61, %v4429_v24  ;;  %v5636_v20 = vpop.f32.mrb[2].mxu1  ;;  %v5456_v37 = vadd.f32 %v5455_v12, %v5454_v57 }
 0x23e   : > { %v5737_v10 = vadd.f32 %v5736_v26, %v5636_v20  ;;  %v4323_v33 = vpop.f32.mrb[3].mxu1  ;;  %v5742_v18 = vadd.f32 %v7576_v9, %v5453_v21  ;;  %v4474_v26 = vmul.f32 %v5731_v47, %v5731_v47 }
 0x23f   : > { %v4431_v46 = vadd.f32 %v5734_v63, %v4430_v48  ;;  %v4472_v30 = vmul.f32 %v5734_v63, %v5734_v63  ;;  %v4502_v27 = vadd.f32 %v4501_v54, %v4471_v45  ;;  %v5740_v56 = vadd.f32 %v7684_v31, %v4323_v33 }
 0x240   : > { %v5050_v22 = vpack.c.bf16 %v5737_v10, %v5731_v47  ;;  %v5748_v13 = vadd.f32 %v7578_v19, %v5456_v37  ;;  %v4475_v60 = vmul.f32 %v5737_v10, %v5737_v10 }
 0x241   : > { %v4503_v53 = vadd.f32 %v4502_v27, %v4472_v30  ;;  %v4432_v36 = vadd.f32 %v5740_v56, %v4431_v46  ;;  %v4473_v3 = vmul.f32 %v5740_v56, %v5740_v56  ;;  %v5045_v2 = vpack.c.bf16 %v5740_v56, %v5734_v63  ;;  %v5457_v29 = vpop.f32.mrb[128].mxu0 }
 0x242   : > { %5090 = vst [vmem:[%s5975_s7 + $0x48] sm:$0xff] %v5050_v22   ;;  %v5458_v31 = vpop.f32.mrb[129].mxu0 }
 0x243   : > { %v4433_v38 = vadd.f32 %v5731_v47, %v4432_v36  ;;  %v4504_v51 = vadd.f32 %v4503_v53, %v4473_v3  ;;  %5089 = vst [vmem:[%s5975_s7 + $0x40] sm:$0xff] %v5045_v2   ;;  %v5639_v32 = vpop.f32.mrb[4].mxu1  ;;  %v5459_v43 = vadd.f32 %v5458_v31, %v5457_v29  ;;  %v5460_v0 = vpop.f32.mrb[130].mxu0 }
 0x244   : > { %v5743_v55 = vadd.f32 %v5742_v18, %v5639_v32  ;;  %v4336_v61 = vpop.f32.mrb[5].mxu1  ;;  %v5461_v19 = vpop.f32.mrb[131].mxu0 }
 0x245   : > { %v4505_v50 = vadd.f32 %v4504_v51, %v4474_v26  ;;  %v5746_v40 = vadd.f32 %v5745_v28, %v4336_v61  ;;  %v4434_v9 = vadd.f32 %v5737_v10, %v4433_v38  ;;  %v5640_v35 = vpop.f32.mrb[6].mxu1  ;;  %v5462_v14 = vadd.f32 %v5461_v19, %v5460_v0 }
 0x246   : > { %v5749_v39 = vadd.f32 %v5748_v13, %v5640_v35  ;;  %v4339_v59 = vpop.f32.mrb[7].mxu1  ;;  %v5757_v17 = vadd.f32 %v7580_v5, %v5459_v43  ;;  %v4478_v47 = vmul.f32 %v5743_v55, %v5743_v55 }
 0x247   : > { %v4435_v23 = vadd.f32 %v5746_v40, %v4434_v9  ;;  %v4476_v8 = vmul.f32 %v5746_v40, %v5746_v40  ;;  %v4506_v1 = vadd.f32 %v4505_v50, %v4475_v60  ;;  %v5752_v34 = vadd.f32 %v5751_v49, %v4339_v59 }
 0x248   : > { %v5060_v62 = vpack.c.bf16 %v5749_v39, %v5743_v55  ;;  %v5763_v41 = vadd.f32 %v7582_v7, %v5462_v14  ;;  %v4479_v49 = vmul.f32 %v5749_v39, %v5749_v39 }
 0x249   : > { %v4507_v24 = vadd.f32 %v4506_v1, %v4476_v8  ;;  %v4436_v6 = vadd.f32 %v5752_v34, %v4435_v23  ;;  %v4477_v28 = vmul.f32 %v5752_v34, %v5752_v34  ;;  %v5055_v52 = vpack.c.bf16 %v5752_v34, %v5746_v40  ;;  %v5463_v54 = vpop.f32.mrb[132].mxu0 }
 0x24a   : > { %5092 = vst [vmem:[%s5975_s7 + $0x58] sm:$0xff] %v5060_v62   ;;  %v5464_v48 = vpop.f32.mrb[133].mxu0 }
 0x24b   : > { %v4437_v25 = vadd.f32 %v5743_v55, %v4436_v6  ;;  %v4508_v16 = vadd.f32 %v4507_v24, %v4477_v28  ;;  %5091 = vst [vmem:[%s5975_s7 + $0x50] sm:$0xff] %v5055_v52   ;;  %v5643_v45 = vpop.f32.mrb[8].mxu1  ;;  %v5465_v10 = vadd.f32 %v5464_v48, %v5463_v54  ;;  %v5466_v33 = vpop.f32.mrb[134].mxu0 }
 0x24c   : > { %v4352_v63 = vpop.f32.mrb[9].mxu1  ;;  %v5467_v46 = vpop.f32.mrb[135].mxu0 }
 0x24d   : > { %v4509_v20 = vadd.f32 %v4508_v16, %v4478_v47  ;;  %v5758_v21 = vadd.f32 %v5757_v17, %v4352_v63  ;;  %v4438_v57 = vadd.f32 %v5749_v39, %v4437_v25  ;;  %v5644_v5 = vpop.f32.mrb[10].mxu1  ;;  %v5468_v37 = vadd.f32 %v5467_v46, %v5466_v33 }
 0x24e   : > { %v4355_v12 = vpop.f32.mrb[11].mxu1  ;;  %v5754_v22 = vadd.f32 %v7590_v44, %v5465_v10 }
 0x24f   : > { %v4439_v30 = vadd.f32 %v5758_v21, %v4438_v57  ;;  %v4480_v7 = vmul.f32 %v5758_v21, %v5758_v21  ;;  %v4510_v27 = vadd.f32 %v4509_v20, %v4479_v49  ;;  %v5764_v56 = vadd.f32 %v5763_v41, %v4355_v12 }
 0x250   : > { %v5755_v2 = vadd.f32 %v5754_v22, %v5643_v45  ;;  %v5760_v13 = vadd.f32 %v7599_v11, %v5468_v37 }
 0x251   : > { %v4511_v18 = vadd.f32 %v4510_v27, %v4480_v7  ;;  %v4440_v53 = vadd.f32 %v5764_v56, %v4439_v30  ;;  %v4481_v36 = vmul.f32 %v5764_v56, %v5764_v56  ;;  %v5065_v3 = vpack.c.bf16 %v5764_v56, %v5758_v21  ;;  %v5469_v51 = vpop.f32.mrb[136].mxu0 }
 0x252   : > { %v4482_v32 = vmul.f32 %v5755_v2, %v5755_v2  ;;  %v5761_v29 = vadd.f32 %v5760_v13, %v5644_v5  ;;  %v5470_v31 = vpop.f32.mrb[137].mxu0 }
 0x253   : > { %v4512_v26 = vadd.f32 %v4511_v18, %v4481_v36  ;;  %5093 = vst [vmem:[%s5975_s7 + $0x60] sm:$0xff] %v5065_v3   ;;  %v5647_v38 = vpop.f32.mrb[12].mxu1  ;;  %v4441_v55 = vadd.f32 %v5755_v2, %v4440_v53  ;;  %v5471_v50 = vadd.f32 %v5470_v31, %v5469_v51  ;;  %v5472_v44 = vpop.f32.mrb[138].mxu0  ;;  %v4455_v53 = vld [vmem:[%s7744_s6] sm:$0x1] }
 0x254   : > { %v4368_v61 = vpop.f32.mrb[13].mxu1  ;;  %v4483_v40 = vmul.f32 %v5761_v29, %v5761_v29  ;;  %v5070_v9 = vpack.c.bf16 %v5761_v29, %v5755_v2  ;;  %v5473_v0 = vpop.f32.mrb[139].mxu0 }
 0x255   : > { %v5648_v60 = vpop.f32.mrb[14].mxu1  ;;  %v4513_v35 = vadd.f32 %v4512_v26, %v4482_v32  ;;  %v4442_v39 = vadd.f32 %v5761_v29, %v4441_v55  ;;  %v5474_v11 = vadd.f32 %v5473_v0, %v5472_v44  ;;  %v5769_v59 = vadd.f32 %v7608_v15, %v5471_v50 }
 0x256   : > { %v4371_v43 = vpop.f32.mrb[15].mxu1  ;;  %5094 = vst [vmem:[%s5975_s7 + $0x68] sm:$0xff] %v5070_v9  }
 0x257   : > { %v4514_v19 = vadd.f32 %v4513_v35, %v4483_v40  ;;  %v5770_v23 = vadd.f32 %v5769_v59, %v4368_v61  ;;  %v5775_v8 = vadd.f32 %v7615_v58, %v5474_v11 }
 0x259   : > { %v5475_v1 = vpop.f32.mrb[140].mxu0  ;;  %v4443_v34 = vadd.f32 %v5770_v23, %v4442_v39  ;;  %v4484_v14 = vmul.f32 %v5770_v23, %v5770_v23  ;;  %v5776_v62 = vadd.f32 %v5775_v8, %v4371_v43 }
 0x25a   : > { %v5476_v17 = vpop.f32.mrb[141].mxu0 }
 0x25b   : > { %v5477_v24 = vadd.f32 %v5476_v17, %v5475_v1  ;;  %v4515_v6 = vadd.f32 %v4514_v19, %v4484_v14  ;;  %v5478_v28 = vpop.f32.mrb[142].mxu0  ;;  %v4444_v52 = vadd.f32 %v5776_v62, %v4443_v34  ;;  %v4485_v41 = vmul.f32 %v5776_v62, %v5776_v62 }
 0x25c   : > { %v5479_v47 = vpop.f32.mrb[143].mxu0  ;;  %v5075_v25 = vpack.c.bf16 %v5776_v62, %v5770_v23 }
 0x25d   : > { %v5766_v15 = vadd.f32 %v7624_v4, %v5477_v24  ;;  %v5480_v16 = vadd.f32 %v5479_v47, %v5478_v28  ;;  %v4516_v45 = vadd.f32 %v4515_v6, %v4485_v41 }
 0x25e   : > { %5095 = vst [vmem:[%s5975_s7 + $0x70] sm:$0xff] %v5075_v25  }
 0x25f   : > { %v5767_v58 = vadd.f32 %v5766_v15, %v5647_v38  ;;  %v5772_v54 = vadd.f32 %v7629_v42, %v5480_v16  ;;  %v4415_v42 = vld [vmem:[%s7743_s5] sm:$0x1] }
 0x261   : > { %v4486_v63 = vmul.f32 %v5767_v58, %v5767_v58  ;;  %v5773_v48 = vadd.f32 %v5772_v54, %v5648_v60  ;;  %v4445_v49 = vadd.f32 %v5767_v58, %v4444_v52 }
 0x263   : > { %v4487_v20 = vmul.f32 %v5773_v48, %v5773_v48  ;;  %v5080_v21 = vpack.c.bf16 %v5773_v48, %v5767_v58  ;;  %v4446_v57 = vadd.f32 %v5773_v48, %v4445_v49  ;;  %v4517_v5 = vadd.f32 %v4516_v45, %v4486_v63 }
 0x265   : > { %5096 = vst [vmem:[%s5975_s7 + $0x78] sm:$0xff] %v5080_v21   ;;  %v4447_v10 = vrot.slane %v4446_v57, 4  ;;  %v4518_v33 = vadd.f32 %v4517_v5, %v4487_v20 }
 0x267   : > { %v4448_v12 = vadd.f32 %v4447_v10, %v4446_v57  ;;  %v4519_v46 = vrot.slane %v4518_v33, 4 }
 0x269   : > { %v4449_v30 = vrot.slane %v4448_v12, 2  ;;  %v4520_v4 = vadd.f32 %v4519_v46, %v4518_v33 }
 0x26b   : > { %v4450_v7 = vadd.f32 %v4449_v30, %v4448_v12  ;;  %v4521_v27 = vrot.slane %v4520_v4, 2 }
 0x26d   : > { %v4451_v56 = vrot.slane %v4450_v7, 1  ;;  %v4522_v37 = vadd.f32 %v4521_v27, %v4520_v4 }
 0x26f   : > { %v4452_v22 = vadd.f32 %v4451_v56, %v4450_v7  ;;  %v4523_v18 = vrot.slane %v4522_v37, 1 }
 0x271   : > { %v4453_v36 = vadd.f32 %v4452_v22, %v4415_v42  ;;  %v4524_v3 = vadd.f32 %v4523_v18, %v4522_v37 }
 0x273   : > { %4454 = vst [vmem:[%s7743_s5] sm:$0x1] %v4453_v36  ;;  %v4525_v2 = vadd.f32 %v4524_v3, %v4455_v53 }
 0x275   : > { %4526 = vst [vmem:[%s7744_s6] sm:$0x1] %v4525_v2 }
 0x276 PF: > { %s17_s21 = sadd.s32 1, %s5920_s21  }
 0x277   : > { %p14_p5 = scmp.ge.s32.totalorder %s17_s21, 4  }
 0x279   :  { %16 = sbr.rel (!%p14_p5) target bundleno = 1 (0x1), region = 90 }

// kernel: residual_block_forward.5
= control target key start
LH: loop header
LB: loop body
LE: loop exit
PB: predicated region body
PF: predicated region fallthrough
CT: control target
= control target key end

     0   :  { %s6200_s24 = smov 0   ;;  %s7700_s0 = inlined_call_operand.vmem [shape: bf16[2,16,16,128], index: 0, kind: input, shape index: {}]   ;;  %s7701_s1 = inlined_call_operand.vmem [shape: f32[1,128], index: 1, kind: input, shape index: {}]   ;;  %s7702_s2 = inlined_call_operand.vmem [shape: f32[1,128], index: 2, kind: input, shape index: {}]   ;;  %s7703_s3 = inlined_call_operand.vmem [shape: bf16[3,384,128], index: 3, kind: input, shape index: {}]   ;;  %s7704_s4 = inlined_call_operand.vmem [shape: f32[1,128], index: 4, kind: input, shape index: {}]   ;;  %s7705_s5 = inlined_call_operand.vmem [shape: f32[2,16,16,4], index: 5, kind: input, shape index: {}]   ;;  %s7706_s6 = inlined_call_operand.vmem [shape: bf16[4,128], index: 6, kind: input, shape index: {}]   ;;  %s7707_s7 = inlined_call_operand.vmem [shape: f32[2,16,16,128], index: 7, kind: output, shape index: {}]  }
   0x1 LB: > { %s4979_s25 = sadd.s32 4294967295, %s6157_s24   ;;  %p4983_p0 = scmp.ge.s32.totalorder %s6157_s24, 1  ;;  %s6157_s24 = sphi %s6200_s24, %s17_s24  }
   0x2   : > { %p247_p1 = scmp.lt.s32.totalorder %s6157_s24, 3 }
   0x4   : > { %p248_p2 = pnand %p4983_p0, %p247_p1 }
   0x6   : > { %251 = sbr.rel (%p248_p2) target bundleno = 593 (0x251), region = 48 }
   0xd   : > { %v6066_v0 = vld [vmem:[%s7703_s3 + $0x40] sm:$0xff]   ;;  %v6159_v2 = vmov 0   ;;  %v6070_v5 = vld [vmem:[%s7703_s3 + $0x48] sm:$0xff]   ;;  %v6074_v9 = vld [vmem:[%s7703_s3 + $0x50] sm:$0xff]   ;;  %p284_p3 = scmp.lt.s32.totalorder %s4979_s25, 1  ;;  %vm308_vm0 = vcmask 1047559  }
   0xe   : > { %v6067_v1 = vld [vmem:[%s7703_s3] sm:$0xff]   ;;  %301 = vst [vmem:[#allocation2 + $0x8] sm:$0xff] %v6159_v2  ;;  %300 = vst [vmem:[#allocation2] sm:$0xff] %v6159_v2  ;;  %5397 = vmatprep.subr.bf16.mxu1 %v6066_v0  ;;  %v6071_v6 = vld [vmem:[%s7703_s3 + $0x8] sm:$0xff]   ;;  %v667_v14 = vrot.slane %v6159_v2, 1  ;;  %v861_v36 = vrot.slane %v6159_v2, 7 }
   0xf   : > { %302 = vst [vmem:[#allocation2 + $0x10] sm:$0xff] %v6159_v2  ;;  %304 = vst [vmem:[#allocation2 + $0x198] sm:$0xff] %v6159_v2  ;;  %v6068_v3 = vld [vmem:[%s7703_s3 + $0x100] sm:$0xff]   ;;  %5398 = vmatpush3.bf16.msra.mxu1 %v6067_v1  ;;  %v6072_v7 = vld [vmem:[%s7703_s3 + $0x108] sm:$0xff]   ;;  %s7761_s25 = smov (!%p284_p3, %s4979_s25), 1  ;;  %vm808_vm4 = vcmask 1046528  }
  0x10   : > { %306 = vst [vmem:[#allocation2 + $0x1a8] sm:$0xff] %v6159_v2  ;;  %v6069_v4 = vld [vmem:[%s7703_s3 + $0xc0] sm:$0xff]   ;;  %5261 = vmatprep.subr.bf16.mxu0 %v6068_v3  ;;  %5399 = vmatprep.subr.bf16.mxu1 %v6070_v5  ;;  %v6073_v8 = vld [vmem:[%s7703_s3 + $0xc8] sm:$0xff]   ;;  %v6075_v10 = vld [vmem:[%s7703_s3 + $0x10] sm:$0xff]   ;;  %v869_v23 = vshrl.u32 %v667_v14, 16  ;;  %v872_v27 = vshll.u32 %v667_v14, 16 }
  0x11   : > { %5262 = vmatpush3.bf16.msra.mxu0 %v6069_v4  ;;  %v6076_v11 = vld [vmem:[%s7703_s3 + $0x110] sm:$0xff]   ;;  %v6078_v13 = vld [vmem:[%s7703_s3 + $0x58] sm:$0xff]   ;;  %v6082_v18 = vld [vmem:[%s7703_s3 + $0x60] sm:$0xff]   ;;  %s5179_s15 = sshll.u32 %s7761_s25, 7  ;;  %vm360_vm1 = vsmask.f32 256 }
  0x12   : > { %5263 = vmatprep.subr.bf16.mxu0 %v6072_v7  ;;  %v6077_v12 = vld [vmem:[%s7703_s3 + $0xd0] sm:$0xff]   ;;  %v6079_v15 = vld [vmem:[%s7703_s3 + $0x18] sm:$0xff]   ;;  %v6083_v19 = vld [vmem:[%s7703_s3 + $0x20] sm:$0xff]   ;;  %v871_v29 = vrot.slane %v869_v23, 7  ;;  %s6315_s26 = scalar_lea.vmem %s7700_s0, %s5179_s15  ;;  %vm309_vm2 = vsmask.f32 7966 }
  0x13   : > { %5400 = vmatpush3.bf16.msra.mxu1 %v6071_v6  ;;  %v6080_v16 = vld [vmem:[%s7703_s3 + $0x118] sm:$0xff]   ;;  %v6084_v20 = vld [vmem:[%s7703_s3 + $0x120] sm:$0xff]   ;;  %v6086_v22 = vld [vmem:[%s7703_s3 + $0x68] sm:$0xff]   ;;  %vm359_vm5 = vcmask 1040384   ;;  %vm4644_vm7 = vcmask 1041408   ;;  %s5180_s17 = sshll.u32 %s7761_s25, 8 }
  0x14   : > { %5401 = vmatprep.subr.bf16.mxu1 %v6074_v9  ;;  %v6081_v17 = vld [vmem:[%s7703_s3 + $0xd8] sm:$0xff]   ;;  %v6085_v21 = vld [vmem:[%s7703_s3 + $0xe0] sm:$0xff]   ;;  %v6087_v24 = vld [vmem:[%s7703_s3 + $0x28] sm:$0xff]   ;;  %v874_v34 = vor.u32 %v872_v27, %v871_v29  ;;  %s7130_s20 = scalar_lea.vmem %s7705_s5, %s5180_s17  ;;  %vm4595_vm8 = vcmask 31744   ;;  %s7591_s28 = scalar_lea.vmem %s7707_s7, %s5180_s17 }
  0x15   : > { %5264 = vmatpush3.bf16.msra.mxu0 %v6073_v8  ;;  %v6088_v25 = vld [vmem:[%s7703_s3 + $0x128] sm:$0xff]   ;;  %v6090_v28 = vld [vmem:[%s7703_s3 + $0x70] sm:$0xff]   ;;  %v6094_v33 = vld [vmem:[%s7703_s3 + $0x78] sm:$0xff]  }
  0x16   : > { %5265 = vmatprep.subr.bf16.mxu0 %v6076_v11  ;;  %v6089_v26 = vld [vmem:[%s7703_s3 + $0xe8] sm:$0xff]   ;;  %v6091_v30 = vld [vmem:[%s7703_s3 + $0x30] sm:$0xff]   ;;  %v6095_v35 = vld [vmem:[%s7703_s3 + $0x38] sm:$0xff]   ;;  %v875_v38 = vsel %vm360_vm1, %v871_v29, %v874_v34 }
  0x17   : > { %5402 = vmatpush3.bf16.msra.mxu1 %v6075_v10  ;;  %v6092_v31 = vld [vmem:[%s7703_s3 + $0x130] sm:$0xff]   ;;  %v6096_v37 = vld [vmem:[%s7703_s3 + $0x138] sm:$0xff]   ;;  %v616_v40 = vld [vmem:[#allocation2] sm:$0x80]  ;;  %2924 = vmatprep.mubr.bf16.mxu1 %v875_v38 }
  0x18   : > { %5403 = vmatprep.subr.bf16.mxu1 %v6078_v13  ;;  %v6093_v32 = vld [vmem:[%s7703_s3 + $0xf0] sm:$0xff]   ;;  %v6097_v39 = vld [vmem:[%s7703_s3 + $0xf8] sm:$0xff]   ;;  %v5183_v41 = vld [vmem:[%s6315_s26] sm:$0xff]   ;;  %v858_v42 = vshrl.u32 %v616_v40, 16 }
  0x19   : > { %5266 = vmatpush3.bf16.msra.mxu0 %v6077_v12  ;;  %v5184_v43 = vunpack.c.l.bf16 %v5183_v41  ;;  %v5185_v44 = vunpack.c.h.bf16 %v5183_v41  ;;  %v6328_v45 = vld [vmem:[%s7701_s1] ss:$0 sm:$0xff]  ;;  %vm6341_vm3 = vmand %vm308_vm0, %vm309_vm2  ;;  %v311_v52 = vld [vmem:[#allocation2 + $0x18] sm:$0x80] }
  0x1a   : > { %5267 = vmatprep.subr.bf16.mxu0 %v6080_v16  ;;  %v6333_v46 = vld [vmem:[%s7702_s2] ss:$0 sm:$0xff]  ;;  %v860_v49 = vrot.slane %v858_v42, 7  ;;  %v312_v54 = vsel %vm6341_vm3, 0, %v311_v52  ;;  %v5246_v55 = vld [vmem:[%s6315_s26 + $0x8] sm:$0xff]   ;;  %v5247_v61 = vld [vmem:[%s6315_s26 + $0x10] sm:$0xff]  }
  0x1b   : > { %5404 = vmatpush3.bf16.msra.mxu1 %v6079_v15  ;;  %v6338_v47 = vld [vmem:[%s7703_s3 + $0x140] sm:$0xff]   ;;  %v481_v50 = vmul.f32 %v5184_v43, %v6328_v45  ;;  %v482_v51 = vmul.f32 %v5185_v44, %v6328_v45  ;;  %v314_v56 = vld [vmem:[#allocation2 + $0x30] sm:$0x80]  ;;  %313 = vst [vmem:[#allocation2 + $0x18] sm:$0x80] %v312_v54  ;;  %v5188_v60 = vunpack.c.l.bf16 %v5246_v55  ;;  %v5189_v62 = vunpack.c.h.bf16 %v5246_v55  ;;  %v6101_v7 = vld [vmem:[%s7703_s3 + $0x88] sm:$0xff]  }
  0x1c   : > { %5405 = vmatprep.subr.bf16.mxu1 %v6082_v18  ;;  %v6099_v53 = vld [vmem:[%s7703_s3 + $0x80] sm:$0xff]   ;;  %v863_v57 = vsel %vm360_vm1, %v860_v49, %v861_v36  ;;  %v315_v63 = vsel %vm6341_vm3, 0, %v314_v56  ;;  %v5192_v0 = vunpack.c.l.bf16 %v5247_v61  ;;  %v5193_v1 = vunpack.c.h.bf16 %v5247_v61  ;;  %v317_v2 = vld [vmem:[#allocation2 + $0x48] sm:$0x80]  ;;  %v5248_v11 = vld [vmem:[%s6315_s26 + $0x18] sm:$0xff]  }
  0x1d   : > { %5268 = vmatpush3.bf16.msra.mxu0 %v6081_v17  ;;  %v520_v58 = vadd.f32 %v6333_v46, %v481_v50  ;;  %v521_v59 = vadd.f32 %v6333_v46, %v482_v51  ;;  %v483_v5 = vmul.f32 %v5188_v60, %v6328_v45  ;;  %316 = vst [vmem:[#allocation2 + $0x30] sm:$0x80] %v315_v63  ;;  %v318_v6 = vsel %vm6341_vm3, 0, %v317_v2  ;;  %v320_v12 = vld [vmem:[#allocation2 + $0x60] sm:$0x80]  ;;  %vm6684_vm6 = vmand %vm359_vm5, %vm360_vm1 }
  0x1e   : > { %5269 = vmatprep.subr.bf16.mxu0 %v6084_v20  ;;  %v484_v8 = vmul.f32 %v5189_v62, %v6328_v45  ;;  %v485_v9 = vmul.f32 %v5192_v0, %v6328_v45  ;;  %v486_v10 = vmul.f32 %v5193_v1, %v6328_v45  ;;  %319 = vst [vmem:[#allocation2 + $0x48] sm:$0x80] %v318_v6  ;;  %v5196_v15 = vunpack.c.l.bf16 %v5248_v11  ;;  %v6388_v0 = vld [vmem:[%s6315_s26 + $0x20] sm:$0xff]  }
  0x1f   : > { %5406 = vmatpush3.bf16.msra.mxu1 %v6083_v19  ;;  %v552_v3 = vmax.f32 %v520_v58, 0.0  ;;  %v553_v4 = vmax.f32 %v521_v59, 0.0  ;;  %v522_v14 = vadd.f32 %v6333_v46, %v483_v5  ;;  %v5197_v16 = vunpack.c.h.bf16 %v5248_v11  ;;  %v6105_v58 = vld [vmem:[%s7703_s3 + $0x98] sm:$0xff]  }
  0x20   : > { %5407 = vmatprep.subr.bf16.mxu1 %v6086_v22  ;;  %v523_v17 = vadd.f32 %v6333_v46, %v484_v8  ;;  %v524_v18 = vadd.f32 %v6333_v46, %v485_v9  ;;  %v525_v19 = vadd.f32 %v6333_v46, %v486_v10  ;;  %v321_v20 = vsel %vm6341_vm3, 0, %v320_v12 }
  0x21   : > { %5270 = vmatpush3.bf16.msra.mxu0 %v6085_v21  ;;  %v584_v13 = vpack.c.bf16 %v553_v4, %v552_v3  ;;  %v6103_v21 = vld [vmem:[%s7703_s3 + $0x90] sm:$0xff]   ;;  %322 = vst [vmem:[#allocation2 + $0x60] sm:$0x80] %v321_v20 }
  0x22   : > { %5271 = vmatprep.subr.bf16.mxu0 %v6088_v25  ;;  %v1449_v25 = vld [vmem:[#allocation2 + $0x18] sm:$0x80]  ;;  %v555_v27 = vmax.f32 %v523_v17, 0.0  ;;  %v557_v36 = vmax.f32 %v525_v19, 0.0  ;;  %v5200_v19 = vunpack.c.l.bf16 %v6388_v0 }
  0x23   : > { %5408 = vmatpush3.bf16.msra.mxu1 %v6087_v24  ;;  %600 = vst [vmem:[#allocation2 + $0x20] sm:$0xff] %v584_v13  ;;  %v1498_v22 = vshll.u32 %v584_v13, 16  ;;  %v1501_v23 = vshrl.u32 %v584_v13, 16  ;;  %v554_v24 = vmax.f32 %v522_v14, 0.0  ;;  %v6100_v13 = vld [vmem:[%s7703_s3 + $0x148] sm:$0xff]  }
  0x24   : > { %5409 = vmatprep.subr.bf16.mxu1 %v6090_v28  ;;  %v487_v28 = vmul.f32 %v5196_v15, %v6328_v45  ;;  %v1451_v34 = vld [vmem:[#allocation2 + $0x30] sm:$0x80] }
  0x25   : > { %5272 = vmatpush3.bf16.msra.mxu0 %v6089_v26  ;;  %v618_v26 = vld [vmem:[#allocation2 + $0x18] sm:$0x80]  ;;  %v1500_v29 = vrot.slane %v1498_v22, 1  ;;  %v620_v42 = vld [vmem:[#allocation2 + $0x30] sm:$0x80]  ;;  %v1721_v50 = vshrl.u32 %v1451_v34, 16  ;;  %v5201_v34 = vunpack.c.h.bf16 %v6388_v0 }
  0x26   : > { %5273 = vmatprep.subr.bf16.mxu0 %v6092_v31  ;;  %v1693_v31 = vrot.slane %v1501_v23, 7  ;;  %v920_v61 = vshrl.u32 %v620_v42, 16  ;;  %v1453_v63 = vld [vmem:[#allocation2 + $0x48] sm:$0x80] }
  0x27   : > { %5410 = vmatpush3.bf16.msra.mxu1 %v6091_v30  ;;  %v1690_v30 = vshrl.u32 %v1449_v25, 16  ;;  %v1503_v38 = vor.u32 %v1501_v23, %v1500_v29  ;;  %v1723_v4 = vrot.slane %v1721_v50, 7  ;;  %v622_v5 = vld [vmem:[#allocation2 + $0x48] sm:$0x80]  ;;  %v1752_v14 = vshrl.u32 %v1453_v63, 16 }
  0x28   : > { %5411 = vmatprep.subr.bf16.mxu1 %v6094_v33  ;;  %v585_v33 = vpack.c.bf16 %v555_v27, %v554_v24  ;;  %v1694_v41 = vor.u32 %v1693_v31, %v1498_v22  ;;  %v922_v12 = vrot.slane %v920_v61, 7  ;;  %v951_v17 = vshrl.u32 %v622_v5, 16  ;;  %v6398_v24 = vld [vmem:[#allocation2 + $0x60] sm:$0x80] }
  0x29   : > { %5274 = vmatpush3.bf16.msra.mxu0 %v6093_v32  ;;  %v889_v32 = vshrl.u32 %v618_v26, 16  ;;  %v1692_v40 = vrot.slane %v1690_v30, 7  ;;  %v1701_v51 = vshrl.u32 %v1503_v38, 16  ;;  %v1704_v52 = vshll.u32 %v1503_v38, 16  ;;  %v6107_v30 = vld [vmem:[%s7703_s3 + $0xa0] sm:$0xff]  }
  0x2a   : > { %5275 = vmatprep.subr.bf16.mxu0 %v6096_v37  ;;  %v488_v37 = vmul.f32 %v5197_v16, %v6328_v45  ;;  %601 = vst [vmem:[#allocation2 + $0x38] sm:$0xff] %v585_v33  ;;  %v1505_v44 = vshll.u32 %v585_v33, 16  ;;  %v1508_v49 = vshrl.u32 %v585_v33, 16  ;;  %v1754_v33 = vrot.slane %v1752_v14, 7 }
  0x2b   : > { %5412 = vmatpush3.bf16.msra.mxu1 %v6095_v35  ;;  %v556_v35 = vmax.f32 %v524_v18, 0.0  ;;  %v891_v43 = vrot.slane %v889_v32, 7  ;;  %v1703_v59 = vrot.slane %v1701_v51, 7  ;;  %v1695_v60 = vsel %vm360_vm1, %v1692_v40, %v1694_v41  ;;  %v6395_v18 = vld [vmem:[#allocation2 + $0x60] sm:$0x80] }
  0x2c   : > { %5734 = vmatprep.subr.bf16.mxu1 %v6099_v53  ;;  %v1507_v55 = vrot.slane %v1505_v44, 1  ;;  %v1724_v56 = vrot.slane %v1508_v49, 7 }
  0x2d   : > { %5276 = vmatpush3.bf16.msra.mxu0 %v6097_v39  ;;  %v1697_v39 = vshrl.u32 %v1500_v29, 16  ;;  %v586_v62 = vpack.c.bf16 %v557_v36, %v556_v35  ;;  %v894_v1 = vsel %vm360_vm1, %v891_v43, %v1694_v41  ;;  %v1706_v6 = vor.u32 %v1704_v52, %v1703_v59  ;;  %v6404_v29 = vld [vmem:[%s7703_s3 + $0x150] sm:$0xff]   ;;  %v323_v35 = vld [vmem:[#allocation2 + $0x78] sm:$0x80]  ;;  %v5250_v36 = vld [vmem:[%s6315_s26 + $0x28] sm:$0xff]  }
  0x2e   : > { %5686 = vmatprep.subr.bf16.mxu0 %v6338_v47  ;;  %2925 = vmatmul.mubr.bf16.vlgmr.msra.gmra.mrb[0].mxu1 %v863_v57  ;;  %v527_v57 = vadd.f32 %v6333_v46, %v488_v37  ;;  %v1510_v2 = vor.u32 %v1508_v49, %v1507_v55  ;;  %v1728_v3 = vshrl.u32 %v1507_v55, 16  ;;  %v326_v41 = vld [vmem:[#allocation2 + $0x90] sm:$0x80]  ;;  %v1783_v43 = vshrl.u32 %v6395_v18, 16 }
  0x2f   : > { %5735 = vmatpush3.bf16.msra.mxu1 %v6099_v53  ;;  %v526_v53 = vadd.f32 %v6333_v46, %v487_v28  ;;  %v1699_v54 = vrot.slane %v1697_v39, 7  ;;  %602 = vst [vmem:[#allocation2 + $0x50] sm:$0xff] %v586_v62  ;;  %v1512_v8 = vshll.u32 %v586_v62, 16  ;;  %v1515_v9 = vshrl.u32 %v586_v62, 16  ;;  %v6104_v62 = vld [vmem:[%s7703_s3 + $0x158] sm:$0xff]  }
  0x30   : > { %5736 = vmatprep.subr.bf16.mxu1 %v6101_v7  ;;  %v1732_v10 = vshrl.u32 %v1510_v2, 16  ;;  %v1735_v11 = vshll.u32 %v1510_v2, 16  ;;  %v1730_v20 = vrot.slane %v1728_v3, 7  ;;  %v559_v28 = vmax.f32 %v527_v57, 0.0  ;;  %v6109_v57 = vld [vmem:[%s7703_s3 + $0xa8] sm:$0xff]   ;;  %v6111_v3 = vld [vmem:[%s7703_s3 + $0xb0] sm:$0xff]  }
  0x31   : > { %v1707_v15 = vsel %vm360_vm1, %v1699_v54, %v1706_v6  ;;  %v1514_v16 = vrot.slane %v1512_v8, 1  ;;  %v1755_v22 = vrot.slane %v1515_v9, 7  ;;  %v558_v23 = vmax.f32 %v526_v53, 0.0 }
  0x32   : > { %2458 = vmatprep.mubr.bf16.mxu0 %v1707_v15  ;;  %2932 = vmatprep.mubr.bf16.mxu1 %v1707_v15  ;;  %v489_v53 = vmul.f32 %v5200_v19, %v6328_v45  ;;  %v490_v54 = vmul.f32 %v5201_v34, %v6328_v45  ;;  %v324_v55 = vsel %vm6341_vm3, 0, %v323_v35  ;;  %v5205_v61 = vunpack.c.h.bf16 %v5250_v36  ;;  %v6113_v35 = vld [vmem:[%s7703_s3 + $0xb8] sm:$0xff]  }
  0x33   : > { %5737 = vmatpush3.bf16.msra.mxu1 %v6101_v7  ;;  %v1725_v7 = vor.u32 %v1724_v56, %v1505_v44  ;;  %2459 = vmatmul.mubr.bf16.vlgmr.msra.gmra.mrb[0].mxu0 %v1695_v60  ;;  %v1517_v26 = vor.u32 %v1515_v9, %v1514_v16  ;;  %v1759_v27 = vshrl.u32 %v1514_v16, 16  ;;  %v6413_v39 = vor.u32 %v1755_v22, %v1512_v8  ;;  %v5251_v8 = vld [vmem:[%s6315_s26 + $0x30] sm:$0xff]   ;;  %v6106_v22 = vld [vmem:[%s7703_s3 + $0x160] sm:$0xff]  }
  0x34   : > { %5738 = vmatprep.subr.bf16.mxu1 %v6103_v21  ;;  %5687 = vmatpush3.bf16.msra.mxu0 %v6338_v47  ;;  %v6415_v40 = vpack.c.bf16 %v559_v28, %v558_v23  ;;  %v6418_v47 = vrot.slane %v951_v17, 7  ;;  %v982_v44 = vshrl.u32 %v6398_v24, 16  ;;  %v5204_v56 = vunpack.c.l.bf16 %v5250_v36  ;;  %325 = vst [vmem:[#allocation2 + $0x78] sm:$0x80] %v324_v55 }
  0x35   : > { %v1726_v25 = vsel %vm360_vm1, %v1723_v4, %v1725_v7  ;;  %v925_v32 = vsel %vm360_vm1, %v922_v12, %v1725_v7  ;;  %v1763_v37 = vshrl.u32 %v1517_v26, 16  ;;  %v1766_v38 = vshll.u32 %v1517_v26, 16  ;;  %5688 = vmatprep.subr.bf16.mxu0 %v6100_v13 }
  0x36   : > { %2933 = vmatmul.mubr.bf16.gmra.mrb[4].mxu1 %v894_v1  ;;  %v1761_v49 = vrot.slane %v1759_v27, 7  ;;  %603 = vst [vmem:[#allocation2 + $0x68] sm:$0xff] %v6415_v40  ;;  %v1519_v51 = vshll.u32 %v6415_v40, 16  ;;  %v1522_v52 = vshrl.u32 %v6415_v40, 16  ;;  %v6434_v59 = vsel %vm360_vm1, %v1754_v33, %v6413_v39  ;;  %v6467_v40 = vld [vmem:[%s6315_s26 + $0x38] sm:$0xff]  }
  0x37   : > { %5739 = vmatpush3.bf16.msra.mxu1 %v6103_v21  ;;  %v1734_v21 = vrot.slane %v1732_v10, 7  ;;  %v1765_v50 = vrot.slane %v1763_v37, 7  ;;  %v528_v63 = vadd.f32 %v6333_v46, %v489_v53  ;;  %v529_v0 = vadd.f32 %v6333_v46, %v490_v54 }
  0x38   : > { %5740 = vmatprep.subr.bf16.mxu1 %v6105_v58  ;;  %5689 = vmatpush3.bf16.msra.mxu0 %v6100_v13  ;;  %v1521_v60 = vrot.slane %v1519_v51, 1  ;;  %v491_v1 = vmul.f32 %v5204_v56, %v6328_v45  ;;  %v327_v2 = vsel %vm6341_vm3, 0, %v326_v41  ;;  %v1786_v7 = vrot.slane %v1522_v52, 7  ;;  %v329_v13 = vld [vmem:[#allocation2 + $0xa8] sm:$0x80] }
  0x39   : > { %v1737_v31 = vor.u32 %v1735_v11, %v1734_v21  ;;  %5690 = vmatprep.subr.bf16.mxu0 %v6404_v29  ;;  %328 = vst [vmem:[#allocation2 + $0x90] sm:$0x80] %v327_v2  ;;  %v560_v9 = vmax.f32 %v528_v63, 0.0  ;;  %v561_v10 = vmax.f32 %v529_v0, 0.0  ;;  %v492_v11 = vmul.f32 %v5205_v61, %v6328_v45  ;;  %v6108_v41 = vld [vmem:[%s7703_s3 + $0x168] sm:$0xff]   ;;  %v6110_v63 = vld [vmem:[%s7703_s3 + $0x170] sm:$0xff]  }
  0x3a   : > { %v1524_v5 = vor.u32 %v1522_v52, %v1521_v60  ;;  %v1790_v6 = vshrl.u32 %v1521_v60, 16  ;;  %v530_v12 = vadd.f32 %v6333_v46, %v491_v1  ;;  %v1785_v16 = vrot.slane %v1783_v43, 7  ;;  %v6116_v0 = vld [vmem:[%s7703_s3 + $0x200] sm:$0xff]  }
  0x3b   : > { %5741 = vmatpush3.bf16.msra.mxu1 %v6105_v58  ;;  %v1738_v42 = vsel %vm360_vm1, %v1730_v20, %v1737_v31  ;;  %v1768_v58 = vor.u32 %v1766_v38, %v1765_v50  ;;  %v984_v17 = vrot.slane %v982_v44, 7  ;;  %v588_v19 = vpack.c.bf16 %v561_v10, %v560_v9  ;;  %v626_v31 = vld [vmem:[#allocation2 + $0x78] sm:$0x80] }
  0x3c   : > { %5742 = vmatprep.subr.bf16.mxu1 %v6107_v30  ;;  %2466 = vmatprep.mubr.bf16.mxu0 %v1738_v42  ;;  %v1794_v14 = vshrl.u32 %v1524_v5, 16  ;;  %v1797_v15 = vshll.u32 %v1524_v5, 16  ;;  %v1792_v18 = vrot.slane %v1790_v6, 7  ;;  %v531_v20 = vadd.f32 %v6333_v46, %v492_v11 }
  0x3d   : > { %2940 = vmatprep.mubr.bf16.mxu1 %v1738_v42  ;;  %2467 = vmatmul.mubr.bf16.gmra.mrb[4].mxu0 %v1726_v25  ;;  %v1769_v4 = vsel %vm360_vm1, %v1761_v49, %v1768_v58  ;;  %v562_v21 = vmax.f32 %v530_v12, 0.0  ;;  %v1787_v24 = vor.u32 %v1786_v7, %v1519_v51  ;;  %v5208_v25 = vunpack.c.l.bf16 %v5251_v8  ;;  %604 = vst [vmem:[#allocation2 + $0x80] sm:$0xff] %v588_v19  ;;  %v332_v12 = vld [vmem:[#allocation2 + $0xc0] sm:$0x80] }
  0x3e   : > { %2941 = vmatmul.mubr.bf16.gmra.mrb[8].mxu1 %v925_v32  ;;  %2474 = vmatprep.mubr.bf16.mxu0 %v1769_v4  ;;  %v1796_v23 = vrot.slane %v1794_v14, 7  ;;  %v330_v26 = vsel %vm6341_vm3, 0, %v329_v13  ;;  %v956_v27 = vsel %vm360_vm1, %v6418_v47, %v6413_v39  ;;  %v1526_v28 = vshll.u32 %v588_v19, 16 }
  0x3f   : > { %5743 = vmatpush3.bf16.msra.mxu1 %v6107_v30  ;;  %2948 = vmatprep.mubr.bf16.mxu1 %v1769_v4  ;;  %v1457_v30 = vld [vmem:[#allocation2 + $0x78] sm:$0x80]  ;;  %v5209_v32 = vunpack.c.h.bf16 %v5251_v8  ;;  %331 = vst [vmem:[#allocation2 + $0xa8] sm:$0x80] %v330_v26  ;;  %v563_v34 = vmax.f32 %v531_v20, 0.0  ;;  %v493_v39 = vmul.f32 %v5208_v25, %v6328_v45  ;;  %v1788_v47 = vsel %vm360_vm1, %v1785_v16, %v1787_v24 }
  0x40   : > { %5744 = vmatprep.subr.bf16.mxu1 %v6109_v57  ;;  %5691 = vmatpush3.bf16.msra.mxu0 %v6404_v29  ;;  %v1529_v29 = vshrl.u32 %v588_v19, 16  ;;  %v1799_v33 = vor.u32 %v1797_v15, %v1796_v23  ;;  %v1528_v36 = vrot.slane %v1526_v28, 1  ;;  %v1814_v37 = vshrl.u32 %v1457_v30, 16  ;;  %v1459_v49 = vld [vmem:[#allocation2 + $0x90] sm:$0x80]  ;;  %v6112_v23 = vld [vmem:[%s7703_s3 + $0x178] sm:$0xff]  }
  0x41   : > { %5692 = vmatprep.subr.bf16.mxu0 %v6104_v62  ;;  %v1013_v43 = vshrl.u32 %v626_v31, 16  ;;  %v6475_v44 = vpack.c.bf16 %v563_v34, %v562_v21  ;;  %v987_v50 = vsel %vm360_vm1, %v984_v17, %v1787_v24  ;;  %v628_v53 = vld [vmem:[#allocation2 + $0x90] sm:$0x80]  ;;  %v494_v54 = vmul.f32 %v5209_v32, %v6328_v45  ;;  %v5253_v17 = vld [vmem:[%s6315_s26 + $0x40] sm:$0xff]  }
  0x42   : > { %v1817_v38 = vrot.slane %v1529_v29, 7  ;;  %v1800_v42 = vsel %vm360_vm1, %v1792_v18, %v1799_v33  ;;  %v1531_v51 = vor.u32 %v1529_v29, %v1528_v36  ;;  %v1821_v52 = vshrl.u32 %v1528_v36, 16 }
  0x43   : > { %5745 = vmatpush3.bf16.msra.mxu1 %v6109_v57  ;;  %605 = vst [vmem:[#allocation2 + $0x98] sm:$0xff] %v6475_v44  ;;  %v1533_v55 = vshll.u32 %v6475_v44, 16  ;;  %v1536_v56 = vshrl.u32 %v6475_v44, 16  ;;  %v532_v57 = vadd.f32 %v6333_v46, %v493_v39  ;;  %v5212_v58 = vunpack.c.l.bf16 %v6467_v40 }
  0x44   : > { %5746 = vmatprep.subr.bf16.mxu1 %v6111_v3  ;;  %5693 = vmatpush3.bf16.msra.mxu0 %v6104_v62  ;;  %v1828_v60 = vshll.u32 %v1531_v51, 16  ;;  %v1816_v61 = vrot.slane %v1814_v37, 7  ;;  %v1818_v62 = vor.u32 %v1817_v38, %v1526_v28  ;;  %v1015_v1 = vrot.slane %v1013_v43, 7  ;;  %v5254_v37 = vld [vmem:[%s6315_s26 + $0x48] sm:$0xff]  }
  0x45   : > { %5694 = vmatprep.subr.bf16.mxu0 %v6106_v22  ;;  %2475 = vmatmul.mubr.bf16.gmra.mrb[8].mxu0 %v6434_v59  ;;  %v1825_v59 = vshrl.u32 %v1531_v51, 16  ;;  %v1535_v2 = vrot.slane %v1533_v55, 1  ;;  %v1044_v4 = vshrl.u32 %v628_v53, 16  ;;  %v1823_v5 = vrot.slane %v1821_v52, 7 }
  0x46   : > { %2949 = vmatmul.mubr.bf16.gmra.mrb[12].mxu1 %v956_v27  ;;  %2482 = vmatprep.mubr.bf16.mxu0 %v1800_v42  ;;  %v533_v7 = vadd.f32 %v6333_v46, %v494_v54  ;;  %v564_v8 = vmax.f32 %v532_v57, 0.0  ;;  %v5213_v11 = vunpack.c.h.bf16 %v6467_v40  ;;  %v1819_v14 = vsel %vm360_vm1, %v1816_v61, %v1818_v62  ;;  %v1461_v30 = vld [vmem:[#allocation2 + $0xa8] sm:$0x80] }
  0x47   : > { %5747 = vmatpush3.bf16.msra.mxu1 %v6111_v3  ;;  %2956 = vmatprep.mubr.bf16.mxu1 %v1800_v42  ;;  %v1845_v3 = vshrl.u32 %v1459_v49, 16  ;;  %v1827_v6 = vrot.slane %v1825_v59, 7  ;;  %v1538_v9 = vor.u32 %v1536_v56, %v1535_v2  ;;  %v1852_v10 = vshrl.u32 %v1535_v2, 16  ;;  %v630_v43 = vld [vmem:[#allocation2 + $0xa8] sm:$0x80] }
  0x48   : > { %5695 = vmatpush3.bf16.msra.mxu0 %v6106_v22  ;;  %5748 = vmatprep.subr.bf16.mxu1 %v6113_v35  ;;  %v565_v15 = vmax.f32 %v533_v7, 0.0  ;;  %v495_v16 = vmul.f32 %v5212_v58, %v6328_v45  ;;  %v1018_v18 = vsel %vm360_vm1, %v1015_v1, %v1818_v62  ;;  %v335_v22 = vld [vmem:[#allocation2 + $0xd8] sm:$0x80]  ;;  %v1848_v25 = vrot.slane %v1536_v56, 7  ;;  %v6114_v56 = vld [vmem:[%s7703_s3 + $0x1c0] sm:$0xff]  }
  0x49   : > { %5696 = vmatprep.subr.bf16.mxu0 %v6108_v41  ;;  %v1830_v13 = vor.u32 %v1828_v60, %v1827_v6  ;;  %v1856_v19 = vshrl.u32 %v1538_v9, 16  ;;  %v1859_v20 = vshll.u32 %v1538_v9, 16  ;;  %v1847_v21 = vrot.slane %v1845_v3, 7 }
  0x4a   : > { %v1046_v26 = vrot.slane %v1044_v4, 7  ;;  %v6502_v27 = vpack.c.bf16 %v565_v15, %v564_v8  ;;  %v1854_v28 = vrot.slane %v1852_v10, 7  ;;  %v496_v31 = vmul.f32 %v5213_v11, %v6328_v45 }
  0x4b   : > { %5749 = vmatpush3.bf16.msra.mxu1 %v6113_v35  ;;  %v1831_v24 = vsel %vm360_vm1, %v1823_v5, %v1830_v13  ;;  %v1858_v29 = vrot.slane %v1856_v19, 7  ;;  %v534_v32 = vadd.f32 %v6333_v46, %v495_v16  ;;  %v333_v35 = vsel %vm6341_vm3, 0, %v332_v12 }
  0x4c   : > { %5782 = vmatprep.subr.bf16.mxu1 %v6116_v0  ;;  %5697 = vmatpush3.bf16.msra.mxu0 %v6108_v41  ;;  %606 = vst [vmem:[#allocation2 + $0xb0] sm:$0xff] %v6502_v27  ;;  %v1540_v33 = vshll.u32 %v6502_v27, 16  ;;  %v1543_v34 = vshrl.u32 %v6502_v27, 16  ;;  %v5216_v36 = vunpack.c.l.bf16 %v5253_v17  ;;  %v535_v39 = vadd.f32 %v6333_v46, %v496_v31  ;;  %334 = vst [vmem:[#allocation2 + $0xc0] sm:$0x80] %v333_v35 }
  0x4d   : > { %5698 = vmatprep.subr.bf16.mxu0 %v6110_v63  ;;  %2483 = vmatmul.mubr.bf16.gmra.mrb[12].mxu0 %v1788_v47  ;;  %v1861_v38 = vor.u32 %v1859_v20, %v1858_v29  ;;  %v566_v40 = vmax.f32 %v534_v32, 0.0  ;;  %v5217_v41 = vunpack.c.h.bf16 %v5253_v17  ;;  %v1849_v42 = vor.u32 %v1848_v25, %v1533_v55  ;;  %v338_v25 = vld [vmem:[#allocation2 + $0xf0] sm:$0x80] }
  0x4e   : > { %2957 = vmatmul.mubr.bf16.gmra.mrb[16].mxu1 %v987_v50  ;;  %2490 = vmatprep.mubr.bf16.mxu0 %v1831_v24  ;;  %v1542_v47 = vrot.slane %v1540_v33, 1  ;;  %v497_v49 = vmul.f32 %v5216_v36, %v6328_v45  ;;  %v336_v50 = vsel %vm6341_vm3, 0, %v335_v22  ;;  %v567_v52 = vmax.f32 %v535_v39, 0.0 }
  0x4f   : > { %2964 = vmatprep.mubr.bf16.mxu1 %v1831_v24  ;;  %v1862_v51 = vsel %vm360_vm1, %v1854_v28, %v1861_v38  ;;  %v498_v53 = vmul.f32 %v5217_v41, %v6328_v45  ;;  %337 = vst [vmem:[#allocation2 + $0xd8] sm:$0x80] %v336_v50  ;;  %v5220_v54 = vunpack.c.l.bf16 %v5254_v37  ;;  %v1876_v57 = vshrl.u32 %v1461_v30, 16 }
  0x50   : > { %5699 = vmatpush3.bf16.msra.mxu0 %v6110_v63  ;;  %v1545_v44 = vor.u32 %v1543_v34, %v1542_v47  ;;  %v1883_v55 = vshrl.u32 %v1542_v47, 16  ;;  %v536_v58 = vadd.f32 %v6333_v46, %v497_v49  ;;  %v6524_v59 = vpack.c.bf16 %v567_v52, %v566_v40 }
  0x51   : > { %5700 = vmatprep.subr.bf16.mxu0 %v6112_v23  ;;  %v537_v60 = vadd.f32 %v6333_v46, %v498_v53  ;;  %v5221_v61 = vunpack.c.h.bf16 %v5254_v37  ;;  %v499_v62 = vmul.f32 %v5220_v54, %v6328_v45  ;;  %v1879_v1 = vrot.slane %v1543_v34, 7 }
  0x52   : > { %v1887_v63 = vshrl.u32 %v1545_v44, 16  ;;  %v1890_v0 = vshll.u32 %v1545_v44, 16  ;;  %v1075_v2 = vshrl.u32 %v630_v43, 16  ;;  %v1850_v3 = vsel %vm360_vm1, %v1847_v21, %v1849_v42  ;;  %607 = vst [vmem:[#allocation2 + $0xc8] sm:$0xff] %v6524_v59  ;;  %v5256_v44 = vld [vmem:[%s6315_s26 + $0x58] sm:$0xff]  }
  0x53   : > { %v1547_v4 = vshll.u32 %v6524_v59, 16  ;;  %v1550_v5 = vshrl.u32 %v6524_v59, 16  ;;  %v568_v6 = vmax.f32 %v536_v58, 0.0  ;;  %v1885_v7 = vrot.slane %v1883_v55, 7  ;;  %v1463_v9 = vld [vmem:[#allocation2 + $0xc0] sm:$0x80] }
  0x54   : > { %5701 = vmatpush3.bf16.msra.mxu0 %v6112_v23  ;;  %v1889_v8 = vrot.slane %v1887_v63, 7  ;;  %v569_v10 = vmax.f32 %v537_v60, 0.0  ;;  %v500_v11 = vmul.f32 %v5221_v61, %v6328_v45  ;;  %v1049_v12 = vsel %vm360_vm1, %v1046_v26, %v1849_v42  ;;  %v632_v15 = vld [vmem:[#allocation2 + $0xc0] sm:$0x80]  ;;  %v341_v42 = vld [vmem:[#allocation2 + $0x108] sm:$0x80] }
  0x55   : > { %2491 = vmatmul.mubr.bf16.gmra.mrb[16].mxu0 %v1819_v14  ;;  %5533 = vmatprep.subr.bf16.mxu0 %v6114_v56  ;;  %v1878_v13 = vrot.slane %v1876_v57, 7  ;;  %v1549_v14 = vrot.slane %v1547_v4, 1  ;;  %v538_v16 = vadd.f32 %v6333_v46, %v499_v62  ;;  %v1077_v19 = vrot.slane %v1075_v2, 7  ;;  %v344_v55 = vld [vmem:[#allocation2 + $0x120] sm:$0x80] }
  0x56   : > { %2965 = vmatmul.mubr.bf16.gmra.mrb[20].mxu1 %v1018_v18  ;;  %2498 = vmatprep.mubr.bf16.mxu0 %v1862_v51  ;;  %v1892_v17 = vor.u32 %v1890_v0, %v1889_v8  ;;  %v1880_v18 = vor.u32 %v1879_v1, %v1540_v33  ;;  %v6537_v20 = vpack.c.bf16 %v569_v10, %v568_v6  ;;  %v1907_v23 = vshrl.u32 %v1463_v9, 16  ;;  %v5255_v33 = vld [vmem:[%s6315_s26 + $0x50] sm:$0xff]   ;;  %v1465_v37 = vld [vmem:[#allocation2 + $0xd8] sm:$0x80] }
  0x57   : > { %2972 = vmatprep.mubr.bf16.mxu1 %v1862_v51  ;;  %v1552_v21 = vor.u32 %v1550_v5, %v1549_v14  ;;  %v1914_v22 = vshrl.u32 %v1549_v14, 16  ;;  %v539_v24 = vadd.f32 %v6333_v46, %v500_v11  ;;  %v1106_v27 = vshrl.u32 %v632_v15, 16  ;;  %v634_v53 = vld [vmem:[#allocation2 + $0xd8] sm:$0x80] }
  0x58   : > { %v1893_v26 = vsel %vm360_vm1, %v1885_v7, %v1892_v17  ;;  %608 = vst [vmem:[#allocation2 + $0xe0] sm:$0xff] %v6537_v20  ;;  %v1554_v28 = vshll.u32 %v6537_v20, 16  ;;  %v1557_v29 = vshrl.u32 %v6537_v20, 16  ;;  %v570_v32 = vmax.f32 %v538_v16, 0.0  ;;  %v5257_v17 = vld [vmem:[%s6315_s26 + $0x60] sm:$0xff]  }
  0x59   : > { %v1918_v30 = vshrl.u32 %v1552_v21, 16  ;;  %v1921_v31 = vshll.u32 %v1552_v21, 16  ;;  %v1881_v34 = vsel %vm360_vm1, %v1878_v13, %v1880_v18  ;;  %v1910_v35 = vrot.slane %v1550_v5, 7 }
  0x5a   : > { %v1556_v36 = vrot.slane %v1554_v28, 1  ;;  %v1916_v38 = vrot.slane %v1914_v22, 7  ;;  %v571_v40 = vmax.f32 %v539_v24, 0.0  ;;  %v339_v41 = vsel %vm6341_vm3, 0, %v338_v25 }
  0x5b   : > { %v1920_v39 = vrot.slane %v1918_v30, 7  ;;  %v1080_v47 = vsel %vm360_vm1, %v1077_v19, %v1880_v18  ;;  %v1909_v43 = vrot.slane %v1907_v23, 7  ;;  %v1108_v49 = vrot.slane %v1106_v27, 7  ;;  %340 = vst [vmem:[#allocation2 + $0xf0] sm:$0x80] %v339_v41 }
  0x5c   : > { %v1559_v50 = vor.u32 %v1557_v29, %v1556_v36  ;;  %v1938_v52 = vshrl.u32 %v1465_v37, 16  ;;  %v6551_v54 = vpack.c.bf16 %v571_v40, %v570_v32  ;;  %v5224_v56 = vunpack.c.l.bf16 %v5255_v33 }
  0x5d   : > { %2499 = vmatmul.mubr.bf16.gmra.mrb[20].mxu0 %v1850_v3  ;;  %v1923_v51 = vor.u32 %v1921_v31, %v1920_v39  ;;  %v1945_v57 = vshrl.u32 %v1556_v36, 16  ;;  %v1941_v61 = vrot.slane %v1557_v29, 7  ;;  %v1911_v63 = vor.u32 %v1910_v35, %v1547_v4 }
  0x5e   : > { %2973 = vmatmul.mubr.bf16.gmra.mrb[24].mxu1 %v1049_v12  ;;  %2506 = vmatprep.mubr.bf16.mxu0 %v1893_v26  ;;  %v1949_v58 = vshrl.u32 %v1559_v50, 16  ;;  %v1952_v60 = vshll.u32 %v1559_v50, 16  ;;  %609 = vst [vmem:[#allocation2 + $0xf8] sm:$0xff] %v6551_v54  ;;  %v1561_v0 = vshll.u32 %v6551_v54, 16  ;;  %v1564_v1 = vshrl.u32 %v6551_v54, 16 }
  0x5f   : > { %2980 = vmatprep.mubr.bf16.mxu1 %v1893_v26  ;;  %v1924_v62 = vsel %vm360_vm1, %v1916_v38, %v1923_v51  ;;  %v5225_v3 = vunpack.c.h.bf16 %v5255_v33  ;;  %v501_v5 = vmul.f32 %v5224_v56, %v6328_v45  ;;  %v342_v6 = vsel %vm6341_vm3, 0, %v341_v42 }
  0x60   : > { %v1951_v2 = vrot.slane %v1949_v58, 7  ;;  %v1940_v7 = vrot.slane %v1938_v52, 7  ;;  %v1137_v8 = vshrl.u32 %v634_v53, 16  ;;  %v1563_v59 = vrot.slane %v1561_v0, 1  ;;  %343 = vst [vmem:[#allocation2 + $0x108] sm:$0x80] %v342_v6 }
  0x61   : > { %v5228_v4 = vunpack.c.l.bf16 %v5256_v44  ;;  %v502_v9 = vmul.f32 %v5225_v3, %v6328_v45  ;;  %v540_v10 = vadd.f32 %v6333_v46, %v501_v5  ;;  %v5229_v11 = vunpack.c.h.bf16 %v5256_v44  ;;  %v6593_v53 = vld [vmem:[%s7701_s1] ss:$0 sm:$0xff]  ;;  %v350_v6 = vld [vmem:[#allocation2 + $0x150] sm:$0x80] }
  0x62   : > { %v345_v12 = vsel %vm6341_vm3, 0, %v344_v55  ;;  %v1947_v13 = vrot.slane %v1945_v57, 7  ;;  %v1954_v14 = vor.u32 %v1952_v60, %v1951_v2  ;;  %v1566_v15 = vor.u32 %v1564_v1, %v1563_v59  ;;  %v1467_v22 = vld [vmem:[#allocation2 + $0xf0] sm:$0x80] }
  0x63   : > { %v503_v16 = vmul.f32 %v5228_v4, %v6328_v45  ;;  %346 = vst [vmem:[#allocation2 + $0x120] sm:$0x80] %v345_v12  ;;  %v1912_v18 = vsel %vm360_vm1, %v1909_v43, %v1911_v63  ;;  %v1111_v19 = vsel %vm360_vm1, %v1108_v49, %v1911_v63  ;;  %v1942_v21 = vor.u32 %v1941_v61, %v1554_v28  ;;  %v636_v27 = vld [vmem:[#allocation2 + $0xf0] sm:$0x80]  ;;  %v6581_v28 = vld [vmem:[%s7702_s2] ss:$0 sm:$0xff] }
  0x64   : > { %v541_v23 = vadd.f32 %v6333_v46, %v502_v9  ;;  %v1976_v24 = vshrl.u32 %v1563_v59, 16  ;;  %v1980_v25 = vshrl.u32 %v1566_v15, 16  ;;  %v1983_v26 = vshll.u32 %v1566_v15, 16  ;;  %v347_v43 = vld [vmem:[#allocation2 + $0x138] sm:$0x80] }
  0x65   : > { %2507 = vmatmul.mubr.bf16.gmra.mrb[24].mxu0 %v1881_v34  ;;  %v572_v29 = vmax.f32 %v540_v10, 0.0  ;;  %v1139_v30 = vrot.slane %v1137_v8, 7  ;;  %v1972_v31 = vrot.slane %v1564_v1, 7  ;;  %v504_v33 = vmul.f32 %v5229_v11, %v6328_v45 }
  0x66   : > { %2981 = vmatmul.mubr.bf16.gmra.mrb[28].mxu1 %v1080_v47  ;;  %2514 = vmatprep.mubr.bf16.mxu0 %v1924_v62  ;;  %v573_v32 = vmax.f32 %v541_v23, 0.0  ;;  %v1955_v34 = vsel %vm360_vm1, %v1947_v13, %v1954_v14  ;;  %v1982_v35 = vrot.slane %v1980_v25, 7  ;;  %v542_v46 = vadd.f32 %v6581_v28, %v503_v16  ;;  %v5258_v13 = vld [vmem:[%s6315_s26 + $0x68] sm:$0xff]  }
  0x67   : > { %2988 = vmatprep.mubr.bf16.mxu1 %v1924_v62  ;;  %v5232_v36 = vunpack.c.l.bf16 %v5257_v17  ;;  %v1969_v37 = vshrl.u32 %v1467_v22, 16  ;;  %v1168_v38 = vshrl.u32 %v636_v27, 16  ;;  %v543_v40 = vadd.f32 %v6581_v28, %v504_v33  ;;  %v1469_v51 = vld [vmem:[#allocation2 + $0x108] sm:$0x80] }
  0x68   : > { %v6584_v39 = vpack.c.bf16 %v573_v32, %v572_v29  ;;  %v1978_v45 = vrot.slane %v1976_v24, 7  ;;  %v1985_v41 = vor.u32 %v1983_v26, %v1982_v35  ;;  %v574_v42 = vmax.f32 %v542_v46, 0.0  ;;  %v638_v58 = vld [vmem:[#allocation2 + $0x108] sm:$0x80] }
  0x69   : > { %v5233_v47 = vunpack.c.h.bf16 %v5257_v17  ;;  %v575_v52 = vmax.f32 %v543_v40, 0.0  ;;  %v505_v56 = vmul.f32 %v6593_v53, %v5232_v36  ;;  %v1943_v44 = vsel %vm360_vm1, %v1940_v7, %v1942_v21  ;;  %v5259_v36 = vld [vmem:[%s6315_s26 + $0x70] sm:$0xff]  }
  0x6a   : > { %610 = vst [vmem:[#allocation2 + $0x110] sm:$0xff] %v6584_v39  ;;  %v1568_v49 = vshll.u32 %v6584_v39, 16  ;;  %v1571_v50 = vshrl.u32 %v6584_v39, 16  ;;  %v1142_v55 = vsel %vm360_vm1, %v1139_v30, %v1942_v21  ;;  %v1973_v57 = vor.u32 %v1972_v31, %v1561_v0  ;;  %v1471_v10 = vld [vmem:[#allocation2 + $0x120] sm:$0x80] }
  0x6b   : > { %v1971_v60 = vrot.slane %v1969_v37, 7  ;;  %v1170_v61 = vrot.slane %v1168_v38, 7  ;;  %v6602_v63 = vpack.c.bf16 %v575_v52, %v574_v42  ;;  %v2000_v1 = vshrl.u32 %v1469_v51, 16 }
  0x6c   : > { %v1570_v62 = vrot.slane %v1568_v49, 1  ;;  %v506_v2 = vmul.f32 %v6593_v53, %v5233_v47  ;;  %v544_v3 = vadd.f32 %v6581_v28, %v505_v56  ;;  %v348_v5 = vsel %vm6341_vm3, 0, %v347_v43 }
  0x6d   : > { %2515 = vmatmul.mubr.bf16.gmra.mrb[28].mxu0 %v1912_v18  ;;  %v1986_v0 = vsel %vm360_vm1, %v1978_v45, %v1985_v41  ;;  %v1199_v8 = vshrl.u32 %v638_v58, 16  ;;  %611 = vst [vmem:[#allocation2 + $0x128] sm:$0xff] %v6602_v63  ;;  %v1575_v59 = vshll.u32 %v6602_v63, 16  ;;  %349 = vst [vmem:[#allocation2 + $0x138] sm:$0x80] %v348_v5  ;;  %v1578_v9 = vshrl.u32 %v6602_v63, 16 }
  0x6e   : > { %2989 = vmatmul.mubr.bf16.gmra.mrb[32].mxu1 %v1111_v19  ;;  %2522 = vmatprep.mubr.bf16.mxu0 %v1955_v34  ;;  %v1573_v7 = vor.u32 %v1571_v50, %v1570_v62  ;;  %v2007_v4 = vshrl.u32 %v1570_v62, 16  ;;  %v545_v11 = vadd.f32 %v6581_v28, %v506_v2  ;;  %v576_v12 = vmax.f32 %v544_v3, 0.0  ;;  %v640_v18 = vld [vmem:[#allocation2 + $0x120] sm:$0x80] }
  0x6f   : > { %2996 = vmatprep.mubr.bf16.mxu1 %v1955_v34  ;;  %v1974_v14 = vsel %vm360_vm1, %v1971_v60, %v1973_v57  ;;  %v1173_v15 = vsel %vm360_vm1, %v1170_v61, %v1973_v57  ;;  %v2002_v19 = vrot.slane %v2000_v1, 7  ;;  %v2003_v21 = vrot.slane %v1571_v50, 7 }
  0x70   : > { %v2011_v16 = vshrl.u32 %v1573_v7, 16  ;;  %v2014_v17 = vshll.u32 %v1573_v7, 16  ;;  %v1577_v22 = vrot.slane %v1575_v59, 1  ;;  %v577_v23 = vmax.f32 %v545_v11, 0.0 }
  0x71   : > { %v5236_v25 = vunpack.c.l.bf16 %v5258_v13  ;;  %v5237_v26 = vunpack.c.h.bf16 %v5258_v13  ;;  %v351_v27 = vsel %vm6341_vm3, 0, %v350_v6  ;;  %v2009_v29 = vrot.slane %v2007_v4, 7  ;;  %v353_v4 = vld [vmem:[#allocation2 + $0x168] sm:$0x80]  ;;  %v5260_v13 = vld [vmem:[%s6315_s26 + $0x78] sm:$0xff]  }
  0x72   : > { %v2013_v24 = vrot.slane %v2011_v16, 7  ;;  %v1201_v30 = vrot.slane %v1199_v8, 7  ;;  %v1580_v31 = vor.u32 %v1578_v9, %v1577_v22  ;;  %v6620_v32 = vpack.c.bf16 %v577_v23, %v576_v12  ;;  %352 = vst [vmem:[#allocation2 + $0x150] sm:$0x80] %v351_v27 }
  0x73   : > { %v2031_v34 = vshrl.u32 %v1471_v10, 16  ;;  %v507_v35 = vmul.f32 %v6593_v53, %v5236_v25  ;;  %v508_v46 = vmul.f32 %v6593_v53, %v5237_v26  ;;  %v2038_v37 = vshrl.u32 %v1577_v22, 16 }
  0x74   : > { %v2016_v33 = vor.u32 %v2014_v17, %v2013_v24  ;;  %v2042_v38 = vshrl.u32 %v1580_v31, 16  ;;  %v2045_v40 = vshll.u32 %v1580_v31, 16  ;;  %v1230_v45 = vshrl.u32 %v640_v18, 16  ;;  %612 = vst [vmem:[#allocation2 + $0x140] sm:$0xff] %v6620_v32  ;;  %v1473_v60 = vld [vmem:[#allocation2 + $0x138] sm:$0x80] }
  0x75   : > { %2523 = vmatmul.mubr.bf16.gmra.mrb[32].mxu0 %v1943_v44  ;;  %v2004_v41 = vor.u32 %v2003_v21, %v1568_v49  ;;  %v2034_v42 = vrot.slane %v1578_v9, 7  ;;  %v1582_v47 = vshll.u32 %v6620_v32, 16  ;;  %v1585_v43 = vshrl.u32 %v6620_v32, 16  ;;  %v642_v61 = vld [vmem:[#allocation2 + $0x138] sm:$0x80] }
  0x76   : > { %2997 = vmatmul.mubr.bf16.gmra.mrb[36].mxu1 %v1142_v55  ;;  %2530 = vmatprep.mubr.bf16.mxu0 %v1986_v0  ;;  %v2017_v50 = vsel %vm360_vm1, %v2009_v29, %v2016_v33  ;;  %v2044_v51 = vrot.slane %v2042_v38, 7  ;;  %v546_v52 = vadd.f32 %v6581_v28, %v507_v35  ;;  %v5240_v56 = vunpack.c.l.bf16 %v5259_v36  ;;  %v356_v18 = vld [vmem:[#allocation2 + $0x180] sm:$0x80] }
  0x77   : > { %3004 = vmatprep.mubr.bf16.mxu1 %v1986_v0  ;;  %v2033_v44 = vrot.slane %v2031_v34, 7  ;;  %v1584_v55 = vrot.slane %v1582_v47, 1  ;;  %v547_v57 = vadd.f32 %v6581_v28, %v508_v46  ;;  %v2040_v49 = vrot.slane %v2038_v37, 7 }
  0x78   : > { %v2047_v58 = vor.u32 %v2045_v40, %v2044_v51  ;;  %v578_v62 = vmax.f32 %v546_v52, 0.0  ;;  %v1232_v1 = vrot.slane %v1230_v45, 7  ;;  %v5241_v5 = vunpack.c.h.bf16 %v5259_v36  ;;  %v648_v36 = vld [vmem:[#allocation2 + $0x10] sm:$0x1] }
  0x79   : > { %v1587_v2 = vor.u32 %v1585_v43, %v1584_v55  ;;  %v579_v3 = vmax.f32 %v547_v57, 0.0  ;;  %v2005_v6 = vsel %vm360_vm1, %v2002_v19, %v2004_v41  ;;  %v1204_v0 = vsel %vm360_vm1, %v1201_v30, %v2004_v41  ;;  %v1475_v45 = vld [vmem:[#allocation2 + $0x150] sm:$0x80] }
  0x7a   : > { %v2035_v7 = vor.u32 %v2034_v42, %v1575_v59  ;;  %v509_v8 = vmul.f32 %v6593_v53, %v5240_v56  ;;  %v2062_v10 = vshrl.u32 %v1473_v60, 16  ;;  %v2065_v11 = vrot.slane %v1585_v43, 7  ;;  %v644_v41 = vld [vmem:[#allocation2 + $0x150] sm:$0x80]  ;;  %v6140_v56 = vld [vmem:[#allocation2 + $0x8] sm:$0xff] }
  0x7b   : > { %v2073_v9 = vshrl.u32 %v1587_v2, 16  ;;  %v1261_v12 = vshrl.u32 %v642_v61, 16  ;;  %v2076_v16 = vshll.u32 %v1587_v2, 16  ;;  %v6642_v17 = vpack.c.bf16 %v579_v3, %v578_v62 }
  0x7c   : > { %v510_v21 = vmul.f32 %v6593_v53, %v5241_v5  ;;  %v548_v59 = vadd.f32 %v6581_v28, %v509_v8  ;;  %v354_v22 = vsel %vm6341_vm3, 0, %v353_v4  ;;  %v5244_v25 = vunpack.c.l.bf16 %v5260_v13 }
  0x7d   : > { %2531 = vmatmul.mubr.bf16.gmra.mrb[36].mxu0 %v1974_v14  ;;  %v2048_v14 = vsel %vm360_vm1, %v2040_v49, %v2047_v58  ;;  %v2075_v19 = vrot.slane %v2073_v9, 7  ;;  %613 = vst [vmem:[#allocation2 + $0x158] sm:$0xff] %v6642_v17  ;;  %v1589_v23 = vshll.u32 %v6642_v17, 16  ;;  %v1592_v24 = vshrl.u32 %v6642_v17, 16  ;;  %355 = vst [vmem:[#allocation2 + $0x168] sm:$0x80] %v354_v22 }
  0x7e   : > { %3005 = vmatmul.mubr.bf16.gmra.mrb[40].mxu1 %v1173_v15  ;;  %2538 = vmatprep.mubr.bf16.mxu0 %v2017_v50  ;;  %v2069_v15 = vshrl.u32 %v1584_v55, 16  ;;  %v5245_v26 = vunpack.c.h.bf16 %v5260_v13  ;;  %v2036_v27 = vsel %vm360_vm1, %v2033_v44, %v2035_v7  ;;  %v549_v29 = vadd.f32 %v6581_v28, %v510_v21 }
  0x7f   : > { %3012 = vmatprep.mubr.bf16.mxu1 %v2017_v50  ;;  %v580_v30 = vmax.f32 %v548_v59, 0.0  ;;  %v357_v31 = vsel %vm6341_vm3, 0, %v356_v18  ;;  %v2064_v33 = vrot.slane %v2062_v10, 7  ;;  %v1591_v34 = vrot.slane %v1589_v23, 1  ;;  %v362_v18 = vld [vmem:[#allocation2 + $0x28] sm:$0x1] }
  0x80   : > { %v511_v35 = vmul.f32 %v6593_v53, %v5244_v25  ;;  %v512_v46 = vmul.f32 %v6593_v53, %v5245_v26  ;;  %358 = vst [vmem:[#allocation2 + $0x180] sm:$0x80] %v357_v31  ;;  %v1235_v37 = vsel %vm360_vm1, %v1232_v1, %v2035_v7  ;;  %v2071_v38 = vrot.slane %v2069_v15, 7  ;;  %v365_v25 = vld [vmem:[#allocation2 + $0x40] sm:$0x1] }
  0x81   : > { %v2078_v40 = vor.u32 %v2076_v16, %v2075_v19  ;;  %v581_v48 = vmax.f32 %v549_v29, 0.0  ;;  %v2066_v42 = vor.u32 %v2065_v11, %v1582_v47  ;;  %v1263_v43 = vrot.slane %v1261_v12, 7 }
  0x82   : > { %v1594_v50 = vor.u32 %v1592_v24, %v1591_v34  ;;  %v550_v51 = vadd.f32 %v6581_v28, %v511_v35  ;;  %v551_v53 = vadd.f32 %v6581_v28, %v512_v46  ;;  %v809_v44 = vrot.slane %v6140_v56, 1  ;;  %v368_v35 = vld [vmem:[#allocation2 + $0x58] sm:$0x1] }
  0x83   : > { %v6661_v52 = vpack.c.bf16 %v581_v48, %v580_v30  ;;  %v810_v55 = vrot.slane %v648_v36, 1  ;;  %v2093_v49 = vshrl.u32 %v1475_v45, 16  ;;  %v1292_v58 = vshrl.u32 %v644_v41, 16 }
  0x84   : > { %v2104_v57 = vshrl.u32 %v1594_v50, 16  ;;  %v2079_v60 = vsel %vm360_vm1, %v2071_v38, %v2078_v40  ;;  %v2096_v61 = vrot.slane %v1592_v24, 7  ;;  %v2100_v1 = vshrl.u32 %v1591_v34, 16  ;;  %v646_v11 = vld [vmem:[#allocation2 + $0x168] sm:$0x80] }
  0x85   : > { %2539 = vmatmul.mubr.bf16.gmra.mrb[40].mxu0 %v2005_v6  ;;  %614 = vst [vmem:[#allocation2 + $0x170] sm:$0xff] %v6661_v52  ;;  %v1596_v47 = vshll.u32 %v6661_v52, 16  ;;  %v1599_v62 = vshrl.u32 %v6661_v52, 16  ;;  %v2107_v3 = vshll.u32 %v1594_v50, 16  ;;  %v582_v28 = vmax.f32 %v550_v51, 0.0 }
  0x86   : > { %3013 = vmatmul.mubr.bf16.gmra.mrb[44].mxu1 %v1204_v0  ;;  %2546 = vmatprep.mubr.bf16.mxu0 %v2048_v14  ;;  %v2106_v2 = vrot.slane %v2104_v57, 7  ;;  %v1477_v6 = vld [vmem:[#allocation2 + $0x168] sm:$0x80]  ;;  %v583_v0 = vmax.f32 %v551_v53, 0.0  ;;  %v6669_v7 = vsel %vm808_vm4, %v809_v44, %v810_v55  ;;  %v2067_v8 = vsel %vm360_vm1, %v2064_v33, %v2066_v42 }
  0x87   : > { %3020 = vmatprep.mubr.bf16.mxu1 %v2048_v14  ;;  %v1598_v5 = vrot.slane %v1596_v47, 1  ;;  %v1266_v4 = vsel %vm360_vm1, %v1263_v43, %v2066_v42  ;;  %v2095_v9 = vrot.slane %v2093_v49, 7  ;;  %v6673_v10 = vrot.slane %v1292_v58, 7  ;;  %v1479_v12 = vld [vmem:[#allocation2 + $0x180] sm:$0x80] }
  0x88   : > { %v6675_v13 = vor.u32 %v2096_v61, %v1589_v23  ;;  %v6677_v15 = vpack.c.bf16 %v583_v0, %v582_v28  ;;  %v6679_v16 = vshrl.u32 %v809_v44, 16  ;;  %v2102_v19 = vrot.slane %v2100_v1, 7  ;;  %v371_v49 = vld [vmem:[#allocation2 + $0x70] sm:$0x1]  ;;  %v374_v58 = vld [vmem:[#allocation2 + $0x88] sm:$0x1] }
  0x89   : > { %v1601_v14 = vor.u32 %v1599_v62, %v1598_v5  ;;  %v2109_v21 = vor.u32 %v2107_v3, %v2106_v2  ;;  %v2124_v59 = vshrl.u32 %v1477_v6, 16  ;;  %v881_v22 = vshrl.u32 %v6669_v7, 16  ;;  %v6142_v1 = vld [vmem:[#allocation2 + $0x38] sm:$0xff]  ;;  %v377_v3 = vld [vmem:[#allocation2 + $0xa0] sm:$0x1]  ;;  %v6143_v0 = vld [vmem:[#allocation2 + $0x50] sm:$0xff] }
  0x8a   : > { %v2127_v26 = vrot.slane %v1599_v62, 7  ;;  %615 = vst [vmem:[#allocation2 + $0x188] sm:$0xff] %v6677_v15  ;;  %v2155_v29 = vshrl.u32 %v1479_v12, 16  ;;  %v2131_v30 = vshrl.u32 %v1598_v5, 16  ;;  %v1603_v33 = vshll.u32 %v6677_v15, 16 }
  0x8b   : > { %v2135_v23 = vshrl.u32 %v1601_v14, 16  ;;  %v2138_v31 = vshll.u32 %v1601_v14, 16  ;;  %v1606_v34 = vshrl.u32 %v6677_v15, 16  ;;  %v363_v36 = vsel %vm6684_vm6, 0, %v362_v18 }
  0x8c   : > { %v366_v40 = vsel %vm6684_vm6, 0, %v365_v25  ;;  %v2110_v45 = vsel %vm360_vm1, %v2102_v19, %v2109_v21  ;;  %v1605_v41 = vrot.slane %v1603_v33, 1  ;;  %v883_v48 = vrot.slane %v881_v22, 7  ;;  %364 = vst [vmem:[#allocation2 + $0x28] sm:$0x1] %v363_v36 }
  0x8d   : > { %2547 = vmatmul.mubr.bf16.gmra.mrb[44].mxu0 %v2036_v27  ;;  %v1323_v27 = vshrl.u32 %v646_v11, 16  ;;  %v2137_v46 = vrot.slane %v2135_v23, 7  ;;  %v884_v42 = vshll.u32 %v6669_v7, 16  ;;  %367 = vst [vmem:[#allocation2 + $0x40] sm:$0x1] %v366_v40  ;;  %v2098_v43 = vsel %vm360_vm1, %v2095_v9, %v6675_v13 }
  0x8e   : > { %3021 = vmatmul.mubr.bf16.gmra.mrb[48].mxu1 %v1235_v37  ;;  %2554 = vmatprep.mubr.bf16.mxu0 %v2079_v60  ;;  %v6141_v37 = vld [vmem:[#allocation2 + $0x20] sm:$0xff]  ;;  %v879_v50 = vrot.slane %v6679_v16, 7  ;;  %v369_v53 = vsel %vm6684_vm6, 0, %v368_v35  ;;  %v2126_v56 = vrot.slane %v2124_v59, 7  ;;  %v2128_v44 = vor.u32 %v2127_v26, %v1596_v47 }
  0x8f   : > { %3028 = vmatprep.mubr.bf16.mxu1 %v2079_v60  ;;  %v6693_v38 = vrot.slane %v6141_v37, 1  ;;  %v1325_v55 = vrot.slane %v1323_v27, 7  ;;  %v1608_v57 = vor.u32 %v1606_v34, %v1605_v41  ;;  %370 = vst [vmem:[#allocation2 + $0x58] sm:$0x1] %v369_v53  ;;  %v2133_v60 = vrot.slane %v2131_v30, 7 }
  0x90   : > { %v2140_v61 = vor.u32 %v2138_v31, %v2137_v46  ;;  %v2157_v62 = vrot.slane %v2155_v29, 7  ;;  %v6707_v2 = vrot.slane %v6142_v1, 1  ;;  %v2158_v5 = vrot.slane %v1606_v34, 7 }
  0x91   : > { %v908_v51 = vshrl.u32 %v6693_v38, 16  ;;  %v2166_v28 = vshrl.u32 %v1608_v57, 16  ;;  %v886_v6 = vor.u32 %v884_v42, %v883_v48  ;;  %v6709_v7 = vrot.slane %v6143_v0, 1  ;;  %v6145_v0 = vld [vmem:[#allocation2 + $0x80] sm:$0xff] }
  0x92   : > { %v2162_v47 = vshrl.u32 %v1605_v41, 16  ;;  %v372_v9 = vsel %vm6684_vm6, 0, %v371_v49  ;;  %v2169_v12 = vshll.u32 %v1608_v57, 16  ;;  %v375_v14 = vsel %vm6684_vm6, 0, %v374_v58 }
  0x93   : > { %v2168_v11 = vrot.slane %v2166_v28, 7  ;;  %373 = vst [vmem:[#allocation2 + $0x70] sm:$0x1] %v372_v9  ;;  %v378_v16 = vsel %vm6684_vm6, 0, %v377_v3  ;;  %v1297_v18 = vsel %vm360_vm1, %v6673_v10, %v6675_v13  ;;  %v2141_v19 = vsel %vm360_vm1, %v2133_v60, %v2140_v61  ;;  %v649_v22 = vld [vmem:[#allocation2 + $0x28] sm:$0x1] }
  0x94   : > { %v2129_v21 = vsel %vm360_vm1, %v2126_v56, %v2128_v44  ;;  %v1328_v59 = vsel %vm360_vm1, %v1325_v55, %v2128_v44  ;;  %v1481_v25 = vld [vmem:[#allocation2 + $0x28] sm:$0x1]  ;;  %v1482_v23 = vld [vmem:[#allocation2 + $0x40] sm:$0x1]  ;;  %376 = vst [vmem:[#allocation2 + $0x88] sm:$0x1] %v375_v14  ;;  %v2159_v10 = vor.u32 %v2158_v5, %v1603_v33  ;;  %v887_v13 = vsel %vm360_vm1, %v879_v50, %v886_v6 }
  0x95   : > { %2555 = vmatmul.mubr.bf16.gmra.mrb[48].mxu0 %v2067_v8  ;;  %v6711_v8 = vrot.slane %v908_v51, 7  ;;  %379 = vst [vmem:[#allocation2 + $0xa0] sm:$0x1] %v378_v16  ;;  %v813_v26 = vrot.slane %v649_v22, 1  ;;  %v1642_v27 = vrot.slane %v1481_v25, 1  ;;  %v1645_v29 = vrot.slane %v1482_v23, 1 }
  0x96   : > { %3029 = vmatmul.mubr.bf16.gmra.mrb[52].mxu1 %v1266_v4  ;;  %2562 = vmatprep.mubr.bf16.mxu0 %v2110_v45  ;;  %v1740_v4 = vshrl.u32 %v6707_v2, 16  ;;  %v650_v30 = vld [vmem:[#allocation2 + $0x40] sm:$0x1]  ;;  %v970_v31 = vshrl.u32 %v6709_v7, 16  ;;  %v2164_v34 = vrot.slane %v2162_v47, 7  ;;  %v2171_v37 = vor.u32 %v2169_v12, %v2168_v11  ;;  %v6144_v5 = vld [vmem:[#allocation2 + $0x68] sm:$0xff] }
  0x97   : > { %3036 = vmatprep.mubr.bf16.mxu1 %v2110_v45  ;;  %v816_v35 = vrot.slane %v650_v30, 1  ;;  %v651_v46 = vld [vmem:[#allocation2 + $0x58] sm:$0x1]  ;;  %v814_v40 = vsel %vm808_vm4, %v6693_v38, %v813_v26  ;;  %v1643_v45 = vsel %vm808_vm4, %v6693_v38, %v1642_v27  ;;  %v1646_v50 = vsel %vm808_vm4, %v6707_v2, %v1645_v29 }
  0x98   : > { %v1483_v36 = vld [vmem:[#allocation2 + $0x58] sm:$0x1]  ;;  %v819_v41 = vrot.slane %v651_v46, 1  ;;  %v912_v48 = vshrl.u32 %v814_v40, 16  ;;  %v915_v42 = vshll.u32 %v814_v40, 16  ;;  %v1713_v33 = vshrl.u32 %v1643_v45, 16 }
  0x99   : > { %v1716_v51 = vshll.u32 %v1643_v45, 16  ;;  %v1648_v56 = vrot.slane %v1483_v36, 1  ;;  %v6741_v44 = vsel %vm360_vm1, %v2157_v62, %v2159_v10  ;;  %v1744_v57 = vshrl.u32 %v1646_v50, 16 }
  0x9a   : > { %v820_v53 = vsel %vm808_vm4, %v6709_v7, %v819_v41  ;;  %v914_v38 = vrot.slane %v912_v48, 7  ;;  %v1715_v55 = vrot.slane %v1713_v33, 7  ;;  %v1747_v49 = vshll.u32 %v1646_v50, 16  ;;  %v1484_v1 = vld [vmem:[#allocation2 + $0x70] sm:$0x1] }
  0x9b   : > { %v974_v61 = vshrl.u32 %v820_v53, 16  ;;  %v1746_v3 = vrot.slane %v1744_v57, 7  ;;  %v1649_v28 = vsel %vm808_vm4, %v6709_v7, %v1648_v56  ;;  %v1650_v6 = vrot.slane %v6144_v5, 1  ;;  %v652_v14 = vld [vmem:[#allocation2 + $0x70] sm:$0x1] }
  0x9c   : > { %v6745_v47 = vrot.slane %v6145_v0, 1  ;;  %v2172_v62 = vsel %vm360_vm1, %v2164_v34, %v2171_v37  ;;  %v917_v9 = vor.u32 %v915_v42, %v914_v38  ;;  %v1718_v11 = vor.u32 %v1716_v51, %v1715_v55  ;;  %v653_v16 = vld [vmem:[#allocation2 + $0x88] sm:$0x1]  ;;  %v380_v42 = vld [vmem:[#allocation2 + $0xb8] sm:$0x1] }
  0x9d   : > { %2563 = vmatmul.mubr.bf16.gmra.mrb[52].mxu0 %v2098_v43  ;;  %v817_v43 = vsel %vm808_vm4, %v6707_v2, %v816_v35  ;;  %v1775_v22 = vshrl.u32 %v1649_v28, 16  ;;  %v1651_v25 = vrot.slane %v1484_v1, 1  ;;  %v1742_v7 = vrot.slane %v1740_v4, 7  ;;  %v1485_v4 = vld [vmem:[#allocation2 + $0x88] sm:$0x1]  ;;  %v6146_v38 = vld [vmem:[#allocation2 + $0x98] sm:$0xff] }
  0x9e   : > { %3037 = vmatmul.mubr.bf16.gmra.mrb[56].mxu1 %v1297_v18  ;;  %2570 = vmatprep.mubr.bf16.mxu0 %v2141_v19  ;;  %v943_v58 = vshrl.u32 %v817_v43, 16  ;;  %v946_v60 = vshll.u32 %v817_v43, 16  ;;  %v976_v18 = vrot.slane %v974_v61, 7  ;;  %v1749_v23 = vor.u32 %v1747_v49, %v1746_v3 }
  0x9f   : > { %3044 = vmatprep.mubr.bf16.mxu1 %v2141_v19  ;;  %v977_v19 = vshll.u32 %v820_v53, 16  ;;  %v1802_v27 = vshrl.u32 %v1650_v6, 16  ;;  %v6750_v29 = vrot.slane %v970_v31, 7  ;;  %v1652_v30 = vsel %vm808_vm4, %v1650_v6, %v1651_v25 }
  0xa0   : > { %v945_v12 = vrot.slane %v943_v58, 7  ;;  %v822_v34 = vrot.slane %v652_v14, 1  ;;  %v825_v10 = vrot.slane %v653_v16, 1  ;;  %v918_v35 = vsel %vm360_vm1, %v6711_v8, %v917_v9  ;;  %v6119_v58 = vld [vmem:[%s7703_s3 + $0x208] sm:$0xff]  }
  0xa1   : > { %v1806_v2 = vshrl.u32 %v1652_v30, 16  ;;  %v979_v46 = vor.u32 %v977_v19, %v976_v18  ;;  %v1777_v36 = vrot.slane %v1775_v22, 7  ;;  %v6761_v40 = vsel %vm360_vm1, %v1742_v7, %v1749_v23  ;;  %v386_v19 = vld [vmem:[#allocation2 + $0xe8] sm:$0x1] }
  0xa2   : > { %v948_v26 = vor.u32 %v946_v60, %v945_v12  ;;  %v823_v37 = vsel %vm808_vm4, %v1650_v6, %v822_v34  ;;  %v826_v31 = vsel %vm808_vm4, %v6745_v47, %v825_v10  ;;  %v6764_v41 = vrot.slane %v1802_v27, 7  ;;  %v389_v27 = vld [vmem:[#allocation2 + $0x100] sm:$0x1]  ;;  %v6148_v10 = vld [vmem:[#allocation2 + $0xb0] sm:$0xff] }
  0xa3   : > { %v1005_v48 = vshrl.u32 %v823_v37, 16  ;;  %v1809_v33 = vshll.u32 %v1652_v30, 16  ;;  %v1032_v51 = vshrl.u32 %v6745_v47, 16  ;;  %v1036_v50 = vshrl.u32 %v826_v31, 16 }
  0xa4   : > { %v949_v45 = vsel %vm360_vm1, %v1742_v7, %v948_v26  ;;  %v1654_v43 = vrot.slane %v1485_v4, 1  ;;  %v1808_v53 = vrot.slane %v1806_v2, 7  ;;  %v1008_v56 = vshll.u32 %v823_v37, 16  ;;  %v6122_v26 = vld [vmem:[%s7703_s3 + $0x210] sm:$0xff]  }
  0xa5   : > { %2571 = vmatmul.mubr.bf16.gmra.mrb[56].mxu0 %v2129_v21  ;;  %v1719_v21 = vsel %vm360_vm1, %v6711_v8, %v1718_v11  ;;  %v654_v8 = vld [vmem:[#allocation2 + $0xa0] sm:$0x1]  ;;  %v1656_v55 = vrot.slane %v6146_v38, 1  ;;  %v1007_v49 = vrot.slane %v1005_v48, 7  ;;  %v381_v1 = vsel %vm6684_vm6, 0, %v380_v42 }
  0xa6   : > { %3045 = vmatmul.mubr.bf16.gmra.mrb[60].mxu1 %v1328_v59  ;;  %2578 = vmatprep.mubr.bf16.mxu0 %v2172_v62  ;;  %v1778_v59 = vshll.u32 %v1649_v28, 16  ;;  %v1655_v60 = vsel %vm808_vm4, %v6745_v47, %v1654_v43  ;;  %v828_v61 = vrot.slane %v654_v8, 1  ;;  %v980_v3 = vsel %vm360_vm1, %v6750_v29, %v979_v46  ;;  %382 = vst [vmem:[#allocation2 + $0xb8] sm:$0x1] %v381_v1  ;;  %v383_v11 = vld [vmem:[#allocation2 + $0xd0] sm:$0x1] }
  0xa7   : > { %5750 = vmatprep.mubr.bf16.mxu1 %v887_v13  ;;  %v1486_v13 = vld [vmem:[#allocation2 + $0xa0] sm:$0x1]  ;;  %v1039_v5 = vshll.u32 %v826_v31, 16  ;;  %v1837_v6 = vshrl.u32 %v1655_v60, 16  ;;  %v1038_v0 = vrot.slane %v1036_v50, 7  ;;  %v1840_v62 = vshll.u32 %v1655_v60, 16 }
  0xa8   : > { %v1657_v57 = vrot.slane %v1486_v13, 1  ;;  %v1780_v28 = vor.u32 %v1778_v59, %v1777_v36  ;;  %v829_v9 = vsel %vm808_vm4, %v1656_v55, %v828_v61  ;;  %v1034_v12 = vrot.slane %v1032_v51, 7  ;;  %v6115_v59 = vld [vmem:[%s7703_s3 + $0x180] sm:$0xff]   ;;  %v6117_v31 = vld [vmem:[%s7703_s3 + $0x1c8] sm:$0xff]   ;;  %v392_v8 = vld [vmem:[#allocation2 + $0x118] sm:$0x1] }
  0xa9   : > { %v1839_v14 = vrot.slane %v1837_v6, 7  ;;  %v1864_v16 = vshrl.u32 %v1656_v55, 16  ;;  %v1811_v22 = vor.u32 %v1809_v33, %v1808_v53  ;;  %v1010_v25 = vor.u32 %v1008_v56, %v1007_v49  ;;  %v6149_v50 = vld [vmem:[#allocation2 + $0xc8] sm:$0xff]  ;;  %v6120_v61 = vld [vmem:[%s7703_s3 + $0x1d0] sm:$0xff]  }
  0xaa   : > { %v1658_v47 = vsel %vm808_vm4, %v1656_v55, %v1657_v57  ;;  %v1067_v23 = vshrl.u32 %v829_v9, 16  ;;  %v1070_v34 = vshll.u32 %v829_v9, 16  ;;  %v1041_v2 = vor.u32 %v1039_v5, %v1038_v0  ;;  %v6118_v49 = vld [vmem:[%s7703_s3 + $0x188] sm:$0xff]   ;;  %v6121_v6 = vld [vmem:[%s7703_s3 + $0x190] sm:$0xff]  }
  0xab   : > { %v1868_v18 = vshrl.u32 %v1658_v47, 16  ;;  %v1871_v7 = vshll.u32 %v1658_v47, 16  ;;  %v1842_v4 = vor.u32 %v1840_v62, %v1839_v14  ;;  %v387_v36 = vsel %vm6684_vm6, 0, %v386_v19  ;;  %v6123_v14 = vld [vmem:[%s7703_s3 + $0x1d8] sm:$0xff]  }
  0xac   : > { %v1069_v46 = vrot.slane %v1067_v23, 7  ;;  %v1781_v37 = vsel %vm360_vm1, %v6750_v29, %v1780_v28  ;;  %v1866_v13 = vrot.slane %v1864_v16, 7  ;;  %388 = vst [vmem:[#allocation2 + $0xe8] sm:$0x1] %v387_v36  ;;  %v390_v48 = vsel %vm6684_vm6, 0, %v389_v27 }
  0xad   : > { %2579 = vmatmul.mubr.bf16.gmra.mrb[60].mxu0 %v6741_v44  ;;  %v6147_v44 = vld [vmem:[%s7703_s3 + $0x200] sm:$0xff]   ;;  %v1870_v30 = vrot.slane %v1868_v18, 7  ;;  %v6801_v42 = vsel %vm360_vm1, %v6764_v41, %v1811_v22  ;;  %v1011_v33 = vsel %vm360_vm1, %v6764_v41, %v1010_v25  ;;  %v655_v29 = vld [vmem:[#allocation2 + $0xb8] sm:$0x1]  ;;  %v1662_v43 = vrot.slane %v6149_v50, 1 }
  0xae   : > { %5751 = vmatmul.mubr.bf16.vlgmr.msra.gmra.mrb[64].mxu1 %v918_v35  ;;  %5702 = vmatprep.mubr.bf16.mxu0 %v1719_v21  ;;  %v830_v35 = vrot.slane %v6148_v10, 1  ;;  %v384_v21 = vsel %vm6684_vm6, 0, %v383_v11  ;;  %v1487_v51 = vld [vmem:[#allocation2 + $0xb8] sm:$0x1]  ;;  %v6806_v53 = vrot.slane %v6537_v20, 1  ;;  %v1072_v38 = vor.u32 %v1070_v34, %v1069_v46 }
  0xaf   : > { %5754 = vmatprep.mubr.bf16.mxu1 %v949_v45  ;;  %5783 = vmatpush3.bf16.msra.mxu1 %v6147_v44  ;;  %385 = vst [vmem:[#allocation2 + $0xd0] sm:$0x1] %v384_v21  ;;  %391 = vst [vmem:[#allocation2 + $0x100] sm:$0x1] %v390_v48  ;;  %v1873_v56 = vor.u32 %v1871_v7, %v1870_v30  ;;  %v831_v55 = vrot.slane %v655_v29, 1  ;;  %v1660_v57 = vrot.slane %v1487_v51, 1 }
  0xb0   : > { %5784 = vmatprep.subr.bf16.mxu1 %v6119_v58  ;;  %v1094_v45 = vshrl.u32 %v830_v35, 16  ;;  %v6125_v41 = vld [vmem:[%s7703_s3 + $0x218] sm:$0xff]   ;;  %v1042_v20 = vsel %vm360_vm1, %v1034_v12, %v1041_v2  ;;  %v1156_v60 = vshrl.u32 %v6806_v53, 16  ;;  %v393_v5 = vsel %vm6684_vm6, 0, %v392_v8  ;;  %v6128_v2 = vld [vmem:[%s7703_s3 + $0x220] sm:$0xff]   ;;  %v6131_v51 = vld [vmem:[%s7703_s3 + $0x228] sm:$0xff]  }
  0xb1   : > { %v832_v1 = vsel %vm808_vm4, %v830_v35, %v831_v55  ;;  %v1661_v28 = vsel %vm808_vm4, %v830_v35, %v1660_v57  ;;  %v6831_v9 = vrot.slane %v6551_v54, 1  ;;  %394 = vst [vmem:[#allocation2 + $0x118] sm:$0x1] %v393_v5  ;;  %v6834_v11 = vsel %vm360_vm1, %v1866_v13, %v1873_v56  ;;  %v6124_v8 = vld [vmem:[%s7703_s3 + $0x198] sm:$0xff]   ;;  %v6126_v29 = vld [vmem:[%s7703_s3 + $0x1e0] sm:$0xff]  }
  0xb2   : > { %v1098_v0 = vshrl.u32 %v832_v1, 16  ;;  %v1101_v62 = vshll.u32 %v832_v1, 16  ;;  %v1899_v47 = vshrl.u32 %v1661_v28, 16  ;;  %v1073_v44 = vsel %vm360_vm1, %v1866_v13, %v1072_v38 }
  0xb3   : > { %5785 = vmatpush3.bf16.msra.mxu1 %v6119_v58  ;;  %v1843_v58 = vsel %vm360_vm1, %v1034_v12, %v1842_v4  ;;  %v1902_v12 = vshll.u32 %v1661_v28, 16  ;;  %v6841_v19 = vrot.slane %v6584_v39, 1  ;;  %v657_v23 = vld [vmem:[#allocation2 + $0xe8] sm:$0x1]  ;;  %v6845_v30 = vrot.slane %v1156_v60, 7 }
  0xb4   : > { %5786 = vmatprep.subr.bf16.mxu1 %v6122_v26  ;;  %v1100_v54 = vrot.slane %v1098_v0, 7  ;;  %v1901_v22 = vrot.slane %v1899_v47, 7  ;;  %v837_v27 = vrot.slane %v657_v23, 1  ;;  %v1489_v34 = vld [vmem:[#allocation2 + $0xe8] sm:$0x1]  ;;  %v1988_v10 = vshrl.u32 %v6831_v9, 16 }
  0xb5   : > { %5703 = vmatmul.mubr.bf16.vlgmr.msra.gmra.mrb[64].mxu0 %v6761_v40  ;;  %v1926_v40 = vshrl.u32 %v1662_v43, 16  ;;  %v1218_v4 = vshrl.u32 %v6841_v19, 16 }
  0xb6   : > { %5755 = vmatmul.mubr.bf16.gmra.mrb[68].mxu1 %v980_v3  ;;  %5534 = vmatpush3.bf16.msra.mxu0 %v6115_v59  ;;  %v6822_v3 = vrot.slane %v1094_v45, 7  ;;  %v1488_v16 = vld [vmem:[#allocation2 + $0xd0] sm:$0x1]  ;;  %v1103_v35 = vor.u32 %v1101_v62, %v1100_v54  ;;  %v1490_v59 = vld [vmem:[#allocation2 + $0x100] sm:$0x1]  ;;  %v1904_v48 = vor.u32 %v1902_v12, %v1901_v22 }
  0xb7   : > { %5706 = vmatprep.mubr.bf16.mxu0 %v1781_v37  ;;  %5535 = vmatprep.subr.bf16.mxu0 %v6117_v31  ;;  %v656_v18 = vld [vmem:[#allocation2 + $0xd0] sm:$0x1]  ;;  %v1663_v25 = vrot.slane %v1488_v16, 1  ;;  %v658_v13 = vld [vmem:[#allocation2 + $0x100] sm:$0x1] }
  0xb8   : > { %5758 = vmatprep.mubr.bf16.mxu1 %v1011_v33  ;;  %5787 = vmatpush3.bf16.msra.mxu1 %v6122_v26  ;;  %v834_v7 = vrot.slane %v656_v18, 1  ;;  %v6843_v26 = vrot.slane %v1926_v40, 7  ;;  %v1104_v45 = vsel %vm360_vm1, %v6822_v3, %v1103_v35  ;;  %v838_v33 = vsel %vm808_vm4, %v6806_v53, %v837_v27  ;;  %v659_v55 = vld [vmem:[#allocation2 + $0x118] sm:$0x1]  ;;  %v6134_v22 = vld [vmem:[%s7703_s3 + $0x230] sm:$0xff]  }
  0xb9   : > { %5788 = vmatprep.subr.bf16.mxu1 %v6125_v41  ;;  %v1664_v21 = vsel %vm808_vm4, %v1662_v43, %v1663_v25  ;;  %v1160_v56 = vshrl.u32 %v838_v33, 16  ;;  %v1163_v38 = vshll.u32 %v838_v33, 16  ;;  %v1491_v12 = vld [vmem:[#allocation2 + $0x118] sm:$0x1] }
  0xba   : > { %5536 = vmatpush3.bf16.msra.mxu0 %v6118_v49  ;;  %v835_v39 = vsel %vm808_vm4, %v1662_v43, %v834_v7  ;;  %v1930_v46 = vshrl.u32 %v1664_v21, 16  ;;  %v1933_v36 = vshll.u32 %v1664_v21, 16  ;;  %v840_v49 = vrot.slane %v658_v13, 1 }
  0xbb   : > { %5537 = vmatprep.subr.bf16.mxu0 %v6120_v61  ;;  %v1129_v37 = vshrl.u32 %v835_v39, 16  ;;  %v1132_v31 = vshll.u32 %v835_v39, 16  ;;  %v1162_v60 = vrot.slane %v1160_v56, 7  ;;  %v1672_v39 = vrot.slane %v1491_v12, 1 }
  0xbc   : > { %5789 = vmatpush3.bf16.msra.mxu1 %v6125_v41  ;;  %v1932_v50 = vrot.slane %v1930_v46, 7  ;;  %v1669_v41 = vrot.slane %v1490_v59, 1  ;;  %v841_v5 = vsel %vm808_vm4, %v6831_v9, %v840_v49  ;;  %v6130_v46 = vld [vmem:[%s7703_s3 + $0x1a8] sm:$0xff]   ;;  %v6934_v49 = vld [vmem:[#allocation2 + $0x50] sm:$0xff] }
  0xbd   : > { %5707 = vmatmul.mubr.bf16.gmra.mrb[68].mxu0 %v6801_v42  ;;  %v1666_v42 = vrot.slane %v1489_v34, 1  ;;  %v1131_v43 = vrot.slane %v1129_v37, 7  ;;  %5790 = vmatprep.subr.bf16.mxu1 %v6128_v2  ;;  %v1165_v62 = vor.u32 %v1163_v38, %v1162_v60  ;;  %v1191_v18 = vshrl.u32 %v841_v5, 16  ;;  %v398_v34 = vld [vmem:[#allocation2 + $0x148] sm:$0x1]  ;;  %v6133_v38 = vld [vmem:[%s7703_s3 + $0x1b0] sm:$0xff]  }
  0xbe   : > { %5759 = vmatmul.mubr.bf16.gmra.mrb[72].mxu1 %v1042_v20  ;;  %5710 = vmatprep.mubr.bf16.mxu0 %v1843_v58  ;;  %v843_v20 = vrot.slane %v659_v55, 1  ;;  %v1935_v58 = vor.u32 %v1933_v36, %v1932_v50  ;;  %v1670_v28 = vsel %vm808_vm4, %v6831_v9, %v1669_v41  ;;  %v6883_v9 = vrot.slane %v1988_v10, 7  ;;  %v401_v36 = vld [vmem:[#allocation2 + $0x160] sm:$0x1]  ;;  %v6135_v60 = vld [vmem:[%s7703_s3 + $0x1f8] sm:$0xff]  }
  0xbf   : > { %5538 = vmatpush3.bf16.msra.mxu0 %v6121_v6  ;;  %5762 = vmatprep.mubr.bf16.mxu1 %v1073_v44  ;;  %v1667_v57 = vsel %vm808_vm4, %v6806_v53, %v1666_v42  ;;  %v1134_v40 = vor.u32 %v1132_v31, %v1131_v43  ;;  %v1905_v6 = vsel %vm360_vm1, %v6822_v3, %v1904_v48  ;;  %v6127_v44 = vld [vmem:[%s7703_s3 + $0x1a0] sm:$0xff]   ;;  %v1992_v16 = vshrl.u32 %v1670_v28, 16  ;;  %v6129_v3 = vld [vmem:[%s7703_s3 + $0x1e8] sm:$0xff]   ;;  %v404_v48 = vld [vmem:[#allocation2 + $0x178] sm:$0x1] }
  0xc0   : > { %5539 = vmatprep.subr.bf16.mxu0 %v6123_v14  ;;  %v1961_v61 = vshrl.u32 %v1667_v57, 16  ;;  %5791 = vmatpush3.bf16.msra.mxu1 %v6128_v2  ;;  %v1964_v1 = vshll.u32 %v1667_v57, 16  ;;  %v844_v53 = vsel %vm808_vm4, %v6841_v19, %v843_v20  ;;  %v395_v14 = vld [vmem:[#allocation2 + $0x130] sm:$0x1]  ;;  %v1194_v54 = vshll.u32 %v841_v5, 16 }
  0xc1   : > { %5792 = vmatprep.subr.bf16.mxu1 %v6131_v51  ;;  %v1135_v0 = vsel %vm360_vm1, %v6843_v26, %v1134_v40  ;;  %v1936_v25 = vsel %vm360_vm1, %v6843_v26, %v1935_v58  ;;  %v1995_v23 = vshll.u32 %v1670_v28, 16  ;;  %v1222_v27 = vshrl.u32 %v844_v53, 16 }
  0xc2   : > { %v1963_v47 = vrot.slane %v1961_v61, 7  ;;  %v1994_v10 = vrot.slane %v1992_v16, 7  ;;  %v1193_v35 = vrot.slane %v1191_v18, 7  ;;  %v1225_v21 = vshll.u32 %v844_v53, 16  ;;  %v6947_v61 = vld [vmem:[#allocation2 + $0x38] sm:$0xff] }
  0xc3   : > { %5540 = vmatpush3.bf16.msra.mxu0 %v6124_v8  ;;  %v1166_v59 = vsel %vm360_vm1, %v6845_v30, %v1165_v62  ;;  %v1224_v2 = vrot.slane %v1222_v27, 7  ;;  %v6899_v26 = vrot.slane %v6602_v63, 1  ;;  %v1220_v31 = vrot.slane %v1218_v4, 7  ;;  %v6132_v63 = vld [vmem:[%s7703_s3 + $0x1f0] sm:$0xff]   ;;  %v6137_v8 = vld [vmem:[%s7703_s3 + $0x238] sm:$0xff]  }
  0xc4   : > { %5541 = vmatprep.subr.bf16.mxu0 %v6126_v29  ;;  %v1966_v7 = vor.u32 %v1964_v1, %v1963_v47  ;;  %5793 = vmatpush3.bf16.msra.mxu1 %v6131_v51  ;;  %v1196_v37 = vor.u32 %v1194_v54, %v1193_v35  ;;  %v1673_v13 = vsel %vm808_vm4, %v6841_v19, %v1672_v39  ;;  %v407_v29 = vld [vmem:[#allocation2 + $0x190] sm:$0x1]  ;;  %v6920_v43 = vrot.slane %v6620_v32, 1  ;;  %v3247_v32 = vld [vmem:[#allocation2 + $0x40] sm:$0x1] }
  0xc5   : > { %5711 = vmatmul.mubr.bf16.gmra.mrb[72].mxu0 %v6834_v11  ;;  %v396_v11 = vsel %vm6684_vm6, 0, %v395_v14  ;;  %5794 = vmatprep.subr.bf16.mxu1 %v6134_v22  ;;  %v2023_v33 = vshrl.u32 %v1673_v13, 16  ;;  %v2026_v19 = vshll.u32 %v1673_v13, 16  ;;  %v2050_v42 = vshrl.u32 %v6899_v26, 16 }
  0xc6   : > { %5763 = vmatmul.mubr.bf16.gmra.mrb[76].mxu1 %v1104_v45  ;;  %5714 = vmatprep.mubr.bf16.mxu0 %v1905_v6  ;;  %397 = vst [vmem:[#allocation2 + $0x130] sm:$0x1] %v396_v11  ;;  %v399_v45 = vsel %vm6684_vm6, 0, %v398_v34  ;;  %v1967_v4 = vsel %vm360_vm1, %v6845_v30, %v1966_v7  ;;  %v1997_v51 = vor.u32 %v1995_v23, %v1994_v10  ;;  %v402_v56 = vsel %vm6684_vm6, 0, %v401_v36  ;;  %v6136_v6 = vld [vmem:[%s7703_s3 + $0x1b8] sm:$0xff]  }
  0xc7   : > { %5766 = vmatprep.mubr.bf16.mxu1 %v1135_v0  ;;  %5542 = vmatpush3.bf16.msra.mxu0 %v6127_v44  ;;  %400 = vst [vmem:[#allocation2 + $0x148] sm:$0x1] %v399_v45  ;;  %v1227_v50 = vor.u32 %v1225_v21, %v1224_v2  ;;  %v1197_v30 = vsel %vm360_vm1, %v6883_v9, %v1196_v37  ;;  %v2025_v55 = vrot.slane %v2023_v33, 7  ;;  %v6929_v57 = vrot.slane %v2050_v42, 7 }
  0xc8   : > { %5543 = vmatprep.subr.bf16.mxu0 %v6129_v3  ;;  %403 = vst [vmem:[#allocation2 + $0x160] sm:$0x1] %v402_v56  ;;  %v6932_v41 = vrot.slane %v6642_v17, 1  ;;  %5795 = vmatpush3.bf16.msra.mxu1 %v6134_v22  ;;  %v1280_v20 = vshrl.u32 %v6920_v43, 16  ;;  %v405_v58 = vsel %vm6684_vm6, 0, %v404_v48  ;;  %v6940_v40 = vrot.slane %v6661_v52, 1 }
  0xc9   : > { %v408_v17 = vsel %vm6684_vm6, 0, %v407_v29  ;;  %5796 = vmatprep.subr.bf16.mxu1 %v6137_v8  ;;  %v2028_v1 = vor.u32 %v2026_v19, %v2025_v55  ;;  %406 = vst [vmem:[#allocation2 + $0x178] sm:$0x1] %v405_v58  ;;  %v1686_v52 = vrot.slane %v6677_v15, 1  ;;  %v3407_v5 = vrot.slane %v6947_v61, 1 }
  0xca   : > { %v2112_v28 = vshrl.u32 %v6932_v41, 16  ;;  %409 = vst [vmem:[#allocation2 + $0x190] sm:$0x1] %v408_v17  ;;  %v6952_v53 = vrot.slane %v1280_v20, 7  ;;  %v1342_v24 = vshrl.u32 %v6940_v40, 16  ;;  %v3408_v0 = vrot.slane %v3247_v32, 1 }
  0xcb   : > { %5544 = vmatpush3.bf16.msra.mxu0 %v6130_v46  ;;  %v3410_v62 = vrot.slane %v6934_v49, 1  ;;  %v1998_v47 = vsel %vm360_vm1, %v6883_v9, %v1997_v51  ;;  %v1228_v44 = vsel %vm360_vm1, %v1220_v31, %v1227_v50  ;;  %v6966_v18 = vshrl.u32 %v1686_v52, 16 }
  0xcc   : > { %5545 = vmatprep.subr.bf16.mxu0 %v6132_v63  ;;  %v6962_v16 = vrot.slane %v2112_v28, 7  ;;  %5797 = vmatpush3.bf16.msra.mxu1 %v6137_v8  ;;  %v2029_v54 = vsel %vm360_vm1, %v1220_v31, %v2028_v1  ;;  %v6970_v9 = vsel %vm808_vm4, %v3407_v5, %v3408_v0  ;;  %v6972_v34 = vrot.slane %v1342_v24, 7 }
  0xcd   : > { %5715 = vmatmul.mubr.bf16.gmra.mrb[76].mxu0 %v1936_v25  ;;  %v1492_v12 = vld [vmem:[#allocation2 + $0x130] sm:$0x1]  ;;  %v2176_v10 = vrot.slane %v6966_v18, 7  ;;  %v6979_v2 = vshrl.u32 %v3407_v5, 16  ;;  %v3479_v11 = vshrl.u32 %v6970_v9, 16  ;;  %v3267_v15 = vshrl.u32 %v6947_v61, 16 }
  0xce   : > { %5767 = vmatmul.mubr.bf16.gmra.mrb[80].mxu1 %v1166_v59  ;;  %5718 = vmatprep.mubr.bf16.mxu0 %v1967_v4  ;;  %v660_v14 = vld [vmem:[#allocation2 + $0x130] sm:$0x1]  ;;  %v1675_v3 = vrot.slane %v1492_v12, 1  ;;  %v661_v25 = vld [vmem:[#allocation2 + $0x148] sm:$0x1] }
  0xcf   : > { %5770 = vmatprep.mubr.bf16.mxu1 %v1197_v30  ;;  %5546 = vmatpush3.bf16.msra.mxu0 %v6133_v38  ;;  %v846_v22 = vrot.slane %v660_v14, 1  ;;  %v1493_v7 = vld [vmem:[#allocation2 + $0x148] sm:$0x1]  ;;  %v849_v23 = vrot.slane %v661_v25, 1  ;;  %v1494_v39 = vld [vmem:[#allocation2 + $0x160] sm:$0x1] }
  0xd0   : > { %5547 = vmatprep.subr.bf16.mxu0 %v6135_v60  ;;  %v1678_v27 = vrot.slane %v1493_v7, 1  ;;  %v1676_v35 = vsel %vm808_vm4, %v6899_v26, %v1675_v3  ;;  %v662_v59 = vld [vmem:[#allocation2 + $0x160] sm:$0x1]  ;;  %v1681_v63 = vrot.slane %v1494_v39, 1  ;;  %v663_v30 = vld [vmem:[#allocation2 + $0x178] sm:$0x1] }
  0xd1   : > { %v847_v21 = vsel %vm808_vm4, %v6899_v26, %v846_v22  ;;  %v2054_v46 = vshrl.u32 %v1676_v35, 16  ;;  %v2057_v36 = vshll.u32 %v1676_v35, 16  ;;  %v850_v13 = vsel %vm808_vm4, %v6920_v43, %v849_v23  ;;  %v1495_v55 = vld [vmem:[#allocation2 + $0x178] sm:$0x1]  ;;  %v1496_v17 = vld [vmem:[#allocation2 + $0x190] sm:$0x1] }
  0xd2   : > { %v1253_v37 = vshrl.u32 %v847_v21, 16  ;;  %v1256_v31 = vshll.u32 %v847_v21, 16  ;;  %v1679_v45 = vsel %vm808_vm4, %v6920_v43, %v1678_v27  ;;  %v852_v48 = vrot.slane %v662_v59, 1  ;;  %v3248_v21 = vld [vmem:[#allocation2 + $0x58] sm:$0x1] }
  0xd3   : > { %5548 = vmatpush3.bf16.msra.mxu0 %v6136_v6  ;;  %v2056_v26 = vrot.slane %v2054_v46, 7  ;;  %v1284_v4 = vshrl.u32 %v850_v13, 16  ;;  %v1287_v33 = vshll.u32 %v850_v13, 16  ;;  %v2085_v19 = vshrl.u32 %v1679_v45, 16 }
  0xd4   : > { %v1255_v8 = vrot.slane %v1253_v37, 7  ;;  %v2088_v42 = vshll.u32 %v1679_v45, 16  ;;  %v1682_v29 = vsel %vm808_vm4, %v6932_v41, %v1681_v63  ;;  %v853_v51 = vsel %vm808_vm4, %v6932_v41, %v852_v48 }
  0xd5   : > { %5719 = vmatmul.mubr.bf16.gmra.mrb[80].mxu0 %v1998_v47  ;;  %v2059_v50 = vor.u32 %v2057_v36, %v2056_v26  ;;  %v1286_v43 = vrot.slane %v1284_v4, 7  ;;  %v2116_v38 = vshrl.u32 %v1682_v29, 16  ;;  %v2087_v32 = vrot.slane %v2085_v19, 7 }
  0xd6   : > { %5771 = vmatmul.mubr.bf16.gmra.mrb[84].mxu1 %v1228_v44  ;;  %5722 = vmatprep.mubr.bf16.mxu0 %v2029_v54  ;;  %v1258_v56 = vor.u32 %v1256_v31, %v1255_v8  ;;  %v2119_v20 = vshll.u32 %v1682_v29, 16  ;;  %v1315_v58 = vshrl.u32 %v853_v51, 16  ;;  %v1318_v60 = vshll.u32 %v853_v51, 16  ;;  %v7022_v51 = vld [vmem:[#allocation2 + $0x68] sm:$0xff] }
  0xd7   : > { %v2060_v1 = vsel %vm360_vm1, %v6929_v57, %v2059_v50  ;;  %v1289_v5 = vor.u32 %v1287_v33, %v1286_v43  ;;  %v2118_v24 = vrot.slane %v2116_v38, 7  ;;  %v2090_v41 = vor.u32 %v2088_v42, %v2087_v32  ;;  %v3215_v33 = vld [vmem:[#allocation2 + $0x30] sm:$0x80]  ;;  %v3249_v38 = vld [vmem:[#allocation2 + $0x70] sm:$0x1] }
  0xd8   : > { %v1259_v28 = vsel %vm360_vm1, %v6929_v57, %v1258_v56  ;;  %v1317_v6 = vrot.slane %v1315_v58, 7  ;;  %v855_v0 = vrot.slane %v663_v30, 1  ;;  %v1684_v47 = vrot.slane %v1495_v55, 1 }
  0xd9   : > { %5774 = vmatprep.mubr.bf16.mxu1 %v1259_v28  ;;  %v1290_v44 = vsel %vm360_vm1, %v6952_v53, %v1289_v5  ;;  %v2121_v12 = vor.u32 %v2119_v20, %v2118_v24  ;;  %v1687_v14 = vrot.slane %v1496_v17, 1  ;;  %v3477_v54 = vrot.slane %v6979_v2, 7  ;;  %v7031_v20 = vld [vmem:[#allocation2 + $0x80] sm:$0xff]  ;;  %v3250_v28 = vld [vmem:[#allocation2 + $0x88] sm:$0x1] }
  0xda   : > { %v2091_v3 = vsel %vm360_vm1, %v6952_v53, %v2090_v41  ;;  %v1320_v22 = vor.u32 %v1318_v60, %v1317_v6  ;;  %v856_v57 = vsel %vm808_vm4, %v6940_v40, %v855_v0  ;;  %v1685_v25 = vsel %vm808_vm4, %v6940_v40, %v1684_v47 }
  0xdb   : > { %v2122_v7 = vsel %vm360_vm1, %v6962_v16, %v2121_v12  ;;  %v1346_v23 = vshrl.u32 %v856_v57, 16  ;;  %v1349_v27 = vshll.u32 %v856_v57, 16  ;;  %v2147_v35 = vshrl.u32 %v1685_v25, 16 }
  0xdc   : > { %v1321_v53 = vsel %vm360_vm1, %v6962_v16, %v1320_v22  ;;  %v2150_v39 = vshll.u32 %v1685_v25, 16  ;;  %v1688_v59 = vsel %vm808_vm4, %v1686_v52, %v1687_v14  ;;  %v3481_v2 = vrot.slane %v3479_v11, 7  ;;  %v3217_v25 = vld [vmem:[#allocation2 + $0x48] sm:$0x80] }
  0xdd   : > { %5723 = vmatmul.mubr.bf16.gmra.mrb[84].mxu0 %v2060_v1  ;;  %v1348_v40 = vrot.slane %v1346_v23, 7  ;;  %v2149_v46 = vrot.slane %v2147_v35, 7  ;;  %v2178_v36 = vshrl.u32 %v1688_v59, 16  ;;  %v2181_v37 = vshll.u32 %v1688_v59, 16 }
  0xde   : > { %5775 = vmatmul.mubr.bf16.gmra.mrb[88].mxu1 %v1290_v44  ;;  %5726 = vmatprep.mubr.bf16.mxu0 %v2091_v3  ;;  %v3482_v31 = vshll.u32 %v6970_v9, 16  ;;  %v3411_v13 = vrot.slane %v3248_v21, 1  ;;  %v3506_v45 = vshrl.u32 %v3410_v62, 16  ;;  %v3264_v63 = vshll.u32 %v6947_v61, 16  ;;  %v7040_v21 = vld [vmem:[#allocation2 + $0x98] sm:$0xff] }
  0xdf   : > { %5778 = vmatprep.mubr.bf16.mxu1 %v1321_v53  ;;  %v1351_v16 = vor.u32 %v1349_v27, %v1348_v40  ;;  %v2152_v48 = vor.u32 %v2150_v39, %v2149_v46  ;;  %v2180_v26 = vrot.slane %v2178_v36, 7  ;;  %v3456_v55 = vshrl.u32 %v3215_v33, 16  ;;  %v3251_v53 = vld [vmem:[#allocation2 + $0xa0] sm:$0x1] }
  0xe0   : > { %v3484_v52 = vor.u32 %v3482_v31, %v3481_v2  ;;  %v3412_v11 = vsel %vm808_vm4, %v3410_v62, %v3411_v13  ;;  %v3508_v8 = vrot.slane %v3506_v45, 7  ;;  %v3266_v4 = vrot.slane %v3264_v63, 1 }
  0xe1   : > { %v1352_v9 = vsel %vm360_vm1, %v6972_v34, %v1351_v16  ;;  %v2153_v19 = vsel %vm360_vm1, %v6972_v34, %v2152_v48  ;;  %v2183_v42 = vor.u32 %v2181_v37, %v2180_v26  ;;  %v3510_v29 = vshrl.u32 %v3412_v11, 16  ;;  %v4594_v34 = vld [vmem:[%s7706_s6] sm:$0x3] }
  0xe2   : > { %v3485_v61 = vsel %vm360_vm1, %v3477_v54, %v3484_v52  ;;  %v3513_v50 = vshll.u32 %v3412_v11, 16  ;;  %v3269_v56 = vor.u32 %v3267_v15, %v3266_v4  ;;  %v3463_v43 = vshrl.u32 %v3266_v4, 16  ;;  %6056 = vmatprep.subr.msk.bf16.mxu1 %vm4644_vm7, %v4594_v34 }
  0xe3   : > { %v2184_v62 = vsel %vm360_vm1, %v2176_v10, %v2183_v42  ;;  %v3512_v30 = vrot.slane %v3510_v29, 7  ;;  %v3459_v32 = vrot.slane %v3267_v15, 7  ;;  %v3413_v1 = vrot.slane %v7022_v51, 1 }
  0xe4   : > { %v3465_v58 = vrot.slane %v3463_v43, 7  ;;  %v3467_v60 = vshrl.u32 %v3269_v56, 16  ;;  %v3470_v17 = vshll.u32 %v3269_v56, 16  ;;  %v3458_v5 = vrot.slane %v3456_v55, 7 }
  0xe5   : > { %5727 = vmatmul.mubr.bf16.gmra.mrb[88].mxu0 %v2122_v7  ;;  %v3515_v18 = vor.u32 %v3513_v50, %v3512_v30  ;;  %v3460_v10 = vor.u32 %v3459_v32, %v3264_v63  ;;  %v3414_v24 = vrot.slane %v3249_v38, 1  ;;  %v3537_v6 = vshrl.u32 %v3413_v1, 16  ;;  %v3219_v50 = vld [vmem:[#allocation2 + $0x60] sm:$0x80]  ;;  %v7050_v30 = vld [vmem:[#allocation2 + $0xc8] sm:$0xff] }
  0xe6   : > { %5779 = vmatmul.mubr.bf16.gmra.mrb[92].mxu1 %v1352_v9  ;;  %5730 = vmatprep.mubr.bf16.mxu0 %v2153_v19  ;;  %v3469_v41 = vrot.slane %v3467_v60, 7  ;;  %v3416_v0 = vrot.slane %v7031_v20, 1  ;;  %v3417_v14 = vrot.slane %v3250_v28, 1  ;;  %v4646_v27 = vsel %vm4644_vm7, %v4594_v34, 0  ;;  %v7047_v9 = vld [vmem:[#allocation2 + $0xb0] sm:$0xff] }
  0xe7   : > { %5798 = vmatprep.mubr.bf16.mxu1 %v3485_v61  ;;  %v3516_v47 = vsel %vm360_vm1, %v3508_v8, %v3515_v18  ;;  %v3461_v44 = vsel %vm360_vm1, %v3458_v5, %v3460_v10  ;;  %v3415_v12 = vsel %vm808_vm4, %v3413_v1, %v3414_v24  ;;  %v3539_v3 = vrot.slane %v3537_v6, 7  ;;  %v7058_v6 = vld [vmem:[#allocation2 + $0xe0] sm:$0xff] }
  0xe8   : > { %v3472_v54 = vor.u32 %v3470_v17, %v3469_v41  ;;  %v3541_v22 = vshrl.u32 %v3415_v12, 16  ;;  %v3544_v57 = vshll.u32 %v3415_v12, 16  ;;  %v3418_v7 = vsel %vm808_vm4, %v3416_v0, %v3417_v14 }
  0xe9   : > { %v3568_v23 = vshrl.u32 %v3416_v0, 16  ;;  %v3271_v35 = vshll.u32 %v6934_v49, 16  ;;  %v3572_v2 = vshrl.u32 %v3418_v7, 16  ;;  %v3575_v40 = vshll.u32 %v3418_v7, 16 }
  0xea   : > { %v3473_v39 = vsel %vm360_vm1, %v3465_v58, %v3472_v54  ;;  %v3543_v59 = vrot.slane %v3541_v22, 7  ;;  %v3274_v37 = vshrl.u32 %v6934_v49, 16  ;;  %v3487_v31 = vshrl.u32 %v3217_v25, 16  ;;  %v3252_v49 = vld [vmem:[#allocation2 + $0xb8] sm:$0x1] }
  0xeb   : > { %v3570_v46 = vrot.slane %v3568_v23, 7  ;;  %v3273_v36 = vrot.slane %v3271_v35, 1  ;;  %v3574_v45 = vrot.slane %v3572_v2, 7  ;;  %v3419_v63 = vrot.slane %v7040_v21, 1  ;;  %v3253_v54 = vld [vmem:[#allocation2 + $0xd0] sm:$0x1] }
  0xec   : > { %v3546_v13 = vor.u32 %v3544_v57, %v3543_v59  ;;  %v3420_v16 = vrot.slane %v3251_v53, 1  ;;  %v3489_v15 = vrot.slane %v3487_v31, 7  ;;  %v3490_v52 = vrot.slane %v3274_v37, 7  ;;  %v3254_v53 = vld [vmem:[#allocation2 + $0xe8] sm:$0x1] }
  0xed   : > { %5731 = vmatmul.mubr.bf16.gmra.mrb[92].mxu0 %v2184_v62  ;;  %v3276_v48 = vor.u32 %v3274_v37, %v3273_v36  ;;  %v3494_v26 = vshrl.u32 %v3273_v36, 16  ;;  %v3577_v8 = vor.u32 %v3575_v40, %v3574_v45  ;;  %v3599_v33 = vshrl.u32 %v3419_v63, 16 }
  0xee   : > { %5799 = vmatmul.mubr.bf16.vlgmr.msra.gmra.mrb[64].mxu1 %v3516_v47  ;;  %4224 = vmatprep.mubr.bf16.mxu0 %v3473_v39  ;;  %v3547_v11 = vsel %vm360_vm1, %v3539_v3, %v3546_v13  ;;  %v3421_v4 = vsel %vm808_vm4, %v3419_v63, %v3420_v16  ;;  %v3491_v61 = vor.u32 %v3490_v52, %v3271_v35  ;;  %v3422_v34 = vrot.slane %v7047_v9, 1 }
  0xef   : > { %5831 = vmatpush3.bf16.msra.mxu1 %v4646_v27  ;;  %5802 = vmatprep.mubr.bf16.mxu1 %v3547_v11  ;;  %v3496_v19 = vrot.slane %v3494_v26, 7  ;;  %v3498_v42 = vshrl.u32 %v3276_v48, 16  ;;  %v3501_v29 = vshll.u32 %v3276_v48, 16  ;;  %v3578_v56 = vsel %vm360_vm1, %v3570_v46, %v3577_v8  ;;  %v3221_v8 = vld [vmem:[#allocation2 + $0x78] sm:$0x80] }
  0xf0   : > { %v3601_v43 = vrot.slane %v3599_v33, 7  ;;  %v3603_v38 = vshrl.u32 %v3421_v4, 16  ;;  %v3606_v62 = vshll.u32 %v3421_v4, 16  ;;  %v3492_v32 = vsel %vm360_vm1, %v3489_v15, %v3491_v61 }
  0xf1   : > { %v3500_v55 = vrot.slane %v3498_v42, 7  ;;  %v3423_v58 = vrot.slane %v3252_v49, 1  ;;  %v3278_v17 = vshll.u32 %v7022_v51, 16  ;;  %v3281_v1 = vshrl.u32 %v7022_v51, 16  ;;  %v7071_v42 = vld [vmem:[#allocation2 + $0xf8] sm:$0xff] }
  0xf2   : > { %v3605_v60 = vrot.slane %v3603_v38, 7  ;;  %v3518_v28 = vshrl.u32 %v3219_v50, 16  ;;  %v3630_v10 = vshrl.u32 %v3422_v34, 16  ;;  %v3425_v24 = vrot.slane %v7050_v30, 1 }
  0xf3   : > { %v3503_v18 = vor.u32 %v3501_v29, %v3500_v55  ;;  %v3424_v5 = vsel %vm808_vm4, %v3422_v34, %v3423_v58  ;;  %v3280_v14 = vrot.slane %v3278_v17, 1  ;;  %v3521_v57 = vrot.slane %v3281_v1, 7  ;;  %v7075_v34 = vld [vmem:[#allocation2 + $0x110] sm:$0xff] }
  0xf4   : > { %v3608_v0 = vor.u32 %v3606_v62, %v3605_v60  ;;  %v3634_v47 = vshrl.u32 %v3424_v5, 16  ;;  %v3637_v12 = vshll.u32 %v3424_v5, 16  ;;  %v3632_v22 = vrot.slane %v3630_v10, 7 }
  0xf5   : > { %4225 = vmatmul.mubr.bf16.vlgmr.msra.gmra.mrb[96].mxu0 %v3461_v44  ;;  %v3504_v51 = vsel %vm360_vm1, %v3496_v19, %v3503_v18  ;;  %v3520_v44 = vrot.slane %v3518_v28, 7  ;;  %v3283_v27 = vor.u32 %v3281_v1, %v3280_v14  ;;  %v3525_v35 = vshrl.u32 %v3280_v14, 16 }
  0xf6   : > { %5803 = vmatmul.mubr.bf16.gmra.mrb[68].mxu1 %v3578_v56  ;;  %4232 = vmatprep.mubr.bf16.mxu0 %v3504_v51  ;;  %v3609_v7 = vsel %vm360_vm1, %v3601_v43, %v3608_v0  ;;  %v3636_v23 = vrot.slane %v3634_v47, 7  ;;  %v3522_v59 = vor.u32 %v3521_v57, %v3278_v17  ;;  %v3426_v2 = vrot.slane %v3253_v54, 1  ;;  %v3255_v43 = vld [vmem:[#allocation2 + $0x100] sm:$0x1] }
  0xf7   : > { %5806 = vmatprep.mubr.bf16.mxu1 %v3609_v7  ;;  %v3661_v40 = vshrl.u32 %v3425_v24, 16  ;;  %v3428_v46 = vrot.slane %v7058_v6, 1  ;;  %v3527_v37 = vrot.slane %v3525_v35, 7  ;;  %v3529_v31 = vshrl.u32 %v3283_v27, 16  ;;  %v7083_v7 = vld [vmem:[#allocation2 + $0x128] sm:$0xff] }
  0xf8   : > { %v3639_v36 = vor.u32 %v3637_v12, %v3636_v23  ;;  %v3532_v13 = vshll.u32 %v3283_v27, 16  ;;  %v3523_v45 = vsel %vm360_vm1, %v3520_v44, %v3522_v59  ;;  %v3427_v63 = vsel %vm808_vm4, %v3425_v24, %v3426_v2 }
  0xf9   : > { %v3663_v16 = vrot.slane %v3661_v40, 7  ;;  %v3429_v48 = vrot.slane %v3254_v53, 1  ;;  %v3531_v15 = vrot.slane %v3529_v31, 7  ;;  %v3665_v52 = vshrl.u32 %v3427_v63, 16 }
  0xfa   : > { %v3640_v26 = vsel %vm360_vm1, %v3632_v22, %v3639_v36  ;;  %v3668_v11 = vshll.u32 %v3427_v63, 16  ;;  %v3692_v33 = vshrl.u32 %v3428_v46, 16  ;;  %v3285_v62 = vshll.u32 %v7031_v20, 16 }
  0xfb   : > { %v3430_v4 = vsel %vm808_vm4, %v3428_v46, %v3429_v48  ;;  %v3534_v29 = vor.u32 %v3532_v13, %v3531_v15  ;;  %v3667_v61 = vrot.slane %v3665_v52, 7  ;;  %v3288_v55 = vshrl.u32 %v7031_v20, 16 }
  0xfc   : > { %v3696_v50 = vshrl.u32 %v3430_v4, 16  ;;  %v3699_v56 = vshll.u32 %v3430_v4, 16  ;;  %v3694_v38 = vrot.slane %v3692_v33, 7  ;;  %v3431_v1 = vrot.slane %v7071_v42, 1 }
  0xfd   : > { %4233 = vmatmul.mubr.bf16.gmra.mrb[100].mxu0 %v3492_v32  ;;  %v3549_v32 = vshrl.u32 %v3221_v8, 16  ;;  %v3535_v58 = vsel %vm360_vm1, %v3527_v37, %v3534_v29  ;;  %v3670_v60 = vor.u32 %v3668_v11, %v3667_v61  ;;  %v3287_v28 = vrot.slane %v3285_v62, 1 }
  0xfe   : > { %5807 = vmatmul.mubr.bf16.gmra.mrb[72].mxu1 %v3640_v26  ;;  %v3698_v17 = vrot.slane %v3696_v50, 7  ;;  %4240 = vmatprep.mubr.bf16.mxu0 %v3535_v58  ;;  %v3552_v5 = vrot.slane %v3288_v55, 7  ;;  %v3432_v10 = vrot.slane %v3255_v43, 1  ;;  %v3723_v0 = vshrl.u32 %v3431_v1, 16 }
  0xff   : > { %v3551_v18 = vrot.slane %v3549_v32, 7  ;;  %v3671_v24 = vsel %vm360_vm1, %v3663_v16, %v3670_v60  ;;  %v3434_v20 = vrot.slane %v7075_v34, 1  ;;  %v3290_v47 = vor.u32 %v3288_v55, %v3287_v28 }
 0x100   : > { %5810 = vmatprep.mubr.bf16.mxu1 %v3671_v24  ;;  %v3556_v12 = vshrl.u32 %v3287_v28, 16  ;;  %v3553_v14 = vor.u32 %v3552_v5, %v3285_v62  ;;  %v3433_v54 = vsel %vm808_vm4, %v3431_v1, %v3432_v10  ;;  %v3725_v22 = vrot.slane %v3723_v0, 7  ;;  %v3258_v62 = vld [vmem:[#allocation2 + $0x148] sm:$0x1]  ;;  %v7096_v28 = vld [vmem:[#allocation2 + $0x140] sm:$0xff] }
 0x101   : > { %v5413_v41 = vpop.f32.mrb[0].mxu1  ;;  %v3727_v44 = vshrl.u32 %v3433_v54, 16  ;;  %v3730_v57 = vshll.u32 %v3433_v54, 16  ;;  %v3560_v27 = vshrl.u32 %v3290_v47, 16  ;;  %v3563_v35 = vshll.u32 %v3290_v47, 16 }
 0x102   : > { %v5414_v3 = vpop.f32.mrb[1].mxu1  ;;  %v3558_v23 = vrot.slane %v3556_v12, 7  ;;  %v3554_v53 = vsel %vm360_vm1, %v3551_v18, %v3553_v14  ;;  %v3754_v2 = vshrl.u32 %v3434_v20, 16  ;;  %v3292_v40 = vshll.u32 %v7040_v21, 16 }
 0x103   : > { %v5416_v25 = vpop.f32.mrb[2].mxu1  ;;  %v7067_v49 = vadd.f32 %v5414_v3, %v5413_v41  ;;  %v3701_v41 = vor.u32 %v3699_v56, %v3698_v17  ;;  %v3256_v3 = vld [vmem:[#allocation2 + $0x118] sm:$0x1]  ;;  %v3562_v46 = vrot.slane %v3560_v27, 7  ;;  %v3295_v36 = vshrl.u32 %v7040_v21, 16 }
 0x104   : > { %v5417_v39 = vpop.f32.mrb[3].mxu1  ;;  %v3435_v59 = vrot.slane %v3256_v3, 1  ;;  %v3437_v31 = vrot.slane %v7083_v7, 1  ;;  %v3756_v48 = vrot.slane %v3754_v2, 7  ;;  %v3294_v26 = vrot.slane %v3292_v40, 1 }
 0x105   : > { %v7069_v19 = vadd.f32 %v5417_v39, %v5416_v25  ;;  %v3702_v51 = vsel %vm360_vm1, %v3694_v38, %v3701_v41  ;;  %v3223_v25 = vld [vmem:[#allocation2 + $0x90] sm:$0x80]  ;;  %4241 = vmatmul.mubr.bf16.gmra.mrb[104].mxu0 %v3523_v45  ;;  %v3729_v39 = vrot.slane %v3727_v44, 7  ;;  %v3565_v52 = vor.u32 %v3563_v35, %v3562_v46  ;;  %v3257_v38 = vld [vmem:[#allocation2 + $0x130] sm:$0x1] }
 0x106   : > { %5811 = vmatmul.mubr.bf16.gmra.mrb[76].mxu1 %v3702_v51  ;;  %v3580_v37 = vshrl.u32 %v3223_v25, 16  ;;  %v5277_v13 = vpop.f32.mrb[0].mxu0  ;;  %v3436_v16 = vsel %vm808_vm4, %v3434_v20, %v3435_v59  ;;  %v3297_v43 = vor.u32 %v3295_v36, %v3294_v26  ;;  %v3587_v17 = vshrl.u32 %v3294_v26, 16  ;;  %v3225_v26 = vld [vmem:[#allocation2 + $0xa8] sm:$0x80] }
 0x107   : > { %v3732_v63 = vor.u32 %v3730_v57, %v3729_v39  ;;  %v5278_v15 = vpop.f32.mrb[1].mxu0  ;;  %v3758_v11 = vshrl.u32 %v3436_v16, 16  ;;  %v3761_v8 = vshll.u32 %v3436_v16, 16  ;;  %v3566_v32 = vsel %vm360_vm1, %v3558_v23, %v3565_v52 }
 0x108   : > { %v3582_v33 = vrot.slane %v3580_v37, 7  ;;  %v7090_v29 = vadd.f32 %v5278_v15, %v5277_v13  ;;  %v5280_v61 = vpop.f32.mrb[2].mxu0  ;;  %v3583_v1 = vrot.slane %v3295_v36, 7  ;;  %4248 = vmatprep.mubr.bf16.mxu0 %v3566_v32  ;;  %v3591_v10 = vshrl.u32 %v3297_v43, 16 }
 0x109   : > { %v5419_v45 = vpop.f32.mrb[4].mxu1  ;;  %v3733_v21 = vsel %vm360_vm1, %v3725_v22, %v3732_v63  ;;  %v5281_v55 = vpop.f32.mrb[3].mxu0  ;;  %v3760_v58 = vrot.slane %v3758_v11, 7  ;;  %v3594_v24 = vshll.u32 %v3297_v43, 16  ;;  %v3589_v0 = vrot.slane %v3587_v17, 7 }
 0x10a   : > { %v5420_v4 = vpop.f32.mrb[5].mxu1  ;;  %5814 = vmatprep.mubr.bf16.mxu1 %v3733_v21  ;;  %v7098_v18 = vadd.f32 %v5281_v55, %v5280_v61  ;;  %v3584_v20 = vor.u32 %v3583_v1, %v3292_v40  ;;  %v3438_v47 = vrot.slane %v3257_v38, 1  ;;  %v3593_v12 = vrot.slane %v3591_v10, 7  ;;  %v7114_v61 = vld [vmem:[#allocation2 + $0x158] sm:$0xff]  ;;  %v3259_v38 = vld [vmem:[#allocation2 + $0x160] sm:$0x1] }
 0x10b   : > { %v7093_v50 = vadd.f32 %v5420_v4, %v5419_v45  ;;  %v5422_v56 = vpop.f32.mrb[6].mxu1  ;;  %v3763_v41 = vor.u32 %v3761_v8, %v3760_v58  ;;  %v3785_v14 = vshrl.u32 %v3437_v31, 16  ;;  %v3440_v54 = vrot.slane %v7096_v28, 1 }
 0x10c   : > { %v5423_v60 = vpop.f32.mrb[7].mxu1  ;;  %v3441_v3 = vrot.slane %v3258_v62, 1  ;;  %v3585_v22 = vsel %vm360_vm1, %v3582_v33, %v3584_v20  ;;  %v3439_v44 = vsel %vm808_vm4, %v3437_v31, %v3438_v47  ;;  %v3299_v57 = vshll.u32 %v7047_v9, 16 }
 0x10d   : > { %v7100_v5 = vadd.f32 %v5423_v60, %v5422_v56  ;;  %4249 = vmatmul.mubr.bf16.gmra.mrb[108].mxu0 %v3554_v53  ;;  %v3764_v51 = vsel %vm360_vm1, %v3756_v48, %v3763_v41  ;;  %v3596_v23 = vor.u32 %v3594_v24, %v3593_v12  ;;  %v3787_v27 = vrot.slane %v3785_v14, 7  ;;  %v7121_v60 = vld [vmem:[#allocation2 + $0x170] sm:$0xff]  ;;  %v3260_v41 = vld [vmem:[#allocation2 + $0x178] sm:$0x1] }
 0x10e   : > { %5815 = vmatmul.mubr.bf16.gmra.mrb[80].mxu1 %v3764_v51  ;;  %v3789_v35 = vshrl.u32 %v3439_v44, 16  ;;  %v3792_v53 = vshll.u32 %v3439_v44, 16  ;;  %v3442_v2 = vsel %vm808_vm4, %v3440_v54, %v3441_v3  ;;  %v3816_v40 = vshrl.u32 %v3440_v54, 16 }
 0x10f   : > { %v3301_v36 = vrot.slane %v3299_v57, 1  ;;  %v3302_v37 = vshrl.u32 %v7047_v9, 16  ;;  %v3597_v63 = vsel %vm360_vm1, %v3589_v0, %v3596_v23  ;;  %v3820_v16 = vshrl.u32 %v3442_v2, 16 }
 0x110   : > { %v5283_v25 = vpop.f32.mrb[4].mxu0  ;;  %v3791_v45 = vrot.slane %v3789_v35, 7  ;;  %4256 = vmatprep.mubr.bf16.mxu0 %v3597_v63  ;;  %v3818_v52 = vrot.slane %v3816_v40, 7  ;;  %v3823_v11 = vshll.u32 %v3442_v2, 16  ;;  %v3611_v58 = vshrl.u32 %v3225_v26, 16 }
 0x111   : > { %v5425_v39 = vpop.f32.mrb[8].mxu1  ;;  %v5284_v59 = vpop.f32.mrb[5].mxu0  ;;  %v3304_v33 = vor.u32 %v3302_v37, %v3301_v36  ;;  %v3822_v56 = vrot.slane %v3820_v16, 7  ;;  %v3618_v62 = vshrl.u32 %v3301_v36, 16  ;;  %v3614_v10 = vrot.slane %v3302_v37, 7 }
 0x112   : > { %v5426_v46 = vpop.f32.mrb[9].mxu1  ;;  %v7109_v13 = vadd.f32 %v5284_v59, %v5283_v25  ;;  %v5286_v31 = vpop.f32.mrb[6].mxu0  ;;  %v3794_v21 = vor.u32 %v3792_v53, %v3791_v45  ;;  %v3443_v24 = vrot.slane %v7114_v61, 1  ;;  %v3613_v47 = vrot.slane %v3611_v58, 7  ;;  %v3227_v37 = vld [vmem:[#allocation2 + $0xc0] sm:$0x80] }
 0x113   : > { %v5428_v48 = vpop.f32.mrb[10].mxu1  ;;  %v5287_v15 = vpop.f32.mrb[7].mxu0  ;;  %v7112_v8 = vadd.f32 %v5426_v46, %v5425_v39  ;;  %v3622_v55 = vshrl.u32 %v3304_v33, 16  ;;  %v3625_v32 = vshll.u32 %v3304_v33, 16  ;;  %v3825_v1 = vor.u32 %v3823_v11, %v3822_v56  ;;  %v3261_v56 = vld [vmem:[#allocation2 + $0x190] sm:$0x1] }
 0x114   : > { %v5429_v4 = vpop.f32.mrb[11].mxu1  ;;  %v7116_v9 = vadd.f32 %v5287_v15, %v5286_v31  ;;  %v3795_v17 = vsel %vm360_vm1, %v3787_v27, %v3794_v21  ;;  %v3620_v0 = vrot.slane %v3618_v62, 7  ;;  %v3444_v12 = vrot.slane %v3259_v38, 1  ;;  %v7141_v15 = vld [vmem:[#allocation2 + $0x188] sm:$0xff] }
 0x115   : > { %v7118_v43 = vadd.f32 %v5429_v4, %v5428_v48  ;;  %4257 = vmatmul.mubr.bf16.gmra.mrb[112].mxu0 %v3585_v22  ;;  %5818 = vmatprep.mubr.bf16.mxu1 %v3795_v17  ;;  %v3624_v20 = vrot.slane %v3622_v55, 7  ;;  %v3826_v54 = vsel %vm360_vm1, %v3818_v52, %v3825_v1  ;;  %v3615_v3 = vor.u32 %v3614_v10, %v3299_v57  ;;  %v7144_v52 = vld [vmem:[%s7130_s20] sm:$0xff]  ;;  %v7149_v38 = vld [vmem:[%s7130_s20 + $0x8] sm:$0xff] }
 0x116   : > { %v3847_v51 = vshrl.u32 %v3443_v24, 16  ;;  %v3446_v44 = vrot.slane %v7121_v60, 1  ;;  %5819 = vmatmul.mubr.bf16.gmra.mrb[84].mxu1 %v3826_v54  ;;  %v3445_v27 = vsel %vm808_vm4, %v3443_v24, %v3444_v12  ;;  %v3447_v35 = vrot.slane %v3260_v41, 1 }
 0x117   : > { %v3627_v23 = vor.u32 %v3625_v32, %v3624_v20  ;;  %v3306_v39 = vshll.u32 %v7050_v30, 16  ;;  %v3616_v40 = vsel %vm360_vm1, %v3613_v47, %v3615_v3  ;;  %v3851_v46 = vshrl.u32 %v3445_v27, 16 }
 0x118   : > { %v5289_v14 = vpop.f32.mrb[8].mxu0  ;;  %v3849_v57 = vrot.slane %v3847_v51, 7  ;;  %v3854_v45 = vshll.u32 %v3445_v27, 16  ;;  %v3448_v16 = vsel %vm808_vm4, %v3446_v44, %v3447_v35  ;;  %v3878_v48 = vshrl.u32 %v3446_v44, 16  ;;  %v7160_v44 = vld [vmem:[#allocation2 + $0x8] sm:$0xff] }
 0x119   : > { %v5431_v22 = vpop.f32.mrb[12].mxu1  ;;  %v5290_v25 = vpop.f32.mrb[9].mxu0  ;;  %v3628_v63 = vsel %vm360_vm1, %v3620_v0, %v3627_v23  ;;  %v3853_v4 = vrot.slane %v3851_v46, 7  ;;  %v3882_v33 = vshrl.u32 %v3448_v16, 16  ;;  %v3885_v21 = vshll.u32 %v3448_v16, 16 }
 0x11a   : > { %v5432_v53 = vpop.f32.mrb[13].mxu1  ;;  %v7136_v59 = vadd.f32 %v5290_v25, %v5289_v14  ;;  %v5292_v2 = vpop.f32.mrb[10].mxu0  ;;  %4264 = vmatprep.mubr.bf16.mxu0 %v3628_v63  ;;  %v3880_v62 = vrot.slane %v3878_v48, 7  ;;  %v3308_v58 = vrot.slane %v3306_v39, 1  ;;  %v3309_v10 = vshrl.u32 %v7050_v30, 16 }
 0x11b   : > { %v5434_v36 = vpop.f32.mrb[14].mxu1  ;;  %v5293_v31 = vpop.f32.mrb[11].mxu0  ;;  %v7151_v55 = vadd.f32 %v5432_v53, %v5431_v22  ;;  %v3856_v17 = vor.u32 %v3854_v45, %v3853_v4  ;;  %v3884_v1 = vrot.slane %v3882_v33, 7  ;;  %v3642_v24 = vshrl.u32 %v3227_v37, 16  ;;  %v3262_v22 = vld [vmem:[#allocation2 + $0x1a8] sm:$0x1] }
 0x11c   : > { %v5435_v26 = vpop.f32.mrb[15].mxu1  ;;  %v7146_v11 = vadd.f32 %v5293_v31, %v5292_v2  ;;  %v3649_v41 = vshrl.u32 %v3308_v58, 16  ;;  %v3449_v0 = vrot.slane %v7141_v15, 1  ;;  %v3450_v20 = vrot.slane %v3261_v56, 1 }
 0x11d   : > { %4265 = vmatmul.mubr.bf16.gmra.mrb[116].mxu0 %v3616_v40  ;;  %v7153_v32 = vadd.f32 %v5435_v26, %v5434_v36  ;;  %v4578_v47 = vpack.c.bf16 %v7149_v38, %v7144_v52  ;;  %v3857_v14 = vsel %vm360_vm1, %v3849_v57, %v3856_v17  ;;  %v3887_v54 = vor.u32 %v3885_v21, %v3884_v1 }
 0x11e   : > { %v3311_v3 = vor.u32 %v3309_v10, %v3308_v58  ;;  %v3452_v25 = vrot.slane %v7160_v44, 1  ;;  %5822 = vmatprep.mubr.bf16.mxu1 %v3857_v14  ;;  %v3644_v23 = vrot.slane %v3642_v24, 7  ;;  %v3645_v27 = vrot.slane %v3309_v10, 7  ;;  %v3229_v24 = vld [vmem:[#allocation2 + $0xd8] sm:$0x80] }
 0x11f   : > { %v3451_v35 = vsel %vm808_vm4, %v3449_v0, %v3450_v20  ;;  %v3909_v53 = vshrl.u32 %v3449_v0, 16  ;;  %v3888_v57 = vsel %vm360_vm1, %v3880_v62, %v3887_v54  ;;  %v3651_v45 = vrot.slane %v3649_v41, 7 }
 0x120   : > { %v5295_v12 = vpop.f32.mrb[12].mxu0  ;;  %v3653_v36 = vshrl.u32 %v3311_v3, 16  ;;  %v3656_v37 = vshll.u32 %v3311_v3, 16  ;;  %5823 = vmatmul.mubr.bf16.gmra.mrb[88].mxu1 %v3888_v57  ;;  %v3646_v16 = vor.u32 %v3645_v27, %v3306_v39  ;;  %v3913_v48 = vshrl.u32 %v3451_v35, 16 }
 0x121   : > { %v5437_v51 = vpop.f32.mrb[16].mxu1  ;;  %v5296_v30 = vpop.f32.mrb[13].mxu0  ;;  %v3916_v26 = vshll.u32 %v3451_v35, 16  ;;  %v3453_v56 = vrot.slane %v3262_v22, 1  ;;  %v3940_v58 = vshrl.u32 %v3452_v25, 16  ;;  %v3911_v17 = vrot.slane %v3909_v53, 7 }
 0x122   : > { %v5438_v2 = vpop.f32.mrb[17].mxu1  ;;  %v7164_v40 = vadd.f32 %v5296_v30, %v5295_v12  ;;  %v5298_v46 = vpop.f32.mrb[14].mxu0  ;;  %v3655_v21 = vrot.slane %v3653_v36, 7  ;;  %v3915_v1 = vrot.slane %v3913_v48, 7  ;;  %v3647_v20 = vsel %vm360_vm1, %v3644_v23, %v3646_v16 }
 0x123   : > { %v5440_v31 = vpop.f32.mrb[18].mxu1  ;;  %v5299_v63 = vpop.f32.mrb[15].mxu0  ;;  %v7169_v10 = vadd.f32 %v5438_v2, %v5437_v51  ;;  %v3454_v39 = vsel %vm808_vm4, %v3452_v25, %v3453_v56  ;;  %v3313_v41 = vshll.u32 %v7058_v6, 16  ;;  %v3316_v3 = vshrl.u32 %v7058_v6, 16 }
 0x124   : > { %v5441_v4 = vpop.f32.mrb[19].mxu1  ;;  %v7167_v33 = vadd.f32 %v5299_v63, %v5298_v46  ;;  %v3658_v0 = vor.u32 %v3656_v37, %v3655_v21  ;;  %v3918_v12 = vor.u32 %v3916_v26, %v3915_v1  ;;  %v3944_v14 = vshrl.u32 %v3454_v39, 16 }
 0x125   : > { %v7171_v62 = vadd.f32 %v5441_v4, %v5440_v31  ;;  %v3947_v54 = vshll.u32 %v3454_v39, 16  ;;  %v3942_v51 = vrot.slane %v3940_v58, 7  ;;  %v3315_v27 = vrot.slane %v3313_v41, 1  ;;  %v4549_v39 = vld [vmem:[%s7130_s20 + $0x18] sm:$0xff] }
 0x126   : > { %v3659_v22 = vsel %vm360_vm1, %v3651_v45, %v3658_v0  ;;  %v3673_v35 = vshrl.u32 %v3229_v24, 16  ;;  %v3919_v2 = vsel %vm360_vm1, %v3911_v17, %v3918_v12  ;;  %v3946_v57 = vrot.slane %v3944_v14, 7 }
 0x127   : > { %4272 = vmatprep.mubr.bf16.mxu0 %v3659_v22  ;;  %v3676_v25 = vrot.slane %v3316_v3, 7  ;;  %v3320_v36 = vshll.u32 %v7071_v42, 16  ;;  %5826 = vmatprep.mubr.bf16.mxu1 %v3919_v2  ;;  %v3318_v31 = vor.u32 %v3316_v3, %v3315_v27  ;;  %v3680_v63 = vshrl.u32 %v3315_v27, 16  ;;  %v3231_v22 = vld [vmem:[#allocation2 + $0xf0] sm:$0x80] }
 0x128   : > { %v5301_v30 = vpop.f32.mrb[16].mxu0  ;;  %4273 = vmatmul.mubr.bf16.gmra.mrb[120].mxu0 %v3647_v20  ;;  %v3949_v16 = vor.u32 %v3947_v54, %v3946_v57  ;;  %v3675_v26 = vrot.slane %v3673_v35, 7  ;;  %v4548_v20 = vld [vmem:[%s7130_s20 + $0x10] sm:$0xff]  ;;  %v3323_v14 = vshrl.u32 %v7071_v42, 16  ;;  %v3330_v27 = vshrl.u32 %v7075_v34, 16  ;;  %v4550_v57 = vld [vmem:[%s7130_s20 + $0x20] sm:$0xff] }
 0x129   : > { %v5443_v53 = vpop.f32.mrb[20].mxu1  ;;  %v5302_v23 = vpop.f32.mrb[17].mxu0  ;;  %v3322_v56 = vrot.slane %v3320_v36, 1  ;;  %v3684_v17 = vshrl.u32 %v3318_v31, 16  ;;  %v3687_v1 = vshll.u32 %v3318_v31, 16  ;;  %v3677_v24 = vor.u32 %v3676_v25, %v3313_v41  ;;  %v4551_v25 = vld [vmem:[%s7130_s20 + $0x28] sm:$0xff] }
 0x12a   : > { %v5444_v46 = vpop.f32.mrb[21].mxu1  ;;  %v7180_v37 = vadd.f32 %v5302_v23, %v5301_v30  ;;  %v5304_v6 = vpop.f32.mrb[18].mxu0  ;;  %v3950_v0 = vsel %vm360_vm1, %v3942_v51, %v3949_v16  ;;  %v3682_v54 = vrot.slane %v3680_v63, 7  ;;  %v3327_v30 = vshll.u32 %v7075_v34, 16 }
 0x12b   : > { %v5446_v45 = vpop.f32.mrb[22].mxu1  ;;  %v5305_v48 = vpop.f32.mrb[19].mxu0  ;;  %v7182_v4 = vadd.f32 %v5444_v46, %v5443_v53  ;;  %5827 = vmatmul.mubr.bf16.gmra.mrb[92].mxu1 %v3950_v0  ;;  %v3686_v3 = vrot.slane %v3684_v17, 7  ;;  %v3325_v41 = vor.u32 %v3323_v14, %v3322_v56  ;;  %v3711_v51 = vshrl.u32 %v3322_v56, 16 }
 0x12c   : > { %v5447_v21 = vpop.f32.mrb[23].mxu1  ;;  %v7186_v58 = vadd.f32 %v5305_v48, %v5304_v6  ;;  %5832 = vmatprep.mubr.msk.bf16.mxu1 %vm4595_vm8, %v4578_v47  ;;  %v3678_v53 = vsel %vm360_vm1, %v3675_v26, %v3677_v24  ;;  %v4579_v23 = vpack.c.bf16 %v4549_v39, %v4548_v20  ;;  %v3329_v6 = vrot.slane %v3327_v30, 1 }
 0x12d   : > { %v7191_v12 = vadd.f32 %v5447_v21, %v5446_v45  ;;  %v3689_v35 = vor.u32 %v3687_v1, %v3686_v3  ;;  %v3715_v63 = vshrl.u32 %v3325_v41, 16  ;;  %v3718_v52 = vshll.u32 %v3325_v41, 16 }
 0x12e   : > { %v3704_v38 = vshrl.u32 %v3231_v22, 16  ;;  %v3707_v47 = vrot.slane %v3323_v14, 7  ;;  %v3332_v17 = vor.u32 %v3330_v27, %v3329_v6  ;;  %v3713_v24 = vrot.slane %v3711_v51, 7  ;;  %v4553_v51 = vld [vmem:[%s7130_s20 + $0x38] sm:$0xff] }
 0x12f   : > { %v3690_v16 = vsel %vm360_vm1, %v3682_v54, %v3689_v35  ;;  %v3717_v0 = vrot.slane %v3715_v63, 7  ;;  %v4580_v20 = vpack.c.bf16 %v4551_v25, %v4550_v57  ;;  %v3742_v3 = vshrl.u32 %v3329_v6, 16  ;;  %v3233_v63 = vld [vmem:[#allocation2 + $0x108] sm:$0x80] }
 0x130   : > { %v5307_v2 = vpop.f32.mrb[20].mxu0  ;;  %4280 = vmatprep.mubr.bf16.mxu0 %v3690_v16  ;;  %v3746_v22 = vshrl.u32 %v3332_v17, 16  ;;  %v3749_v41 = vshll.u32 %v3332_v17, 16  ;;  %v7710_v25 = vshll.u32 %v7083_v7, 16  ;;  %v3337_v6 = vshrl.u32 %v7083_v7, 16  ;;  %v4555_v16 = vld [vmem:[%s7130_s20 + $0x48] sm:$0xff] }
 0x131   : > { %v5449_v46 = vpop.f32.mrb[24].mxu1  ;;  %v5308_v31 = vpop.f32.mrb[21].mxu0  ;;  %4281 = vmatmul.mubr.bf16.gmra.mrb[124].mxu0 %v3678_v53  ;;  %v3720_v35 = vor.u32 %v3718_v52, %v3717_v0  ;;  %v3744_v57 = vrot.slane %v3742_v3, 7 }
 0x132   : > { %v5450_v45 = vpop.f32.mrb[25].mxu1  ;;  %v7206_v48 = vadd.f32 %v5308_v31, %v5307_v2  ;;  %v5310_v21 = vpop.f32.mrb[22].mxu0  ;;  %v3706_v2 = vrot.slane %v3704_v38, 7  ;;  %v4552_v31 = vld [vmem:[%s7130_s20 + $0x30] sm:$0xff]  ;;  %v3748_v53 = vrot.slane %v3746_v22, 7  ;;  %v3735_v38 = vshrl.u32 %v3233_v63, 16 }
 0x133   : > { %v7208_v26 = vadd.f32 %v5450_v45, %v5449_v46  ;;  %v5452_v56 = vpop.f32.mrb[26].mxu1  ;;  %v5311_v1 = vpop.f32.mrb[23].mxu0  ;;  %v3708_v46 = vor.u32 %v3707_v47, %v3320_v36  ;;  %5833 = vmatmul.mubr.msk.bf16.vlgmr.msra.gmra.mrb[64].mxu1 %vm4595_vm8, %v4579_v23  ;;  %v3721_v45 = vsel %vm360_vm1, %v3713_v24, %v3720_v35  ;;  %v4581_v36 = vpack.c.bf16 %v4553_v51, %v4552_v31  ;;  %v4554_v47 = vld [vmem:[%s7130_s20 + $0x40] sm:$0xff] }
 0x134   : > { %v5453_v39 = vpop.f32.mrb[27].mxu1  ;;  %v7210_v14 = vadd.f32 %v5311_v1, %v5310_v21  ;;  %5836 = vmatprep.mubr.msk.bf16.mxu1 %vm4595_vm8, %v4580_v20  ;;  %4288 = vmatprep.mubr.bf16.mxu0 %v3721_v45  ;;  %v3751_v52 = vor.u32 %v3749_v41, %v3748_v53  ;;  %v3336_v23 = vrot.slane %v7710_v25, 1  ;;  %v3738_v1 = vrot.slane %v3330_v27, 7 }
 0x135   : > { %v7212_v54 = vadd.f32 %v5453_v39, %v5452_v56  ;;  %v3709_v56 = vsel %vm360_vm1, %v3706_v2, %v3708_v46  ;;  %v7708_v24 = vshll.u32 %v7096_v28, 16  ;;  %v7709_v20 = vshrl.u32 %v7096_v28, 16 }
 0x136   : > { %v3752_v22 = vsel %vm360_vm1, %v3744_v57, %v3751_v52  ;;  %v3339_v31 = vor.u32 %v3337_v6, %v3336_v23  ;;  %v4582_v2 = vpack.c.bf16 %v4555_v16, %v4554_v47  ;;  %v3773_v27 = vshrl.u32 %v3336_v23, 16  ;;  %v3235_v52 = vld [vmem:[#allocation2 + $0x120] sm:$0x80]  ;;  %v4556_v47 = vld [vmem:[%s7130_s20 + $0x50] sm:$0xff]  ;;  %v4557_v16 = vld [vmem:[%s7130_s20 + $0x58] sm:$0xff] }
 0x137   : > { %7719 = vst [vmem:[#allocation3_spill] sm:$0xff] %v7212_v54  ;;  %v3343_v63 = vrot.slane %v7708_v24, 1  ;;  %v4583_v34 = vpack.c.bf16 %v4557_v16, %v4556_v47 }
 0x138   : > { %v5313_v42 = vpop.f32.mrb[24].mxu0  ;;  %v3780_v57 = vshll.u32 %v3339_v31, 16 }
 0x139   : > { %v5455_v21 = vpop.f32.mrb[28].mxu1  ;;  %v5314_v17 = vpop.f32.mrb[25].mxu0  ;;  %4289 = vmatmul.mubr.bf16.gmra.mrb[128].mxu0 %v3709_v56  ;;  %v3346_v23 = vor.u32 %v7709_v20, %v3343_v63  ;;  %v3775_v56 = vrot.slane %v3773_v27, 7 }
 0x13a   : > { %v5456_v0 = vpop.f32.mrb[29].mxu1  ;;  %v7230_v39 = vadd.f32 %v5314_v17, %v5313_v42  ;;  %v5316_v3 = vpop.f32.mrb[26].mxu0  ;;  %v3777_v42 = vshrl.u32 %v3339_v31, 16  ;;  %4296 = vmatprep.mubr.bf16.mxu0 %v3752_v22  ;;  %v3739_v17 = vor.u32 %v3738_v1, %v3327_v30  ;;  %v3769_v30 = vrot.slane %v3337_v6, 7  ;;  %v4558_v1 = vld [vmem:[%s7130_s20 + $0x60] sm:$0xff] }
 0x13b   : > { %v7233_v41 = vadd.f32 %v5456_v0, %v5455_v21  ;;  %v5458_v35 = vpop.f32.mrb[30].mxu1  ;;  %v5317_v51 = vpop.f32.mrb[27].mxu0  ;;  %v3737_v21 = vrot.slane %v3735_v38, 7  ;;  %5837 = vmatmul.mubr.msk.bf16.gmra.mrb[68].mxu1 %vm4595_vm8, %v4581_v36  ;;  %v7711_v38 = vshll.u32 %v7114_v61, 16  ;;  %v3811_v25 = vshll.u32 %v3346_v23, 16 }
 0x13c   : > { %v5459_v46 = vpop.f32.mrb[31].mxu1  ;;  %v7237_v53 = vadd.f32 %v5317_v51, %v5316_v3  ;;  %v3779_v0 = vrot.slane %v3777_v42, 7  ;;  %5840 = vmatprep.mubr.msk.bf16.mxu1 %vm4595_vm8, %v4582_v2  ;;  %v3766_v3 = vshrl.u32 %v3235_v52, 16  ;;  %v4559_v51 = vld [vmem:[%s7130_s20 + $0x68] sm:$0xff]  ;;  %v3804_v42 = vshrl.u32 %v3343_v63, 16 }
 0x13d   : > { %v7239_v45 = vadd.f32 %v5459_v46, %v5458_v35  ;;  %v3808_v35 = vshrl.u32 %v3346_v23, 16  ;;  %v3740_v20 = vsel %vm360_vm1, %v3737_v21, %v3739_v17  ;;  %v3350_v2 = vrot.slane %v7711_v38, 1 }
 0x13e   : > { %v3782_v31 = vor.u32 %v3780_v57, %v3779_v0  ;;  %v3768_v21 = vrot.slane %v3766_v3, 7  ;;  %v4584_v17 = vpack.c.bf16 %v4559_v51, %v4558_v1  ;;  %v7722_v63 = vshrl.u32 %v7114_v61, 16  ;;  %v4561_v3 = vld [vmem:[%s7130_s20 + $0x78] sm:$0xff] }
 0x13f   : > { %7720 = vst [vmem:[#allocation4_spill] sm:$0xff] %v7239_v45  ;;  %v3810_v16 = vrot.slane %v3808_v35, 7  ;;  %v4560_v35 = vld [vmem:[%s7130_s20 + $0x70] sm:$0xff]  ;;  %v3806_v51 = vrot.slane %v3804_v42, 7 }
 0x140   : > { %v5319_v22 = vpop.f32.mrb[28].mxu0  ;;  %v3783_v6 = vsel %vm360_vm1, %v3775_v56, %v3782_v31  ;;  %v3353_v23 = vor.u32 %v7722_v63, %v3350_v2  ;;  %v7712_v56 = vshll.u32 %v7121_v60, 16  ;;  %v3237_v31 = vld [vmem:[#allocation2 + $0x138] sm:$0x80]  ;;  %v3835_v63 = vshrl.u32 %v3350_v2, 16 }
 0x141   : > { %v5461_v46 = vpop.f32.mrb[32].mxu1  ;;  %v5320_v36 = vpop.f32.mrb[29].mxu0  ;;  %4297 = vmatmul.mubr.bf16.gmra.mrb[132].mxu0 %v3740_v20  ;;  %v3813_v20 = vor.u32 %v3811_v25, %v3810_v16 }
 0x142   : > { %v5462_v27 = vpop.f32.mrb[33].mxu1  ;;  %v7256_v52 = vadd.f32 %v5320_v36, %v5319_v22  ;;  %v5322_v54 = vpop.f32.mrb[30].mxu0  ;;  %v7723_v22 = vshll.u32 %v7083_v7, 16  ;;  %4304 = vmatprep.mubr.bf16.mxu0 %v3783_v6  ;;  %v3839_v1 = vshrl.u32 %v3353_v23, 16  ;;  %v7725_v6 = vshrl.u32 %v7096_v28, 16 }
 0x143   : > { %v7259_v57 = vadd.f32 %v5462_v27, %v5461_v46  ;;  %v5464_v47 = vpop.f32.mrb[34].mxu1  ;;  %v5323_v0 = vpop.f32.mrb[31].mxu0  ;;  %5841 = vmatmul.mubr.msk.bf16.gmra.mrb[72].mxu1 %vm4595_vm8, %v4583_v34  ;;  %v4585_v46 = vpack.c.bf16 %v4561_v3, %v4560_v35  ;;  %v3797_v27 = vshrl.u32 %v3237_v31, 16  ;;  %v4563_v34 = vld [vmem:[%s7130_s20 + $0x88] sm:$0xff]  ;;  %v7727_v31 = vshrl.u32 %v7121_v60, 16 }
 0x144   : > { %v5465_v24 = vpop.f32.mrb[35].mxu1  ;;  %v7263_v38 = vadd.f32 %v5323_v0, %v5322_v54  ;;  %v3770_v36 = vor.u32 %v3769_v30, %v7723_v22  ;;  %v7275_v54 = vrot.slane %v7712_v56, 1  ;;  %5844 = vmatprep.mubr.msk.bf16.mxu1 %vm4595_vm8, %v4584_v17  ;;  %v4562_v0 = vld [vmem:[%s7130_s20 + $0x80] sm:$0xff]  ;;  %v3841_v22 = vrot.slane %v3839_v1, 7 }
 0x145   : > { %7721 = vst [vmem:[#allocation5_spill] sm:$0xff] %v7259_v57  ;;  %v7267_v45 = vadd.f32 %v5465_v24, %v5464_v47  ;;  %v3800_v47 = vrot.slane %v7725_v6, 7  ;;  %v3842_v56 = vshll.u32 %v3353_v23, 16  ;;  %v4586_v2 = vpack.c.bf16 %v4563_v34, %v4562_v0  ;;  %v4564_v57 = vld [vmem:[%s7130_s20 + $0x90] sm:$0xff] }
 0x146   : > { %v3771_v24 = vsel %vm360_vm1, %v3768_v21, %v3770_v36  ;;  %v3814_v36 = vsel %vm360_vm1, %v3806_v51, %v3813_v20  ;;  %v3360_v6 = vor.u32 %v7727_v31, %v7275_v54  ;;  %v3799_v7 = vrot.slane %v3797_v27, 7  ;;  %v4565_v51 = vld [vmem:[%s7130_s20 + $0x98] sm:$0xff] }
 0x147   : > { %7724 = vst [vmem:[#allocation6_spill] sm:$0xff] %v7267_v45  ;;  %v3837_v20 = vrot.slane %v3835_v63, 7  ;;  %v7731_v0 = vshll.u32 %v7141_v15, 16  ;;  %v7732_v63 = vshrl.u32 %v7114_v61, 16 }
 0x148   : > { %v5325_v30 = vpop.f32.mrb[32].mxu0 }
 0x149   : > { %v5467_v42 = vpop.f32.mrb[36].mxu1  ;;  %v5326_v25 = vpop.f32.mrb[33].mxu0  ;;  %4305 = vmatmul.mubr.bf16.gmra.mrb[136].mxu0 %v3771_v24  ;;  %v7303_v34 = vrot.slane %v7731_v0, 1  ;;  %v3873_v0 = vshll.u32 %v3360_v6, 16 }
 0x14a   : > { %v5468_v16 = vpop.f32.mrb[37].mxu1  ;;  %v7285_v17 = vadd.f32 %v5326_v25, %v5325_v30  ;;  %v5328_v21 = vpop.f32.mrb[34].mxu0  ;;  %v7729_v30 = vshll.u32 %v7096_v28, 16  ;;  %4312 = vmatprep.mubr.bf16.mxu0 %v3814_v36  ;;  %v3870_v28 = vshrl.u32 %v3360_v6, 16  ;;  %v4567_v36 = vld [vmem:[%s7130_s20 + $0xa8] sm:$0xff] }
 0x14b   : > { %v7288_v35 = vadd.f32 %v5468_v16, %v5467_v42  ;;  %v5470_v3 = vpop.f32.mrb[38].mxu1  ;;  %v5329_v45 = vpop.f32.mrb[35].mxu0  ;;  %v3844_v42 = vor.u32 %v3842_v56, %v3841_v22  ;;  %v3239_v16 = vld [vmem:[#allocation2 + $0x150] sm:$0x80]  ;;  %5845 = vmatmul.mubr.msk.bf16.gmra.mrb[76].mxu1 %vm4595_vm8, %v4585_v46  ;;  %v3831_v56 = vrot.slane %v7732_v63, 7  ;;  %v4566_v22 = vld [vmem:[%s7130_s20 + $0xa0] sm:$0xff] }
 0x14c   : > { %7726 = vst [vmem:[#allocation7_spill] sm:$0xff] %v7285_v17  ;;  %v5471_v1 = vpop.f32.mrb[39].mxu1  ;;  %v7293_v23 = vadd.f32 %v5329_v45, %v5328_v21  ;;  %v3801_v25 = vor.u32 %v3800_v47, %v7729_v30  ;;  %v7713_v45 = vshrl.u32 %v7141_v15, 16  ;;  %5848 = vmatprep.mubr.msk.bf16.mxu1 %vm4595_vm8, %v4586_v2  ;;  %v4587_v47 = vpack.c.bf16 %v4565_v51, %v4564_v57 }
 0x14d   : > { %v7298_v17 = vadd.f32 %v5471_v1, %v5470_v3  ;;  %v3828_v21 = vshrl.u32 %v3239_v16, 16  ;;  %v3845_v1 = vsel %vm360_vm1, %v3837_v20, %v3844_v42  ;;  %v3866_v46 = vshrl.u32 %v7275_v54, 16 }
 0x14e   : > { %7728 = vst [vmem:[#allocation8_spill] sm:$0xff] %v7293_v23  ;;  %v3802_v24 = vsel %vm360_vm1, %v3799_v7, %v3801_v25  ;;  %v3367_v7 = vor.u32 %v7713_v45, %v7303_v34  ;;  %v3872_v16 = vrot.slane %v3870_v28, 7  ;;  %v7714_v63 = vshll.u32 %v7160_v44, 16  ;;  %v3241_v28 = vld [vmem:[#allocation2 + $0x168] sm:$0x80] }
 0x14f   : > { %7730 = vst [vmem:[#allocation9_spill] sm:$0xff] %v7298_v17  ;;  %v4588_v42 = vpack.c.bf16 %v4567_v36, %v4566_v22  ;;  %v3830_v45 = vrot.slane %v3828_v21, 7  ;;  %v3868_v22 = vrot.slane %v3866_v46, 7 }
 0x150   : > { %v5331_v27 = vpop.f32.mrb[36].mxu0  ;;  %v3875_v36 = vor.u32 %v3873_v0, %v3872_v16  ;;  %v3897_v16 = vshrl.u32 %v7303_v34, 16 }
 0x151   : > { %v5473_v3 = vpop.f32.mrb[40].mxu1  ;;  %v5332_v31 = vpop.f32.mrb[37].mxu0  ;;  %4313 = vmatmul.mubr.bf16.gmra.mrb[140].mxu0 %v3802_v24  ;;  %v7334_v24 = vrot.slane %v7714_v63, 1 }
 0x152   : > { %v5474_v30 = vpop.f32.mrb[41].mxu1  ;;  %v7318_v57 = vadd.f32 %v5332_v31, %v5331_v27  ;;  %v5334_v2 = vpop.f32.mrb[38].mxu0  ;;  %4320 = vmatprep.mubr.bf16.mxu0 %v3845_v1  ;;  %v7736_v27 = vshll.u32 %v7114_v61, 16  ;;  %v7737_v1 = vshrl.u32 %v7121_v60, 16 }
 0x153   : > { %v7320_v25 = vadd.f32 %v5474_v30, %v5473_v3  ;;  %v5476_v51 = vpop.f32.mrb[42].mxu1  ;;  %v5335_v20 = vpop.f32.mrb[39].mxu0  ;;  %v4568_v3 = vld [vmem:[%s7130_s20 + $0xb0] sm:$0xff]  ;;  %v4569_v30 = vld [vmem:[%s7130_s20 + $0xb8] sm:$0xff]  ;;  %5849 = vmatmul.mubr.msk.bf16.gmra.mrb[80].mxu1 %vm4595_vm8, %v4587_v47 }
 0x154   : > { %v5477_v17 = vpop.f32.mrb[43].mxu1  ;;  %v7323_v54 = vadd.f32 %v5335_v20, %v5334_v2  ;;  %v3832_v31 = vor.u32 %v3831_v56, %v7736_v27  ;;  %5852 = vmatprep.mubr.msk.bf16.mxu1 %vm4595_vm8, %v4588_v42  ;;  %v4589_v21 = vpack.c.bf16 %v4569_v30, %v4568_v3  ;;  %v3859_v56 = vshrl.u32 %v3241_v28, 16  ;;  %v4571_v20 = vld [vmem:[%s7130_s20 + $0xc8] sm:$0xff] }
 0x155   : > { %7733 = vst [vmem:[#allocation10_spill] sm:$0xff] %v7320_v25  ;;  %v7325_v6 = vadd.f32 %v5477_v17, %v5476_v51  ;;  %v3901_v25 = vshrl.u32 %v3367_v7, 16  ;;  %v3862_v2 = vrot.slane %v7737_v1, 7  ;;  %v4570_v51 = vld [vmem:[%s7130_s20 + $0xc0] sm:$0xff]  ;;  %v3876_v3 = vsel %vm360_vm1, %v3868_v22, %v3875_v36  ;;  %v4572_v36 = vld [vmem:[%s7130_s20 + $0xd0] sm:$0xff] }
 0x156   : > { %7734 = vst [vmem:[#allocation11_spill] sm:$0xff] %v7323_v54  ;;  %v3833_v47 = vsel %vm360_vm1, %v3830_v45, %v3832_v31  ;;  %v7738_v1 = vshrl.u32 %v7160_v44, 16  ;;  %v4590_v23 = vpack.c.bf16 %v4571_v20, %v4570_v51  ;;  %v3243_v51 = vld [vmem:[#allocation2 + $0x180] sm:$0x80] }
 0x157   : > { %7735 = vst [vmem:[#allocation12_spill] sm:$0xff] %v7325_v6  ;;  %v3903_v63 = vrot.slane %v3901_v25, 7  ;;  %v3904_v6 = vshll.u32 %v3367_v7, 16  ;;  %v3861_v7 = vrot.slane %v3859_v56, 7  ;;  %v7739_v25 = vshll.u32 %v7121_v60, 16  ;;  %v4574_v60 = vld [vmem:[%s7130_s20 + $0xe0] sm:$0xff] }
 0x158   : > { %v5337_v61 = vpop.f32.mrb[40].mxu0  ;;  %v3374_v45 = vor.u32 %v7738_v1, %v7334_v24  ;;  %v4575_v1 = vld [vmem:[%s7130_s20 + $0xe8] sm:$0xff] }
 0x159   : > { %v5479_v27 = vpop.f32.mrb[44].mxu1  ;;  %v5338_v46 = vpop.f32.mrb[41].mxu0  ;;  %4321 = vmatmul.mubr.bf16.gmra.mrb[144].mxu0 %v3833_v47 }
 0x15a   : > { %v5480_v0 = vpop.f32.mrb[45].mxu1  ;;  %v7344_v17 = vadd.f32 %v5338_v46, %v5337_v61  ;;  %v5340_v42 = vpop.f32.mrb[42].mxu0  ;;  %v3863_v61 = vor.u32 %v3862_v2, %v7739_v25  ;;  %4328 = vmatprep.mubr.bf16.mxu0 %v3876_v3  ;;  %v3899_v46 = vrot.slane %v3897_v16, 7  ;;  %v3932_v20 = vshrl.u32 %v3374_v45, 16 }
 0x15b   : > { %v7347_v30 = vadd.f32 %v5480_v0, %v5479_v27  ;;  %v5482_v28 = vpop.f32.mrb[46].mxu1  ;;  %v5341_v31 = vpop.f32.mrb[43].mxu0  ;;  %v4573_v27 = vld [vmem:[%s7130_s20 + $0xd8] sm:$0xff]  ;;  %v3906_v0 = vor.u32 %v3904_v6, %v3903_v63  ;;  %5853 = vmatmul.mubr.msk.bf16.gmra.mrb[84].mxu1 %vm4595_vm8, %v4589_v21  ;;  %v7741_v16 = vshrl.u32 %v7141_v15, 16  ;;  %v3928_v21 = vshrl.u32 %v7334_v24, 16 }
 0x15c   : > { %v5483_v54 = vpop.f32.mrb[47].mxu1  ;;  %v7352_v34 = vadd.f32 %v5341_v31, %v5340_v42  ;;  %5856 = vmatprep.mubr.msk.bf16.mxu1 %vm4595_vm8, %v4590_v23  ;;  %v3864_v47 = vsel %vm360_vm1, %v3861_v7, %v3863_v61  ;;  %v4591_v42 = vpack.c.bf16 %v4573_v27, %v4572_v36  ;;  %v3934_v61 = vrot.slane %v3932_v20, 7 }
 0x15d   : > { %v7356_v22 = vadd.f32 %v5483_v54, %v5482_v28  ;;  %v3907_v3 = vsel %vm360_vm1, %v3899_v46, %v3906_v0  ;;  %v3890_v28 = vshrl.u32 %v3243_v51, 16  ;;  %v3893_v63 = vrot.slane %v7741_v16, 7  ;;  %v3245_v16 = vld [vmem:[#allocation2 + $0x198] sm:$0x80] }
 0x15e   : > { %v3935_v36 = vshll.u32 %v3374_v45, 16  ;;  %v4576_v45 = vld [vmem:[%s7130_s20 + $0xf0] sm:$0xff] }
 0x15f   : > { %7740 = vst [vmem:[#allocation13_spill] sm:$0xff] %v7356_v22  ;;  %v4592_v22 = vpack.c.bf16 %v4575_v1, %v4574_v60  ;;  %v3892_v24 = vrot.slane %v3890_v28, 7  ;;  %v4577_v60 = vld [vmem:[%s7130_s20 + $0xf8] sm:$0xff] }
 0x160   : > { %v5343_v56 = vpop.f32.mrb[44].mxu0  ;;  %v3937_v20 = vor.u32 %v3935_v36, %v3934_v61 }
 0x161   : > { %v5485_v2 = vpop.f32.mrb[48].mxu1  ;;  %v5344_v54 = vpop.f32.mrb[45].mxu0  ;;  %4329 = vmatmul.mubr.bf16.gmra.mrb[148].mxu0 %v3864_v47 }
 0x162   : > { %v5486_v6 = vpop.f32.mrb[49].mxu1  ;;  %v7369_v31 = vadd.f32 %v5344_v54, %v5343_v56  ;;  %v5346_v23 = vpop.f32.mrb[46].mxu0  ;;  %4336 = vmatprep.mubr.bf16.mxu0 %v3907_v3  ;;  %v7742_v56 = vshll.u32 %v7141_v15, 16  ;;  %v7743_v3 = vshrl.u32 %v7160_v44, 16 }
 0x163   : > { %v7371_v25 = vadd.f32 %v5486_v6, %v5485_v2  ;;  %v5488_v7 = vpop.f32.mrb[50].mxu1  ;;  %v5347_v27 = vpop.f32.mrb[47].mxu0  ;;  %5857 = vmatmul.mubr.msk.bf16.gmra.mrb[88].mxu1 %vm4595_vm8, %v4591_v42  ;;  %v3930_v2 = vrot.slane %v3928_v21, 7  ;;  %v4593_v42 = vpack.c.bf16 %v4577_v60, %v4576_v45 }
 0x164   : > { %v5489_v46 = vpop.f32.mrb[51].mxu1  ;;  %v7373_v0 = vadd.f32 %v5347_v27, %v5346_v23  ;;  %v3894_v54 = vor.u32 %v3893_v63, %v7742_v56  ;;  %5860 = vmatprep.mubr.msk.bf16.mxu1 %vm4595_vm8, %v4592_v22  ;;  %v3924_v28 = vrot.slane %v7743_v3, 7 }
 0x165   : > { %v7375_v51 = vadd.f32 %v5489_v46, %v5488_v7  ;;  %v3921_v7 = vshrl.u32 %v3245_v16, 16  ;;  %v3938_v61 = vsel %vm360_vm1, %v3930_v2, %v3937_v20  ;;  %v7744_v16 = vshll.u32 %v7160_v44, 16 }
 0x166   : > { %v3895_v6 = vsel %vm360_vm1, %v3892_v24, %v3894_v54 }
 0x167   : > { %v3923_v54 = vrot.slane %v3921_v7, 7 }
 0x168   : > { %v5349_v1 = vpop.f32.mrb[48].mxu0 }
 0x169   : > { %v5491_v47 = vpop.f32.mrb[52].mxu1  ;;  %v5350_v23 = vpop.f32.mrb[49].mxu0  ;;  %4337 = vmatmul.mubr.bf16.gmra.mrb[152].mxu0 %v3895_v6 }
 0x16a   : > { %v5492_v15 = vpop.f32.mrb[53].mxu1  ;;  %v7386_v63 = vadd.f32 %v5350_v23, %v5349_v1  ;;  %v5352_v21 = vpop.f32.mrb[50].mxu0  ;;  %4344 = vmatprep.mubr.bf16.mxu0 %v3938_v61  ;;  %v3925_v1 = vor.u32 %v3924_v28, %v7744_v16 }
 0x16b   : > { %v7389_v36 = vadd.f32 %v5492_v15, %v5491_v47  ;;  %v5494_v22 = vpop.f32.mrb[54].mxu1  ;;  %v5353_v27 = vpop.f32.mrb[51].mxu0  ;;  %5861 = vmatmul.mubr.msk.bf16.gmra.mrb[92].mxu1 %vm4595_vm8, %v4593_v42 }
 0x16c   : > { %v5495_v46 = vpop.f32.mrb[55].mxu1  ;;  %v7391_v56 = vadd.f32 %v5353_v27, %v5352_v21  ;;  %v3926_v2 = vsel %vm360_vm1, %v3923_v54, %v3925_v1 }
 0x16d   : > { %v7393_v24 = vadd.f32 %v5495_v46, %v5494_v22 }
 0x170   : > { %v5355_v45 = vpop.f32.mrb[52].mxu0 }
 0x171   : > { %v5497_v60 = vpop.f32.mrb[56].mxu1  ;;  %v5356_v20 = vpop.f32.mrb[53].mxu0  ;;  %4345 = vmatmul.mubr.bf16.gmra.mrb[156].mxu0 %v3926_v2 }
 0x172   : > { %v5498_v47 = vpop.f32.mrb[57].mxu1  ;;  %v7399_v23 = vadd.f32 %v5356_v20, %v5355_v45  ;;  %v5358_v6 = vpop.f32.mrb[54].mxu0 }
 0x173   : > { %v7401_v3 = vadd.f32 %v5498_v47, %v5497_v60  ;;  %v5500_v15 = vpop.f32.mrb[58].mxu1  ;;  %v5359_v21 = vpop.f32.mrb[55].mxu0 }
 0x174   : > { %v5501_v61 = vpop.f32.mrb[59].mxu1  ;;  %v7403_v7 = vadd.f32 %v5359_v21, %v5358_v6 }
 0x175   : > { %7745 = vst [vmem:[#allocation14_spill] sm:$0xff] %v7401_v3  ;;  %v7405_v44 = vadd.f32 %v5501_v61, %v5500_v15 }
 0x177   : > { %7746 = vst [vmem:[#allocation15_spill] sm:$0xff] %v7405_v44 }
 0x178   : > { %v5361_v28 = vpop.f32.mrb[56].mxu0 }
 0x179   : > { %v5503_v42 = vpop.f32.mrb[60].mxu1  ;;  %v5362_v22 = vpop.f32.mrb[57].mxu0 }
 0x17a   : > { %v5504_v27 = vpop.f32.mrb[61].mxu1  ;;  %v7407_v46 = vadd.f32 %v5362_v22, %v5361_v28  ;;  %v5364_v54 = vpop.f32.mrb[58].mxu0 }
 0x17b   : > { %v7409_v16 = vadd.f32 %v5504_v27, %v5503_v42  ;;  %v5506_v1 = vpop.f32.mrb[62].mxu1  ;;  %v5365_v45 = vpop.f32.mrb[59].mxu0 }
 0x17c   : > { %v5507_v60 = vpop.f32.mrb[63].mxu1  ;;  %v7411_v20 = vadd.f32 %v5365_v45, %v5364_v54 }
 0x17d   : > { %v7413_v47 = vadd.f32 %v5507_v60, %v5506_v1 }
 0x180   : > { %v5367_v2 = vpop.f32.mrb[60].mxu0 }
 0x181   : > { %v5368_v6 = vpop.f32.mrb[61].mxu0 }
 0x182   : > { %v7415_v15 = vadd.f32 %v5368_v6, %v5367_v2  ;;  %v5370_v21 = vpop.f32.mrb[62].mxu0 }
 0x183   : > { %v5371_v61 = vpop.f32.mrb[63].mxu0 }
 0x184   : > { %v7417_v44 = vadd.f32 %v5371_v61, %v5370_v21 }
 0x188   : > { %v5704_v28 = vpop.f32.mrb[64].mxu0 }
 0x189   : > { %v2630_v22 = vadd.f32 %v5704_v28, %v7109_v13  ;;  %v2621_v42 = vpop.f32.mrb[65].mxu0 }
 0x18a   : > { %v2622_v27 = vadd.f32 %v7090_v29, %v2621_v42  ;;  %v5705_v3 = vpop.f32.mrb[66].mxu0 }
 0x18b   : > { %v7422_v54 = vadd.f32 %v7093_v50, %v2630_v22  ;;  %v2633_v1 = vadd.f32 %v5705_v3, %v7116_v9  ;;  %v2624_v45 = vpop.f32.mrb[67].mxu0 }
 0x18c   : > { %v7426_v60 = vadd.f32 %v7067_v49, %v2622_v27  ;;  %v2625_v2 = vadd.f32 %v7098_v18, %v2624_v45 }
 0x18d   : > { %v7430_v6 = vadd.f32 %v7100_v5, %v2633_v1 }
 0x18e   : > { %v7433_v13 = vadd.f32 %v7069_v19, %v2625_v2 }
 0x190   : > { %v5708_v21 = vpop.f32.mrb[68].mxu0 }
 0x191   : > { %v2646_v29 = vadd.f32 %v5708_v21, %v7164_v40  ;;  %v2637_v61 = vpop.f32.mrb[69].mxu0 }
 0x192   : > { %v2638_v50 = vadd.f32 %v7136_v59, %v2637_v61  ;;  %v5709_v28 = vpop.f32.mrb[70].mxu0 }
 0x193   : > { %v7438_v9 = vadd.f32 %v7151_v55, %v2646_v29  ;;  %v2649_v49 = vadd.f32 %v5709_v28, %v7167_v33  ;;  %v2640_v3 = vpop.f32.mrb[71].mxu0 }
 0x194   : > { %v7442_v18 = vadd.f32 %v7112_v8, %v2638_v50  ;;  %v2641_v5 = vadd.f32 %v7146_v11, %v2640_v3  ;;  %v7748_v50 = vld [vmem:[#allocation3_spill] sm:$0xff] }
 0x195   : > { %v7446_v19 = vadd.f32 %v7153_v32, %v2649_v49 }
 0x196   : > { %v7449_v40 = vadd.f32 %v7118_v43, %v2641_v5 }
 0x198   : > { %v5712_v22 = vpop.f32.mrb[72].mxu0 }
 0x199   : > { %v2662_v59 = vadd.f32 %v5712_v22, %v7206_v48  ;;  %v2653_v42 = vpop.f32.mrb[73].mxu0 }
 0x19a   : > { %v2654_v55 = vadd.f32 %v7180_v37, %v2653_v42  ;;  %v5713_v27 = vpop.f32.mrb[74].mxu0 }
 0x19b   : > { %v7454_v33 = vadd.f32 %v7182_v4, %v2662_v59  ;;  %v2665_v8 = vadd.f32 %v5713_v27, %v7210_v14  ;;  %v2656_v1 = vpop.f32.mrb[75].mxu0 }
 0x19c   : > { %v7458_v11 = vadd.f32 %v7169_v10, %v2654_v55  ;;  %v2657_v32 = vadd.f32 %v7186_v58, %v2656_v1  ;;  %v7752_v55 = vld [vmem:[#allocation8_spill] sm:$0xff] }
 0x19d   : > { %v7462_v43 = vadd.f32 %v7191_v12, %v2665_v8  ;;  %v7753_v8 = vld [vmem:[#allocation9_spill] sm:$0xff] }
 0x19e   : > { %v7465_v48 = vadd.f32 %v7171_v62, %v2657_v32  ;;  %v7747_v62 = vld [vmem:[#allocation4_spill] sm:$0xff]  ;;  %v7754_v32 = vld [vmem:[#allocation6_spill] sm:$0xff] }
 0x1a0   : > { %v5716_v45 = vpop.f32.mrb[76].mxu0 }
 0x1a1   : > { %v2678_v37 = vadd.f32 %v5716_v45, %v7256_v52  ;;  %v2669_v2 = vpop.f32.mrb[77].mxu0 }
 0x1a2   : > { %v2670_v4 = vadd.f32 %v7230_v39, %v2669_v2  ;;  %v5717_v21 = vpop.f32.mrb[78].mxu0 }
 0x1a3   : > { %v7470_v14 = vadd.f32 %v7233_v41, %v2678_v37  ;;  %v2681_v10 = vadd.f32 %v5717_v21, %v7263_v38  ;;  %v2672_v29 = vpop.f32.mrb[79].mxu0  ;;  %v7749_v41 = vld [vmem:[#allocation7_spill] sm:$0xff] }
 0x1a4   : > { %v7474_v58 = vadd.f32 %v7208_v26, %v2670_v4  ;;  %v2673_v12 = vadd.f32 %v7237_v53, %v2672_v29  ;;  %v7750_v26 = vld [vmem:[#allocation11_spill] sm:$0xff]  ;;  %v7751_v53 = vld [vmem:[#allocation5_spill] sm:$0xff] }
 0x1a5   : > { %v7478_v61 = vadd.f32 %v7747_v62, %v2681_v10 }
 0x1a6   : > { %v7481_v52 = vadd.f32 %v7748_v50, %v2673_v12  ;;  %v7755_v12 = vld [vmem:[#allocation10_spill] sm:$0xff] }
 0x1a8   : > { %v5720_v28 = vpop.f32.mrb[80].mxu0 }
 0x1a9   : > { %v2694_v39 = vadd.f32 %v5720_v28, %v7318_v57  ;;  %v2685_v49 = vpop.f32.mrb[81].mxu0  ;;  %v7756_v28 = vld [vmem:[#allocation13_spill] sm:$0xff] }
 0x1aa   : > { %v2686_v3 = vadd.f32 %v7749_v41, %v2685_v49  ;;  %v5721_v5 = vpop.f32.mrb[82].mxu0  ;;  %v7757_v49 = vld [vmem:[#allocation12_spill] sm:$0xff] }
 0x1ab   : > { %v7486_v38 = vadd.f32 %v7288_v35, %v2694_v39  ;;  %v2697_v22 = vadd.f32 %v5721_v5, %v7750_v26  ;;  %v2688_v59 = vpop.f32.mrb[83].mxu0 }
 0x1ac   : > { %v7490_v42 = vadd.f32 %v7751_v53, %v2686_v3  ;;  %v2689_v27 = vadd.f32 %v7752_v55, %v2688_v59 }
 0x1ad   : > { %v7494_v1 = vadd.f32 %v7753_v8, %v2697_v22 }
 0x1ae   : > { %v7497_v57 = vadd.f32 %v7754_v32, %v2689_v27 }
 0x1b0   : > { %v5724_v45 = vpop.f32.mrb[84].mxu0 }
 0x1b1   : > { %v2710_v37 = vadd.f32 %v5724_v45, %v7369_v31  ;;  %v2701_v2 = vpop.f32.mrb[85].mxu0 }
 0x1b2   : > { %v2702_v35 = vadd.f32 %v7344_v17, %v2701_v2  ;;  %v5725_v4 = vpop.f32.mrb[86].mxu0 }
 0x1b3   : > { %v7502_v21 = vadd.f32 %v7347_v30, %v2710_v37  ;;  %v2713_v10 = vadd.f32 %v5725_v4, %v7373_v0  ;;  %v2704_v29 = vpop.f32.mrb[87].mxu0  ;;  %v7759_v37 = vld [vmem:[#allocation15_spill] sm:$0xff] }
 0x1b4   : > { %v7506_v62 = vadd.f32 %v7755_v12, %v2702_v35  ;;  %v2705_v50 = vadd.f32 %v7352_v34, %v2704_v29 }
 0x1b5   : > { %v7510_v39 = vadd.f32 %v7756_v28, %v2713_v10 }
 0x1b6   : > { %v7513_v31 = vadd.f32 %v7757_v49, %v2705_v50 }
 0x1b8   : > { %v5728_v41 = vpop.f32.mrb[88].mxu0 }
 0x1b9   : > { %v2726_v17 = vadd.f32 %v5728_v41, %v7399_v23  ;;  %v2717_v3 = vpop.f32.mrb[89].mxu0 }
 0x1ba   : > { %v2718_v30 = vadd.f32 %v7386_v63, %v2717_v3  ;;  %v5729_v5 = vpop.f32.mrb[90].mxu0 }
 0x1bb   : > { %v7518_v0 = vadd.f32 %v7389_v36, %v2726_v17  ;;  %v2729_v26 = vadd.f32 %v5729_v5, %v7403_v7  ;;  %v2720_v22 = vpop.f32.mrb[91].mxu0 }
 0x1bc   : > { %v7522_v34 = vadd.f32 %v7371_v25, %v2718_v30  ;;  %v2721_v59 = vadd.f32 %v7391_v56, %v2720_v22  ;;  %v7758_v56 = vld [vmem:[#allocation14_spill] sm:$0xff] }
 0x1bd   : > { %v7526_v53 = vadd.f32 %v7393_v24, %v2729_v26 }
 0x1be   : > { %v7529_v23 = vadd.f32 %v7375_v51, %v2721_v59 }
 0x1c0   : > { %v5732_v55 = vpop.f32.mrb[92].mxu0 }
 0x1c1   : > { %v2742_v63 = vadd.f32 %v5732_v55, %v7415_v15  ;;  %v2733_v27 = vpop.f32.mrb[93].mxu0 }
 0x1c2   : > { %v2734_v36 = vadd.f32 %v7407_v46, %v2733_v27  ;;  %v5733_v8 = vpop.f32.mrb[94].mxu0 }
 0x1c3   : > { %v7534_v7 = vadd.f32 %v7409_v16, %v2742_v63  ;;  %v2745_v25 = vadd.f32 %v5733_v8, %v7417_v44  ;;  %v2736_v32 = vpop.f32.mrb[95].mxu0 }
 0x1c4   : > { %v7538_v45 = vadd.f32 %v7758_v56, %v2734_v36  ;;  %v2737_v24 = vadd.f32 %v7411_v20, %v2736_v32 }
 0x1c5   : > { %v7542_v51 = vadd.f32 %v7413_v47, %v2745_v25 }
 0x1c6   : > { %v7545_v15 = vadd.f32 %v7759_v37, %v2737_v24 }
 0x1c8   : > { %v5549_v2 = vpop.f32.mrb[96].mxu0 }
 0x1c9   : > { %v5550_v46 = vpop.f32.mrb[97].mxu0 }
 0x1ca   : > { %v5551_v35 = vadd.f32 %v5550_v46, %v5549_v2  ;;  %v5552_v4 = vpop.f32.mrb[98].mxu0 }
 0x1cb   : > { %v5553_v16 = vpop.f32.mrb[99].mxu0 }
 0x1cc   : > { %v5554_v10 = vadd.f32 %v5553_v16, %v5552_v4  ;;  %v5870_v44 = vadd.f32 %v5551_v35, %v7426_v60 }
 0x1ce   : > { %v7549_v29 = vadd.f32 %v5554_v10, %v7433_v13 }
 0x1d0   : > { %v5555_v12 = vpop.f32.mrb[100].mxu0 }
 0x1d1   : > { %v5556_v50 = vpop.f32.mrb[101].mxu0 }
 0x1d2   : > { %v5557_v20 = vadd.f32 %v5556_v50, %v5555_v12  ;;  %v5558_v28 = vpop.f32.mrb[102].mxu0 }
 0x1d3   : > { %v5559_v47 = vpop.f32.mrb[103].mxu0 }
 0x1d4   : > { %v5560_v49 = vadd.f32 %v5559_v47, %v5558_v28  ;;  %v5866_v41 = vadd.f32 %v5557_v20, %v7422_v54 }
 0x1d6   : > { %v5874_v17 = vadd.f32 %v5560_v49, %v7430_v6 }
 0x1d8   : > { %v5561_v3 = vpop.f32.mrb[104].mxu0 }
 0x1d9   : > { %v5562_v30 = vpop.f32.mrb[105].mxu0 }
 0x1da   : > { %v5563_v5 = vadd.f32 %v5562_v30, %v5561_v3  ;;  %v5564_v26 = vpop.f32.mrb[106].mxu0 }
 0x1db   : > { %v5565_v22 = vpop.f32.mrb[107].mxu0 }
 0x1dc   : > { %v5566_v59 = vadd.f32 %v5565_v22, %v5564_v26  ;;  %v7554_v60 = vadd.f32 %v5563_v5, %v7442_v18 }
 0x1de   : > { %v7557_v13 = vadd.f32 %v5566_v59, %v7449_v40 }
 0x1e0   : > { %v5567_v55 = vpop.f32.mrb[108].mxu0 }
 0x1e1   : > { %v5568_v63 = vpop.f32.mrb[109].mxu0 }
 0x1e2   : > { %v5569_v27 = vadd.f32 %v5568_v63, %v5567_v55  ;;  %v5570_v36 = vpop.f32.mrb[110].mxu0 }
 0x1e3   : > { %v5571_v8 = vpop.f32.mrb[111].mxu0 }
 0x1e4   : > { %v5572_v54 = vadd.f32 %v5571_v8, %v5570_v36  ;;  %v5882_v6 = vadd.f32 %v5569_v27, %v7438_v9 }
 0x1e6   : > { %v7561_v25 = vadd.f32 %v5572_v54, %v7446_v19 }
 0x1e8   : > { %v5573_v32 = vpop.f32.mrb[112].mxu0 }
 0x1e9   : > { %v5574_v56 = vpop.f32.mrb[113].mxu0 }
 0x1ea   : > { %v5575_v24 = vadd.f32 %v5574_v56, %v5573_v32  ;;  %v5576_v37 = vpop.f32.mrb[114].mxu0 }
 0x1eb   : > { %v5577_v18 = vpop.f32.mrb[115].mxu0 }
 0x1ec   : > { %v5578_v2 = vadd.f32 %v5577_v18, %v5576_v37  ;;  %v7564_v40 = vadd.f32 %v5575_v24, %v7458_v11 }
 0x1ee   : > { %v7567_v46 = vadd.f32 %v5578_v2, %v7465_v48 }
 0x1f0   : > { %v5579_v35 = vpop.f32.mrb[116].mxu0 }
 0x1f1   : > { %v5580_v4 = vpop.f32.mrb[117].mxu0 }
 0x1f2   : > { %v5581_v16 = vadd.f32 %v5580_v4, %v5579_v35  ;;  %v5582_v10 = vpop.f32.mrb[118].mxu0 }
 0x1f3   : > { %v5583_v9 = vpop.f32.mrb[119].mxu0 }
 0x1f4   : > { %v5584_v12 = vadd.f32 %v5583_v9, %v5582_v10  ;;  %v7570_v19 = vadd.f32 %v5581_v16, %v7454_v33 }
 0x1f6   : > { %v7573_v50 = vadd.f32 %v5584_v12, %v7462_v43  ;;  %v7584_v43 = vld [vmem:[%s7704_s4] ss:$0 sm:$0xff] }
 0x1fb   : > { %v5585_v20 = vpop.f32.mrb[120].mxu0 }
 0x1fc   : > { %v5586_v28 = vpop.f32.mrb[121].mxu0 }
 0x1fd   : > { %v5587_v11 = vadd.f32 %v5586_v28, %v5585_v20  ;;  %v5588_v47 = vpop.f32.mrb[122].mxu0 }
 0x1fe   : > { %v5589_v49 = vpop.f32.mrb[123].mxu0 }
 0x1ff   : > { %v5590_v48 = vadd.f32 %v5589_v49, %v5588_v47  ;;  %v7576_v3 = vadd.f32 %v5587_v11, %v7474_v58 }
 0x201   : > { %v7579_v30 = vadd.f32 %v5590_v48, %v7481_v52 }
 0x204   : > { %v5591_v5 = vpop.f32.mrb[124].mxu0 }
 0x205   : > { %v5592_v26 = vpop.f32.mrb[125].mxu0 }
 0x206   : > { %v5593_v33 = vadd.f32 %v5592_v26, %v5591_v5  ;;  %v5594_v22 = vpop.f32.mrb[126].mxu0  ;;  %v5834_v59 = vpop.f32.mrb[64].mxu1 }
 0x207   : > { %v5595_v55 = vpop.f32.mrb[127].mxu0  ;;  %v5867_v63 = vadd.f32 %v5866_v41, %v5834_v59  ;;  %v4682_v27 = vpop.f32.mrb[65].mxu1 }
 0x208   : > { %v5596_v58 = vadd.f32 %v5595_v55, %v5594_v22  ;;  %v5871_v52 = vadd.f32 %v5870_v44, %v4682_v27  ;;  %v5835_v36 = vpop.f32.mrb[66].mxu1  ;;  %v7594_v8 = vadd.f32 %v5593_v33, %v7470_v14 }
 0x209   : > { %v4850_v54 = vadd.f32 %v5867_v63, %v7584_v43  ;;  %v5875_v41 = vadd.f32 %v5874_v17, %v5835_v36  ;;  %v4685_v32 = vpop.f32.mrb[67].mxu1 }
 0x20a   : > { %v4848_v56 = vadd.f32 %v5871_v52, %v7584_v43  ;;  %v5879_v24 = vadd.f32 %v7549_v29, %v4685_v32  ;;  %v7600_v37 = vadd.f32 %v5596_v58, %v7478_v61 }
 0x20b   : > { %4882 = vst [vmem:[%s7591_s28 + $0x10] sm:$0xff] %v4850_v54  ;;  %v4851_v18 = vadd.f32 %v5875_v41, %v7584_v43 }
 0x20c   : > { %4880 = vst [vmem:[%s7591_s28] sm:$0xff] %v4848_v56  ;;  %v4849_v44 = vadd.f32 %v5879_v24, %v7584_v43  ;;  %v5597_v2 = vpop.f32.mrb[128].mxu0 }
 0x20d   : > { %4883 = vst [vmem:[%s7591_s28 + $0x18] sm:$0xff] %v4851_v18  ;;  %v5598_v14 = vpop.f32.mrb[129].mxu0 }
 0x20e   : > { %4881 = vst [vmem:[%s7591_s28 + $0x8] sm:$0xff] %v4849_v44  ;;  %v5599_v35 = vadd.f32 %v5598_v14, %v5597_v2  ;;  %v5600_v17 = vpop.f32.mrb[130].mxu0  ;;  %v5838_v4 = vpop.f32.mrb[68].mxu1 }
 0x20f   : > { %v5601_v16 = vpop.f32.mrb[131].mxu0  ;;  %v5883_v29 = vadd.f32 %v5882_v6, %v5838_v4  ;;  %v4698_v10 = vpop.f32.mrb[69].mxu1 }
 0x210   : > { %v5602_v61 = vadd.f32 %v5601_v16, %v5600_v17  ;;  %v5887_v9 = vadd.f32 %v7554_v60, %v4698_v10  ;;  %v5839_v12 = vpop.f32.mrb[70].mxu1  ;;  %v7610_v20 = vadd.f32 %v5599_v35, %v7490_v42 }
 0x211   : > { %v4854_v28 = vadd.f32 %v5883_v29, %v7584_v43  ;;  %v5891_v11 = vadd.f32 %v7561_v25, %v5839_v12  ;;  %v4701_v47 = vpop.f32.mrb[71].mxu1 }
 0x212   : > { %v4852_v49 = vadd.f32 %v5887_v9, %v7584_v43  ;;  %v5895_v48 = vadd.f32 %v7557_v13, %v4701_v47  ;;  %v7617_v6 = vadd.f32 %v5602_v61, %v7497_v57 }
 0x213   : > { %4886 = vst [vmem:[%s7591_s28 + $0x30] sm:$0xff] %v4854_v28  ;;  %v4855_v60 = vadd.f32 %v5891_v11, %v7584_v43 }
 0x214   : > { %4884 = vst [vmem:[%s7591_s28 + $0x20] sm:$0xff] %v4852_v49  ;;  %v4853_v5 = vadd.f32 %v5895_v48, %v7584_v43  ;;  %v5603_v42 = vpop.f32.mrb[132].mxu0 }
 0x215   : > { %4887 = vst [vmem:[%s7591_s28 + $0x38] sm:$0xff] %v4855_v60  ;;  %v5604_v26 = vpop.f32.mrb[133].mxu0 }
 0x216   : > { %4885 = vst [vmem:[%s7591_s28 + $0x28] sm:$0xff] %v4853_v5  ;;  %v5605_v33 = vadd.f32 %v5604_v26, %v5603_v42  ;;  %v5606_v25 = vpop.f32.mrb[134].mxu0  ;;  %v5842_v22 = vpop.f32.mrb[72].mxu1 }
 0x217   : > { %v5607_v59 = vpop.f32.mrb[135].mxu0  ;;  %v5899_v13 = vadd.f32 %v7570_v19, %v5842_v22  ;;  %v4714_v57 = vpop.f32.mrb[73].mxu1 }
 0x218   : > { %v5608_v55 = vadd.f32 %v5607_v59, %v5606_v25  ;;  %v5903_v63 = vadd.f32 %v7564_v40, %v4714_v57  ;;  %v5843_v27 = vpop.f32.mrb[74].mxu1  ;;  %v5930_v58 = vadd.f32 %v5605_v33, %v7486_v38 }
 0x219   : > { %v4858_v52 = vadd.f32 %v5899_v13, %v7584_v43  ;;  %v5907_v36 = vadd.f32 %v7573_v50, %v5843_v27  ;;  %v4717_v54 = vpop.f32.mrb[75].mxu1 }
 0x21a   : > { %v4856_v41 = vadd.f32 %v5903_v63, %v7584_v43  ;;  %v5911_v32 = vadd.f32 %v7567_v46, %v4717_v54  ;;  %v5938_v19 = vadd.f32 %v5608_v55, %v7494_v1 }
 0x21b   : > { %4890 = vst [vmem:[%s7591_s28 + $0x50] sm:$0xff] %v4858_v52  ;;  %v4859_v56 = vadd.f32 %v5907_v36, %v7584_v43 }
 0x21c   : > { %4888 = vst [vmem:[%s7591_s28 + $0x40] sm:$0xff] %v4856_v41  ;;  %v4857_v40 = vadd.f32 %v5911_v32, %v7584_v43  ;;  %v5609_v24 = vpop.f32.mrb[136].mxu0 }
 0x21d   : > { %4891 = vst [vmem:[%s7591_s28 + $0x58] sm:$0xff] %v4859_v56  ;;  %v5610_v38 = vpop.f32.mrb[137].mxu0 }
 0x21e   : > { %4889 = vst [vmem:[%s7591_s28 + $0x48] sm:$0xff] %v4857_v40  ;;  %v5611_v18 = vadd.f32 %v5610_v38, %v5609_v24  ;;  %v5612_v50 = vpop.f32.mrb[138].mxu0  ;;  %v5846_v44 = vpop.f32.mrb[76].mxu1 }
 0x21f   : > { %v5613_v2 = vpop.f32.mrb[139].mxu0  ;;  %v5915_v46 = vadd.f32 %v7594_v8, %v5846_v44  ;;  %v4730_v14 = vpop.f32.mrb[77].mxu1 }
 0x220   : > { %v5614_v1 = vadd.f32 %v5613_v2, %v5612_v50  ;;  %v5919_v35 = vadd.f32 %v7576_v3, %v4730_v14  ;;  %v5847_v17 = vpop.f32.mrb[78].mxu1  ;;  %v5950_v4 = vadd.f32 %v5611_v18, %v7506_v62 }
 0x221   : > { %v4862_v16 = vadd.f32 %v5915_v46, %v7584_v43  ;;  %v5923_v29 = vadd.f32 %v7600_v37, %v5847_v17  ;;  %v4733_v10 = vpop.f32.mrb[79].mxu1 }
 0x222   : > { %v4860_v61 = vadd.f32 %v5919_v35, %v7584_v43  ;;  %v5927_v9 = vadd.f32 %v7579_v30, %v4733_v10  ;;  %v5958_v8 = vadd.f32 %v5614_v1, %v7513_v31 }
 0x223   : > { %4894 = vst [vmem:[%s7591_s28 + $0x70] sm:$0xff] %v4862_v16  ;;  %v4863_v12 = vadd.f32 %v5923_v29, %v7584_v43 }
 0x224   : > { %4892 = vst [vmem:[%s7591_s28 + $0x60] sm:$0xff] %v4860_v61  ;;  %v4861_v3 = vadd.f32 %v5927_v9, %v7584_v43  ;;  %v5615_v28 = vpop.f32.mrb[140].mxu0 }
 0x225   : > { %4895 = vst [vmem:[%s7591_s28 + $0x78] sm:$0xff] %v4863_v12  ;;  %v5616_v62 = vpop.f32.mrb[141].mxu0 }
 0x226   : > { %4893 = vst [vmem:[%s7591_s28 + $0x68] sm:$0xff] %v4861_v3  ;;  %v5617_v11 = vadd.f32 %v5616_v62, %v5615_v28  ;;  %v5618_v37 = vpop.f32.mrb[142].mxu0  ;;  %v5850_v47 = vpop.f32.mrb[80].mxu1 }
 0x227   : > { %v5619_v49 = vpop.f32.mrb[143].mxu0  ;;  %v5931_v48 = vadd.f32 %v5930_v58, %v5850_v47  ;;  %v4746_v30 = vpop.f32.mrb[81].mxu1 }
 0x228   : > { %v5620_v31 = vadd.f32 %v5619_v49, %v5618_v37  ;;  %v5935_v60 = vadd.f32 %v7610_v20, %v4746_v30  ;;  %v5851_v5 = vpop.f32.mrb[82].mxu1  ;;  %v5946_v42 = vadd.f32 %v5617_v11, %v7502_v21 }
 0x229   : > { %v4866_v26 = vadd.f32 %v5931_v48, %v7584_v43  ;;  %v5939_v33 = vadd.f32 %v5938_v19, %v5851_v5  ;;  %v4749_v25 = vpop.f32.mrb[83].mxu1 }
 0x22a   : > { %v4864_v22 = vadd.f32 %v5935_v60, %v7584_v43  ;;  %v5943_v59 = vadd.f32 %v7617_v6, %v4749_v25  ;;  %v5954_v13 = vadd.f32 %v5620_v31, %v7510_v39 }
 0x22b   : > { %4898 = vst [vmem:[%s7591_s28 + $0x90] sm:$0xff] %v4866_v26  ;;  %v4867_v57 = vadd.f32 %v5939_v33, %v7584_v43 }
 0x22c   : > { %4896 = vst [vmem:[%s7591_s28 + $0x80] sm:$0xff] %v4864_v22  ;;  %v4865_v20 = vadd.f32 %v5943_v59, %v7584_v43  ;;  %v5621_v55 = vpop.f32.mrb[144].mxu0 }
 0x22d   : > { %4899 = vst [vmem:[%s7591_s28 + $0x98] sm:$0xff] %v4867_v57  ;;  %v5622_v63 = vpop.f32.mrb[145].mxu0 }
 0x22e   : > { %4897 = vst [vmem:[%s7591_s28 + $0x88] sm:$0xff] %v4865_v20  ;;  %v5623_v21 = vadd.f32 %v5622_v63, %v5621_v55  ;;  %v5624_v27 = vpop.f32.mrb[146].mxu0  ;;  %v5854_v58 = vpop.f32.mrb[84].mxu1 }
 0x22f   : > { %v5625_v52 = vpop.f32.mrb[147].mxu0  ;;  %v5947_v36 = vadd.f32 %v5946_v42, %v5854_v58  ;;  %v4762_v6 = vpop.f32.mrb[85].mxu1 }
 0x230   : > { %v5626_v39 = vadd.f32 %v5625_v52, %v5624_v27  ;;  %v5951_v54 = vadd.f32 %v5950_v4, %v4762_v6  ;;  %v5855_v41 = vpop.f32.mrb[86].mxu1  ;;  %v5966_v32 = vadd.f32 %v5623_v21, %v7522_v34 }
 0x231   : > { %v4870_v19 = vadd.f32 %v5947_v36, %v7584_v43  ;;  %v5955_v56 = vadd.f32 %v5954_v13, %v5855_v41  ;;  %v4765_v40 = vpop.f32.mrb[87].mxu1 }
 0x232   : > { %v4868_v24 = vadd.f32 %v5951_v54, %v7584_v43  ;;  %v5959_v38 = vadd.f32 %v5958_v8, %v4765_v40  ;;  %v5974_v18 = vadd.f32 %v5626_v39, %v7529_v23 }
 0x233   : > { %4902 = vst [vmem:[%s7591_s28 + $0xb0] sm:$0xff] %v4870_v19  ;;  %v4871_v50 = vadd.f32 %v5955_v56, %v7584_v43 }
 0x234   : > { %4900 = vst [vmem:[%s7591_s28 + $0xa0] sm:$0xff] %v4868_v24  ;;  %v4869_v44 = vadd.f32 %v5959_v38, %v7584_v43  ;;  %v5627_v2 = vpop.f32.mrb[148].mxu0 }
 0x235   : > { %4903 = vst [vmem:[%s7591_s28 + $0xb8] sm:$0xff] %v4871_v50  ;;  %v5628_v46 = vpop.f32.mrb[149].mxu0 }
 0x236   : > { %4901 = vst [vmem:[%s7591_s28 + $0xa8] sm:$0xff] %v4869_v44  ;;  %v5629_v34 = vadd.f32 %v5628_v46, %v5627_v2  ;;  %v5630_v14 = vpop.f32.mrb[150].mxu0  ;;  %v5858_v1 = vpop.f32.mrb[88].mxu1 }
 0x237   : > { %v5631_v35 = vpop.f32.mrb[151].mxu0  ;;  %v4778_v17 = vpop.f32.mrb[89].mxu1 }
 0x238   : > { %v5632_v4 = vadd.f32 %v5631_v35, %v5630_v14  ;;  %v5962_v23 = vadd.f32 %v5629_v34, %v7518_v0  ;;  %v5967_v16 = vadd.f32 %v5966_v32, %v4778_v17  ;;  %v5859_v29 = vpop.f32.mrb[90].mxu1 }
 0x239   : > { %v4781_v10 = vpop.f32.mrb[91].mxu1 }
 0x23a   : > { %v5963_v61 = vadd.f32 %v5962_v23, %v5858_v1  ;;  %v4872_v9 = vadd.f32 %v5967_v16, %v7584_v43  ;;  %v5970_v8 = vadd.f32 %v5632_v4, %v7526_v53  ;;  %v5975_v12 = vadd.f32 %v5974_v18, %v4781_v10 }
 0x23c   : > { %v4874_v3 = vadd.f32 %v5963_v61, %v7584_v43  ;;  %4904 = vst [vmem:[%s7591_s28 + $0xc0] sm:$0xff] %v4872_v9  ;;  %v5971_v28 = vadd.f32 %v5970_v8, %v5859_v29  ;;  %v4873_v62 = vadd.f32 %v5975_v12, %v7584_v43  ;;  %v5633_v11 = vpop.f32.mrb[152].mxu0 }
 0x23d   : > { %v5634_v37 = vpop.f32.mrb[153].mxu0 }
 0x23e   : > { %4906 = vst [vmem:[%s7591_s28 + $0xd0] sm:$0xff] %v4874_v3  ;;  %v4875_v0 = vadd.f32 %v5971_v28, %v7584_v43  ;;  %4905 = vst [vmem:[%s7591_s28 + $0xc8] sm:$0xff] %v4873_v62  ;;  %v5635_v47 = vadd.f32 %v5634_v37, %v5633_v11  ;;  %v5636_v49 = vpop.f32.mrb[154].mxu0  ;;  %v5862_v48 = vpop.f32.mrb[92].mxu1 }
 0x23f   : > { %v5637_v30 = vpop.f32.mrb[155].mxu0  ;;  %v4794_v53 = vpop.f32.mrb[93].mxu1 }
 0x240   : > { %4907 = vst [vmem:[%s7591_s28 + $0xd8] sm:$0xff] %v4875_v0  ;;  %v5638_v31 = vadd.f32 %v5637_v30, %v5636_v49  ;;  %v5982_v60 = vadd.f32 %v5635_v47, %v7538_v45  ;;  %v5863_v5 = vpop.f32.mrb[94].mxu1 }
 0x241   : > { %v4797_v42 = vpop.f32.mrb[95].mxu1 }
 0x242   : > { %v5983_v26 = vadd.f32 %v5982_v60, %v4794_v53  ;;  %v5990_v33 = vadd.f32 %v5638_v31, %v7545_v15 }
 0x244   : > { %v4876_v25 = vadd.f32 %v5983_v26, %v7584_v43  ;;  %v5991_v22 = vadd.f32 %v5990_v33, %v4797_v42  ;;  %v5639_v59 = vpop.f32.mrb[156].mxu0 }
 0x245   : > { %v5640_v13 = vpop.f32.mrb[157].mxu0 }
 0x246   : > { %4908 = vst [vmem:[%s7591_s28 + $0xe0] sm:$0xff] %v4876_v25  ;;  %v4877_v57 = vadd.f32 %v5991_v22, %v7584_v43  ;;  %v5641_v20 = vadd.f32 %v5640_v13, %v5639_v59  ;;  %v5642_v55 = vpop.f32.mrb[158].mxu0 }
 0x247   : > { %v5643_v63 = vpop.f32.mrb[159].mxu0 }
 0x248   : > { %4909 = vst [vmem:[%s7591_s28 + $0xe8] sm:$0xff] %v4877_v57  ;;  %v5978_v45 = vadd.f32 %v5641_v20, %v7534_v7  ;;  %v5644_v21 = vadd.f32 %v5643_v63, %v5642_v55 }
 0x24a   : > { %v5979_v27 = vadd.f32 %v5978_v45, %v5862_v48  ;;  %v5986_v15 = vadd.f32 %v5644_v21, %v7542_v51 }
 0x24c   : > { %v4878_v58 = vadd.f32 %v5979_v27, %v7584_v43  ;;  %v5987_v52 = vadd.f32 %v5986_v15, %v5863_v5 }
 0x24e   : > { %4910 = vst [vmem:[%s7591_s28 + $0xf0] sm:$0xff] %v4878_v58  ;;  %v4879_v36 = vadd.f32 %v5987_v52, %v7584_v43 }
 0x250   : > { %4911 = vst [vmem:[%s7591_s28 + $0xf8] sm:$0xff] %v4879_v36 }
 0x251 PF: > { %s17_s24 = sadd.s32 1, %s6157_s24  }
 0x252   : > { %p14_p4 = scmp.ge.s32.totalorder %s17_s24, 4  }
 0x254   :  { %16 = sbr.rel (!%p14_p4) target bundleno = 1 (0x1), region = 86 }

</bundles_post_ra>
